<compile_context>
chip_gen: v7x
topology: tpu7x:2x2x1
jax: 0.10.0
libtpu: 0.0.40
codegen_flags: <defaults>
</compile_context>

<pallas_src>
import functools

import jax
import jax.numpy as jnp
from jax.experimental import pallas as pl
from jax.experimental.pallas import tpu as pltpu


def _round_up(x, m):
    return (x + m - 1) // m * m


_VMEM_BUDGET = 20 * 1024 * 1024        # block working set target (v7x-safe)
_VMEM_LIMIT = 32 * 1024 * 1024         # scoped VMEM limit passed to Mosaic
_KN2ROW_SLAB_LIMIT = 6 * 1024 * 1024   # per-image slab limit for fused epilogue


# ---------------------------------------------------------------------------
# Pallas kernel: full-K bf16 matmul, f32 accumulation, optional fused ReLU
# ---------------------------------------------------------------------------
def _matmul_kernel(a_ref, b_ref, o_ref, *, apply_relu):
    r = jnp.dot(a_ref[...], b_ref[...], preferred_element_type=jnp.float32)
    if apply_relu:
        r = jnp.maximum(r, 0.0)  # ReLU on the f32 accumulator (v5e-friendly)
    o_ref[...] = r.astype(o_ref.dtype)


def _choose_tiles(M, K, N, out_bytes):
    """Large tiles, full N when legal, bounded by the VMEM budget."""
    if N <= 512 or N % 128 != 0:
        tn = N  # block dim equal to the full array dim is always legal
    else:
        tn = 512
        while N % tn:
            tn -= 128

    def vmem(tm):
        # 2x double-buffered A, B, out blocks (B is resident when grid_n == 1,
        # but budget conservatively).
        return 2 * (tm * K * 2) + 2 * (K * tn * 2) + 2 * (tm * tn * out_bytes)

    tm = 1024
    while tm > 16 and vmem(tm) > _VMEM_BUDGET:
        tm //= 2
    tm = min(tm, _round_up(M, 16))
    tm = _round_up(tm, 16)  # bf16 sublane packing
    return tm, tn


def pallas_matmul(a, b, apply_relu=False, out_dtype=jnp.float32):
    """a: (M, K), b: (K, N) -> (M, N) out_dtype; bf16 on the MXU, f32 accum.

    K is taken as a single full block (no K padding / masking needed); the
    grid is (M-tiles, N-tiles), both parallel.
    """
    M, K = a.shape
    K2, N = b.shape
    assert K == K2
    a = a.astype(jnp.bfloat16)
    b = b.astype(jnp.bfloat16)
    out_bytes = jnp.dtype(out_dtype).itemsize

    tm, tn = _choose_tiles(M, K, N, out_bytes)

    # Avoid padding the (potentially huge) A matrix: only tiny M gets padded
    # to the bf16 sublane multiple; large ragged M relies on Pallas masked
    # partial blocks (OOB reads feed only rows whose writes are dropped).
    Mp = M
    if M % 16 and M < 4096:
        Mp = _round_up(M, 16)
        a = jnp.pad(a, ((0, Mp - M), (0, 0)))

    grid = (pl.cdiv(Mp, tm), pl.cdiv(N, tn))
    gm, gn = grid
    cost = pl.CostEstimate(
        flops=2 * M * N * K,
        transcendentals=0,
        bytes_accessed=(Mp * K * 2
                        + (gm if gn > 1 else 1) * K * N * 2
                        + Mp * N * out_bytes),
    )

    out = pl.pallas_call(
        functools.partial(_matmul_kernel, apply_relu=apply_relu),
        out_shape=jax.ShapeDtypeStruct((Mp, N), out_dtype),
        grid_spec=pltpu.PrefetchScalarGridSpec(
            num_scalar_prefetch=0,
            grid=grid,
            in_specs=[
                pl.BlockSpec((tm, K), lambda i, j: (i, 0)),
                pl.BlockSpec((K, tn), lambda i, j: (0, j)),
            ],
            out_specs=pl.BlockSpec((tm, tn), lambda i, j: (i, j)),
        ),
        compiler_params=pltpu.CompilerParams(
            # Both axes parallel so a v7x 2-TC megacore can shard the M axis.
            dimension_semantics=("parallel", "parallel"),
            vmem_limit_bytes=_VMEM_LIMIT,
        ),
        cost_estimate=cost,
    )(a, b)
    if Mp > M:
        out = out[:M]
    return out


# ---------------------------------------------------------------------------
# Pallas kernel: fused kn2row epilogue (25 shift-adds in VMEM, f32 accum)
# ---------------------------------------------------------------------------
def _kn2row_sum_kernel(t_ref, o_ref, *, h, w, kh):
    tt = t_ref[0]  # (hp, wp, kh*kh*2) bf16 slab resident in VMEM
    acc = jnp.zeros((h, w, 2), jnp.float32)
    for i in range(kh):
        for j in range(kh):
            tap = i * kh + j
            acc = acc + tt[i:i + h, j:j + w, 2 * tap:2 * tap + 2].astype(jnp.float32)
    o_ref[0] = acc


def _kn2row_sum_pallas(t, h, w, kh):
    n, hp, wp, ct = t.shape
    return pl.pallas_call(
        functools.partial(_kn2row_sum_kernel, h=h, w=w, kh=kh),
        out_shape=jax.ShapeDtypeStruct((n, h, w, 2), jnp.float32),
        grid_spec=pltpu.PrefetchScalarGridSpec(
            num_scalar_prefetch=0,
            grid=(n,),
            in_specs=[pl.BlockSpec((1, hp, wp, ct), lambda b: (b, 0, 0, 0))],
            out_specs=pl.BlockSpec((1, h, w, 2), lambda b: (b, 0, 0, 0)),
        ),
        compiler_params=pltpu.CompilerParams(
            dimension_semantics=("parallel",),
            vmem_limit_bytes=_VMEM_LIMIT,
        ),
    )(t)


# ---------------------------------------------------------------------------
# Conv helpers (patch/interleave glue in plain JAX, all matmuls in Pallas)
# ---------------------------------------------------------------------------
def _im2col(x, kh, kw, stride, pad):
    """x: (N, H, W, C) bf16 -> (N*Ho*Wo, kh*kw*C), taps major, channels minor."""
    n, h, w, c = x.shape
    xp = jnp.pad(x, ((0, 0), (pad, pad), (pad, pad), (0, 0)))
    ho = (h + 2 * pad - kh) // stride + 1
    wo = (w + 2 * pad - kw) // stride + 1
    cols = []
    for i in range(kh):
        for j in range(kw):
            cols.append(
                xp[:, i : i + stride * ho : stride, j : j + stride * wo : stride, :]
            )
    patches = jnp.concatenate(cols, axis=-1)  # (N, Ho, Wo, kh*kw*C)
    return patches.reshape(n * ho * wo, kh * kw * c), ho, wo


def conv2d(x, wmat, kh, kw, stride, pad, relu):
    """x: NHWC bf16; wmat: prepared (kh*kw*Cin, Cout) bf16; bias-free conv."""
    cols, ho, wo = _im2col(x, kh, kw, stride, pad)
    out = pallas_matmul(cols, wmat, apply_relu=relu, out_dtype=jnp.bfloat16)
    return out.reshape(x.shape[0], ho, wo, wmat.shape[1])


def predict_flow_conv(x, wmat):
    """5x5 / stride-1 / pad-2 conv to 2 channels via kn2row: one matmul with
    K=C_in, N=2*25 (bf16), then a fused Pallas shift-add epilogue (f32 acc)."""
    n, h, w, c = x.shape
    kh, pad = 5, 2
    xp = jnp.pad(x, ((0, 0), (pad, pad), (pad, pad), (0, 0)))
    hp, wp = h + 2 * pad, w + 2 * pad
    t = pallas_matmul(
        xp.reshape(n * hp * wp, c), wmat, apply_relu=False, out_dtype=jnp.bfloat16
    )
    t = t.reshape(n, hp, wp, wmat.shape[1])

    if hp * wp * wmat.shape[1] * 2 <= _KN2ROW_SLAB_LIMIT:
        return _kn2row_sum_pallas(t, h, w, kh)

    # XLA fallback for very large frames (slab would not fit VMEM).
    # TODO(synk): row-tiled Pallas epilogue with a 4-row halo for huge frames.
    y = jnp.zeros((n, h, w, 2), jnp.float32)
    for i in range(kh):
        for j in range(kh):
            tap = i * kh + j
            y = y + t[:, i : i + h, j : j + w, 2 * tap : 2 * tap + 2].astype(jnp.float32)
    return y


def conv_transpose2d(x, wmat_big, relu):
    """4x4 / stride-2 / pad-1 ConvTranspose2d (bias-free) via subpixel
    decomposition: one 2x2-tap matmul with 4*O columns, then depth-to-space
    (crop -> stack -> transpose -> reshape), no strided scatters."""
    n, h, w, _ = x.shape
    o_ch = wmat_big.shape[1] // 4
    xp = jnp.pad(x.astype(jnp.bfloat16), ((0, 0), (1, 1), (1, 1), (0, 0)))
    cols, ho, wo = _im2col(xp, 2, 2, 1, 0)  # ho = h + 1, wo = w + 1
    yf = pallas_matmul(cols, wmat_big, apply_relu=relu, out_dtype=jnp.bfloat16)
    yf = yf.reshape(n, ho, wo, 2, 2, o_ch)

    rows = []
    for ry in range(2):
        cols2 = [yf[:, ry : ry + h, rx : rx + w, ry, rx, :] for rx in range(2)]
        rows.append(jnp.stack(cols2, axis=3))          # (n, h, w, 2, o)
    z = jnp.stack(rows, axis=3)                         # (n, h, w, ry, rx, o)
    out = z.transpose(0, 1, 3, 2, 4, 5).reshape(n, 2 * h, 2 * w, o_ch)
    return out


def crop_concat(t1, t2, t3):
    """torch `concatenate`: crop to common H, W; concat on channel axis."""
    h = min(t1.shape[1], t2.shape[1], t3.shape[1])
    w = min(t1.shape[2], t2.shape[2], t3.shape[2])
    return jnp.concatenate(
        [t1[:, :h, :w, :], t2[:, :h, :w, :], t3[:, :h, :w, :]], axis=-1
    )


# ---------------------------------------------------------------------------
# Parameters: deterministic synthetic init (PyTorch layouts) + one-time prep
# ---------------------------------------------------------------------------
def init_params(key):
    shapes = {
        # conv weights: (O, I, kh, kw)
        "conv1": (64, 6, 7, 7),
        "conv2": (128, 64, 5, 5),
        "conv3": (256, 128, 5, 5),
        "conv3_1": (256, 256, 3, 3),
        "conv4": (512, 256, 3, 3),
        "predict_flow4": (2, 512, 5, 5),
        "predict_flow3": (2, 386, 5, 5),
        "predict_flow2": (2, 194, 5, 5),
        # conv-transpose weights: (I, O, kh, kw)
        "upconv3": (512, 128, 4, 4),
        "upconv2": (386, 64, 4, 4),
        "upconvflow4": (2, 2, 4, 4),
        "upconvflow3": (2, 2, 4, 4),
    }
    params = {}
    keys = jax.random.split(key, len(shapes))
    for k, (name, shp) in zip(keys, sorted(shapes.items())):
        fan_in = shp[1] * shp[2] * shp[3]
        params[name] = (
            jax.random.normal(k, shp, jnp.float32) * (2.0 / fan_in) ** 0.5
        )
    return params


def _prep_conv(w):
    """(O, I, kh, kw) -> (kh*kw*I, O) bf16 matmul weight (tap-major rows)."""
    o, i, kh, kw = w.shape
    return jnp.transpose(w, (2, 3, 1, 0)).reshape(kh * kw * i, o).astype(jnp.bfloat16)


def _prep_predict_flow(w):
    """(2, C, 5, 5) -> (C, 25*2) bf16 kn2row weight; column = tap*2 + o."""
    o, c, kh, kw = w.shape
    return jnp.transpose(w, (1, 2, 3, 0)).reshape(c, kh * kw * o).astype(jnp.bfloat16)


def _prep_deconv(w):
    """(I, O, 4, 4) ConvTranspose2d weight -> (4*I, 4*O) bf16 subpixel weight.

    Rows: (tap_a, tap_b, in_ch) of the 2x2 sub-kernels on the pad-1 input.
    Cols: (ry, rx, out_ch) subpixel phases of the stride-2 output.
    """
    i, o, kh, kw = w.shape  # kh == kw == 4, stride 2, pad 1
    wf = w[:, :, ::-1, ::-1].reshape(i, o, 2, 2, 2, 2)  # [i, o, a, ry, b, rx]
    wb = jnp.transpose(wf, (2, 4, 0, 3, 5, 1))          # [a, b, i, ry, rx, o]
    return wb.reshape(4 * i, 4 * o).astype(jnp.bfloat16)


def prepare_params(params):
    """One-time weight transforms (transpose/flip/reshape/bf16 cast)."""
    prepped = {}
    for name in ("conv1", "conv2", "conv3", "conv3_1", "conv4"):
        prepped[name] = _prep_conv(params[name])
    for name in ("predict_flow4", "predict_flow3", "predict_flow2"):
        prepped[name] = _prep_predict_flow(params[name])
    for name in ("upconv3", "upconv2", "upconvflow4", "upconvflow3"):
        prepped[name] = _prep_deconv(params[name])
    return prepped


# ---------------------------------------------------------------------------
# Forward pass (eval mode: returns only finalflow), NCHW in / NCHW out
# ---------------------------------------------------------------------------
@jax.jit
def light_flow_net(prepped, x_nchw):
    # NCHW -> NHWC, cast to bf16 once; all intermediate activations stay bf16.
    x = jnp.transpose(x_nchw, (0, 2, 3, 1)).astype(jnp.bfloat16)

    out_conv1 = conv2d(x, prepped["conv1"], 7, 7, stride=2, pad=3, relu=True)
    out_conv2 = conv2d(out_conv1, prepped["conv2"], 5, 5, stride=2, pad=2, relu=True)
    out_conv3 = conv2d(
        conv2d(out_conv2, prepped["conv3"], 5, 5, stride=2, pad=2, relu=True),
        prepped["conv3_1"], 3, 3, stride=1, pad=1, relu=True,
    )
    out_conv4 = conv2d(out_conv3, prepped["conv4"], 3, 3, stride=2, pad=1, relu=True)

    flow4 = predict_flow_conv(out_conv4, prepped["predict_flow4"])
    up_flow4 = conv_transpose2d(flow4, prepped["upconvflow4"], relu=False)
    out_upconv3 = conv_transpose2d(out_conv4, prepped["upconv3"], relu=True)
    concat3 = crop_concat(out_upconv3, out_conv3, up_flow4)

    flow3 = predict_flow_conv(concat3, prepped["predict_flow3"])
    up_flow3 = conv_transpose2d(flow3, prepped["upconvflow3"], relu=False)
    out_upconv2 = conv_transpose2d(concat3, prepped["upconv2"], relu=True)
    concat2 = crop_concat(out_upconv2, out_conv2, up_flow3)

    finalflow = predict_flow_conv(concat2, prepped["predict_flow2"])
    return jnp.transpose(finalflow, (0, 3, 1, 2))  # back to NCHW, f32


if __name__ == "__main__":
    key = jax.random.PRNGKey(0)
    pkey, xkey = jax.random.split(key)
    params = init_params(pkey)
    prepped = prepare_params(params)
    # two stacked RGB frames -> 6 input channels
    x = jax.random.normal(xkey, (2, 6, 16, 16), jnp.float32)

    out = light_flow_net(prepped, x)
    jax.block_until_ready(out)
    assert out.shape == (2, 2, 4, 4), out.shape
    print("KERNEL_OK")
</pallas_src>

<mosaic_0001>
module attributes {stable_mosaic.version = 11 : i64} {
  func.func @_matmul_kernel(%arg0: i32, %arg1: i32, %arg2: memref<128x294xbf16, #tpu.memory_space<vmem>>, %arg3: memref<294x64xbf16, #tpu.memory_space<vmem>>, %arg4: memref<128x64xbf16, #tpu.memory_space<vmem>>) attributes {dimension_semantics = [#tpu.dimension_semantics<parallel>, #tpu.dimension_semantics<parallel>], iteration_bounds = array<i64: 1, 1>, scalar_prefetch = 0 : i64, scratch_operands = 0 : i64, tpu.core_type = #tpu.core_type<tc>, window_params = [{transform_indices = @transform_0, window_bounds = array<i64: 128, 294>}, {transform_indices = @transform_1, window_bounds = array<i64: 294, 64>}, {transform_indices = @transform_2, window_bounds = array<i64: 128, 64>}]} {
    %c0 = arith.constant 0 : index
    %c0_0 = arith.constant 0 : index
    %0 = vector.load %arg2[%c0, %c0_0] : memref<128x294xbf16, #tpu.memory_space<vmem>>, vector<128x294xbf16>
    %c0_1 = arith.constant 0 : index
    %c0_2 = arith.constant 0 : index
    %1 = vector.load %arg3[%c0_1, %c0_2] : memref<294x64xbf16, #tpu.memory_space<vmem>>, vector<294x64xbf16>
    %cst = arith.constant dense<0.000000e+00> : vector<128x64xf32>
    %2 = tpu.matmul %0, %1, %cst {dimension_numbers = #tpu.dot_dimension_numbers<[1], [0], [0], [1], [0, 0, 1, 1], [], []>} : vector<128x294xbf16>, vector<294x64xbf16>, vector<128x64xf32> -> vector<128x64xf32>
    %cst_3 = arith.constant 0.000000e+00 : f32
    %3 = vector.broadcast %cst_3 : f32 to vector<128x64xf32>
    %4 = arith.maximumf %2, %3 : vector<128x64xf32>
    %5 = arith.truncf %4 : vector<128x64xf32> to vector<128x64xbf16>
    %c0_4 = arith.constant 0 : index
    %c0_5 = arith.constant 0 : index
    %6 = vector.load %arg4[%c0_4, %c0_5] : memref<128x64xbf16, #tpu.memory_space<vmem>>, vector<128x64xbf16>
    tpu.vector_store %arg4[%c0_4, %c0_5], %5 {strides = array<i32>} : memref<128x64xbf16, #tpu.memory_space<vmem>>, vector<128x64xbf16>,
    return
  }
  func.func @transform_0(%arg0: i32, %arg1: i32) -> (i32, i32) {
    %c0_i32 = arith.constant 0 : i32
    %c0_i32_0 = arith.constant 0 : i32
    return %arg0, %c0_i32 : i32, i32
  }
  func.func @transform_1(%arg0: i32, %arg1: i32) -> (i32, i32) {
    %c0_i32 = arith.constant 0 : i32
    %c0_i32_0 = arith.constant 0 : i32
    return %c0_i32, %arg1 : i32, i32
  }
  func.func @transform_2(%arg0: i32, %arg1: i32) -> (i32, i32) {
    %c0_i32 = arith.constant 0 : i32
    return %arg0, %arg1 : i32, i32
  }
}

module attributes {stable_mosaic.version = 11 : i64} {
  func.func @_matmul_kernel(%arg0: i32, %arg1: i32, %arg2: memref<32x1600xbf16, #tpu.memory_space<vmem>>, %arg3: memref<1600x128xbf16, #tpu.memory_space<vmem>>, %arg4: memref<32x128xbf16, #tpu.memory_space<vmem>>) attributes {dimension_semantics = [#tpu.dimension_semantics<parallel>, #tpu.dimension_semantics<parallel>], iteration_bounds = array<i64: 1, 1>, scalar_prefetch = 0 : i64, scratch_operands = 0 : i64, tpu.core_type = #tpu.core_type<tc>, window_params = [{transform_indices = @transform_0, window_bounds = array<i64: 32, 1600>}, {transform_indices = @transform_1, window_bounds = array<i64: 1600, 128>}, {transform_indices = @transform_2, window_bounds = array<i64: 32, 128>}]} {
    %c0 = arith.constant 0 : index
    %c0_0 = arith.constant 0 : index
    %0 = vector.load %arg2[%c0, %c0_0] : memref<32x1600xbf16, #tpu.memory_space<vmem>>, vector<32x1600xbf16>
    %c0_1 = arith.constant 0 : index
    %c0_2 = arith.constant 0 : index
    %1 = vector.load %arg3[%c0_1, %c0_2] : memref<1600x128xbf16, #tpu.memory_space<vmem>>, vector<1600x128xbf16>
    %cst = arith.constant dense<0.000000e+00> : vector<32x128xf32>
    %2 = tpu.matmul %0, %1, %cst {dimension_numbers = #tpu.dot_dimension_numbers<[1], [0], [0], [1], [0, 0, 1, 1], [], []>} : vector<32x1600xbf16>, vector<1600x128xbf16>, vector<32x128xf32> -> vector<32x128xf32>
    %cst_3 = arith.constant 0.000000e+00 : f32
    %3 = vector.broadcast %cst_3 : f32 to vector<32x128xf32>
    %4 = arith.maximumf %2, %3 : vector<32x128xf32>
    %5 = arith.truncf %4 : vector<32x128xf32> to vector<32x128xbf16>
    %c0_4 = arith.constant 0 : index
    %c0_5 = arith.constant 0 : index
    %6 = vector.load %arg4[%c0_4, %c0_5] : memref<32x128xbf16, #tpu.memory_space<vmem>>, vector<32x128xbf16>
    tpu.vector_store %arg4[%c0_4, %c0_5], %5 {strides = array<i32>} : memref<32x128xbf16, #tpu.memory_space<vmem>>, vector<32x128xbf16>,
    return
  }
  func.func @transform_0(%arg0: i32, %arg1: i32) -> (i32, i32) {
    %c0_i32 = arith.constant 0 : i32
    %c0_i32_0 = arith.constant 0 : i32
    return %arg0, %c0_i32 : i32, i32
  }
  func.func @transform_1(%arg0: i32, %arg1: i32) -> (i32, i32) {
    %c0_i32 = arith.constant 0 : i32
    %c0_i32_0 = arith.constant 0 : i32
    return %c0_i32, %arg1 : i32, i32
  }
  func.func @transform_2(%arg0: i32, %arg1: i32) -> (i32, i32) {
    %c0_i32 = arith.constant 0 : i32
    return %arg0, %arg1 : i32, i32
  }
}

module attributes {stable_mosaic.version = 11 : i64} {
  func.func @_matmul_kernel(%arg0: i32, %arg1: i32, %arg2: memref<16x3200xbf16, #tpu.memory_space<vmem>>, %arg3: memref<3200x256xbf16, #tpu.memory_space<vmem>>, %arg4: memref<16x256xbf16, #tpu.memory_space<vmem>>) attributes {dimension_semantics = [#tpu.dimension_semantics<parallel>, #tpu.dimension_semantics<parallel>], iteration_bounds = array<i64: 1, 1>, scalar_prefetch = 0 : i64, scratch_operands = 0 : i64, tpu.core_type = #tpu.core_type<tc>, window_params = [{transform_indices = @transform_0, window_bounds = array<i64: 16, 3200>}, {transform_indices = @transform_1, window_bounds = array<i64: 3200, 256>}, {transform_indices = @transform_2, window_bounds = array<i64: 16, 256>}]} {
    %c0 = arith.constant 0 : index
    %c0_0 = arith.constant 0 : index
    %0 = vector.load %arg2[%c0, %c0_0] : memref<16x3200xbf16, #tpu.memory_space<vmem>>, vector<16x3200xbf16>
    %c0_1 = arith.constant 0 : index
    %c0_2 = arith.constant 0 : index
    %1 = vector.load %arg3[%c0_1, %c0_2] : memref<3200x256xbf16, #tpu.memory_space<vmem>>, vector<3200x256xbf16>
    %cst = arith.constant dense<0.000000e+00> : vector<16x256xf32>
    %2 = tpu.matmul %0, %1, %cst {dimension_numbers = #tpu.dot_dimension_numbers<[1], [0], [0], [1], [0, 0, 1, 1], [], []>} : vector<16x3200xbf16>, vector<3200x256xbf16>, vector<16x256xf32> -> vector<16x256xf32>
    %cst_3 = arith.constant 0.000000e+00 : f32
    %3 = vector.broadcast %cst_3 : f32 to vector<16x256xf32>
    %4 = arith.maximumf %2, %3 : vector<16x256xf32>
    %5 = arith.truncf %4 : vector<16x256xf32> to vector<16x256xbf16>
    %c0_4 = arith.constant 0 : index
    %c0_5 = arith.constant 0 : index
    %6 = vector.load %arg4[%c0_4, %c0_5] : memref<16x256xbf16, #tpu.memory_space<vmem>>, vector<16x256xbf16>
    tpu.vector_store %arg4[%c0_4, %c0_5], %5 {strides = array<i32>} : memref<16x256xbf16, #tpu.memory_space<vmem>>, vector<16x256xbf16>,
    return
  }
  func.func @transform_0(%arg0: i32, %arg1: i32) -> (i32, i32) {
    %c0_i32 = arith.constant 0 : i32
    %c0_i32_0 = arith.constant 0 : i32
    return %arg0, %c0_i32 : i32, i32
  }
  func.func @transform_1(%arg0: i32, %arg1: i32) -> (i32, i32) {
    %c0_i32 = arith.constant 0 : i32
    %c0_i32_0 = arith.constant 0 : i32
    return %c0_i32, %arg1 : i32, i32
  }
  func.func @transform_2(%arg0: i32, %arg1: i32) -> (i32, i32) {
    %c0_i32 = arith.constant 0 : i32
    return %arg0, %arg1 : i32, i32
  }
}

module attributes {stable_mosaic.version = 11 : i64} {
  func.func @_matmul_kernel(%arg0: i32, %arg1: i32, %arg2: memref<16x2304xbf16, #tpu.memory_space<vmem>>, %arg3: memref<2304x256xbf16, #tpu.memory_space<vmem>>, %arg4: memref<16x256xbf16, #tpu.memory_space<vmem>>) attributes {dimension_semantics = [#tpu.dimension_semantics<parallel>, #tpu.dimension_semantics<parallel>], iteration_bounds = array<i64: 1, 1>, scalar_prefetch = 0 : i64, scratch_operands = 0 : i64, tpu.core_type = #tpu.core_type<tc>, window_params = [{transform_indices = @transform_0, window_bounds = array<i64: 16, 2304>}, {transform_indices = @transform_1, window_bounds = array<i64: 2304, 256>}, {transform_indices = @transform_2, window_bounds = array<i64: 16, 256>}]} {
    %c0 = arith.constant 0 : index
    %c0_0 = arith.constant 0 : index
    %0 = vector.load %arg2[%c0, %c0_0] : memref<16x2304xbf16, #tpu.memory_space<vmem>>, vector<16x2304xbf16>
    %c0_1 = arith.constant 0 : index
    %c0_2 = arith.constant 0 : index
    %1 = vector.load %arg3[%c0_1, %c0_2] : memref<2304x256xbf16, #tpu.memory_space<vmem>>, vector<2304x256xbf16>
    %cst = arith.constant dense<0.000000e+00> : vector<16x256xf32>
    %2 = tpu.matmul %0, %1, %cst {dimension_numbers = #tpu.dot_dimension_numbers<[1], [0], [0], [1], [0, 0, 1, 1], [], []>} : vector<16x2304xbf16>, vector<2304x256xbf16>, vector<16x256xf32> -> vector<16x256xf32>
    %cst_3 = arith.constant 0.000000e+00 : f32
    %3 = vector.broadcast %cst_3 : f32 to vector<16x256xf32>
    %4 = arith.maximumf %2, %3 : vector<16x256xf32>
    %5 = arith.truncf %4 : vector<16x256xf32> to vector<16x256xbf16>
    %c0_4 = arith.constant 0 : index
    %c0_5 = arith.constant 0 : index
    %6 = vector.load %arg4[%c0_4, %c0_5] : memref<16x256xbf16, #tpu.memory_space<vmem>>, vector<16x256xbf16>
    tpu.vector_store %arg4[%c0_4, %c0_5], %5 {strides = array<i32>} : memref<16x256xbf16, #tpu.memory_space<vmem>>, vector<16x256xbf16>,
    return
  }
  func.func @transform_0(%arg0: i32, %arg1: i32) -> (i32, i32) {
    %c0_i32 = arith.constant 0 : i32
    %c0_i32_0 = arith.constant 0 : i32
    return %arg0, %c0_i32 : i32, i32
  }
  func.func @transform_1(%arg0: i32, %arg1: i32) -> (i32, i32) {
    %c0_i32 = arith.constant 0 : i32
    %c0_i32_0 = arith.constant 0 : i32
    return %c0_i32, %arg1 : i32, i32
  }
  func.func @transform_2(%arg0: i32, %arg1: i32) -> (i32, i32) {
    %c0_i32 = arith.constant 0 : i32
    return %arg0, %arg1 : i32, i32
  }
}

module attributes {stable_mosaic.version = 11 : i64} {
  func.func @_matmul_kernel(%arg0: i32, %arg1: i32, %arg2: memref<16x2304xbf16, #tpu.memory_space<vmem>>, %arg3: memref<2304x512xbf16, #tpu.memory_space<vmem>>, %arg4: memref<16x512xbf16, #tpu.memory_space<vmem>>) attributes {dimension_semantics = [#tpu.dimension_semantics<parallel>, #tpu.dimension_semantics<parallel>], iteration_bounds = array<i64: 1, 1>, scalar_prefetch = 0 : i64, scratch_operands = 0 : i64, tpu.core_type = #tpu.core_type<tc>, window_params = [{transform_indices = @transform_0, window_bounds = array<i64: 16, 2304>}, {transform_indices = @transform_1, window_bounds = array<i64: 2304, 512>}, {transform_indices = @transform_2, window_bounds = array<i64: 16, 512>}]} {
    %c0 = arith.constant 0 : index
    %c0_0 = arith.constant 0 : index
    %0 = vector.load %arg2[%c0, %c0_0] : memref<16x2304xbf16, #tpu.memory_space<vmem>>, vector<16x2304xbf16>
    %c0_1 = arith.constant 0 : index
    %c0_2 = arith.constant 0 : index
    %1 = vector.load %arg3[%c0_1, %c0_2] : memref<2304x512xbf16, #tpu.memory_space<vmem>>, vector<2304x512xbf16>
    %cst = arith.constant dense<0.000000e+00> : vector<16x512xf32>
    %2 = tpu.matmul %0, %1, %cst {dimension_numbers = #tpu.dot_dimension_numbers<[1], [0], [0], [1], [0, 0, 1, 1], [], []>} : vector<16x2304xbf16>, vector<2304x512xbf16>, vector<16x512xf32> -> vector<16x512xf32>
    %cst_3 = arith.constant 0.000000e+00 : f32
    %3 = vector.broadcast %cst_3 : f32 to vector<16x512xf32>
    %4 = arith.maximumf %2, %3 : vector<16x512xf32>
    %5 = arith.truncf %4 : vector<16x512xf32> to vector<16x512xbf16>
    %c0_4 = arith.constant 0 : index
    %c0_5 = arith.constant 0 : index
    %6 = vector.load %arg4[%c0_4, %c0_5] : memref<16x512xbf16, #tpu.memory_space<vmem>>, vector<16x512xbf16>
    tpu.vector_store %arg4[%c0_4, %c0_5], %5 {strides = array<i32>} : memref<16x512xbf16, #tpu.memory_space<vmem>>, vector<16x512xbf16>,
    return
  }
  func.func @transform_0(%arg0: i32, %arg1: i32) -> (i32, i32) {
    %c0_i32 = arith.constant 0 : i32
    %c0_i32_0 = arith.constant 0 : i32
    return %arg0, %c0_i32 : i32, i32
  }
  func.func @transform_1(%arg0: i32, %arg1: i32) -> (i32, i32) {
    %c0_i32 = arith.constant 0 : i32
    %c0_i32_0 = arith.constant 0 : i32
    return %c0_i32, %arg1 : i32, i32
  }
  func.func @transform_2(%arg0: i32, %arg1: i32) -> (i32, i32) {
    %c0_i32 = arith.constant 0 : i32
    return %arg0, %arg1 : i32, i32
  }
}

module attributes {stable_mosaic.version = 11 : i64} {
  func.func @_matmul_kernel(%arg0: i32, %arg1: i32, %arg2: memref<16x2048xbf16, #tpu.memory_space<vmem>>, %arg3: memref<2048x512xbf16, #tpu.memory_space<vmem>>, %arg4: memref<16x512xbf16, #tpu.memory_space<vmem>>) attributes {dimension_semantics = [#tpu.dimension_semantics<parallel>, #tpu.dimension_semantics<parallel>], iteration_bounds = array<i64: 1, 1>, scalar_prefetch = 0 : i64, scratch_operands = 0 : i64, tpu.core_type = #tpu.core_type<tc>, window_params = [{transform_indices = @transform_0, window_bounds = array<i64: 16, 2048>}, {transform_indices = @transform_1, window_bounds = array<i64: 2048, 512>}, {transform_indices = @transform_2, window_bounds = array<i64: 16, 512>}]} {
    %c0 = arith.constant 0 : index
    %c0_0 = arith.constant 0 : index
    %0 = vector.load %arg2[%c0, %c0_0] : memref<16x2048xbf16, #tpu.memory_space<vmem>>, vector<16x2048xbf16>
    %c0_1 = arith.constant 0 : index
    %c0_2 = arith.constant 0 : index
    %1 = vector.load %arg3[%c0_1, %c0_2] : memref<2048x512xbf16, #tpu.memory_space<vmem>>, vector<2048x512xbf16>
    %cst = arith.constant dense<0.000000e+00> : vector<16x512xf32>
    %2 = tpu.matmul %0, %1, %cst {dimension_numbers = #tpu.dot_dimension_numbers<[1], [0], [0], [1], [0, 0, 1, 1], [], []>} : vector<16x2048xbf16>, vector<2048x512xbf16>, vector<16x512xf32> -> vector<16x512xf32>
    %cst_3 = arith.constant 0.000000e+00 : f32
    %3 = vector.broadcast %cst_3 : f32 to vector<16x512xf32>
    %4 = arith.maximumf %2, %3 : vector<16x512xf32>
    %5 = arith.truncf %4 : vector<16x512xf32> to vector<16x512xbf16>
    %c0_4 = arith.constant 0 : index
    %c0_5 = arith.constant 0 : index
    %6 = vector.load %arg4[%c0_4, %c0_5] : memref<16x512xbf16, #tpu.memory_space<vmem>>, vector<16x512xbf16>
    tpu.vector_store %arg4[%c0_4, %c0_5], %5 {strides = array<i32>} : memref<16x512xbf16, #tpu.memory_space<vmem>>, vector<16x512xbf16>,
    return
  }
  func.func @transform_0(%arg0: i32, %arg1: i32) -> (i32, i32) {
    %c0_i32 = arith.constant 0 : i32
    %c0_i32_0 = arith.constant 0 : i32
    return %arg0, %c0_i32 : i32, i32
  }
  func.func @transform_1(%arg0: i32, %arg1: i32) -> (i32, i32) {
    %c0_i32 = arith.constant 0 : i32
    %c0_i32_0 = arith.constant 0 : i32
    return %c0_i32, %arg1 : i32, i32
  }
  func.func @transform_2(%arg0: i32, %arg1: i32) -> (i32, i32) {
    %c0_i32 = arith.constant 0 : i32
    return %arg0, %arg1 : i32, i32
  }
}

module attributes {stable_mosaic.version = 11 : i64} {
  func.func @_matmul_kernel(%arg0: i32, %arg1: i32, %arg2: memref<64x512xbf16, #tpu.memory_space<vmem>>, %arg3: memref<512x50xbf16, #tpu.memory_space<vmem>>, %arg4: memref<64x50xbf16, #tpu.memory_space<vmem>>) attributes {dimension_semantics = [#tpu.dimension_semantics<parallel>, #tpu.dimension_semantics<parallel>], iteration_bounds = array<i64: 1, 1>, scalar_prefetch = 0 : i64, scratch_operands = 0 : i64, tpu.core_type = #tpu.core_type<tc>, window_params = [{transform_indices = @transform_0, window_bounds = array<i64: 64, 512>}, {transform_indices = @transform_1, window_bounds = array<i64: 512, 50>}, {transform_indices = @transform_2, window_bounds = array<i64: 64, 50>}]} {
    %c0 = arith.constant 0 : index
    %c0_0 = arith.constant 0 : index
    %0 = vector.load %arg2[%c0, %c0_0] : memref<64x512xbf16, #tpu.memory_space<vmem>>, vector<64x512xbf16>
    %c0_1 = arith.constant 0 : index
    %c0_2 = arith.constant 0 : index
    %1 = vector.load %arg3[%c0_1, %c0_2] : memref<512x50xbf16, #tpu.memory_space<vmem>>, vector<512x50xbf16>
    %cst = arith.constant dense<0.000000e+00> : vector<64x50xf32>
    %2 = tpu.matmul %0, %1, %cst {dimension_numbers = #tpu.dot_dimension_numbers<[1], [0], [0], [1], [0, 0, 1, 1], [], []>} : vector<64x512xbf16>, vector<512x50xbf16>, vector<64x50xf32> -> vector<64x50xf32>
    %3 = arith.truncf %2 : vector<64x50xf32> to vector<64x50xbf16>
    %c0_3 = arith.constant 0 : index
    %c0_4 = arith.constant 0 : index
    %4 = vector.load %arg4[%c0_3, %c0_4] : memref<64x50xbf16, #tpu.memory_space<vmem>>, vector<64x50xbf16>
    tpu.vector_store %arg4[%c0_3, %c0_4], %3 {strides = array<i32>} : memref<64x50xbf16, #tpu.memory_space<vmem>>, vector<64x50xbf16>,
    return
  }
  func.func @transform_0(%arg0: i32, %arg1: i32) -> (i32, i32) {
    %c0_i32 = arith.constant 0 : i32
    %c0_i32_0 = arith.constant 0 : i32
    return %arg0, %c0_i32 : i32, i32
  }
  func.func @transform_1(%arg0: i32, %arg1: i32) -> (i32, i32) {
    %c0_i32 = arith.constant 0 : i32
    %c0_i32_0 = arith.constant 0 : i32
    return %c0_i32, %arg1 : i32, i32
  }
  func.func @transform_2(%arg0: i32, %arg1: i32) -> (i32, i32) {
    %c0_i32 = arith.constant 0 : i32
    return %arg0, %arg1 : i32, i32
  }
}

module attributes {stable_mosaic.version = 11 : i64} {
  func.func @_kn2row_sum_kernel(%arg0: i32, %arg1: memref<1x5x5x50xbf16, #tpu.memory_space<vmem>>, %arg2: memref<1x1x1x2xf32, #tpu.memory_space<vmem>>) attributes {dimension_semantics = [#tpu.dimension_semantics<parallel>], iteration_bounds = array<i64: 2>, scalar_prefetch = 0 : i64, scratch_operands = 0 : i64, tpu.core_type = #tpu.core_type<tc>, window_params = [{transform_indices = @transform_0, window_bounds = array<i64: 1, 5, 5, 50>}, {transform_indices = @transform_1, window_bounds = array<i64: 1, 1, 1, 2>}]} {
    %c0 = arith.constant 0 : index
    %c0_0 = arith.constant 0 : index
    %c0_1 = arith.constant 0 : index
    %c0_2 = arith.constant 0 : index
    %0 = vector.load %arg1[%c0, %c0_0, %c0_1, %c0_2] : memref<1x5x5x50xbf16, #tpu.memory_space<vmem>>, vector<1x5x5x50xbf16>
    %1 = vector.shape_cast %0 : vector<1x5x5x50xbf16> to vector<5x5x50xbf16>
    %cst = arith.constant 0.000000e+00 : f32
    %2 = vector.broadcast %cst : f32 to vector<1x1x2xf32>
    %3 = vector.extract_strided_slice %1 {offsets = [0, 0, 0], sizes = [1, 1, 2], strides = [1, 1, 1]} : vector<5x5x50xbf16> to vector<1x1x2xbf16>
    %4 = arith.extf %3 : vector<1x1x2xbf16> to vector<1x1x2xf32>
    %5 = arith.addf %2, %4 : vector<1x1x2xf32>
    %6 = vector.extract_strided_slice %1 {offsets = [0, 1, 2], sizes = [1, 1, 2], strides = [1, 1, 1]} : vector<5x5x50xbf16> to vector<1x1x2xbf16>
    %7 = arith.extf %6 : vector<1x1x2xbf16> to vector<1x1x2xf32>
    %8 = arith.addf %5, %7 : vector<1x1x2xf32>
    %9 = vector.extract_strided_slice %1 {offsets = [0, 2, 4], sizes = [1, 1, 2], strides = [1, 1, 1]} : vector<5x5x50xbf16> to vector<1x1x2xbf16>
    %10 = arith.extf %9 : vector<1x1x2xbf16> to vector<1x1x2xf32>
    %11 = arith.addf %8, %10 : vector<1x1x2xf32>
    %12 = vector.extract_strided_slice %1 {offsets = [0, 3, 6], sizes = [1, 1, 2], strides = [1, 1, 1]} : vector<5x5x50xbf16> to vector<1x1x2xbf16>
    %13 = arith.extf %12 : vector<1x1x2xbf16> to vector<1x1x2xf32>
    %14 = arith.addf %11, %13 : vector<1x1x2xf32>
    %15 = vector.extract_strided_slice %1 {offsets = [0, 4, 8], sizes = [1, 1, 2], strides = [1, 1, 1]} : vector<5x5x50xbf16> to vector<1x1x2xbf16>
    %16 = arith.extf %15 : vector<1x1x2xbf16> to vector<1x1x2xf32>
    %17 = arith.addf %14, %16 : vector<1x1x2xf32>
    %18 = vector.extract_strided_slice %1 {offsets = [1, 0, 10], sizes = [1, 1, 2], strides = [1, 1, 1]} : vector<5x5x50xbf16> to vector<1x1x2xbf16>
    %19 = arith.extf %18 : vector<1x1x2xbf16> to vector<1x1x2xf32>
    %20 = arith.addf %17, %19 : vector<1x1x2xf32>
    %21 = vector.extract_strided_slice %1 {offsets = [1, 1, 12], sizes = [1, 1, 2], strides = [1, 1, 1]} : vector<5x5x50xbf16> to vector<1x1x2xbf16>
    %22 = arith.extf %21 : vector<1x1x2xbf16> to vector<1x1x2xf32>
    %23 = arith.addf %20, %22 : vector<1x1x2xf32>
    %24 = vector.extract_strided_slice %1 {offsets = [1, 2, 14], sizes = [1, 1, 2], strides = [1, 1, 1]} : vector<5x5x50xbf16> to vector<1x1x2xbf16>
    %25 = arith.extf %24 : vector<1x1x2xbf16> to vector<1x1x2xf32>
    %26 = arith.addf %23, %25 : vector<1x1x2xf32>
    %27 = vector.extract_strided_slice %1 {offsets = [1, 3, 16], sizes = [1, 1, 2], strides = [1, 1, 1]} : vector<5x5x50xbf16> to vector<1x1x2xbf16>
    %28 = arith.extf %27 : vector<1x1x2xbf16> to vector<1x1x2xf32>
    %29 = arith.addf %26, %28 : vector<1x1x2xf32>
    %30 = vector.extract_strided_slice %1 {offsets = [1, 4, 18], sizes = [1, 1, 2], strides = [1, 1, 1]} : vector<5x5x50xbf16> to vector<1x1x2xbf16>
    %31 = arith.extf %30 : vector<1x1x2xbf16> to vector<1x1x2xf32>
    %32 = arith.addf %29, %31 : vector<1x1x2xf32>
    %33 = vector.extract_strided_slice %1 {offsets = [2, 0, 20], sizes = [1, 1, 2], strides = [1, 1, 1]} : vector<5x5x50xbf16> to vector<1x1x2xbf16>
    %34 = arith.extf %33 : vector<1x1x2xbf16> to vector<1x1x2xf32>
    %35 = arith.addf %32, %34 : vector<1x1x2xf32>
    %36 = vector.extract_strided_slice %1 {offsets = [2, 1, 22], sizes = [1, 1, 2], strides = [1, 1, 1]} : vector<5x5x50xbf16> to vector<1x1x2xbf16>
    %37 = arith.extf %36 : vector<1x1x2xbf16> to vector<1x1x2xf32>
    %38 = arith.addf %35, %37 : vector<1x1x2xf32>
    %39 = vector.extract_strided_slice %1 {offsets = [2, 2, 24], sizes = [1, 1, 2], strides = [1, 1, 1]} : vector<5x5x50xbf16> to vector<1x1x2xbf16>
    %40 = arith.extf %39 : vector<1x1x2xbf16> to vector<1x1x2xf32>
    %41 = arith.addf %38, %40 : vector<1x1x2xf32>
    %42 = vector.extract_strided_slice %1 {offsets = [2, 3, 26], sizes = [1, 1, 2], strides = [1, 1, 1]} : vector<5x5x50xbf16> to vector<1x1x2xbf16>
    %43 = arith.extf %42 : vector<1x1x2xbf16> to vector<1x1x2xf32>
    %44 = arith.addf %41, %43 : vector<1x1x2xf32>
    %45 = vector.extract_strided_slice %1 {offsets = [2, 4, 28], sizes = [1, 1, 2], strides = [1, 1, 1]} : vector<5x5x50xbf16> to vector<1x1x2xbf16>
    %46 = arith.extf %45 : vector<1x1x2xbf16> to vector<1x1x2xf32>
    %47 = arith.addf %44, %46 : vector<1x1x2xf32>
    %48 = vector.extract_strided_slice %1 {offsets = [3, 0, 30], sizes = [1, 1, 2], strides = [1, 1, 1]} : vector<5x5x50xbf16> to vector<1x1x2xbf16>
    %49 = arith.extf %48 : vector<1x1x2xbf16> to vector<1x1x2xf32>
    %50 = arith.addf %47, %49 : vector<1x1x2xf32>
    %51 = vector.extract_strided_slice %1 {offsets = [3, 1, 32], sizes = [1, 1, 2], strides = [1, 1, 1]} : vector<5x5x50xbf16> to vector<1x1x2xbf16>
    %52 = arith.extf %51 : vector<1x1x2xbf16> to vector<1x1x2xf32>
    %53 = arith.addf %50, %52 : vector<1x1x2xf32>
    %54 = vector.extract_strided_slice %1 {offsets = [3, 2, 34], sizes = [1, 1, 2], strides = [1, 1, 1]} : vector<5x5x50xbf16> to vector<1x1x2xbf16>
    %55 = arith.extf %54 : vector<1x1x2xbf16> to vector<1x1x2xf32>
    %56 = arith.addf %53, %55 : vector<1x1x2xf32>
    %57 = vector.extract_strided_slice %1 {offsets = [3, 3, 36], sizes = [1, 1, 2], strides = [1, 1, 1]} : vector<5x5x50xbf16> to vector<1x1x2xbf16>
    %58 = arith.extf %57 : vector<1x1x2xbf16> to vector<1x1x2xf32>
    %59 = arith.addf %56, %58 : vector<1x1x2xf32>
    %60 = vector.extract_strided_slice %1 {offsets = [3, 4, 38], sizes = [1, 1, 2], strides = [1, 1, 1]} : vector<5x5x50xbf16> to vector<1x1x2xbf16>
    %61 = arith.extf %60 : vector<1x1x2xbf16> to vector<1x1x2xf32>
    %62 = arith.addf %59, %61 : vector<1x1x2xf32>
    %63 = vector.extract_strided_slice %1 {offsets = [4, 0, 40], sizes = [1, 1, 2], strides = [1, 1, 1]} : vector<5x5x50xbf16> to vector<1x1x2xbf16>
    %64 = arith.extf %63 : vector<1x1x2xbf16> to vector<1x1x2xf32>
    %65 = arith.addf %62, %64 : vector<1x1x2xf32>
    %66 = vector.extract_strided_slice %1 {offsets = [4, 1, 42], sizes = [1, 1, 2], strides = [1, 1, 1]} : vector<5x5x50xbf16> to vector<1x1x2xbf16>
    %67 = arith.extf %66 : vector<1x1x2xbf16> to vector<1x1x2xf32>
    %68 = arith.addf %65, %67 : vector<1x1x2xf32>
    %69 = vector.extract_strided_slice %1 {offsets = [4, 2, 44], sizes = [1, 1, 2], strides = [1, 1, 1]} : vector<5x5x50xbf16> to vector<1x1x2xbf16>
    %70 = arith.extf %69 : vector<1x1x2xbf16> to vector<1x1x2xf32>
    %71 = arith.addf %68, %70 : vector<1x1x2xf32>
    %72 = vector.extract_strided_slice %1 {offsets = [4, 3, 46], sizes = [1, 1, 2], strides = [1, 1, 1]} : vector<5x5x50xbf16> to vector<1x1x2xbf16>
    %73 = arith.extf %72 : vector<1x1x2xbf16> to vector<1x1x2xf32>
    %74 = arith.addf %71, %73 : vector<1x1x2xf32>
    %75 = vector.extract_strided_slice %1 {offsets = [4, 4, 48], sizes = [1, 1, 2], strides = [1, 1, 1]} : vector<5x5x50xbf16> to vector<1x1x2xbf16>
    %76 = arith.extf %75 : vector<1x1x2xbf16> to vector<1x1x2xf32>
    %77 = arith.addf %74, %76 : vector<1x1x2xf32>
    %c0_3 = arith.constant 0 : index
    %c0_4 = arith.constant 0 : index
    %c0_5 = arith.constant 0 : index
    %c0_6 = arith.constant 0 : index
    %78 = vector.load %arg2[%c0_3, %c0_4, %c0_5, %c0_6] : memref<1x1x1x2xf32, #tpu.memory_space<vmem>>, vector<1x1x1x2xf32>
    %79 = vector.shape_cast %78 : vector<1x1x1x2xf32> to vector<1x1x2xf32>
    %80 = vector.shape_cast %77 : vector<1x1x2xf32> to vector<1x1x1x2xf32>
    tpu.vector_store %arg2[%c0_3, %c0_4, %c0_5, %c0_6], %80 {strides = array<i32>} : memref<1x1x1x2xf32, #tpu.memory_space<vmem>>, vector<1x1x1x2xf32>,
    return
  }
  func.func @transform_0(%arg0: i32) -> (i32, i32, i32, i32) {
    %c0_i32 = arith.constant 0 : i32
    %c0_i32_0 = arith.constant 0 : i32
    %c0_i32_1 = arith.constant 0 : i32
    %c0_i32_2 = arith.constant 0 : i32
    return %arg0, %c0_i32, %c0_i32_0, %c0_i32_1 : i32, i32, i32, i32
  }
  func.func @transform_1(%arg0: i32) -> (i32, i32, i32, i32) {
    %c0_i32 = arith.constant 0 : i32
    %c0_i32_0 = arith.constant 0 : i32
    %c0_i32_1 = arith.constant 0 : i32
    %c0_i32_2 = arith.constant 0 : i32
    return %arg0, %c0_i32, %c0_i32_0, %c0_i32_1 : i32, i32, i32, i32
  }
}

module attributes {stable_mosaic.version = 11 : i64} {
  func.func @_matmul_kernel(%arg0: i32, %arg1: i32, %arg2: memref<16x8xbf16, #tpu.memory_space<vmem>>, %arg3: memref<8x8xbf16, #tpu.memory_space<vmem>>, %arg4: memref<16x8xbf16, #tpu.memory_space<vmem>>) attributes {dimension_semantics = [#tpu.dimension_semantics<parallel>, #tpu.dimension_semantics<parallel>], iteration_bounds = array<i64: 1, 1>, scalar_prefetch = 0 : i64, scratch_operands = 0 : i64, tpu.core_type = #tpu.core_type<tc>, window_params = [{transform_indices = @transform_0, window_bounds = array<i64: 16, 8>}, {transform_indices = @transform_1, window_bounds = array<i64: 8, 8>}, {transform_indices = @transform_2, window_bounds = array<i64: 16, 8>}]} {
    %c0 = arith.constant 0 : index
    %c0_0 = arith.constant 0 : index
    %0 = vector.load %arg2[%c0, %c0_0] : memref<16x8xbf16, #tpu.memory_space<vmem>>, vector<16x8xbf16>
    %c0_1 = arith.constant 0 : index
    %c0_2 = arith.constant 0 : index
    %1 = vector.load %arg3[%c0_1, %c0_2] : memref<8x8xbf16, #tpu.memory_space<vmem>>, vector<8x8xbf16>
    %cst = arith.constant dense<0.000000e+00> : vector<16x8xf32>
    %2 = tpu.matmul %0, %1, %cst {dimension_numbers = #tpu.dot_dimension_numbers<[1], [0], [0], [1], [0, 0, 1, 1], [], []>} : vector<16x8xbf16>, vector<8x8xbf16>, vector<16x8xf32> -> vector<16x8xf32>
    %3 = arith.truncf %2 : vector<16x8xf32> to vector<16x8xbf16>
    %c0_3 = arith.constant 0 : index
    %c0_4 = arith.constant 0 : index
    %4 = vector.load %arg4[%c0_3, %c0_4] : memref<16x8xbf16, #tpu.memory_space<vmem>>, vector<16x8xbf16>
    tpu.vector_store %arg4[%c0_3, %c0_4], %3 {strides = array<i32>} : memref<16x8xbf16, #tpu.memory_space<vmem>>, vector<16x8xbf16>,
    return
  }
  func.func @transform_0(%arg0: i32, %arg1: i32) -> (i32, i32) {
    %c0_i32 = arith.constant 0 : i32
    %c0_i32_0 = arith.constant 0 : i32
    return %arg0, %c0_i32 : i32, i32
  }
  func.func @transform_1(%arg0: i32, %arg1: i32) -> (i32, i32) {
    %c0_i32 = arith.constant 0 : i32
    %c0_i32_0 = arith.constant 0 : i32
    return %c0_i32, %arg1 : i32, i32
  }
  func.func @transform_2(%arg0: i32, %arg1: i32) -> (i32, i32) {
    %c0_i32 = arith.constant 0 : i32
    return %arg0, %arg1 : i32, i32
  }
}

module attributes {stable_mosaic.version = 11 : i64} {
  func.func @_matmul_kernel(%arg0: i32, %arg1: i32, %arg2: memref<32x1544xbf16, #tpu.memory_space<vmem>>, %arg3: memref<1544x256xbf16, #tpu.memory_space<vmem>>, %arg4: memref<32x256xbf16, #tpu.memory_space<vmem>>) attributes {dimension_semantics = [#tpu.dimension_semantics<parallel>, #tpu.dimension_semantics<parallel>], iteration_bounds = array<i64: 1, 1>, scalar_prefetch = 0 : i64, scratch_operands = 0 : i64, tpu.core_type = #tpu.core_type<tc>, window_params = [{transform_indices = @transform_0, window_bounds = array<i64: 32, 1544>}, {transform_indices = @transform_1, window_bounds = array<i64: 1544, 256>}, {transform_indices = @transform_2, window_bounds = array<i64: 32, 256>}]} {
    %c0 = arith.constant 0 : index
    %c0_0 = arith.constant 0 : index
    %0 = vector.load %arg2[%c0, %c0_0] : memref<32x1544xbf16, #tpu.memory_space<vmem>>, vector<32x1544xbf16>
    %c0_1 = arith.constant 0 : index
    %c0_2 = arith.constant 0 : index
    %1 = vector.load %arg3[%c0_1, %c0_2] : memref<1544x256xbf16, #tpu.memory_space<vmem>>, vector<1544x256xbf16>
    %cst = arith.constant dense<0.000000e+00> : vector<32x256xf32>
    %2 = tpu.matmul %0, %1, %cst {dimension_numbers = #tpu.dot_dimension_numbers<[1], [0], [0], [1], [0, 0, 1, 1], [], []>} : vector<32x1544xbf16>, vector<1544x256xbf16>, vector<32x256xf32> -> vector<32x256xf32>
    %cst_3 = arith.constant 0.000000e+00 : f32
    %3 = vector.broadcast %cst_3 : f32 to vector<32x256xf32>
    %4 = arith.maximumf %2, %3 : vector<32x256xf32>
    %5 = arith.truncf %4 : vector<32x256xf32> to vector<32x256xbf16>
    %c0_4 = arith.constant 0 : index
    %c0_5 = arith.constant 0 : index
    %6 = vector.load %arg4[%c0_4, %c0_5] : memref<32x256xbf16, #tpu.memory_space<vmem>>, vector<32x256xbf16>
    tpu.vector_store %arg4[%c0_4, %c0_5], %5 {strides = array<i32>} : memref<32x256xbf16, #tpu.memory_space<vmem>>, vector<32x256xbf16>,
    return
  }
  func.func @transform_0(%arg0: i32, %arg1: i32) -> (i32, i32) {
    %c0_i32 = arith.constant 0 : i32
    %c0_i32_0 = arith.constant 0 : i32
    return %arg0, %c0_i32 : i32, i32
  }
  func.func @transform_1(%arg0: i32, %arg1: i32) -> (i32, i32) {
    %c0_i32 = arith.constant 0 : i32
    %c0_i32_0 = arith.constant 0 : i32
    return %c0_i32, %arg1 : i32, i32
  }
  func.func @transform_2(%arg0: i32, %arg1: i32) -> (i32, i32) {
    %c0_i32 = arith.constant 0 : i32
    return %arg0, %arg1 : i32, i32
  }
}

module attributes {stable_mosaic.version = 11 : i64} {
  func.func @_matmul_kernel(%arg0: i32, %arg1: i32, %arg2: memref<80x386xbf16, #tpu.memory_space<vmem>>, %arg3: memref<386x50xbf16, #tpu.memory_space<vmem>>, %arg4: memref<80x50xbf16, #tpu.memory_space<vmem>>) attributes {dimension_semantics = [#tpu.dimension_semantics<parallel>, #tpu.dimension_semantics<parallel>], iteration_bounds = array<i64: 1, 1>, scalar_prefetch = 0 : i64, scratch_operands = 0 : i64, tpu.core_type = #tpu.core_type<tc>, window_params = [{transform_indices = @transform_0, window_bounds = array<i64: 80, 386>}, {transform_indices = @transform_1, window_bounds = array<i64: 386, 50>}, {transform_indices = @transform_2, window_bounds = array<i64: 80, 50>}]} {
    %c0 = arith.constant 0 : index
    %c0_0 = arith.constant 0 : index
    %0 = vector.load %arg2[%c0, %c0_0] : memref<80x386xbf16, #tpu.memory_space<vmem>>, vector<80x386xbf16>
    %c0_1 = arith.constant 0 : index
    %c0_2 = arith.constant 0 : index
    %1 = vector.load %arg3[%c0_1, %c0_2] : memref<386x50xbf16, #tpu.memory_space<vmem>>, vector<386x50xbf16>
    %cst = arith.constant dense<0.000000e+00> : vector<80x50xf32>
    %2 = tpu.matmul %0, %1, %cst {dimension_numbers = #tpu.dot_dimension_numbers<[1], [0], [0], [1], [0, 0, 1, 1], [], []>} : vector<80x386xbf16>, vector<386x50xbf16>, vector<80x50xf32> -> vector<80x50xf32>
    %3 = arith.truncf %2 : vector<80x50xf32> to vector<80x50xbf16>
    %c0_3 = arith.constant 0 : index
    %c0_4 = arith.constant 0 : index
    %4 = vector.load %arg4[%c0_3, %c0_4] : memref<80x50xbf16, #tpu.memory_space<vmem>>, vector<80x50xbf16>
    tpu.vector_store %arg4[%c0_3, %c0_4], %3 {strides = array<i32>} : memref<80x50xbf16, #tpu.memory_space<vmem>>, vector<80x50xbf16>,
    return
  }
  func.func @transform_0(%arg0: i32, %arg1: i32) -> (i32, i32) {
    %c0_i32 = arith.constant 0 : i32
    %c0_i32_0 = arith.constant 0 : i32
    return %arg0, %c0_i32 : i32, i32
  }
  func.func @transform_1(%arg0: i32, %arg1: i32) -> (i32, i32) {
    %c0_i32 = arith.constant 0 : i32
    %c0_i32_0 = arith.constant 0 : i32
    return %c0_i32, %arg1 : i32, i32
  }
  func.func @transform_2(%arg0: i32, %arg1: i32) -> (i32, i32) {
    %c0_i32 = arith.constant 0 : i32
    return %arg0, %arg1 : i32, i32
  }
}

module attributes {stable_mosaic.version = 11 : i64} {
  func.func @_kn2row_sum_kernel(%arg0: i32, %arg1: memref<1x6x6x50xbf16, #tpu.memory_space<vmem>>, %arg2: memref<1x2x2x2xf32, #tpu.memory_space<vmem>>) attributes {dimension_semantics = [#tpu.dimension_semantics<parallel>], iteration_bounds = array<i64: 2>, scalar_prefetch = 0 : i64, scratch_operands = 0 : i64, tpu.core_type = #tpu.core_type<tc>, window_params = [{transform_indices = @transform_0, window_bounds = array<i64: 1, 6, 6, 50>}, {transform_indices = @transform_1, window_bounds = array<i64: 1, 2, 2, 2>}]} {
    %c0 = arith.constant 0 : index
    %c0_0 = arith.constant 0 : index
    %c0_1 = arith.constant 0 : index
    %c0_2 = arith.constant 0 : index
    %0 = vector.load %arg1[%c0, %c0_0, %c0_1, %c0_2] : memref<1x6x6x50xbf16, #tpu.memory_space<vmem>>, vector<1x6x6x50xbf16>
    %1 = vector.shape_cast %0 : vector<1x6x6x50xbf16> to vector<6x6x50xbf16>
    %cst = arith.constant 0.000000e+00 : f32
    %2 = vector.broadcast %cst : f32 to vector<2x2x2xf32>
    %3 = vector.extract_strided_slice %1 {offsets = [0, 0, 0], sizes = [2, 2, 2], strides = [1, 1, 1]} : vector<6x6x50xbf16> to vector<2x2x2xbf16>
    %4 = arith.extf %3 : vector<2x2x2xbf16> to vector<2x2x2xf32>
    %5 = arith.addf %2, %4 : vector<2x2x2xf32>
    %6 = vector.extract_strided_slice %1 {offsets = [0, 1, 2], sizes = [2, 2, 2], strides = [1, 1, 1]} : vector<6x6x50xbf16> to vector<2x2x2xbf16>
    %7 = arith.extf %6 : vector<2x2x2xbf16> to vector<2x2x2xf32>
    %8 = arith.addf %5, %7 : vector<2x2x2xf32>
    %9 = vector.extract_strided_slice %1 {offsets = [0, 2, 4], sizes = [2, 2, 2], strides = [1, 1, 1]} : vector<6x6x50xbf16> to vector<2x2x2xbf16>
    %10 = arith.extf %9 : vector<2x2x2xbf16> to vector<2x2x2xf32>
    %11 = arith.addf %8, %10 : vector<2x2x2xf32>
    %12 = vector.extract_strided_slice %1 {offsets = [0, 3, 6], sizes = [2, 2, 2], strides = [1, 1, 1]} : vector<6x6x50xbf16> to vector<2x2x2xbf16>
    %13 = arith.extf %12 : vector<2x2x2xbf16> to vector<2x2x2xf32>
    %14 = arith.addf %11, %13 : vector<2x2x2xf32>
    %15 = vector.extract_strided_slice %1 {offsets = [0, 4, 8], sizes = [2, 2, 2], strides = [1, 1, 1]} : vector<6x6x50xbf16> to vector<2x2x2xbf16>
    %16 = arith.extf %15 : vector<2x2x2xbf16> to vector<2x2x2xf32>
    %17 = arith.addf %14, %16 : vector<2x2x2xf32>
    %18 = vector.extract_strided_slice %1 {offsets = [1, 0, 10], sizes = [2, 2, 2], strides = [1, 1, 1]} : vector<6x6x50xbf16> to vector<2x2x2xbf16>
    %19 = arith.extf %18 : vector<2x2x2xbf16> to vector<2x2x2xf32>
    %20 = arith.addf %17, %19 : vector<2x2x2xf32>
    %21 = vector.extract_strided_slice %1 {offsets = [1, 1, 12], sizes = [2, 2, 2], strides = [1, 1, 1]} : vector<6x6x50xbf16> to vector<2x2x2xbf16>
    %22 = arith.extf %21 : vector<2x2x2xbf16> to vector<2x2x2xf32>
    %23 = arith.addf %20, %22 : vector<2x2x2xf32>
    %24 = vector.extract_strided_slice %1 {offsets = [1, 2, 14], sizes = [2, 2, 2], strides = [1, 1, 1]} : vector<6x6x50xbf16> to vector<2x2x2xbf16>
    %25 = arith.extf %24 : vector<2x2x2xbf16> to vector<2x2x2xf32>
    %26 = arith.addf %23, %25 : vector<2x2x2xf32>
    %27 = vector.extract_strided_slice %1 {offsets = [1, 3, 16], sizes = [2, 2, 2], strides = [1, 1, 1]} : vector<6x6x50xbf16> to vector<2x2x2xbf16>
    %28 = arith.extf %27 : vector<2x2x2xbf16> to vector<2x2x2xf32>
    %29 = arith.addf %26, %28 : vector<2x2x2xf32>
    %30 = vector.extract_strided_slice %1 {offsets = [1, 4, 18], sizes = [2, 2, 2], strides = [1, 1, 1]} : vector<6x6x50xbf16> to vector<2x2x2xbf16>
    %31 = arith.extf %30 : vector<2x2x2xbf16> to vector<2x2x2xf32>
    %32 = arith.addf %29, %31 : vector<2x2x2xf32>
    %33 = vector.extract_strided_slice %1 {offsets = [2, 0, 20], sizes = [2, 2, 2], strides = [1, 1, 1]} : vector<6x6x50xbf16> to vector<2x2x2xbf16>
    %34 = arith.extf %33 : vector<2x2x2xbf16> to vector<2x2x2xf32>
    %35 = arith.addf %32, %34 : vector<2x2x2xf32>
    %36 = vector.extract_strided_slice %1 {offsets = [2, 1, 22], sizes = [2, 2, 2], strides = [1, 1, 1]} : vector<6x6x50xbf16> to vector<2x2x2xbf16>
    %37 = arith.extf %36 : vector<2x2x2xbf16> to vector<2x2x2xf32>
    %38 = arith.addf %35, %37 : vector<2x2x2xf32>
    %39 = vector.extract_strided_slice %1 {offsets = [2, 2, 24], sizes = [2, 2, 2], strides = [1, 1, 1]} : vector<6x6x50xbf16> to vector<2x2x2xbf16>
    %40 = arith.extf %39 : vector<2x2x2xbf16> to vector<2x2x2xf32>
    %41 = arith.addf %38, %40 : vector<2x2x2xf32>
    %42 = vector.extract_strided_slice %1 {offsets = [2, 3, 26], sizes = [2, 2, 2], strides = [1, 1, 1]} : vector<6x6x50xbf16> to vector<2x2x2xbf16>
    %43 = arith.extf %42 : vector<2x2x2xbf16> to vector<2x2x2xf32>
    %44 = arith.addf %41, %43 : vector<2x2x2xf32>
    %45 = vector.extract_strided_slice %1 {offsets = [2, 4, 28], sizes = [2, 2, 2], strides = [1, 1, 1]} : vector<6x6x50xbf16> to vector<2x2x2xbf16>
    %46 = arith.extf %45 : vector<2x2x2xbf16> to vector<2x2x2xf32>
    %47 = arith.addf %44, %46 : vector<2x2x2xf32>
    %48 = vector.extract_strided_slice %1 {offsets = [3, 0, 30], sizes = [2, 2, 2], strides = [1, 1, 1]} : vector<6x6x50xbf16> to vector<2x2x2xbf16>
    %49 = arith.extf %48 : vector<2x2x2xbf16> to vector<2x2x2xf32>
    %50 = arith.addf %47, %49 : vector<2x2x2xf32>
    %51 = vector.extract_strided_slice %1 {offsets = [3, 1, 32], sizes = [2, 2, 2], strides = [1, 1, 1]} : vector<6x6x50xbf16> to vector<2x2x2xbf16>
    %52 = arith.extf %51 : vector<2x2x2xbf16> to vector<2x2x2xf32>
    %53 = arith.addf %50, %52 : vector<2x2x2xf32>
    %54 = vector.extract_strided_slice %1 {offsets = [3, 2, 34], sizes = [2, 2, 2], strides = [1, 1, 1]} : vector<6x6x50xbf16> to vector<2x2x2xbf16>
    %55 = arith.extf %54 : vector<2x2x2xbf16> to vector<2x2x2xf32>
    %56 = arith.addf %53, %55 : vector<2x2x2xf32>
    %57 = vector.extract_strided_slice %1 {offsets = [3, 3, 36], sizes = [2, 2, 2], strides = [1, 1, 1]} : vector<6x6x50xbf16> to vector<2x2x2xbf16>
    %58 = arith.extf %57 : vector<2x2x2xbf16> to vector<2x2x2xf32>
    %59 = arith.addf %56, %58 : vector<2x2x2xf32>
    %60 = vector.extract_strided_slice %1 {offsets = [3, 4, 38], sizes = [2, 2, 2], strides = [1, 1, 1]} : vector<6x6x50xbf16> to vector<2x2x2xbf16>
    %61 = arith.extf %60 : vector<2x2x2xbf16> to vector<2x2x2xf32>
    %62 = arith.addf %59, %61 : vector<2x2x2xf32>
    %63 = vector.extract_strided_slice %1 {offsets = [4, 0, 40], sizes = [2, 2, 2], strides = [1, 1, 1]} : vector<6x6x50xbf16> to vector<2x2x2xbf16>
    %64 = arith.extf %63 : vector<2x2x2xbf16> to vector<2x2x2xf32>
    %65 = arith.addf %62, %64 : vector<2x2x2xf32>
    %66 = vector.extract_strided_slice %1 {offsets = [4, 1, 42], sizes = [2, 2, 2], strides = [1, 1, 1]} : vector<6x6x50xbf16> to vector<2x2x2xbf16>
    %67 = arith.extf %66 : vector<2x2x2xbf16> to vector<2x2x2xf32>
    %68 = arith.addf %65, %67 : vector<2x2x2xf32>
    %69 = vector.extract_strided_slice %1 {offsets = [4, 2, 44], sizes = [2, 2, 2], strides = [1, 1, 1]} : vector<6x6x50xbf16> to vector<2x2x2xbf16>
    %70 = arith.extf %69 : vector<2x2x2xbf16> to vector<2x2x2xf32>
    %71 = arith.addf %68, %70 : vector<2x2x2xf32>
    %72 = vector.extract_strided_slice %1 {offsets = [4, 3, 46], sizes = [2, 2, 2], strides = [1, 1, 1]} : vector<6x6x50xbf16> to vector<2x2x2xbf16>
    %73 = arith.extf %72 : vector<2x2x2xbf16> to vector<2x2x2xf32>
    %74 = arith.addf %71, %73 : vector<2x2x2xf32>
    %75 = vector.extract_strided_slice %1 {offsets = [4, 4, 48], sizes = [2, 2, 2], strides = [1, 1, 1]} : vector<6x6x50xbf16> to vector<2x2x2xbf16>
    %76 = arith.extf %75 : vector<2x2x2xbf16> to vector<2x2x2xf32>
    %77 = arith.addf %74, %76 : vector<2x2x2xf32>
    %c0_3 = arith.constant 0 : index
    %c0_4 = arith.constant 0 : index
    %c0_5 = arith.constant 0 : index
    %c0_6 = arith.constant 0 : index
    %78 = vector.load %arg2[%c0_3, %c0_4, %c0_5, %c0_6] : memref<1x2x2x2xf32, #tpu.memory_space<vmem>>, vector<1x2x2x2xf32>
    %79 = vector.shape_cast %78 : vector<1x2x2x2xf32> to vector<2x2x2xf32>
    %80 = vector.shape_cast %77 : vector<2x2x2xf32> to vector<1x2x2x2xf32>
    tpu.vector_store %arg2[%c0_3, %c0_4, %c0_5, %c0_6], %80 {strides = array<i32>} : memref<1x2x2x2xf32, #tpu.memory_space<vmem>>, vector<1x2x2x2xf32>,
    return
  }
  func.func @transform_0(%arg0: i32) -> (i32, i32, i32, i32) {
    %c0_i32 = arith.constant 0 : i32
    %c0_i32_0 = arith.constant 0 : i32
    %c0_i32_1 = arith.constant 0 : i32
    %c0_i32_2 = arith.constant 0 : i32
    return %arg0, %c0_i32, %c0_i32_0, %c0_i32_1 : i32, i32, i32, i32
  }
  func.func @transform_1(%arg0: i32) -> (i32, i32, i32, i32) {
    %c0_i32 = arith.constant 0 : i32
    %c0_i32_0 = arith.constant 0 : i32
    %c0_i32_1 = arith.constant 0 : i32
    %c0_i32_2 = arith.constant 0 : i32
    return %arg0, %c0_i32, %c0_i32_0, %c0_i32_1 : i32, i32, i32, i32
  }
}

module attributes {stable_mosaic.version = 11 : i64} {
  func.func @_matmul_kernel(%arg0: i32, %arg1: i32, %arg2: memref<32x8xbf16, #tpu.memory_space<vmem>>, %arg3: memref<8x8xbf16, #tpu.memory_space<vmem>>, %arg4: memref<32x8xbf16, #tpu.memory_space<vmem>>) attributes {dimension_semantics = [#tpu.dimension_semantics<parallel>, #tpu.dimension_semantics<parallel>], iteration_bounds = array<i64: 1, 1>, scalar_prefetch = 0 : i64, scratch_operands = 0 : i64, tpu.core_type = #tpu.core_type<tc>, window_params = [{transform_indices = @transform_0, window_bounds = array<i64: 32, 8>}, {transform_indices = @transform_1, window_bounds = array<i64: 8, 8>}, {transform_indices = @transform_2, window_bounds = array<i64: 32, 8>}]} {
    %c0 = arith.constant 0 : index
    %c0_0 = arith.constant 0 : index
    %0 = vector.load %arg2[%c0, %c0_0] : memref<32x8xbf16, #tpu.memory_space<vmem>>, vector<32x8xbf16>
    %c0_1 = arith.constant 0 : index
    %c0_2 = arith.constant 0 : index
    %1 = vector.load %arg3[%c0_1, %c0_2] : memref<8x8xbf16, #tpu.memory_space<vmem>>, vector<8x8xbf16>
    %cst = arith.constant dense<0.000000e+00> : vector<32x8xf32>
    %2 = tpu.matmul %0, %1, %cst {dimension_numbers = #tpu.dot_dimension_numbers<[1], [0], [0], [1], [0, 0, 1, 1], [], []>} : vector<32x8xbf16>, vector<8x8xbf16>, vector<32x8xf32> -> vector<32x8xf32>
    %3 = arith.truncf %2 : vector<32x8xf32> to vector<32x8xbf16>
    %c0_3 = arith.constant 0 : index
    %c0_4 = arith.constant 0 : index
    %4 = vector.load %arg4[%c0_3, %c0_4] : memref<32x8xbf16, #tpu.memory_space<vmem>>, vector<32x8xbf16>
    tpu.vector_store %arg4[%c0_3, %c0_4], %3 {strides = array<i32>} : memref<32x8xbf16, #tpu.memory_space<vmem>>, vector<32x8xbf16>,
    return
  }
  func.func @transform_0(%arg0: i32, %arg1: i32) -> (i32, i32) {
    %c0_i32 = arith.constant 0 : i32
    %c0_i32_0 = arith.constant 0 : i32
    return %arg0, %c0_i32 : i32, i32
  }
  func.func @transform_1(%arg0: i32, %arg1: i32) -> (i32, i32) {
    %c0_i32 = arith.constant 0 : i32
    %c0_i32_0 = arith.constant 0 : i32
    return %c0_i32, %arg1 : i32, i32
  }
  func.func @transform_2(%arg0: i32, %arg1: i32) -> (i32, i32) {
    %c0_i32 = arith.constant 0 : i32
    return %arg0, %arg1 : i32, i32
  }
}

module attributes {stable_mosaic.version = 11 : i64} {
  func.func @_matmul_kernel(%arg0: i32, %arg1: i32, %arg2: memref<128x194xbf16, #tpu.memory_space<vmem>>, %arg3: memref<194x50xbf16, #tpu.memory_space<vmem>>, %arg4: memref<128x50xbf16, #tpu.memory_space<vmem>>) attributes {dimension_semantics = [#tpu.dimension_semantics<parallel>, #tpu.dimension_semantics<parallel>], iteration_bounds = array<i64: 1, 1>, scalar_prefetch = 0 : i64, scratch_operands = 0 : i64, tpu.core_type = #tpu.core_type<tc>, window_params = [{transform_indices = @transform_0, window_bounds = array<i64: 128, 194>}, {transform_indices = @transform_1, window_bounds = array<i64: 194, 50>}, {transform_indices = @transform_2, window_bounds = array<i64: 128, 50>}]} {
    %c0 = arith.constant 0 : index
    %c0_0 = arith.constant 0 : index
    %0 = vector.load %arg2[%c0, %c0_0] : memref<128x194xbf16, #tpu.memory_space<vmem>>, vector<128x194xbf16>
    %c0_1 = arith.constant 0 : index
    %c0_2 = arith.constant 0 : index
    %1 = vector.load %arg3[%c0_1, %c0_2] : memref<194x50xbf16, #tpu.memory_space<vmem>>, vector<194x50xbf16>
    %cst = arith.constant dense<0.000000e+00> : vector<128x50xf32>
    %2 = tpu.matmul %0, %1, %cst {dimension_numbers = #tpu.dot_dimension_numbers<[1], [0], [0], [1], [0, 0, 1, 1], [], []>} : vector<128x194xbf16>, vector<194x50xbf16>, vector<128x50xf32> -> vector<128x50xf32>
    %3 = arith.truncf %2 : vector<128x50xf32> to vector<128x50xbf16>
    %c0_3 = arith.constant 0 : index
    %c0_4 = arith.constant 0 : index
    %4 = vector.load %arg4[%c0_3, %c0_4] : memref<128x50xbf16, #tpu.memory_space<vmem>>, vector<128x50xbf16>
    tpu.vector_store %arg4[%c0_3, %c0_4], %3 {strides = array<i32>} : memref<128x50xbf16, #tpu.memory_space<vmem>>, vector<128x50xbf16>,
    return
  }
  func.func @transform_0(%arg0: i32, %arg1: i32) -> (i32, i32) {
    %c0_i32 = arith.constant 0 : i32
    %c0_i32_0 = arith.constant 0 : i32
    return %arg0, %c0_i32 : i32, i32
  }
  func.func @transform_1(%arg0: i32, %arg1: i32) -> (i32, i32) {
    %c0_i32 = arith.constant 0 : i32
    %c0_i32_0 = arith.constant 0 : i32
    return %c0_i32, %arg1 : i32, i32
  }
  func.func @transform_2(%arg0: i32, %arg1: i32) -> (i32, i32) {
    %c0_i32 = arith.constant 0 : i32
    return %arg0, %arg1 : i32, i32
  }
}

module attributes {stable_mosaic.version = 11 : i64} {
  func.func @_kn2row_sum_kernel(%arg0: i32, %arg1: memref<1x8x8x50xbf16, #tpu.memory_space<vmem>>, %arg2: memref<1x4x4x2xf32, #tpu.memory_space<vmem>>) attributes {dimension_semantics = [#tpu.dimension_semantics<parallel>], iteration_bounds = array<i64: 2>, scalar_prefetch = 0 : i64, scratch_operands = 0 : i64, tpu.core_type = #tpu.core_type<tc>, window_params = [{transform_indices = @transform_0, window_bounds = array<i64: 1, 8, 8, 50>}, {transform_indices = @transform_1, window_bounds = array<i64: 1, 4, 4, 2>}]} {
    %c0 = arith.constant 0 : index
    %c0_0 = arith.constant 0 : index
    %c0_1 = arith.constant 0 : index
    %c0_2 = arith.constant 0 : index
    %0 = vector.load %arg1[%c0, %c0_0, %c0_1, %c0_2] : memref<1x8x8x50xbf16, #tpu.memory_space<vmem>>, vector<1x8x8x50xbf16>
    %1 = vector.shape_cast %0 : vector<1x8x8x50xbf16> to vector<8x8x50xbf16>
    %cst = arith.constant 0.000000e+00 : f32
    %2 = vector.broadcast %cst : f32 to vector<4x4x2xf32>
    %3 = vector.extract_strided_slice %1 {offsets = [0, 0, 0], sizes = [4, 4, 2], strides = [1, 1, 1]} : vector<8x8x50xbf16> to vector<4x4x2xbf16>
    %4 = arith.extf %3 : vector<4x4x2xbf16> to vector<4x4x2xf32>
    %5 = arith.addf %2, %4 : vector<4x4x2xf32>
    %6 = vector.extract_strided_slice %1 {offsets = [0, 1, 2], sizes = [4, 4, 2], strides = [1, 1, 1]} : vector<8x8x50xbf16> to vector<4x4x2xbf16>
    %7 = arith.extf %6 : vector<4x4x2xbf16> to vector<4x4x2xf32>
    %8 = arith.addf %5, %7 : vector<4x4x2xf32>
    %9 = vector.extract_strided_slice %1 {offsets = [0, 2, 4], sizes = [4, 4, 2], strides = [1, 1, 1]} : vector<8x8x50xbf16> to vector<4x4x2xbf16>
    %10 = arith.extf %9 : vector<4x4x2xbf16> to vector<4x4x2xf32>
    %11 = arith.addf %8, %10 : vector<4x4x2xf32>
    %12 = vector.extract_strided_slice %1 {offsets = [0, 3, 6], sizes = [4, 4, 2], strides = [1, 1, 1]} : vector<8x8x50xbf16> to vector<4x4x2xbf16>
    %13 = arith.extf %12 : vector<4x4x2xbf16> to vector<4x4x2xf32>
    %14 = arith.addf %11, %13 : vector<4x4x2xf32>
    %15 = vector.extract_strided_slice %1 {offsets = [0, 4, 8], sizes = [4, 4, 2], strides = [1, 1, 1]} : vector<8x8x50xbf16> to vector<4x4x2xbf16>
    %16 = arith.extf %15 : vector<4x4x2xbf16> to vector<4x4x2xf32>
    %17 = arith.addf %14, %16 : vector<4x4x2xf32>
    %18 = vector.extract_strided_slice %1 {offsets = [1, 0, 10], sizes = [4, 4, 2], strides = [1, 1, 1]} : vector<8x8x50xbf16> to vector<4x4x2xbf16>
    %19 = arith.extf %18 : vector<4x4x2xbf16> to vector<4x4x2xf32>
    %20 = arith.addf %17, %19 : vector<4x4x2xf32>
    %21 = vector.extract_strided_slice %1 {offsets = [1, 1, 12], sizes = [4, 4, 2], strides = [1, 1, 1]} : vector<8x8x50xbf16> to vector<4x4x2xbf16>
    %22 = arith.extf %21 : vector<4x4x2xbf16> to vector<4x4x2xf32>
    %23 = arith.addf %20, %22 : vector<4x4x2xf32>
    %24 = vector.extract_strided_slice %1 {offsets = [1, 2, 14], sizes = [4, 4, 2], strides = [1, 1, 1]} : vector<8x8x50xbf16> to vector<4x4x2xbf16>
    %25 = arith.extf %24 : vector<4x4x2xbf16> to vector<4x4x2xf32>
    %26 = arith.addf %23, %25 : vector<4x4x2xf32>
    %27 = vector.extract_strided_slice %1 {offsets = [1, 3, 16], sizes = [4, 4, 2], strides = [1, 1, 1]} : vector<8x8x50xbf16> to vector<4x4x2xbf16>
    %28 = arith.extf %27 : vector<4x4x2xbf16> to vector<4x4x2xf32>
    %29 = arith.addf %26, %28 : vector<4x4x2xf32>
    %30 = vector.extract_strided_slice %1 {offsets = [1, 4, 18], sizes = [4, 4, 2], strides = [1, 1, 1]} : vector<8x8x50xbf16> to vector<4x4x2xbf16>
    %31 = arith.extf %30 : vector<4x4x2xbf16> to vector<4x4x2xf32>
    %32 = arith.addf %29, %31 : vector<4x4x2xf32>
    %33 = vector.extract_strided_slice %1 {offsets = [2, 0, 20], sizes = [4, 4, 2], strides = [1, 1, 1]} : vector<8x8x50xbf16> to vector<4x4x2xbf16>
    %34 = arith.extf %33 : vector<4x4x2xbf16> to vector<4x4x2xf32>
    %35 = arith.addf %32, %34 : vector<4x4x2xf32>
    %36 = vector.extract_strided_slice %1 {offsets = [2, 1, 22], sizes = [4, 4, 2], strides = [1, 1, 1]} : vector<8x8x50xbf16> to vector<4x4x2xbf16>
    %37 = arith.extf %36 : vector<4x4x2xbf16> to vector<4x4x2xf32>
    %38 = arith.addf %35, %37 : vector<4x4x2xf32>
    %39 = vector.extract_strided_slice %1 {offsets = [2, 2, 24], sizes = [4, 4, 2], strides = [1, 1, 1]} : vector<8x8x50xbf16> to vector<4x4x2xbf16>
    %40 = arith.extf %39 : vector<4x4x2xbf16> to vector<4x4x2xf32>
    %41 = arith.addf %38, %40 : vector<4x4x2xf32>
    %42 = vector.extract_strided_slice %1 {offsets = [2, 3, 26], sizes = [4, 4, 2], strides = [1, 1, 1]} : vector<8x8x50xbf16> to vector<4x4x2xbf16>
    %43 = arith.extf %42 : vector<4x4x2xbf16> to vector<4x4x2xf32>
    %44 = arith.addf %41, %43 : vector<4x4x2xf32>
    %45 = vector.extract_strided_slice %1 {offsets = [2, 4, 28], sizes = [4, 4, 2], strides = [1, 1, 1]} : vector<8x8x50xbf16> to vector<4x4x2xbf16>
    %46 = arith.extf %45 : vector<4x4x2xbf16> to vector<4x4x2xf32>
    %47 = arith.addf %44, %46 : vector<4x4x2xf32>
    %48 = vector.extract_strided_slice %1 {offsets = [3, 0, 30], sizes = [4, 4, 2], strides = [1, 1, 1]} : vector<8x8x50xbf16> to vector<4x4x2xbf16>
    %49 = arith.extf %48 : vector<4x4x2xbf16> to vector<4x4x2xf32>
    %50 = arith.addf %47, %49 : vector<4x4x2xf32>
    %51 = vector.extract_strided_slice %1 {offsets = [3, 1, 32], sizes = [4, 4, 2], strides = [1, 1, 1]} : vector<8x8x50xbf16> to vector<4x4x2xbf16>
    %52 = arith.extf %51 : vector<4x4x2xbf16> to vector<4x4x2xf32>
    %53 = arith.addf %50, %52 : vector<4x4x2xf32>
    %54 = vector.extract_strided_slice %1 {offsets = [3, 2, 34], sizes = [4, 4, 2], strides = [1, 1, 1]} : vector<8x8x50xbf16> to vector<4x4x2xbf16>
    %55 = arith.extf %54 : vector<4x4x2xbf16> to vector<4x4x2xf32>
    %56 = arith.addf %53, %55 : vector<4x4x2xf32>
    %57 = vector.extract_strided_slice %1 {offsets = [3, 3, 36], sizes = [4, 4, 2], strides = [1, 1, 1]} : vector<8x8x50xbf16> to vector<4x4x2xbf16>
    %58 = arith.extf %57 : vector<4x4x2xbf16> to vector<4x4x2xf32>
    %59 = arith.addf %56, %58 : vector<4x4x2xf32>
    %60 = vector.extract_strided_slice %1 {offsets = [3, 4, 38], sizes = [4, 4, 2], strides = [1, 1, 1]} : vector<8x8x50xbf16> to vector<4x4x2xbf16>
    %61 = arith.extf %60 : vector<4x4x2xbf16> to vector<4x4x2xf32>
    %62 = arith.addf %59, %61 : vector<4x4x2xf32>
    %63 = vector.extract_strided_slice %1 {offsets = [4, 0, 40], sizes = [4, 4, 2], strides = [1, 1, 1]} : vector<8x8x50xbf16> to vector<4x4x2xbf16>
    %64 = arith.extf %63 : vector<4x4x2xbf16> to vector<4x4x2xf32>
    %65 = arith.addf %62, %64 : vector<4x4x2xf32>
    %66 = vector.extract_strided_slice %1 {offsets = [4, 1, 42], sizes = [4, 4, 2], strides = [1, 1, 1]} : vector<8x8x50xbf16> to vector<4x4x2xbf16>
    %67 = arith.extf %66 : vector<4x4x2xbf16> to vector<4x4x2xf32>
    %68 = arith.addf %65, %67 : vector<4x4x2xf32>
    %69 = vector.extract_strided_slice %1 {offsets = [4, 2, 44], sizes = [4, 4, 2], strides = [1, 1, 1]} : vector<8x8x50xbf16> to vector<4x4x2xbf16>
    %70 = arith.extf %69 : vector<4x4x2xbf16> to vector<4x4x2xf32>
    %71 = arith.addf %68, %70 : vector<4x4x2xf32>
    %72 = vector.extract_strided_slice %1 {offsets = [4, 3, 46], sizes = [4, 4, 2], strides = [1, 1, 1]} : vector<8x8x50xbf16> to vector<4x4x2xbf16>
    %73 = arith.extf %72 : vector<4x4x2xbf16> to vector<4x4x2xf32>
    %74 = arith.addf %71, %73 : vector<4x4x2xf32>
    %75 = vector.extract_strided_slice %1 {offsets = [4, 4, 48], sizes = [4, 4, 2], strides = [1, 1, 1]} : vector<8x8x50xbf16> to vector<4x4x2xbf16>
    %76 = arith.extf %75 : vector<4x4x2xbf16> to vector<4x4x2xf32>
    %77 = arith.addf %74, %76 : vector<4x4x2xf32>
    %c0_3 = arith.constant 0 : index
    %c0_4 = arith.constant 0 : index
    %c0_5 = arith.constant 0 : index
    %c0_6 = arith.constant 0 : index
    %78 = vector.load %arg2[%c0_3, %c0_4, %c0_5, %c0_6] : memref<1x4x4x2xf32, #tpu.memory_space<vmem>>, vector<1x4x4x2xf32>
    %79 = vector.shape_cast %78 : vector<1x4x4x2xf32> to vector<4x4x2xf32>
    %80 = vector.shape_cast %77 : vector<4x4x2xf32> to vector<1x4x4x2xf32>
    tpu.vector_store %arg2[%c0_3, %c0_4, %c0_5, %c0_6], %80 {strides = array<i32>} : memref<1x4x4x2xf32, #tpu.memory_space<vmem>>, vector<1x4x4x2xf32>,
    return
  }
  func.func @transform_0(%arg0: i32) -> (i32, i32, i32, i32) {
    %c0_i32 = arith.constant 0 : i32
    %c0_i32_0 = arith.constant 0 : i32
    %c0_i32_1 = arith.constant 0 : i32
    %c0_i32_2 = arith.constant 0 : i32
    return %arg0, %c0_i32, %c0_i32_0, %c0_i32_1 : i32, i32, i32, i32
  }
  func.func @transform_1(%arg0: i32) -> (i32, i32, i32, i32) {
    %c0_i32 = arith.constant 0 : i32
    %c0_i32_0 = arith.constant 0 : i32
    %c0_i32_1 = arith.constant 0 : i32
    %c0_i32_2 = arith.constant 0 : i32
    return %arg0, %c0_i32, %c0_i32_0, %c0_i32_1 : i32, i32, i32, i32
  }
}

</mosaic_0001>

<bundles_post_ra>
// kernel: light_flow_net.15
= control target key start
LH: loop header
LB: loop body
LE: loop exit
PB: predicated region body
PF: predicated region fallthrough
CT: control target
= control target key end

     0   :  { %vm337_vm0 = vcmask 1042432   ;;  %vm312_vm1 = vcmask 310272   ;;  %vm615_vm2 = vcmask 519168   ;;  %s1112_s1 = inlined_call_operand.vmem [shape: bf16[294,64], index: 1, kind: input, shape index: {}]   ;;  %s1113_s0 = inlined_call_operand.vmem [shape: bf16[128,294], index: 0, kind: input, shape index: {}]   ;;  %s1114_s2 = inlined_call_operand.vmem [shape: bf16[128,64], index: 2, kind: output, shape index: {}]  }
   0x1   :  { %v833_v0 = vld [vmem:[%s1112_s1 + $0x40] sm:$0xff]   ;;  %v835_v2 = vld [vmem:[%s1112_s1 + $0x48] sm:$0xff]   ;;  %v837_v4 = vld [vmem:[%s1112_s1 + $0x50] sm:$0xff]  }
   0x2   :  { %v834_v1 = vld [vmem:[%s1112_s1] sm:$0xff]   ;;  %719 = vmatprep.subr.bf16.mxu0 %v833_v0  ;;  %816 = vmatprep.subr.bf16.mxu1 %v833_v0  ;;  %v836_v3 = vld [vmem:[%s1112_s1 + $0x8] sm:$0xff]   ;;  %v838_v5 = vld [vmem:[%s1112_s1 + $0x10] sm:$0xff]  }
   0x3   :  { %720 = vmatpush3.bf16.msra.mxu0 %v834_v1  ;;  %824 = vmatpush3.bf16.msra.mxu1 %v834_v1  ;;  %v839_v6 = vld [vmem:[%s1112_s1 + $0x58] sm:$0xff]   ;;  %v841_v8 = vld [vmem:[%s1112_s1 + $0x60] sm:$0xff]   ;;  %v843_v10 = vld [vmem:[%s1112_s1 + $0x68] sm:$0xff]  }
   0x4   :  { %721 = vmatprep.subr.bf16.mxu0 %v835_v2  ;;  %817 = vmatprep.subr.bf16.mxu1 %v835_v2  ;;  %v840_v7 = vld [vmem:[%s1112_s1 + $0x18] sm:$0xff]   ;;  %v842_v9 = vld [vmem:[%s1112_s1 + $0x20] sm:$0xff]   ;;  %v844_v13 = vld [vmem:[%s1112_s1 + $0x28] sm:$0xff]  }
   0x5   :  { %v851_v11 = vld [vmem:[%s1113_s0 + $0x4] ss:$12 sps:$4 sm:$0xff]   ;;  %v854_v12 = vld [vmem:[%s1113_s0 + $0x94] ss:$12 sps:$4 sm:$0xff]   ;;  %v847_v16 = vld [vmem:[%s1112_s1 + $0x78] sm:$0xff]  }
   0x6   :  { %v845_v14 = vld [vmem:[%s1112_s1 + $0x70] sm:$0xff]   ;;  %373 = vmatprep.mubr.bf16.mxu0 %v851_v11  ;;  %421 = vmatprep.mubr.bf16.mxu1 %v854_v12  ;;  %v848_v17 = vld [vmem:[%s1112_s1 + $0x38] sm:$0xff]   ;;  %v855_v18 = vld [vmem:[%s1112_s1 + $0x80] sm:$0xff]  }
   0x7   :  { %722 = vmatpush3.bf16.msra.mxu0 %v836_v3  ;;  %825 = vmatpush3.bf16.msra.mxu1 %v836_v3  ;;  %v846_v15 = vld [vmem:[%s1112_s1 + $0x30] sm:$0xff]   ;;  %v849_v19 = vld [vmem:[%s1113_s0] ss:$12 sps:$4 sm:$0xff]   ;;  %v856_v21 = vld [vmem:[%s1113_s0 + $0x1c] ss:$12 sps:$4 sm:$0xff]  }
   0x8   :  { %723 = vmatprep.subr.bf16.mxu0 %v837_v4  ;;  %818 = vmatprep.subr.bf16.mxu1 %v837_v4  ;;  %v852_v20 = vld [vmem:[%s1113_s0 + $0x90] ss:$12 sps:$4 sm:$0xff]   ;;  %v858_v22 = vld [vmem:[%s1113_s0 + $0xac] ss:$12 sps:$4 sm:$0xff]   ;;  %v862_v26 = vld [vmem:[%s1113_s0 + $0xa8] ss:$12 sps:$4 sm:$0xff]  }
   0x9   :  { %v860_v23 = vld [vmem:[%s1112_s1 + $0x88] sm:$0xff]   ;;  %v863_v24 = vld [vmem:[%s1112_s1 + $0x90] ss:$0 sps:$4 sm:$0x77]   ;;  %v861_v25 = vld [vmem:[%s1113_s0 + $0x18] ss:$12 sps:$4 sm:$0xff]  }
   0xa   :  { %v864_v27 = vld [vmem:[%s1113_s0 + $0x34] ss:$12 sps:$4 sm:$0xff]   ;;  %v339_v28 = vsel %vm337_vm0, %v863_v24, 0  ;;  %v867_v30 = vld [vmem:[%s1113_s0 + $0x30] ss:$12 sps:$4 sm:$0xff]  }
   0xb   :  { %724 = vmatpush3.bf16.msra.mxu0 %v838_v5  ;;  %826 = vmatpush3.bf16.msra.mxu1 %v838_v5  ;;  %v866_v29 = vld [vmem:[%s1113_s0 + $0x8] ss:$12 sps:$4 sm:$0xff]   ;;  %v868_v31 = vld [vmem:[%s1113_s0 + $0x20] ss:$12 sps:$4 sm:$0xff]   ;;  %v871_v33 = vld [vmem:[%s1113_s0 + $0x38] ss:$12 sps:$4 sm:$0xff]  }
   0xc   :  { %725 = vmatprep.subr.bf16.mxu0 %v839_v6  ;;  %819 = vmatprep.subr.bf16.mxu1 %v839_v6  ;;  %v869_v32 = vld [vmem:[%s1113_s0 + $0x4c] ss:$12 sps:$4 sm:$0xff]   ;;  %v872_v34 = vld [vmem:[%s1113_s0 + $0x48] ss:$12 sps:$4 sm:$0xff]   ;;  %v873_v35 = vld [vmem:[%s1113_s0 + $0x50] ss:$12 sps:$4 sm:$0xff]  }
   0xd   :  { %v874_v36 = vld [vmem:[%s1113_s0 + $0x64] ss:$12 sps:$4 sm:$0xff]   ;;  %v876_v37 = vld [vmem:[%s1113_s0 + $0x68] ss:$12 sps:$4 sm:$0xff]   ;;  %v877_v38 = vld [vmem:[%s1113_s0 + $0x60] ss:$12 sps:$4 sm:$0xff]  }
   0xe   :  { %v878_v39 = vld [vmem:[%s1113_s0 + $0x80] ss:$12 sps:$4 sm:$0xff]   ;;  %v879_v40 = vld [vmem:[%s1113_s0 + $0x7c] ss:$12 sps:$4 sm:$0xff]   ;;  %v881_v41 = vld [vmem:[%s1113_s0 + $0x98] ss:$12 sps:$4 sm:$0xff]  }
   0xf   :  { %726 = vmatpush3.bf16.msra.mxu0 %v840_v7  ;;  %827 = vmatpush3.bf16.msra.mxu1 %v840_v7  ;;  %v882_v42 = vld [vmem:[%s1113_s0 + $0x78] ss:$12 sps:$4 sm:$0xff]   ;;  %v883_v43 = vld [vmem:[%s1113_s0 + $0xb0] ss:$12 sps:$4 sm:$0xff]  }
  0x10   :  { %727 = vmatprep.subr.bf16.mxu0 %v841_v8  ;;  %820 = vmatprep.subr.bf16.mxu1 %v841_v8 }
  0x13   :  { %728 = vmatpush3.bf16.msra.mxu0 %v842_v9  ;;  %828 = vmatpush3.bf16.msra.mxu1 %v842_v9 }
  0x14   :  { %729 = vmatprep.subr.bf16.mxu0 %v843_v10  ;;  %821 = vmatprep.subr.bf16.mxu1 %v843_v10 }
  0x17   :  { %730 = vmatpush3.bf16.msra.mxu0 %v844_v13  ;;  %829 = vmatpush3.bf16.msra.mxu1 %v844_v13 }
  0x18   :  { %731 = vmatprep.subr.bf16.mxu0 %v845_v14  ;;  %822 = vmatprep.subr.bf16.mxu1 %v845_v14 }
  0x1b   :  { %732 = vmatpush3.bf16.msra.mxu0 %v846_v15  ;;  %830 = vmatpush3.bf16.msra.mxu1 %v846_v15 }
  0x1c   :  { %733 = vmatprep.subr.bf16.mxu0 %v847_v16  ;;  %823 = vmatprep.subr.bf16.mxu1 %v847_v16 }
  0x1f   :  { %734 = vmatpush3.bf16.msra.mxu0 %v848_v17  ;;  %831 = vmatpush3.bf16.msra.mxu1 %v848_v17 }
  0x20   :  { %794 = vmatprep.subr.bf16.mxu1 %v855_v18 }
  0x22   :  { %374 = vmatmul.mubr.bf16.vlgmr.msra.gmra.mrb[0].mxu0 %v849_v19  ;;  %422 = vmatmul.mubr.bf16.vlgmr.msra.gmra.mrb[0].mxu1 %v852_v20 }
  0x23   :  { %795 = vmatpush3.bf16.msra.mxu1 %v855_v18  ;;  %381 = vmatprep.mubr.bf16.mxu0 %v856_v21 }
  0x24   :  { %429 = vmatprep.mubr.bf16.mxu1 %v858_v22  ;;  %796 = vmatprep.subr.bf16.mxu1 %v860_v23 }
  0x27   :  { %797 = vmatpush3.bf16.msra.mxu1 %v860_v23 }
  0x28   :  { %832 = vmatprep.subr.msk.bf16.mxu1 %vm337_vm0, %v863_v24 }
  0x2a   :  { %382 = vmatmul.mubr.bf16.gmra.mrb[4].mxu0 %v861_v25  ;;  %430 = vmatmul.mubr.bf16.gmra.mrb[4].mxu1 %v862_v26 }
  0x2b   :  { %799 = vmatpush3.bf16.msra.mxu1 %v339_v28  ;;  %389 = vmatprep.mubr.bf16.mxu0 %v864_v27 }
  0x2c   :  { %800 = vmatprep.mubr.msk.bf16.mxu1 %vm312_vm1, %v866_v29 }
  0x32   :  { %390 = vmatmul.mubr.bf16.gmra.mrb[8].mxu0 %v867_v30  ;;  %801 = vmatmul.mubr.msk.bf16.vlgmr.msra.gmra.mrb[8].mxu1 %vm312_vm1, %v868_v31 }
  0x33   :  { %397 = vmatprep.mubr.bf16.mxu0 %v869_v32  ;;  %804 = vmatprep.mubr.msk.bf16.mxu1 %vm312_vm1, %v871_v33 }
  0x3a   :  { %398 = vmatmul.mubr.bf16.gmra.mrb[12].mxu0 %v872_v34  ;;  %805 = vmatmul.mubr.msk.bf16.gmra.mrb[12].mxu1 %vm312_vm1, %v873_v35 }
  0x3b   :  { %405 = vmatprep.mubr.bf16.mxu0 %v874_v36  ;;  %808 = vmatprep.mubr.msk.bf16.mxu1 %vm312_vm1, %v876_v37 }
  0x42   :  { %406 = vmatmul.mubr.bf16.gmra.mrb[16].mxu0 %v877_v38  ;;  %809 = vmatmul.mubr.msk.bf16.gmra.mrb[16].mxu1 %vm312_vm1, %v878_v39 }
  0x43   :  { %413 = vmatprep.mubr.bf16.mxu0 %v879_v40  ;;  %812 = vmatprep.mubr.msk.bf16.mxu1 %vm312_vm1, %v881_v41 }
  0x4a   :  { %414 = vmatmul.mubr.bf16.gmra.mrb[20].mxu0 %v882_v42  ;;  %813 = vmatmul.mubr.msk.bf16.gmra.mrb[20].mxu1 %vm312_vm1, %v883_v43 }
  0xf5   :  { %v735_v44 = vpop.f32.mrb[0].mxu0  ;;  %v771_v45 = vpop.f32.mrb[0].mxu1 }
  0xf6   :  { %v736_v46 = vpop.f32.mrb[1].mxu0  ;;  %v772_v47 = vpop.f32.mrb[1].mxu1 }
  0xf7   :  { %v737_v48 = vadd.f32 %v736_v46, %v735_v44  ;;  %v1036_v49 = vadd.f32 %v772_v47, %v771_v45  ;;  %v738_v50 = vpop.f32.mrb[2].mxu0  ;;  %v774_v51 = vpop.f32.mrb[2].mxu1 }
  0xf8   :  { %v739_v52 = vpop.f32.mrb[3].mxu0  ;;  %v775_v53 = vpop.f32.mrb[3].mxu1 }
  0xf9   :  { %v740_v54 = vadd.f32 %v739_v52, %v738_v50  ;;  %v1038_v55 = vadd.f32 %v775_v53, %v774_v51 }
  0xfd   :  { %v741_v56 = vpop.f32.mrb[4].mxu0  ;;  %v777_v57 = vpop.f32.mrb[4].mxu1 }
  0xfe   :  { %v742_v58 = vpop.f32.mrb[5].mxu0  ;;  %v778_v59 = vpop.f32.mrb[5].mxu1 }
  0xff   :  { %v743_v60 = vadd.f32 %v742_v58, %v741_v56  ;;  %v1040_v61 = vadd.f32 %v778_v59, %v777_v57  ;;  %v744_v62 = vpop.f32.mrb[6].mxu0  ;;  %v780_v63 = vpop.f32.mrb[6].mxu1 }
 0x100   :  { %v745_v0 = vpop.f32.mrb[7].mxu0  ;;  %v781_v1 = vpop.f32.mrb[7].mxu1 }
 0x101   :  { %v746_v2 = vadd.f32 %v745_v0, %v744_v62  ;;  %v1042_v3 = vadd.f32 %v781_v1, %v780_v63 }
 0x105   :  { %v747_v4 = vpop.f32.mrb[8].mxu0  ;;  %v802_v5 = vpop.f32.mrb[8].mxu1 }
 0x106   :  { %v481_v6 = vadd.f32 %v802_v5, %v743_v60  ;;  %v748_v7 = vpop.f32.mrb[9].mxu0  ;;  %v472_v8 = vpop.f32.mrb[9].mxu1 }
 0x107   :  { %v749_v9 = vadd.f32 %v748_v7, %v747_v4  ;;  %v473_v10 = vadd.f32 %v737_v48, %v472_v8  ;;  %v750_v11 = vpop.f32.mrb[10].mxu0  ;;  %v803_v12 = vpop.f32.mrb[10].mxu1 }
 0x108   :  { %v537_v13 = vmax.f32 %v481_v6, 0.0  ;;  %v484_v14 = vadd.f32 %v803_v12, %v746_v2  ;;  %v751_v15 = vpop.f32.mrb[11].mxu0  ;;  %v475_v16 = vpop.f32.mrb[11].mxu1 }
 0x109   :  { %v535_v17 = vmax.f32 %v473_v10, 0.0  ;;  %v752_v18 = vadd.f32 %v751_v15, %v750_v11  ;;  %v476_v19 = vadd.f32 %v740_v54, %v475_v16 }
 0x10a   :  { %v705_v20 = vpack.c.bf16 %v537_v13, %v537_v13  ;;  %v538_v21 = vmax.f32 %v484_v14, 0.0 }
 0x10b   :  { %v703_v22 = vpack.c.bf16 %v535_v17, %v535_v17  ;;  %v536_v23 = vmax.f32 %v476_v19, 0.0 }
 0x10c   :  { %618 = vst.msk [vmem:[%s1114_s2 + $0x8] sm:$0xf] %vm615_vm2, %v705_v20  ;;  %v706_v24 = vpack.c.bf16 %v538_v21, %v538_v21 }
 0x10d   :  { %616 = vst.msk [vmem:[%s1114_s2] sm:$0xf] %vm615_vm2, %v703_v22  ;;  %v704_v25 = vpack.c.bf16 %v536_v23, %v536_v23  ;;  %v753_v26 = vpop.f32.mrb[12].mxu0  ;;  %v806_v27 = vpop.f32.mrb[12].mxu1 }
 0x10e   :  { %619 = vst.msk [vmem:[%s1114_s2 + $0xc] sm:$0xf] %vm615_vm2, %v706_v24  ;;  %v754_v28 = vpop.f32.mrb[13].mxu0  ;;  %v488_v29 = vpop.f32.mrb[13].mxu1 }
 0x10f   :  { %617 = vst.msk [vmem:[%s1114_s2 + $0x4] sm:$0xf] %vm615_vm2, %v704_v25  ;;  %v755_v30 = vadd.f32 %v754_v28, %v753_v26  ;;  %v489_v31 = vadd.f32 %v749_v9, %v488_v29  ;;  %v756_v32 = vpop.f32.mrb[14].mxu0  ;;  %v807_v33 = vpop.f32.mrb[14].mxu1 }
 0x110   :  { %v757_v34 = vpop.f32.mrb[15].mxu0  ;;  %v491_v35 = vpop.f32.mrb[15].mxu1 }
 0x111   :  { %v497_v36 = vadd.f32 %v806_v27, %v755_v30  ;;  %v539_v37 = vmax.f32 %v489_v31, 0.0  ;;  %v758_v38 = vadd.f32 %v757_v34, %v756_v32  ;;  %v492_v39 = vadd.f32 %v752_v18, %v491_v35 }
 0x113   :  { %v541_v40 = vmax.f32 %v497_v36, 0.0  ;;  %v707_v41 = vpack.c.bf16 %v539_v37, %v539_v37  ;;  %v500_v42 = vadd.f32 %v807_v33, %v758_v38  ;;  %v540_v43 = vmax.f32 %v492_v39, 0.0 }
 0x115   :  { %v709_v44 = vpack.c.bf16 %v541_v40, %v541_v40  ;;  %620 = vst.msk [vmem:[%s1114_s2 + $0x10] sm:$0xf] %vm615_vm2, %v707_v41  ;;  %v542_v45 = vmax.f32 %v500_v42, 0.0  ;;  %v708_v46 = vpack.c.bf16 %v540_v43, %v540_v43  ;;  %v759_v47 = vpop.f32.mrb[16].mxu0  ;;  %v810_v48 = vpop.f32.mrb[16].mxu1 }
 0x116   :  { %v760_v50 = vpop.f32.mrb[17].mxu0  ;;  %v504_v51 = vpop.f32.mrb[17].mxu1 }
 0x117   :  { %622 = vst.msk [vmem:[%s1114_s2 + $0x18] sm:$0xf] %vm615_vm2, %v709_v44  ;;  %v710_v52 = vpack.c.bf16 %v542_v45, %v542_v45  ;;  %621 = vst.msk [vmem:[%s1114_s2 + $0x14] sm:$0xf] %vm615_vm2, %v708_v46  ;;  %v761_v53 = vadd.f32 %v760_v50, %v759_v47  ;;  %v762_v54 = vpop.f32.mrb[18].mxu0  ;;  %v811_v56 = vpop.f32.mrb[18].mxu1 }
 0x118   :  { %v763_v57 = vpop.f32.mrb[19].mxu0  ;;  %v507_v58 = vpop.f32.mrb[19].mxu1 }
 0x119   :  { %623 = vst.msk [vmem:[%s1114_s2 + $0x1c] sm:$0xf] %vm615_vm2, %v710_v52  ;;  %v505_v59 = vadd.f32 %v761_v53, %v504_v51  ;;  %v764_v60 = vadd.f32 %v763_v57, %v762_v54 }
 0x11b   :  { %v543_v62 = vmax.f32 %v505_v59, 0.0  ;;  %v508_v63 = vadd.f32 %v764_v60, %v507_v58 }
 0x11d   :  { %v711_v0 = vpack.c.bf16 %v543_v62, %v543_v62  ;;  %v544_v1 = vmax.f32 %v508_v63, 0.0  ;;  %v765_v2 = vpop.f32.mrb[20].mxu0  ;;  %v814_v4 = vpop.f32.mrb[20].mxu1 }
 0x11e   :  { %v529_v5 = vadd.f32 %v814_v4, %v1040_v61  ;;  %v766_v6 = vpop.f32.mrb[21].mxu0  ;;  %v520_v7 = vpop.f32.mrb[21].mxu1 }
 0x11f   :  { %624 = vst.msk [vmem:[%s1114_s2 + $0x20] sm:$0xf] %vm615_vm2, %v711_v0  ;;  %v712_v8 = vpack.c.bf16 %v544_v1, %v544_v1  ;;  %v767_v9 = vadd.f32 %v766_v6, %v765_v2  ;;  %v521_v10 = vadd.f32 %v1036_v49, %v520_v7  ;;  %v768_v11 = vpop.f32.mrb[22].mxu0  ;;  %v815_v12 = vpop.f32.mrb[22].mxu1 }
 0x120   :  { %v549_v13 = vmax.f32 %v529_v5, 0.0  ;;  %v532_v14 = vadd.f32 %v815_v12, %v1042_v3  ;;  %v769_v15 = vpop.f32.mrb[23].mxu0  ;;  %v523_v16 = vpop.f32.mrb[23].mxu1 }
 0x121   :  { %625 = vst.msk [vmem:[%s1114_s2 + $0x24] sm:$0xf] %vm615_vm2, %v712_v8  ;;  %v513_v61 = vadd.f32 %v810_v48, %v767_v9  ;;  %v547_v17 = vmax.f32 %v521_v10, 0.0  ;;  %v770_v18 = vadd.f32 %v769_v15, %v768_v11  ;;  %v524_v19 = vadd.f32 %v1038_v55, %v523_v16 }
 0x122   :  { %v717_v20 = vpack.c.bf16 %v549_v13, %v549_v13  ;;  %v550_v21 = vmax.f32 %v532_v14, 0.0 }
 0x123   :  { %v545_v49 = vmax.f32 %v513_v61, 0.0  ;;  %v715_v22 = vpack.c.bf16 %v547_v17, %v547_v17  ;;  %v516_v23 = vadd.f32 %v811_v56, %v770_v18  ;;  %v548_v24 = vmax.f32 %v524_v19, 0.0 }
 0x124   :  { %630 = vst.msk [vmem:[%s1114_s2 + $0x38] sm:$0xf] %vm615_vm2, %v717_v20  ;;  %v718_v3 = vpack.c.bf16 %v550_v21, %v550_v21 }
 0x125   :  { %v713_v25 = vpack.c.bf16 %v545_v49, %v545_v49  ;;  %628 = vst.msk [vmem:[%s1114_s2 + $0x30] sm:$0xf] %vm615_vm2, %v715_v22  ;;  %v546_v26 = vmax.f32 %v516_v23, 0.0  ;;  %v716_v55 = vpack.c.bf16 %v548_v24, %v548_v24 }
 0x126   :  { %631 = vst.msk [vmem:[%s1114_s2 + $0x3c] sm:$0xf] %vm615_vm2, %v718_v3 }
 0x127   :  { %626 = vst.msk [vmem:[%s1114_s2 + $0x28] sm:$0xf] %vm615_vm2, %v713_v25  ;;  %v714_v27 = vpack.c.bf16 %v546_v26, %v546_v26  ;;  %629 = vst.msk [vmem:[%s1114_s2 + $0x34] sm:$0xf] %vm615_vm2, %v716_v55 }
 0x129   :  { %627 = vst.msk [vmem:[%s1114_s2 + $0x2c] sm:$0xf] %vm615_vm2, %v714_v27 }

// kernel: light_flow_net.16
= control target key start
LH: loop header
LB: loop body
LE: loop exit
PB: predicated region body
PF: predicated region fallthrough
CT: control target
= control target key end

     0   :  { %vm970_vm0 = vcmask 523264   ;;  %s2218_s1 = inlined_call_operand.vmem [shape: bf16[1600,128], index: 1, kind: input, shape index: {}]   ;;  %s2219_s0 = inlined_call_operand.vmem [shape: bf16[32,1600], index: 0, kind: input, shape index: {}]   ;;  %s2220_s2 = inlined_call_operand.vmem [shape: bf16[32,128], index: 2, kind: output, shape index: {}]  }
   0x1   :  { %v1681_v0 = vld [vmem:[%s2218_s1 + $0x40] sm:$0xff]   ;;  %v1685_v4 = vld [vmem:[%s2218_s1 + $0x48] sm:$0xff]   ;;  %v1689_v8 = vld [vmem:[%s2218_s1 + $0x50] sm:$0xff]  }
   0x2   :  { %v1682_v1 = vld [vmem:[%s2218_s1 + $0xc0] sm:$0xff]   ;;  %1495 = vmatprep.subr.bf16.mxu0 %v1681_v0  ;;  %v1686_v5 = vld [vmem:[%s2218_s1 + $0xc8] sm:$0xff]   ;;  %v1690_v9 = vld [vmem:[%s2218_s1 + $0xd0] sm:$0xff]  }
   0x3   :  { %v1683_v2 = vld [vmem:[%s2218_s1] sm:$0xff]   ;;  %1523 = vmatprep.subr.bf16.mxu1 %v1682_v1  ;;  %v1687_v6 = vld [vmem:[%s2218_s1 + $0x8] sm:$0xff]   ;;  %v1691_v10 = vld [vmem:[%s2218_s1 + $0x10] sm:$0xff]  }
   0x4   :  { %v1684_v3 = vld [vmem:[%s2218_s1 + $0x80] sm:$0xff]   ;;  %1496 = vmatpush3.bf16.msra.mxu0 %v1683_v2  ;;  %v1688_v7 = vld [vmem:[%s2218_s1 + $0x88] sm:$0xff]   ;;  %v1692_v11 = vld [vmem:[%s2218_s1 + $0x90] sm:$0xff]  }
   0x5   :  { %1524 = vmatpush3.bf16.msra.mxu1 %v1684_v3  ;;  %1497 = vmatprep.subr.bf16.mxu0 %v1685_v4  ;;  %v1693_v12 = vld [vmem:[%s2218_s1 + $0x58] sm:$0xff]   ;;  %v1697_v16 = vld [vmem:[%s2218_s1 + $0x60] sm:$0xff]   ;;  %v1701_v20 = vld [vmem:[%s2218_s1 + $0x68] sm:$0xff]  }
   0x6   :  { %1525 = vmatprep.subr.bf16.mxu1 %v1686_v5  ;;  %v1694_v13 = vld [vmem:[%s2218_s1 + $0xd8] sm:$0xff]   ;;  %v1698_v17 = vld [vmem:[%s2218_s1 + $0xe0] sm:$0xff]   ;;  %v1702_v21 = vld [vmem:[%s2218_s1 + $0xe8] sm:$0xff]  }
   0x7   :  { %v1695_v14 = vld [vmem:[%s2218_s1 + $0x18] sm:$0xff]   ;;  %v1699_v18 = vld [vmem:[%s2218_s1 + $0x20] sm:$0xff]   ;;  %v1703_v22 = vld [vmem:[%s2218_s1 + $0x28] sm:$0xff]  }
   0x8   :  { %1498 = vmatpush3.bf16.msra.mxu0 %v1687_v6  ;;  %v1696_v15 = vld [vmem:[%s2218_s1 + $0x98] sm:$0xff]   ;;  %v1700_v19 = vld [vmem:[%s2218_s1 + $0xa0] sm:$0xff]   ;;  %v1704_v23 = vld [vmem:[%s2218_s1 + $0xa8] sm:$0xff]  }
   0x9   :  { %1526 = vmatpush3.bf16.msra.mxu1 %v1688_v7  ;;  %1499 = vmatprep.subr.bf16.mxu0 %v1689_v8  ;;  %v1705_v24 = vld [vmem:[%s2218_s1 + $0x70] sm:$0xff]   ;;  %v1709_v28 = vld [vmem:[%s2218_s1 + $0x78] sm:$0xff]   ;;  %v1718_v35 = vld [vmem:[%s2219_s0 + $0xc] ss:$52 sps:$4 sm:$0xff]  }
   0xa   :  { %1527 = vmatprep.subr.bf16.mxu1 %v1690_v9  ;;  %v1706_v25 = vld [vmem:[%s2218_s1 + $0xf0] sm:$0xff]   ;;  %v1710_v29 = vld [vmem:[%s2218_s1 + $0xf8] sm:$0xff]   ;;  %v1719_v36 = vld [vmem:[%s2218_s1 + $0x140] sm:$0xff]   ;;  %1058 = vmatprep.mubr.bf16.mxu1 %v1718_v35 }
   0xb   :  { %v1707_v26 = vld [vmem:[%s2218_s1 + $0x30] sm:$0xff]   ;;  %v1711_v30 = vld [vmem:[%s2218_s1 + $0x38] sm:$0xff]   ;;  %v1720_v37 = vld [vmem:[%s2218_s1 + $0x100] sm:$0xff]  }
   0xc   :  { %1500 = vmatpush3.bf16.msra.mxu0 %v1691_v10  ;;  %v1708_v27 = vld [vmem:[%s2218_s1 + $0xb0] sm:$0xff]   ;;  %v1712_v31 = vld [vmem:[%s2218_s1 + $0xb8] sm:$0xff]   ;;  %v1721_v38 = vld [vmem:[%s2218_s1 + $0x1c0] sm:$0xff]  }
   0xd   :  { %1528 = vmatpush3.bf16.msra.mxu1 %v1692_v11  ;;  %1501 = vmatprep.subr.bf16.mxu0 %v1693_v12  ;;  %v1713_v32 = vld [vmem:[%s2219_s0] ss:$52 sps:$4 sm:$0xff]   ;;  %v1715_v33 = vld [vmem:[%s2219_s0 + $0x4] ss:$52 sps:$4 sm:$0xff]   ;;  %v1716_v34 = vld [vmem:[%s2219_s0 + $0x8] ss:$52 sps:$4 sm:$0xff]  }
   0xe   :  { %1529 = vmatprep.subr.bf16.mxu1 %v1694_v13  ;;  %1009 = vmatprep.mubr.bf16.mxu0 %v1715_v33  ;;  %v1722_v39 = vld [vmem:[%s2218_s1 + $0x180] sm:$0xff]   ;;  %v1723_v40 = vld [vmem:[%s2218_s1 + $0x148] sm:$0xff]   ;;  %v1727_v44 = vld [vmem:[%s2218_s1 + $0x150] sm:$0xff]  }
   0xf   :  { %v1724_v41 = vld [vmem:[%s2218_s1 + $0x108] sm:$0xff]   ;;  %v1728_v45 = vld [vmem:[%s2218_s1 + $0x110] sm:$0xff]   ;;  %v1731_v48 = vld [vmem:[%s2218_s1 + $0x158] sm:$0xff]  }
  0x10   :  { %1502 = vmatpush3.bf16.msra.mxu0 %v1695_v14  ;;  %v1725_v42 = vld [vmem:[%s2218_s1 + $0x1c8] sm:$0xff]   ;;  %v1729_v46 = vld [vmem:[%s2218_s1 + $0x1d0] sm:$0xff]   ;;  %v1732_v49 = vld [vmem:[%s2218_s1 + $0x118] sm:$0xff]  }
  0x11   :  { %1530 = vmatpush3.bf16.msra.mxu1 %v1696_v15  ;;  %1503 = vmatprep.subr.bf16.mxu0 %v1697_v16  ;;  %v1726_v43 = vld [vmem:[%s2218_s1 + $0x188] sm:$0xff]   ;;  %v1730_v47 = vld [vmem:[%s2218_s1 + $0x190] sm:$0xff]   ;;  %v1733_v50 = vld [vmem:[%s2218_s1 + $0x1d8] sm:$0xff]  }
  0x12   :  { %1531 = vmatprep.subr.bf16.mxu1 %v1698_v17  ;;  %v1734_v51 = vld [vmem:[%s2218_s1 + $0x198] sm:$0xff]   ;;  %v1735_v52 = vld [vmem:[%s2218_s1 + $0x160] sm:$0xff]   ;;  %v1739_v56 = vld [vmem:[%s2218_s1 + $0x168] sm:$0xff]  }
  0x13   :  { %v1736_v53 = vld [vmem:[%s2218_s1 + $0x120] sm:$0xff]   ;;  %v1742_v58 = vld [vmem:[%s2219_s0 + $0x74] ss:$52 sps:$4 sm:$0xff]   ;;  %v1753_v4 = vld [vmem:[%s2218_s1 + $0x178] sm:$0xff]  }
  0x14   :  { %1504 = vmatpush3.bf16.msra.mxu0 %v1699_v18  ;;  %v1737_v54 = vld [vmem:[%s2218_s1 + $0x1e0] sm:$0xff]   ;;  %v1744_v59 = vld [vmem:[%s2218_s1 + $0x128] sm:$0xff]   ;;  %v1749_v0 = vld [vmem:[%s2218_s1 + $0x170] sm:$0xff]  }
  0x15   :  { %1532 = vmatpush3.bf16.msra.mxu1 %v1700_v19  ;;  %1505 = vmatprep.subr.bf16.mxu0 %v1701_v20  ;;  %v1738_v55 = vld [vmem:[%s2218_s1 + $0x1a0] sm:$0xff]   ;;  %v1745_v60 = vld [vmem:[%s2219_s0 + $0x68] ss:$52 sps:$4 sm:$0xff]   ;;  %v1750_v1 = vld [vmem:[%s2218_s1 + $0x130] sm:$0xff]  }
  0x16   :  { %1533 = vmatprep.subr.bf16.mxu1 %v1702_v21  ;;  %v1740_v57 = vld [vmem:[%s2219_s0 + $0x6c] ss:$52 sps:$4 sm:$0xff]   ;;  %v1746_v61 = vld [vmem:[%s2219_s0 + $0x70] ss:$52 sps:$4 sm:$0xff]   ;;  %v1754_v5 = vld [vmem:[%s2218_s1 + $0x138] sm:$0xff]  }
  0x17   :  { %v1747_v62 = vld [vmem:[%s2218_s1 + $0x1e8] sm:$0xff]   ;;  %v1751_v2 = vld [vmem:[%s2218_s1 + $0x1f0] sm:$0xff]   ;;  %v1755_v6 = vld [vmem:[%s2218_s1 + $0x1f8] sm:$0xff]  }
  0x18   :  { %1506 = vmatpush3.bf16.msra.mxu0 %v1703_v22  ;;  %v1748_v63 = vld [vmem:[%s2218_s1 + $0x1a8] sm:$0xff]   ;;  %v1752_v3 = vld [vmem:[%s2218_s1 + $0x1b0] sm:$0xff]   ;;  %v1759_v9 = vld [vmem:[%s2218_s1 + $0x1b8] sm:$0xff]  }
  0x19   :  { %1534 = vmatpush3.bf16.msra.mxu1 %v1704_v23  ;;  %1507 = vmatprep.subr.bf16.mxu0 %v1705_v24  ;;  %v1756_v7 = vld [vmem:[%s2219_s0 + $0x10] ss:$52 sps:$4 sm:$0xff]   ;;  %v1758_v8 = vld [vmem:[%s2219_s0 + $0x14] ss:$52 sps:$4 sm:$0xff]   ;;  %v1761_v11 = vld [vmem:[%s2219_s0 + $0x18] ss:$52 sps:$4 sm:$0xff]  }
  0x1a   :  { %1535 = vmatprep.subr.bf16.mxu1 %v1706_v25  ;;  %v1760_v10 = vld [vmem:[%s2218_s1 + $0x240] sm:$0xff]   ;;  %v1763_v12 = vld [vmem:[%s2219_s0 + $0x1c] ss:$52 sps:$4 sm:$0xff]   ;;  %v1767_v16 = vld [vmem:[%s2218_s1 + $0x248] sm:$0xff]  }
  0x1b   :  { %v1764_v13 = vld [vmem:[%s2218_s1 + $0x200] sm:$0xff]   ;;  %v1768_v17 = vld [vmem:[%s2218_s1 + $0x208] sm:$0xff]   ;;  %v1770_v19 = vld [vmem:[%s2219_s0 + $0x7c] ss:$52 sps:$4 sm:$0xff]  }
  0x1c   :  { %1508 = vmatpush3.bf16.msra.mxu0 %v1707_v26  ;;  %v1765_v14 = vld [vmem:[%s2218_s1 + $0x2c0] sm:$0xff]   ;;  %v1769_v18 = vld [vmem:[%s2218_s1 + $0x2c8] sm:$0xff]   ;;  %v1774_v22 = vld [vmem:[%s2218_s1 + $0x250] sm:$0xff]  }
  0x1d   :  { %1536 = vmatpush3.bf16.msra.mxu1 %v1708_v27  ;;  %1509 = vmatprep.subr.bf16.mxu0 %v1709_v28  ;;  %v1766_v15 = vld [vmem:[%s2218_s1 + $0x280] sm:$0xff]   ;;  %v1772_v20 = vld [vmem:[%s2218_s1 + $0x288] sm:$0xff]   ;;  %v1777_v24 = vld [vmem:[%s2218_s1 + $0x210] sm:$0xff]  }
  0x1e   :  { %1537 = vmatprep.subr.bf16.mxu1 %v1710_v29  ;;  %v1773_v21 = vld [vmem:[%s2219_s0 + $0x78] ss:$52 sps:$4 sm:$0xff]   ;;  %v1778_v25 = vld [vmem:[%s2219_s0 + $0x80] ss:$52 sps:$4 sm:$0xff]  }
  0x1f   :  { %v1775_v23 = vld [vmem:[%s2219_s0 + $0x84] ss:$52 sps:$4 sm:$0xff]   ;;  %v1779_v26 = vld [vmem:[%s2218_s1 + $0x2d0] sm:$0xff]  }
  0x20   :  { %1510 = vmatpush3.bf16.msra.mxu0 %v1711_v30  ;;  %v1780_v27 = vld [vmem:[%s2218_s1 + $0x290] sm:$0xff]   ;;  %v1781_v28 = vld [vmem:[%s2218_s1 + $0x258] sm:$0xff]   ;;  %v1786_v33 = vld [vmem:[%s2218_s1 + $0x220] sm:$0xff]  }
  0x21   :  { %1538 = vmatpush3.bf16.msra.mxu1 %v1712_v31  ;;  %1551 = vmatprep.subr.bf16.mxu0 %v1719_v36  ;;  %v1782_v29 = vld [vmem:[%s2218_s1 + $0x218] sm:$0xff]   ;;  %v1788_v35 = vld [vmem:[%s2218_s1 + $0x2a0] sm:$0xff]   ;;  %v1789_v36 = vld [vmem:[%s2218_s1 + $0x268] sm:$0xff]  }
  0x22   :  { %1579 = vmatprep.subr.bf16.mxu1 %v1721_v38  ;;  %v1783_v30 = vld [vmem:[%s2218_s1 + $0x2d8] sm:$0xff]   ;;  %v1791_v38 = vld [vmem:[%s2218_s1 + $0x2e8] sm:$0xff]  }
  0x23   :  { %1010 = vmatmul.mubr.bf16.vlgmr.msra.gmra.mrb[0].mxu0 %v1713_v32  ;;  %v1784_v31 = vld [vmem:[%s2218_s1 + $0x298] sm:$0xff]   ;;  %v1785_v32 = vld [vmem:[%s2218_s1 + $0x260] sm:$0xff]  }
  0x24   :  { %1059 = vmatmul.mubr.bf16.vlgmr.msra.gmra.mrb[0].mxu1 %v1716_v34  ;;  %1552 = vmatpush3.bf16.msra.mxu0 %v1720_v37  ;;  %v1787_v34 = vld [vmem:[%s2218_s1 + $0x2e0] sm:$0xff]   ;;  %v1790_v37 = vld [vmem:[%s2218_s1 + $0x228] sm:$0xff]  }
  0x25   :  { %1580 = vmatpush3.bf16.msra.mxu1 %v1722_v39  ;;  %1553 = vmatprep.subr.bf16.mxu0 %v1723_v40  ;;  %v1792_v39 = vld [vmem:[%s2218_s1 + $0x2a8] sm:$0xff]   ;;  %v1793_v40 = vld [vmem:[%s2218_s1 + $0x270] sm:$0xff]  }
  0x26   :  { %1581 = vmatprep.subr.bf16.mxu1 %v1725_v42  ;;  %1017 = vmatprep.mubr.bf16.mxu0 %v1740_v57  ;;  %v1795_v42 = vld [vmem:[%s2218_s1 + $0x2f0] sm:$0xff]  }
  0x27   :  { %1066 = vmatprep.mubr.bf16.mxu1 %v1742_v58  ;;  %v1813_v57 = vld [vmem:[%s2219_s0 + $0x94] ss:$52 sps:$4 sm:$0xff]   ;;  %v1816_v58 = vld [vmem:[%s2218_s1 + $0x318] sm:$0xff]  }
  0x28   :  { %1554 = vmatpush3.bf16.msra.mxu0 %v1724_v41  ;;  %v1794_v41 = vld [vmem:[%s2218_s1 + $0x230] sm:$0xff]  }
  0x29   :  { %1582 = vmatpush3.bf16.msra.mxu1 %v1726_v43  ;;  %1555 = vmatprep.subr.bf16.mxu0 %v1727_v44  ;;  %v1796_v43 = vld [vmem:[%s2218_s1 + $0x2b0] sm:$0xff]   ;;  %v1797_v44 = vld [vmem:[%s2218_s1 + $0x278] sm:$0xff]  }
  0x2a   :  { %1583 = vmatprep.subr.bf16.mxu1 %v1729_v46  ;;  %v1799_v46 = vld [vmem:[%s2218_s1 + $0x2f8] sm:$0xff]  }
  0x2b   :  { %1018 = vmatmul.mubr.bf16.gmra.mrb[4].mxu0 %v1745_v60  ;;  %v1815_v60 = vld [vmem:[%s2219_s0 + $0x90] ss:$52 sps:$4 sm:$0xff]  }
  0x2c   :  { %1556 = vmatpush3.bf16.msra.mxu0 %v1728_v45  ;;  %1067 = vmatmul.mubr.bf16.gmra.mrb[4].mxu1 %v1746_v61  ;;  %v1798_v45 = vld [vmem:[%s2218_s1 + $0x238] sm:$0xff]  }
  0x2d   :  { %1584 = vmatpush3.bf16.msra.mxu1 %v1730_v47  ;;  %1557 = vmatprep.subr.bf16.mxu0 %v1731_v48  ;;  %v1800_v47 = vld [vmem:[%s2219_s0 + $0x20] ss:$52 sps:$4 sm:$0xff]   ;;  %v1802_v48 = vld [vmem:[%s2219_s0 + $0x24] ss:$52 sps:$4 sm:$0xff]  }
  0x2e   :  { %1585 = vmatprep.subr.bf16.mxu1 %v1733_v50  ;;  %1107 = vmatprep.mubr.bf16.mxu0 %v1758_v8  ;;  %v1804_v50 = vld [vmem:[%s2218_s1 + $0x300] sm:$0xff]   ;;  %v1818_v61 = vld [vmem:[%s2219_s0 + $0x98] ss:$52 sps:$4 sm:$0xff]  }
  0x2f   :  { %1156 = vmatprep.mubr.bf16.mxu1 %v1763_v12 }
  0x30   :  { %1558 = vmatpush3.bf16.msra.mxu0 %v1732_v49  ;;  %v1803_v49 = vld [vmem:[%s2218_s1 + $0x2b8] sm:$0xff]  }
  0x31   :  { %1586 = vmatpush3.bf16.msra.mxu1 %v1734_v51  ;;  %1559 = vmatprep.subr.bf16.mxu0 %v1735_v52  ;;  %v1805_v51 = vld [vmem:[%s2219_s0 + $0x28] ss:$52 sps:$4 sm:$0xff]   ;;  %v1807_v52 = vld [vmem:[%s2219_s0 + $0x2c] ss:$52 sps:$4 sm:$0xff]  }
  0x32   :  { %1587 = vmatprep.subr.bf16.mxu1 %v1737_v54  ;;  %v1809_v54 = vld [vmem:[%s2219_s0 + $0x8c] ss:$52 sps:$4 sm:$0xff]  }
  0x34   :  { %1560 = vmatpush3.bf16.msra.mxu0 %v1736_v53  ;;  %v1808_v53 = vld [vmem:[%s2218_s1 + $0x308] sm:$0xff]  }
  0x35   :  { %1588 = vmatpush3.bf16.msra.mxu1 %v1738_v55  ;;  %1561 = vmatprep.subr.bf16.mxu0 %v1739_v56  ;;  %v1811_v55 = vld [vmem:[%s2219_s0 + $0x88] ss:$52 sps:$4 sm:$0xff]   ;;  %v1812_v56 = vld [vmem:[%s2218_s1 + $0x310] sm:$0xff]  }
  0x36   :  { %1589 = vmatprep.subr.bf16.mxu1 %v1747_v62 }
  0x38   :  { %1562 = vmatpush3.bf16.msra.mxu0 %v1744_v59  ;;  %v1817_v59 = vld [vmem:[%s2219_s0 + $0x30] ss:$52 sps:$4 sm:$0xff]  }
  0x39   :  { %1590 = vmatpush3.bf16.msra.mxu1 %v1748_v63  ;;  %1563 = vmatprep.subr.bf16.mxu0 %v1749_v0 }
  0x3a   :  { %1591 = vmatprep.subr.bf16.mxu1 %v1751_v2 }
  0x3c   :  { %1564 = vmatpush3.bf16.msra.mxu0 %v1750_v1 }
  0x3d   :  { %1592 = vmatpush3.bf16.msra.mxu1 %v1752_v3  ;;  %1565 = vmatprep.subr.bf16.mxu0 %v1753_v4 }
  0x3e   :  { %1593 = vmatprep.subr.bf16.mxu1 %v1755_v6 }
  0x40   :  { %1566 = vmatpush3.bf16.msra.mxu0 %v1754_v5 }
  0x41   :  { %1594 = vmatpush3.bf16.msra.mxu1 %v1759_v9  ;;  %1607 = vmatprep.subr.bf16.mxu0 %v1760_v10 }
  0x42   :  { %1635 = vmatprep.subr.bf16.mxu1 %v1765_v14 }
  0x43   :  { %1108 = vmatmul.mubr.bf16.vlgmr.msra.gmra.mrb[8].mxu0 %v1756_v7 }
  0x44   :  { %1608 = vmatpush3.bf16.msra.mxu0 %v1764_v13  ;;  %1157 = vmatmul.mubr.bf16.vlgmr.msra.gmra.mrb[8].mxu1 %v1761_v11 }
  0x45   :  { %1636 = vmatpush3.bf16.msra.mxu1 %v1766_v15  ;;  %1609 = vmatprep.subr.bf16.mxu0 %v1767_v16 }
  0x46   :  { %1637 = vmatprep.subr.bf16.mxu1 %v1769_v18  ;;  %1115 = vmatprep.mubr.bf16.mxu0 %v1770_v19 }
  0x47   :  { %1164 = vmatprep.mubr.bf16.mxu1 %v1775_v23 }
  0x48   :  { %1610 = vmatpush3.bf16.msra.mxu0 %v1768_v17 }
  0x49   :  { %1638 = vmatpush3.bf16.msra.mxu1 %v1772_v20  ;;  %1611 = vmatprep.subr.bf16.mxu0 %v1774_v22 }
  0x4a   :  { %1639 = vmatprep.subr.bf16.mxu1 %v1779_v26 }
  0x4b   :  { %1116 = vmatmul.mubr.bf16.gmra.mrb[12].mxu0 %v1773_v21 }
  0x4c   :  { %1612 = vmatpush3.bf16.msra.mxu0 %v1777_v24  ;;  %1165 = vmatmul.mubr.bf16.gmra.mrb[12].mxu1 %v1778_v25 }
  0x4d   :  { %1640 = vmatpush3.bf16.msra.mxu1 %v1780_v27  ;;  %1613 = vmatprep.subr.bf16.mxu0 %v1781_v28 }
  0x4e   :  { %1641 = vmatprep.subr.bf16.mxu1 %v1783_v30  ;;  %1205 = vmatprep.mubr.bf16.mxu0 %v1802_v48 }
  0x4f   :  { %1254 = vmatprep.mubr.bf16.mxu1 %v1807_v52 }
  0x50   :  { %1614 = vmatpush3.bf16.msra.mxu0 %v1782_v29 }
  0x51   :  { %1642 = vmatpush3.bf16.msra.mxu1 %v1784_v31  ;;  %1615 = vmatprep.subr.bf16.mxu0 %v1785_v32 }
  0x52   :  { %1643 = vmatprep.subr.bf16.mxu1 %v1787_v34 }
  0x54   :  { %1616 = vmatpush3.bf16.msra.mxu0 %v1786_v33 }
  0x55   :  { %1644 = vmatpush3.bf16.msra.mxu1 %v1788_v35  ;;  %1617 = vmatprep.subr.bf16.mxu0 %v1789_v36 }
  0x56   :  { %1645 = vmatprep.subr.bf16.mxu1 %v1791_v38 }
  0x58   :  { %1618 = vmatpush3.bf16.msra.mxu0 %v1790_v37 }
  0x59   :  { %1646 = vmatpush3.bf16.msra.mxu1 %v1792_v39  ;;  %1619 = vmatprep.subr.bf16.mxu0 %v1793_v40 }
  0x5a   :  { %1647 = vmatprep.subr.bf16.mxu1 %v1795_v42 }
  0x5c   :  { %1620 = vmatpush3.bf16.msra.mxu0 %v1794_v41 }
  0x5d   :  { %1648 = vmatpush3.bf16.msra.mxu1 %v1796_v43  ;;  %1621 = vmatprep.subr.bf16.mxu0 %v1797_v44 }
  0x5e   :  { %1649 = vmatprep.subr.bf16.mxu1 %v1799_v46 }
  0x60   :  { %1622 = vmatpush3.bf16.msra.mxu0 %v1798_v45 }
  0x61   :  { %1650 = vmatpush3.bf16.msra.mxu1 %v1803_v49  ;;  %1669 = vmatprep.subr.bf16.mxu0 %v1804_v50 }
  0x63   :  { %1206 = vmatmul.mubr.bf16.vlgmr.msra.gmra.mrb[16].mxu0 %v1800_v47 }
  0x64   :  { %1670 = vmatpush3.bf16.msra.mxu0 %v1804_v50  ;;  %1255 = vmatmul.mubr.bf16.vlgmr.msra.gmra.mrb[16].mxu1 %v1805_v51 }
  0x65   :  { %1671 = vmatprep.subr.bf16.mxu0 %v1808_v53  ;;  %1213 = vmatprep.mubr.bf16.mxu0 %v1809_v54 }
  0x66   :  { %1262 = vmatprep.mubr.bf16.mxu1 %v1813_v57 }
  0x68   :  { %1672 = vmatpush3.bf16.msra.mxu0 %v1808_v53 }
  0x69   :  { %1673 = vmatprep.subr.bf16.mxu0 %v1812_v56 }
  0x6b   :  { %1214 = vmatmul.mubr.bf16.gmra.mrb[20].mxu0 %v1811_v55 }
  0x6c   :  { %1677 = vmatprep.mubr.msk.bf16.mxu0 %vm970_vm0, %v1817_v59  ;;  %1674 = vmatpush3.bf16.msra.mxu0 %v1812_v56 }
  0x6d   :  { %1675 = vmatprep.subr.bf16.mxu0 %v1816_v58  ;;  %1263 = vmatmul.mubr.bf16.gmra.mrb[20].mxu1 %v1815_v60 }
  0x70   :  { %1676 = vmatpush3.bf16.msra.mxu0 %v1816_v58 }
  0x73   :  { %1678 = vmatmul.mubr.msk.bf16.vlgmr.msra.gmra.mrb[24].mxu0 %vm970_vm0, %v1818_v61 }
  0xf6   :  { %v1511_v62 = vpop.f32.mrb[0].mxu0 }
  0xf7   :  { %v1539_v63 = vpop.f32.mrb[0].mxu1  ;;  %v1512_v0 = vpop.f32.mrb[1].mxu0 }
  0xf8   :  { %v1513_v1 = vadd.f32 %v1512_v0, %v1511_v62  ;;  %v1540_v2 = vpop.f32.mrb[1].mxu1  ;;  %v1514_v3 = vpop.f32.mrb[2].mxu0 }
  0xf9   :  { %v1541_v4 = vadd.f32 %v1540_v2, %v1539_v63  ;;  %v1542_v5 = vpop.f32.mrb[2].mxu1  ;;  %v1515_v6 = vpop.f32.mrb[3].mxu0 }
  0xfa   :  { %v1516_v7 = vadd.f32 %v1515_v6, %v1514_v3  ;;  %v1543_v8 = vpop.f32.mrb[3].mxu1 }
  0xfb   :  { %v1061_v9 = vadd.f32 %v1541_v4, %v1513_v1  ;;  %v1544_v10 = vadd.f32 %v1543_v8, %v1542_v5 }
  0xfd   :  { %v1064_v11 = vadd.f32 %v1544_v10, %v1516_v7 }
  0xfe   :  { %v1517_v12 = vpop.f32.mrb[4].mxu0 }
  0xff   :  { %v1545_v13 = vpop.f32.mrb[4].mxu1  ;;  %v1518_v14 = vpop.f32.mrb[5].mxu0 }
 0x100   :  { %v1546_v15 = vpop.f32.mrb[5].mxu1  ;;  %v1519_v16 = vadd.f32 %v1518_v14, %v1517_v12  ;;  %v1520_v18 = vpop.f32.mrb[6].mxu0 }
 0x101   :  { %v1547_v17 = vadd.f32 %v1546_v15, %v1545_v13  ;;  %v1548_v19 = vpop.f32.mrb[6].mxu1  ;;  %v1521_v20 = vpop.f32.mrb[7].mxu0 }
 0x102   :  { %v1549_v21 = vpop.f32.mrb[7].mxu1  ;;  %v1522_v23 = vadd.f32 %v1521_v20, %v1520_v18 }
 0x103   :  { %v1069_v22 = vadd.f32 %v1547_v17, %v1519_v16  ;;  %v1550_v24 = vadd.f32 %v1549_v21, %v1548_v19 }
 0x105   :  { %v1072_v25 = vadd.f32 %v1550_v24, %v1522_v23 }
 0x116   :  { %v1567_v26 = vpop.f32.mrb[8].mxu0 }
 0x117   :  { %v1568_v27 = vpop.f32.mrb[9].mxu0  ;;  %v1595_v30 = vpop.f32.mrb[8].mxu1 }
 0x118   :  { %v1569_v28 = vadd.f32 %v1568_v27, %v1567_v26  ;;  %v1570_v29 = vpop.f32.mrb[10].mxu0  ;;  %v1596_v34 = vpop.f32.mrb[9].mxu1 }
 0x119   :  { %v1571_v31 = vpop.f32.mrb[11].mxu0  ;;  %v1597_v35 = vadd.f32 %v1596_v34, %v1595_v30  ;;  %v1598_v36 = vpop.f32.mrb[10].mxu1 }
 0x11a   :  { %v1110_v32 = vadd.f32 %v1569_v28, %v1061_v9  ;;  %v1572_v33 = vadd.f32 %v1571_v31, %v1570_v29  ;;  %v1599_v38 = vpop.f32.mrb[11].mxu1 }
 0x11b   :  { %v1600_v40 = vadd.f32 %v1599_v38, %v1598_v36 }
 0x11c   :  { %v1113_v37 = vadd.f32 %v1572_v33, %v1064_v11  ;;  %v1159_v39 = vadd.f32 %v1597_v35, %v1110_v32 }
 0x11e   :  { %v1162_v41 = vadd.f32 %v1600_v40, %v1113_v37  ;;  %v1573_v42 = vpop.f32.mrb[12].mxu0 }
 0x11f   :  { %v1574_v43 = vpop.f32.mrb[13].mxu0  ;;  %v1601_v46 = vpop.f32.mrb[12].mxu1 }
 0x120   :  { %v1575_v44 = vadd.f32 %v1574_v43, %v1573_v42  ;;  %v1576_v45 = vpop.f32.mrb[14].mxu0  ;;  %v1602_v50 = vpop.f32.mrb[13].mxu1 }
 0x121   :  { %v1577_v47 = vpop.f32.mrb[15].mxu0  ;;  %v1603_v51 = vadd.f32 %v1602_v50, %v1601_v46  ;;  %v1604_v52 = vpop.f32.mrb[14].mxu1 }
 0x122   :  { %v1118_v48 = vadd.f32 %v1575_v44, %v1069_v22  ;;  %v1578_v49 = vadd.f32 %v1577_v47, %v1576_v45  ;;  %v1605_v54 = vpop.f32.mrb[15].mxu1 }
 0x123   :  { %v1606_v56 = vadd.f32 %v1605_v54, %v1604_v52 }
 0x124   :  { %v1121_v53 = vadd.f32 %v1578_v49, %v1072_v25  ;;  %v1167_v55 = vadd.f32 %v1603_v51, %v1118_v48 }
 0x126   :  { %v1170_v57 = vadd.f32 %v1606_v56, %v1121_v53 }
 0x136   :  { %v1623_v58 = vpop.f32.mrb[16].mxu0 }
 0x137   :  { %v1624_v59 = vpop.f32.mrb[17].mxu0  ;;  %v1651_v0 = vpop.f32.mrb[16].mxu1 }
 0x138   :  { %v1625_v60 = vadd.f32 %v1624_v59, %v1623_v58  ;;  %v1626_v61 = vpop.f32.mrb[18].mxu0  ;;  %v1652_v2 = vpop.f32.mrb[17].mxu1 }
 0x139   :  { %v1627_v62 = vpop.f32.mrb[19].mxu0  ;;  %v1653_v4 = vadd.f32 %v1652_v2, %v1651_v0  ;;  %v1654_v5 = vpop.f32.mrb[18].mxu1 }
 0x13a   :  { %v1208_v63 = vadd.f32 %v1625_v60, %v1159_v39  ;;  %v1628_v1 = vadd.f32 %v1627_v62, %v1626_v61  ;;  %v1655_v6 = vpop.f32.mrb[19].mxu1 }
 0x13b   :  { %v1656_v7 = vadd.f32 %v1655_v6, %v1654_v5 }
 0x13c   :  { %v1211_v3 = vadd.f32 %v1628_v1, %v1162_v41  ;;  %v1257_v9 = vadd.f32 %v1653_v4, %v1208_v63 }
 0x13e   :  { %v1629_v8 = vpop.f32.mrb[20].mxu0  ;;  %v1260_v13 = vadd.f32 %v1656_v7, %v1211_v3 }
 0x13f   :  { %v1630_v10 = vpop.f32.mrb[21].mxu0 }
 0x140   :  { %v1631_v11 = vadd.f32 %v1630_v10, %v1629_v8  ;;  %v1632_v12 = vpop.f32.mrb[22].mxu0  ;;  %v1657_v16 = vpop.f32.mrb[20].mxu1 }
 0x141   :  { %v1633_v14 = vpop.f32.mrb[23].mxu0  ;;  %v1658_v18 = vpop.f32.mrb[21].mxu1 }
 0x142   :  { %v1216_v15 = vadd.f32 %v1631_v11, %v1167_v55  ;;  %v1634_v17 = vadd.f32 %v1633_v14, %v1632_v12  ;;  %v1659_v20 = vadd.f32 %v1658_v18, %v1657_v16  ;;  %v1660_v21 = vpop.f32.mrb[22].mxu1 }
 0x143   :  { %v1661_v22 = vpop.f32.mrb[23].mxu1 }
 0x144   :  { %v1219_v19 = vadd.f32 %v1634_v17, %v1170_v57  ;;  %v1662_v23 = vadd.f32 %v1661_v22, %v1660_v21  ;;  %v1265_v24 = vadd.f32 %v1659_v20, %v1216_v15 }
 0x146   :  { %v1679_v25 = vpop.f32.mrb[24].mxu0  ;;  %v1268_v28 = vadd.f32 %v1662_v23, %v1219_v19 }
 0x147   :  { %v1314_v26 = vadd.f32 %v1679_v25, %v1265_v24  ;;  %v1305_v27 = vpop.f32.mrb[25].mxu0 }
 0x148   :  { %v1306_v29 = vadd.f32 %v1305_v27, %v1257_v9  ;;  %v1680_v30 = vpop.f32.mrb[26].mxu0 }
 0x149   :  { %v1317_v31 = vadd.f32 %v1680_v30, %v1268_v28  ;;  %v1308_v32 = vpop.f32.mrb[27].mxu0  ;;  %v1322_v34 = vmax.f32 %v1314_v26, 0.0 }
 0x14a   :  { %v1309_v33 = vadd.f32 %v1308_v32, %v1260_v13  ;;  %v1320_v36 = vmax.f32 %v1306_v29, 0.0 }
 0x14b   :  { %v1323_v35 = vmax.f32 %v1317_v31, 0.0 }
 0x14c   :  { %v1321_v37 = vmax.f32 %v1309_v33, 0.0 }
 0x14d   :  { %v1492_v38 = vpack.c.bf16 %v1323_v35, %v1322_v34 }
 0x14e   :  { %v1487_v39 = vpack.c.bf16 %v1321_v37, %v1320_v36 }
 0x14f   :  { %1494 = vst [vmem:[%s2220_s2 + $0x8] sm:$0xff] %v1492_v38  }
 0x150   :  { %1488 = vst [vmem:[%s2220_s2] sm:$0xff] %v1487_v39  }

// kernel: light_flow_net.17
= control target key start
LH: loop header
LB: loop body
LE: loop exit
PB: predicated region body
PF: predicated region fallthrough
CT: control target
= control target key end

     0   :  { %s5557_s1 = inlined_call_operand.vmem [shape: bf16[3200,256], index: 1, kind: input, shape index: {}]   ;;  %s5558_s0 = inlined_call_operand.vmem [shape: bf16[16,3200], index: 0, kind: input, shape index: {}]   ;;  %s5559_s2 = inlined_call_operand.vmem [shape: bf16[16,256], index: 2, kind: output, shape index: {}]  }
   0x1   :  { %v3623_v0 = vld [vmem:[%s5557_s1 + $0x4] ss:$8 sps:$4 sm:$0xff]   ;;  %v3627_v2 = vld [vmem:[%s5557_s1] ss:$8 sps:$4 sm:$0xff]   ;;  %v3629_v4 = vld [vmem:[%s5557_s1 + $0x14] ss:$8 sps:$4 sm:$0xff]  }
   0x2   :  { %v3625_v1 = vld [vmem:[%s5557_s1 + $0x604] ss:$8 sps:$4 sm:$0xff]   ;;  %2564 = vmatprep.subr.bf16.mxu1 %v3623_v0  ;;  %v3628_v3 = vld [vmem:[%s5557_s1 + $0x600] ss:$8 sps:$4 sm:$0xff]   ;;  %v3631_v5 = vld [vmem:[%s5557_s1 + $0x614] ss:$8 sps:$4 sm:$0xff]  }
   0x3   :  { %2822 = vmatprep.subr.bf16.mxu0 %v3625_v1  ;;  %2565 = vmatpush1.bf16.msra.mxu1 %v3627_v2  ;;  %v3633_v6 = vld [vmem:[%s5557_s1 + $0x10] ss:$8 sps:$4 sm:$0xff]   ;;  %v3635_v8 = vld [vmem:[%s5557_s1 + $0x24] ss:$8 sps:$4 sm:$0xff]   ;;  %v3639_v10 = vld [vmem:[%s5557_s1 + $0x20] ss:$8 sps:$4 sm:$0xff]  }
   0x4   :  { %2823 = vmatpush1.bf16.msra.mxu0 %v3628_v3  ;;  %2566 = vmatprep.subr.bf16.mxu1 %v3629_v4  ;;  %v3634_v7 = vld [vmem:[%s5557_s1 + $0x610] ss:$8 sps:$4 sm:$0xff]   ;;  %v3637_v9 = vld [vmem:[%s5557_s1 + $0x624] ss:$8 sps:$4 sm:$0xff]   ;;  %v3640_v11 = vld [vmem:[%s5557_s1 + $0x620] ss:$8 sps:$4 sm:$0xff]  }
   0x5   :  { %2824 = vmatprep.subr.bf16.mxu0 %v3631_v5  ;;  %v3641_v12 = vld [vmem:[%s5557_s1 + $0x34] ss:$8 sps:$4 sm:$0xff]   ;;  %v3645_v14 = vld [vmem:[%s5557_s1 + $0x30] ss:$8 sps:$4 sm:$0xff]   ;;  %v3647_v16 = vld [vmem:[%s5557_s1 + $0x44] ss:$8 sps:$4 sm:$0xff]  }
   0x6   :  { %v3643_v13 = vld [vmem:[%s5557_s1 + $0x634] ss:$8 sps:$4 sm:$0xff]   ;;  %v3646_v15 = vld [vmem:[%s5557_s1 + $0x630] ss:$8 sps:$4 sm:$0xff]   ;;  %v3649_v17 = vld [vmem:[%s5557_s1 + $0x644] ss:$8 sps:$4 sm:$0xff]  }
   0x7   :  { %2567 = vmatpush1.bf16.msra.mxu1 %v3633_v6  ;;  %v3651_v18 = vld [vmem:[%s5557_s1 + $0x40] ss:$8 sps:$4 sm:$0xff]   ;;  %v3653_v20 = vld [vmem:[%s5557_s1 + $0x54] ss:$8 sps:$4 sm:$0xff]   ;;  %v3657_v22 = vld [vmem:[%s5557_s1 + $0x50] ss:$8 sps:$4 sm:$0xff]  }
   0x8   :  { %2825 = vmatpush1.bf16.msra.mxu0 %v3634_v7  ;;  %2568 = vmatprep.subr.bf16.mxu1 %v3635_v8  ;;  %v3652_v19 = vld [vmem:[%s5557_s1 + $0x640] ss:$8 sps:$4 sm:$0xff]   ;;  %v3655_v21 = vld [vmem:[%s5557_s1 + $0x654] ss:$8 sps:$4 sm:$0xff]   ;;  %v3658_v23 = vld [vmem:[%s5557_s1 + $0x650] ss:$8 sps:$4 sm:$0xff]  }
   0x9   :  { %2826 = vmatprep.subr.bf16.mxu0 %v3637_v9  ;;  %v3659_v24 = vld [vmem:[%s5557_s1 + $0x64] ss:$8 sps:$4 sm:$0xff]   ;;  %v3663_v26 = vld [vmem:[%s5557_s1 + $0x60] ss:$8 sps:$4 sm:$0xff]   ;;  %v3665_v28 = vld [vmem:[%s5557_s1 + $0x74] ss:$8 sps:$4 sm:$0xff]  }
   0xa   :  { %v3661_v25 = vld [vmem:[%s5557_s1 + $0x664] ss:$8 sps:$4 sm:$0xff]   ;;  %v3664_v27 = vld [vmem:[%s5557_s1 + $0x660] ss:$8 sps:$4 sm:$0xff]   ;;  %v3667_v29 = vld [vmem:[%s5557_s1 + $0x674] ss:$8 sps:$4 sm:$0xff]  }
   0xb   :  { %2569 = vmatpush1.bf16.msra.mxu1 %v3639_v10  ;;  %v3669_v30 = vld [vmem:[%s5557_s1 + $0x70] ss:$8 sps:$4 sm:$0xff]   ;;  %v3671_v32 = vld [vmem:[%s5557_s1 + $0x84] ss:$8 sps:$4 sm:$0xff]   ;;  %v3675_v34 = vld [vmem:[%s5557_s1 + $0x80] ss:$8 sps:$4 sm:$0xff]  }
   0xc   :  { %2827 = vmatpush1.bf16.msra.mxu0 %v3640_v11  ;;  %2570 = vmatprep.subr.bf16.mxu1 %v3641_v12  ;;  %v3670_v31 = vld [vmem:[%s5557_s1 + $0x670] ss:$8 sps:$4 sm:$0xff]   ;;  %v3673_v33 = vld [vmem:[%s5557_s1 + $0x684] ss:$8 sps:$4 sm:$0xff]   ;;  %v3676_v35 = vld [vmem:[%s5557_s1 + $0x680] ss:$8 sps:$4 sm:$0xff]  }
   0xd   :  { %2828 = vmatprep.subr.bf16.mxu0 %v3643_v13  ;;  %v3677_v36 = vld [vmem:[%s5557_s1 + $0x94] ss:$8 sps:$4 sm:$0xff]   ;;  %v3681_v38 = vld [vmem:[%s5557_s1 + $0x90] ss:$8 sps:$4 sm:$0xff]   ;;  %v3683_v40 = vld [vmem:[%s5557_s1 + $0xa4] ss:$8 sps:$4 sm:$0xff]  }
   0xe   :  { %v3679_v37 = vld [vmem:[%s5557_s1 + $0x694] ss:$8 sps:$4 sm:$0xff]   ;;  %v3682_v39 = vld [vmem:[%s5557_s1 + $0x690] ss:$8 sps:$4 sm:$0xff]   ;;  %v3685_v41 = vld [vmem:[%s5557_s1 + $0x6a4] ss:$8 sps:$4 sm:$0xff]  }
   0xf   :  { %2571 = vmatpush1.bf16.msra.mxu1 %v3645_v14  ;;  %v3687_v42 = vld [vmem:[%s5557_s1 + $0xa0] ss:$8 sps:$4 sm:$0xff]   ;;  %v3689_v44 = vld [vmem:[%s5557_s1 + $0xb4] ss:$8 sps:$4 sm:$0xff]   ;;  %v3693_v46 = vld [vmem:[%s5557_s1 + $0xb0] ss:$8 sps:$4 sm:$0xff]  }
  0x10   :  { %2829 = vmatpush1.bf16.msra.mxu0 %v3646_v15  ;;  %2572 = vmatprep.subr.bf16.mxu1 %v3647_v16  ;;  %v3688_v43 = vld [vmem:[%s5557_s1 + $0x6a0] ss:$8 sps:$4 sm:$0xff]   ;;  %v3691_v45 = vld [vmem:[%s5557_s1 + $0x6b4] ss:$8 sps:$4 sm:$0xff]   ;;  %v3694_v47 = vld [vmem:[%s5557_s1 + $0x6b0] ss:$8 sps:$4 sm:$0xff]  }
  0x11   :  { %2830 = vmatprep.subr.bf16.mxu0 %v3649_v17  ;;  %v3721_v48 = vld [vmem:[%s5558_s0 + $0x4] ss:$100 sps:$4 sm:$0xff]   ;;  %v3727_v51 = vld [vmem:[%s5558_s0 + $0x34] ss:$100 sps:$4 sm:$0xff]  }
  0x12   :  { %v3695_v49 = vld [vmem:[%s5557_s1 + $0xc4] ss:$8 sps:$4 sm:$0xff]   ;;  %2596 = vmatprep.mubr.bf16.mxu1 %v3721_v48  ;;  %v3699_v52 = vld [vmem:[%s5557_s1 + $0xc0] ss:$8 sps:$4 sm:$0xff]   ;;  %v3701_v54 = vld [vmem:[%s5557_s1 + $0xd4] ss:$8 sps:$4 sm:$0xff]   ;;  %2854 = vmatprep.mubr.bf16.mxu0 %v3727_v51 }
  0x13   :  { %2573 = vmatpush1.bf16.msra.mxu1 %v3651_v18  ;;  %v3697_v50 = vld [vmem:[%s5557_s1 + $0x6c4] ss:$8 sps:$4 sm:$0xff]   ;;  %v3700_v53 = vld [vmem:[%s5557_s1 + $0x6c0] ss:$8 sps:$4 sm:$0xff]   ;;  %v3703_v55 = vld [vmem:[%s5557_s1 + $0x6d4] ss:$8 sps:$4 sm:$0xff]  }
  0x14   :  { %2831 = vmatpush1.bf16.msra.mxu0 %v3652_v19  ;;  %2574 = vmatprep.subr.bf16.mxu1 %v3653_v20  ;;  %v3705_v56 = vld [vmem:[%s5557_s1 + $0xd0] ss:$8 sps:$4 sm:$0xff]   ;;  %v3707_v58 = vld [vmem:[%s5557_s1 + $0xe4] ss:$8 sps:$4 sm:$0xff]   ;;  %v3711_v60 = vld [vmem:[%s5557_s1 + $0xe0] ss:$8 sps:$4 sm:$0xff]  }
  0x15   :  { %2832 = vmatprep.subr.bf16.mxu0 %v3655_v21  ;;  %v3706_v57 = vld [vmem:[%s5557_s1 + $0x6d0] ss:$8 sps:$4 sm:$0xff]   ;;  %v3709_v59 = vld [vmem:[%s5557_s1 + $0x6e4] ss:$8 sps:$4 sm:$0xff]   ;;  %v3712_v61 = vld [vmem:[%s5557_s1 + $0x6e0] ss:$8 sps:$4 sm:$0xff]  }
  0x16   :  { %v3713_v62 = vld [vmem:[%s5557_s1 + $0xf4] ss:$8 sps:$4 sm:$0xff]   ;;  %v3717_v0 = vld [vmem:[%s5557_s1 + $0xf0] ss:$8 sps:$4 sm:$0xff]   ;;  %v3724_v2 = vld [vmem:[%s5557_s1 + $0x104] ss:$8 sps:$4 sm:$0xff]  }
  0x17   :  { %2575 = vmatpush1.bf16.msra.mxu1 %v3657_v22  ;;  %v3715_v63 = vld [vmem:[%s5557_s1 + $0x6f4] ss:$8 sps:$4 sm:$0xff]   ;;  %v3718_v1 = vld [vmem:[%s5557_s1 + $0x6f0] ss:$8 sps:$4 sm:$0xff]   ;;  %v3730_v3 = vld [vmem:[%s5557_s1 + $0x704] ss:$8 sps:$4 sm:$0xff]  }
  0x18   :  { %2833 = vmatpush1.bf16.msra.mxu0 %v3658_v23  ;;  %2576 = vmatprep.subr.bf16.mxu1 %v3659_v24  ;;  %v3719_v4 = vld [vmem:[%s5558_s0] ss:$100 sps:$4 sm:$0xff]   ;;  %v3725_v6 = vld [vmem:[%s5558_s0 + $0x30] ss:$100 sps:$4 sm:$0xff]  }
  0x19   :  { %2834 = vmatprep.subr.bf16.mxu0 %v3661_v25  ;;  %v3722_v5 = vld [vmem:[%s5557_s1 + $0x100] ss:$8 sps:$4 sm:$0xff]   ;;  %v3733_v8 = vld [vmem:[%s5557_s1 + $0x114] ss:$8 sps:$4 sm:$0xff]   ;;  %v3731_v10 = vld [vmem:[%s5557_s1 + $0x110] ss:$8 sps:$4 sm:$0xff]  }
  0x1a   :  { %v3728_v7 = vld [vmem:[%s5557_s1 + $0x700] ss:$8 sps:$4 sm:$0xff]   ;;  %v3736_v9 = vld [vmem:[%s5557_s1 + $0x714] ss:$8 sps:$4 sm:$0xff]   ;;  %v3734_v11 = vld [vmem:[%s5557_s1 + $0x710] ss:$8 sps:$4 sm:$0xff]  }
  0x1b   :  { %2577 = vmatpush1.bf16.msra.mxu1 %v3663_v26  ;;  %v3739_v12 = vld [vmem:[%s5557_s1 + $0x124] ss:$8 sps:$4 sm:$0xff]   ;;  %v3737_v14 = vld [vmem:[%s5557_s1 + $0x120] ss:$8 sps:$4 sm:$0xff]   ;;  %v3745_v16 = vld [vmem:[%s5557_s1 + $0x134] ss:$8 sps:$4 sm:$0xff]  }
  0x1c   :  { %2835 = vmatpush1.bf16.msra.mxu0 %v3664_v27  ;;  %2578 = vmatprep.subr.bf16.mxu1 %v3665_v28  ;;  %v3742_v13 = vld [vmem:[%s5557_s1 + $0x724] ss:$8 sps:$4 sm:$0xff]   ;;  %v3740_v15 = vld [vmem:[%s5557_s1 + $0x720] ss:$8 sps:$4 sm:$0xff]   ;;  %v3748_v17 = vld [vmem:[%s5557_s1 + $0x734] ss:$8 sps:$4 sm:$0xff]  }
  0x1d   :  { %2836 = vmatprep.subr.bf16.mxu0 %v3667_v29  ;;  %v3743_v18 = vld [vmem:[%s5557_s1 + $0x130] ss:$8 sps:$4 sm:$0xff]   ;;  %v3751_v20 = vld [vmem:[%s5557_s1 + $0x144] ss:$8 sps:$4 sm:$0xff]   ;;  %v3749_v22 = vld [vmem:[%s5557_s1 + $0x140] ss:$8 sps:$4 sm:$0xff]  }
  0x1e   :  { %v3746_v19 = vld [vmem:[%s5557_s1 + $0x730] ss:$8 sps:$4 sm:$0xff]   ;;  %v3754_v21 = vld [vmem:[%s5557_s1 + $0x744] ss:$8 sps:$4 sm:$0xff]   ;;  %v3752_v23 = vld [vmem:[%s5557_s1 + $0x740] ss:$8 sps:$4 sm:$0xff]  }
  0x1f   :  { %2579 = vmatpush1.bf16.msra.mxu1 %v3669_v30  ;;  %v3757_v24 = vld [vmem:[%s5557_s1 + $0x154] ss:$8 sps:$4 sm:$0xff]   ;;  %v3755_v26 = vld [vmem:[%s5557_s1 + $0x150] ss:$8 sps:$4 sm:$0xff]   ;;  %v3763_v28 = vld [vmem:[%s5557_s1 + $0x164] ss:$8 sps:$4 sm:$0xff]  }
  0x20   :  { %2837 = vmatpush1.bf16.msra.mxu0 %v3670_v31  ;;  %2580 = vmatprep.subr.bf16.mxu1 %v3671_v32  ;;  %v3760_v25 = vld [vmem:[%s5557_s1 + $0x754] ss:$8 sps:$4 sm:$0xff]   ;;  %v3758_v27 = vld [vmem:[%s5557_s1 + $0x750] ss:$8 sps:$4 sm:$0xff]   ;;  %v3766_v29 = vld [vmem:[%s5557_s1 + $0x764] ss:$8 sps:$4 sm:$0xff]  }
  0x21   :  { %2838 = vmatprep.subr.bf16.mxu0 %v3673_v33  ;;  %v3761_v30 = vld [vmem:[%s5557_s1 + $0x160] ss:$8 sps:$4 sm:$0xff]   ;;  %v3769_v32 = vld [vmem:[%s5557_s1 + $0x174] ss:$8 sps:$4 sm:$0xff]  }
  0x22   :  { %v3764_v31 = vld [vmem:[%s5557_s1 + $0x760] ss:$8 sps:$4 sm:$0xff]   ;;  %v3772_v33 = vld [vmem:[%s5557_s1 + $0x774] ss:$8 sps:$4 sm:$0xff]  }
  0x23   :  { %2581 = vmatpush1.bf16.msra.mxu1 %v3675_v34  ;;  %v3823_v34 = vld [vmem:[%s5558_s0 + $0xc] ss:$100 sps:$4 sm:$0xff]   ;;  %v3785_v48 = vld [vmem:[%s5557_s1 + $0x1a0] ss:$8 sps:$4 sm:$0xff]   ;;  %v3796_v51 = vld [vmem:[%s5557_s1 + $0x7b4] ss:$8 sps:$4 sm:$0xff]  }
  0x24   :  { %2839 = vmatpush1.bf16.msra.mxu0 %v3676_v35  ;;  %2582 = vmatprep.subr.bf16.mxu1 %v3677_v36  ;;  %v3767_v35 = vld [vmem:[%s5557_s1 + $0x170] ss:$8 sps:$4 sm:$0xff]  }
  0x25   :  { %2840 = vmatprep.subr.bf16.mxu0 %v3679_v37  ;;  %v3770_v36 = vld [vmem:[%s5557_s1 + $0x770] ss:$8 sps:$4 sm:$0xff]   ;;  %v3829_v37 = vld [vmem:[%s5558_s0 + $0x3c] ss:$100 sps:$4 sm:$0xff]  }
  0x27   :  { %2583 = vmatpush1.bf16.msra.mxu1 %v3681_v38  ;;  %v3775_v38 = vld [vmem:[%s5557_s1 + $0x184] ss:$8 sps:$4 sm:$0xff]  }
  0x28   :  { %2841 = vmatpush1.bf16.msra.mxu0 %v3682_v39  ;;  %2584 = vmatprep.subr.bf16.mxu1 %v3683_v40  ;;  %v3778_v39 = vld [vmem:[%s5557_s1 + $0x784] ss:$8 sps:$4 sm:$0xff]   ;;  %v3773_v40 = vld [vmem:[%s5557_s1 + $0x180] ss:$8 sps:$4 sm:$0xff]  }
  0x29   :  { %2842 = vmatprep.subr.bf16.mxu0 %v3685_v41  ;;  %v3776_v41 = vld [vmem:[%s5557_s1 + $0x780] ss:$8 sps:$4 sm:$0xff]  }
  0x2b   :  { %2585 = vmatpush1.bf16.msra.mxu1 %v3687_v42  ;;  %v3781_v42 = vld [vmem:[%s5557_s1 + $0x194] ss:$8 sps:$4 sm:$0xff]  }
  0x2c   :  { %2843 = vmatpush1.bf16.msra.mxu0 %v3688_v43  ;;  %2586 = vmatprep.subr.bf16.mxu1 %v3689_v44  ;;  %v3784_v43 = vld [vmem:[%s5557_s1 + $0x794] ss:$8 sps:$4 sm:$0xff]   ;;  %v3779_v44 = vld [vmem:[%s5557_s1 + $0x190] ss:$8 sps:$4 sm:$0xff]  }
  0x2d   :  { %2844 = vmatprep.subr.bf16.mxu0 %v3691_v45  ;;  %v3782_v45 = vld [vmem:[%s5557_s1 + $0x790] ss:$8 sps:$4 sm:$0xff]  }
  0x2f   :  { %2587 = vmatpush1.bf16.msra.mxu1 %v3693_v46  ;;  %v3787_v46 = vld [vmem:[%s5557_s1 + $0x1a4] ss:$8 sps:$4 sm:$0xff]  }
  0x30   :  { %2845 = vmatpush1.bf16.msra.mxu0 %v3694_v47  ;;  %2588 = vmatprep.subr.bf16.mxu1 %v3695_v49  ;;  %v3790_v47 = vld [vmem:[%s5557_s1 + $0x7a4] ss:$8 sps:$4 sm:$0xff]   ;;  %v3788_v49 = vld [vmem:[%s5557_s1 + $0x7a0] ss:$8 sps:$4 sm:$0xff]  }
  0x31   :  { %2846 = vmatprep.subr.bf16.mxu0 %v3697_v50  ;;  %v3793_v50 = vld [vmem:[%s5557_s1 + $0x1b4] ss:$8 sps:$4 sm:$0xff]  }
  0x33   :  { %2589 = vmatpush1.bf16.msra.mxu1 %v3699_v52  ;;  %v3791_v52 = vld [vmem:[%s5557_s1 + $0x1b0] ss:$8 sps:$4 sm:$0xff]  }
  0x34   :  { %2847 = vmatpush1.bf16.msra.mxu0 %v3700_v53  ;;  %2590 = vmatprep.subr.bf16.mxu1 %v3701_v54  ;;  %v3794_v53 = vld [vmem:[%s5557_s1 + $0x7b0] ss:$8 sps:$4 sm:$0xff]   ;;  %v3799_v54 = vld [vmem:[%s5557_s1 + $0x1c4] ss:$8 sps:$4 sm:$0xff]  }
  0x35   :  { %2848 = vmatprep.subr.bf16.mxu0 %v3703_v55  ;;  %v3802_v55 = vld [vmem:[%s5557_s1 + $0x7c4] ss:$8 sps:$4 sm:$0xff]  }
  0x37   :  { %2591 = vmatpush1.bf16.msra.mxu1 %v3705_v56  ;;  %v3797_v56 = vld [vmem:[%s5557_s1 + $0x1c0] ss:$8 sps:$4 sm:$0xff]  }
  0x38   :  { %2849 = vmatpush1.bf16.msra.mxu0 %v3706_v57  ;;  %2592 = vmatprep.subr.bf16.mxu1 %v3707_v58  ;;  %v3800_v57 = vld [vmem:[%s5557_s1 + $0x7c0] ss:$8 sps:$4 sm:$0xff]   ;;  %v3805_v58 = vld [vmem:[%s5557_s1 + $0x1d4] ss:$8 sps:$4 sm:$0xff]  }
  0x39   :  { %2850 = vmatprep.subr.bf16.mxu0 %v3709_v59  ;;  %v3808_v59 = vld [vmem:[%s5557_s1 + $0x7d4] ss:$8 sps:$4 sm:$0xff]  }
  0x3b   :  { %2593 = vmatpush1.bf16.msra.mxu1 %v3711_v60  ;;  %v3803_v60 = vld [vmem:[%s5557_s1 + $0x1d0] ss:$8 sps:$4 sm:$0xff]  }
  0x3c   :  { %2851 = vmatpush1.bf16.msra.mxu0 %v3712_v61  ;;  %2594 = vmatprep.subr.bf16.mxu1 %v3713_v62  ;;  %v3806_v61 = vld [vmem:[%s5557_s1 + $0x7d0] ss:$8 sps:$4 sm:$0xff]   ;;  %v3811_v62 = vld [vmem:[%s5557_s1 + $0x1e4] ss:$8 sps:$4 sm:$0xff]  }
  0x3d   :  { %2852 = vmatprep.subr.bf16.mxu0 %v3715_v63  ;;  %v3814_v63 = vld [vmem:[%s5557_s1 + $0x7e4] ss:$8 sps:$4 sm:$0xff]  }
  0x3f   :  { %2595 = vmatpush1.bf16.msra.mxu1 %v3717_v0  ;;  %v3809_v0 = vld [vmem:[%s5557_s1 + $0x1e0] ss:$8 sps:$4 sm:$0xff]  }
  0x40   :  { %2853 = vmatpush1.bf16.msra.mxu0 %v3718_v1  ;;  %2607 = vmatprep.subr.bf16.mxu1 %v3724_v2  ;;  %v3812_v1 = vld [vmem:[%s5557_s1 + $0x7e0] ss:$8 sps:$4 sm:$0xff]   ;;  %v3817_v2 = vld [vmem:[%s5557_s1 + $0x1f4] ss:$8 sps:$4 sm:$0xff]  }
  0x41   :  { %2865 = vmatprep.subr.bf16.mxu0 %v3730_v3  ;;  %v3820_v3 = vld [vmem:[%s5557_s1 + $0x7f4] ss:$8 sps:$4 sm:$0xff]  }
  0x42   :  { %2597 = vmatmul.mubr.bf16.vlgmr.msra.gmra.mrb[0].mxu1 %v3719_v4  ;;  %v3815_v4 = vld [vmem:[%s5557_s1 + $0x1f0] ss:$8 sps:$4 sm:$0xff]  }
  0x43   :  { %2855 = vmatmul.mubr.bf16.vlgmr.msra.gmra.mrb[0].mxu0 %v3725_v6  ;;  %2608 = vmatpush1.bf16.msra.mxu1 %v3722_v5  ;;  %v3818_v5 = vld [vmem:[%s5557_s1 + $0x7f0] ss:$8 sps:$4 sm:$0xff]   ;;  %v3826_v6 = vld [vmem:[%s5557_s1 + $0x204] ss:$8 sps:$4 sm:$0xff]  }
  0x44   :  { %2866 = vmatpush1.bf16.msra.mxu0 %v3728_v7  ;;  %2609 = vmatprep.subr.bf16.mxu1 %v3733_v8  ;;  %v3832_v7 = vld [vmem:[%s5557_s1 + $0x804] ss:$8 sps:$4 sm:$0xff]  }
  0x45   :  { %2867 = vmatprep.subr.bf16.mxu0 %v3736_v9  ;;  %2639 = vmatprep.mubr.bf16.mxu1 %v3823_v34  ;;  %v3821_v8 = vld [vmem:[%s5558_s0 + $0x8] ss:$100 sps:$4 sm:$0xff]  }
  0x46   :  { %2897 = vmatprep.mubr.bf16.mxu0 %v3829_v37  ;;  %v3824_v9 = vld [vmem:[%s5557_s1 + $0x200] ss:$8 sps:$4 sm:$0xff]   ;;  %v3865_v34 = vld [vmem:[%s5557_s1 + $0x264] ss:$8 sps:$4 sm:$0xff]  }
  0x47   :  { %2610 = vmatpush1.bf16.msra.mxu1 %v3731_v10  ;;  %v3827_v10 = vld [vmem:[%s5558_s0 + $0x38] ss:$100 sps:$4 sm:$0xff]   ;;  %v3866_v37 = vld [vmem:[%s5557_s1 + $0x860] ss:$8 sps:$4 sm:$0xff]  }
  0x48   :  { %2868 = vmatpush1.bf16.msra.mxu0 %v3734_v11  ;;  %2611 = vmatprep.subr.bf16.mxu1 %v3739_v12  ;;  %v3830_v11 = vld [vmem:[%s5557_s1 + $0x800] ss:$8 sps:$4 sm:$0xff]   ;;  %v3835_v12 = vld [vmem:[%s5557_s1 + $0x214] ss:$8 sps:$4 sm:$0xff]  }
  0x49   :  { %2869 = vmatprep.subr.bf16.mxu0 %v3742_v13  ;;  %v3838_v13 = vld [vmem:[%s5557_s1 + $0x814] ss:$8 sps:$4 sm:$0xff]  }
  0x4b   :  { %2612 = vmatpush1.bf16.msra.mxu1 %v3737_v14  ;;  %v3833_v14 = vld [vmem:[%s5557_s1 + $0x210] ss:$8 sps:$4 sm:$0xff]  }
  0x4c   :  { %2870 = vmatpush1.bf16.msra.mxu0 %v3740_v15  ;;  %2613 = vmatprep.subr.bf16.mxu1 %v3745_v16  ;;  %v3836_v15 = vld [vmem:[%s5557_s1 + $0x810] ss:$8 sps:$4 sm:$0xff]   ;;  %v3841_v16 = vld [vmem:[%s5557_s1 + $0x224] ss:$8 sps:$4 sm:$0xff]  }
  0x4d   :  { %2871 = vmatprep.subr.bf16.mxu0 %v3748_v17  ;;  %v3844_v17 = vld [vmem:[%s5557_s1 + $0x824] ss:$8 sps:$4 sm:$0xff]  }
  0x4f   :  { %2614 = vmatpush1.bf16.msra.mxu1 %v3743_v18  ;;  %v3839_v18 = vld [vmem:[%s5557_s1 + $0x220] ss:$8 sps:$4 sm:$0xff]  }
  0x50   :  { %2872 = vmatpush1.bf16.msra.mxu0 %v3746_v19  ;;  %2615 = vmatprep.subr.bf16.mxu1 %v3751_v20  ;;  %v3925_v19 = vld [vmem:[%s5558_s0 + $0x14] ss:$100 sps:$4 sm:$0xff]   ;;  %v3842_v20 = vld [vmem:[%s5557_s1 + $0x820] ss:$8 sps:$4 sm:$0xff]  }
  0x51   :  { %2873 = vmatprep.subr.bf16.mxu0 %v3754_v21  ;;  %v3847_v21 = vld [vmem:[%s5557_s1 + $0x234] ss:$8 sps:$4 sm:$0xff]  }
  0x53   :  { %2616 = vmatpush1.bf16.msra.mxu1 %v3749_v22  ;;  %v3850_v22 = vld [vmem:[%s5557_s1 + $0x834] ss:$8 sps:$4 sm:$0xff]  }
  0x54   :  { %2874 = vmatpush1.bf16.msra.mxu0 %v3752_v23  ;;  %2617 = vmatprep.subr.bf16.mxu1 %v3757_v24  ;;  %v3931_v23 = vld [vmem:[%s5558_s0 + $0x44] ss:$100 sps:$4 sm:$0xff]   ;;  %v3845_v24 = vld [vmem:[%s5557_s1 + $0x230] ss:$8 sps:$4 sm:$0xff]  }
  0x55   :  { %2875 = vmatprep.subr.bf16.mxu0 %v3760_v25  ;;  %v3848_v25 = vld [vmem:[%s5557_s1 + $0x830] ss:$8 sps:$4 sm:$0xff]  }
  0x57   :  { %2618 = vmatpush1.bf16.msra.mxu1 %v3755_v26  ;;  %v3853_v26 = vld [vmem:[%s5557_s1 + $0x244] ss:$8 sps:$4 sm:$0xff]  }
  0x58   :  { %2876 = vmatpush1.bf16.msra.mxu0 %v3758_v27  ;;  %2619 = vmatprep.subr.bf16.mxu1 %v3763_v28  ;;  %v3856_v27 = vld [vmem:[%s5557_s1 + $0x844] ss:$8 sps:$4 sm:$0xff]   ;;  %v3851_v28 = vld [vmem:[%s5557_s1 + $0x240] ss:$8 sps:$4 sm:$0xff]  }
  0x59   :  { %2877 = vmatprep.subr.bf16.mxu0 %v3766_v29  ;;  %v3854_v29 = vld [vmem:[%s5557_s1 + $0x840] ss:$8 sps:$4 sm:$0xff]  }
  0x5b   :  { %2620 = vmatpush1.bf16.msra.mxu1 %v3761_v30  ;;  %v3859_v30 = vld [vmem:[%s5557_s1 + $0x254] ss:$8 sps:$4 sm:$0xff]  }
  0x5c   :  { %2878 = vmatpush1.bf16.msra.mxu0 %v3764_v31  ;;  %2621 = vmatprep.subr.bf16.mxu1 %v3769_v32  ;;  %v3862_v31 = vld [vmem:[%s5557_s1 + $0x854] ss:$8 sps:$4 sm:$0xff]   ;;  %v3857_v32 = vld [vmem:[%s5557_s1 + $0x250] ss:$8 sps:$4 sm:$0xff]  }
  0x5d   :  { %2879 = vmatprep.subr.bf16.mxu0 %v3772_v33  ;;  %v3860_v33 = vld [vmem:[%s5557_s1 + $0x850] ss:$8 sps:$4 sm:$0xff]  }
  0x5f   :  { %2622 = vmatpush1.bf16.msra.mxu1 %v3767_v35  ;;  %v3868_v35 = vld [vmem:[%s5557_s1 + $0x864] ss:$8 sps:$4 sm:$0xff]  }
  0x60   :  { %2880 = vmatpush1.bf16.msra.mxu0 %v3770_v36  ;;  %2623 = vmatprep.subr.bf16.mxu1 %v3775_v38  ;;  %v3863_v36 = vld [vmem:[%s5557_s1 + $0x260] ss:$8 sps:$4 sm:$0xff]   ;;  %v3871_v38 = vld [vmem:[%s5557_s1 + $0x274] ss:$8 sps:$4 sm:$0xff]  }
  0x61   :  { %2881 = vmatprep.subr.bf16.mxu0 %v3778_v39  ;;  %v3874_v39 = vld [vmem:[%s5557_s1 + $0x874] ss:$8 sps:$4 sm:$0xff]  }
  0x63   :  { %2624 = vmatpush1.bf16.msra.mxu1 %v3773_v40  ;;  %v3869_v40 = vld [vmem:[%s5557_s1 + $0x270] ss:$8 sps:$4 sm:$0xff]  }
  0x64   :  { %2882 = vmatpush1.bf16.msra.mxu0 %v3776_v41  ;;  %2625 = vmatprep.subr.bf16.mxu1 %v3781_v42  ;;  %v3872_v41 = vld [vmem:[%s5557_s1 + $0x870] ss:$8 sps:$4 sm:$0xff]   ;;  %v3877_v42 = vld [vmem:[%s5557_s1 + $0x284] ss:$8 sps:$4 sm:$0xff]  }
  0x65   :  { %2883 = vmatprep.subr.bf16.mxu0 %v3784_v43  ;;  %v3880_v43 = vld [vmem:[%s5557_s1 + $0x884] ss:$8 sps:$4 sm:$0xff]  }
  0x67   :  { %2626 = vmatpush1.bf16.msra.mxu1 %v3779_v44  ;;  %v3875_v44 = vld [vmem:[%s5557_s1 + $0x280] ss:$8 sps:$4 sm:$0xff]  }
  0x68   :  { %2884 = vmatpush1.bf16.msra.mxu0 %v3782_v45  ;;  %2627 = vmatprep.subr.bf16.mxu1 %v3787_v46  ;;  %v3878_v45 = vld [vmem:[%s5557_s1 + $0x880] ss:$8 sps:$4 sm:$0xff]   ;;  %v3883_v46 = vld [vmem:[%s5557_s1 + $0x294] ss:$8 sps:$4 sm:$0xff]  }
  0x69   :  { %2885 = vmatprep.subr.bf16.mxu0 %v3790_v47  ;;  %v3886_v47 = vld [vmem:[%s5557_s1 + $0x894] ss:$8 sps:$4 sm:$0xff]  }
  0x6b   :  { %2628 = vmatpush1.bf16.msra.mxu1 %v3785_v48  ;;  %v3881_v48 = vld [vmem:[%s5557_s1 + $0x290] ss:$8 sps:$4 sm:$0xff]  }
  0x6c   :  { %2886 = vmatpush1.bf16.msra.mxu0 %v3788_v49  ;;  %2629 = vmatprep.subr.bf16.mxu1 %v3793_v50  ;;  %v3884_v49 = vld [vmem:[%s5557_s1 + $0x890] ss:$8 sps:$4 sm:$0xff]   ;;  %v3889_v50 = vld [vmem:[%s5557_s1 + $0x2a4] ss:$8 sps:$4 sm:$0xff]  }
  0x6d   :  { %2887 = vmatprep.subr.bf16.mxu0 %v3796_v51  ;;  %v3892_v51 = vld [vmem:[%s5557_s1 + $0x8a4] ss:$8 sps:$4 sm:$0xff]  }
  0x6f   :  { %2630 = vmatpush1.bf16.msra.mxu1 %v3791_v52  ;;  %v3887_v52 = vld [vmem:[%s5557_s1 + $0x2a0] ss:$8 sps:$4 sm:$0xff]  }
  0x70   :  { %2888 = vmatpush1.bf16.msra.mxu0 %v3794_v53  ;;  %2631 = vmatprep.subr.bf16.mxu1 %v3799_v54  ;;  %v3890_v53 = vld [vmem:[%s5557_s1 + $0x8a0] ss:$8 sps:$4 sm:$0xff]   ;;  %v3895_v54 = vld [vmem:[%s5557_s1 + $0x2b4] ss:$8 sps:$4 sm:$0xff]  }
  0x71   :  { %2889 = vmatprep.subr.bf16.mxu0 %v3802_v55  ;;  %v3898_v55 = vld [vmem:[%s5557_s1 + $0x8b4] ss:$8 sps:$4 sm:$0xff]  }
  0x73   :  { %2632 = vmatpush1.bf16.msra.mxu1 %v3797_v56  ;;  %v3893_v56 = vld [vmem:[%s5557_s1 + $0x2b0] ss:$8 sps:$4 sm:$0xff]  }
  0x74   :  { %2890 = vmatpush1.bf16.msra.mxu0 %v3800_v57  ;;  %2633 = vmatprep.subr.bf16.mxu1 %v3805_v58  ;;  %v3896_v57 = vld [vmem:[%s5557_s1 + $0x8b0] ss:$8 sps:$4 sm:$0xff]   ;;  %v3901_v58 = vld [vmem:[%s5557_s1 + $0x2c4] ss:$8 sps:$4 sm:$0xff]  }
  0x75   :  { %2891 = vmatprep.subr.bf16.mxu0 %v3808_v59  ;;  %v3904_v59 = vld [vmem:[%s5557_s1 + $0x8c4] ss:$8 sps:$4 sm:$0xff]  }
  0x77   :  { %2634 = vmatpush1.bf16.msra.mxu1 %v3803_v60  ;;  %v3899_v60 = vld [vmem:[%s5557_s1 + $0x2c0] ss:$8 sps:$4 sm:$0xff]  }
  0x78   :  { %2892 = vmatpush1.bf16.msra.mxu0 %v3806_v61  ;;  %2635 = vmatprep.subr.bf16.mxu1 %v3811_v62  ;;  %v3902_v61 = vld [vmem:[%s5557_s1 + $0x8c0] ss:$8 sps:$4 sm:$0xff]   ;;  %v3907_v62 = vld [vmem:[%s5557_s1 + $0x2d4] ss:$8 sps:$4 sm:$0xff]  }
  0x79   :  { %2893 = vmatprep.subr.bf16.mxu0 %v3814_v63  ;;  %v3910_v63 = vld [vmem:[%s5557_s1 + $0x8d4] ss:$8 sps:$4 sm:$0xff]  }
  0x7b   :  { %2636 = vmatpush1.bf16.msra.mxu1 %v3809_v0  ;;  %v3905_v0 = vld [vmem:[%s5557_s1 + $0x2d0] ss:$8 sps:$4 sm:$0xff]  }
  0x7c   :  { %2894 = vmatpush1.bf16.msra.mxu0 %v3812_v1  ;;  %2637 = vmatprep.subr.bf16.mxu1 %v3817_v2  ;;  %v3908_v1 = vld [vmem:[%s5557_s1 + $0x8d0] ss:$8 sps:$4 sm:$0xff]   ;;  %v3913_v2 = vld [vmem:[%s5557_s1 + $0x2e4] ss:$8 sps:$4 sm:$0xff]  }
  0x7d   :  { %2895 = vmatprep.subr.bf16.mxu0 %v3820_v3  ;;  %v3916_v3 = vld [vmem:[%s5557_s1 + $0x8e4] ss:$8 sps:$4 sm:$0xff]  }
  0x7f   :  { %2638 = vmatpush1.bf16.msra.mxu1 %v3815_v4  ;;  %v3911_v4 = vld [vmem:[%s5557_s1 + $0x2e0] ss:$8 sps:$4 sm:$0xff]  }
  0x80   :  { %2896 = vmatpush1.bf16.msra.mxu0 %v3818_v5  ;;  %2650 = vmatprep.subr.bf16.mxu1 %v3826_v6  ;;  %v3914_v5 = vld [vmem:[%s5557_s1 + $0x8e0] ss:$8 sps:$4 sm:$0xff]   ;;  %v3919_v6 = vld [vmem:[%s5557_s1 + $0x2f4] ss:$8 sps:$4 sm:$0xff]  }
  0x81   :  { %2908 = vmatprep.subr.bf16.mxu0 %v3832_v7  ;;  %v3922_v7 = vld [vmem:[%s5557_s1 + $0x8f4] ss:$8 sps:$4 sm:$0xff]  }
  0x82   :  { %2640 = vmatmul.mubr.bf16.vlgmr.msra.gmra.mrb[0].mxu1 %v3821_v8  ;;  %v3917_v8 = vld [vmem:[%s5557_s1 + $0x2f0] ss:$8 sps:$4 sm:$0xff]  }
  0x83   :  { %2898 = vmatmul.mubr.bf16.vlgmr.msra.gmra.mrb[0].mxu0 %v3827_v10  ;;  %2651 = vmatpush1.bf16.msra.mxu1 %v3824_v9  ;;  %v3920_v9 = vld [vmem:[%s5557_s1 + $0x8f0] ss:$8 sps:$4 sm:$0xff]   ;;  %v3928_v10 = vld [vmem:[%s5557_s1 + $0x304] ss:$8 sps:$4 sm:$0xff]  }
  0x84   :  { %2909 = vmatpush1.bf16.msra.mxu0 %v3830_v11  ;;  %2652 = vmatprep.subr.bf16.mxu1 %v3835_v12  ;;  %v3934_v11 = vld [vmem:[%s5557_s1 + $0x904] ss:$8 sps:$4 sm:$0xff]   ;;  %v3923_v12 = vld [vmem:[%s5558_s0 + $0x10] ss:$100 sps:$4 sm:$0xff]  }
  0x85   :  { %2910 = vmatprep.subr.bf16.mxu0 %v3838_v13  ;;  %2682 = vmatprep.mubr.bf16.mxu1 %v3925_v19  ;;  %v3926_v13 = vld [vmem:[%s5557_s1 + $0x300] ss:$8 sps:$4 sm:$0xff]   ;;  %v4033_v19 = vld [vmem:[%s5558_s0 + $0x4c] ss:$100 sps:$4 sm:$0xff]  }
  0x86   :  { %2940 = vmatprep.mubr.bf16.mxu0 %v3931_v23  ;;  %v3946_v23 = vld [vmem:[%s5557_s1 + $0x924] ss:$8 sps:$4 sm:$0xff]  }
  0x87   :  { %2653 = vmatpush1.bf16.msra.mxu1 %v3833_v14  ;;  %v3929_v14 = vld [vmem:[%s5558_s0 + $0x40] ss:$100 sps:$4 sm:$0xff]  }
  0x88   :  { %2911 = vmatpush1.bf16.msra.mxu0 %v3836_v15  ;;  %2654 = vmatprep.subr.bf16.mxu1 %v3841_v16  ;;  %v3932_v15 = vld [vmem:[%s5557_s1 + $0x900] ss:$8 sps:$4 sm:$0xff]   ;;  %v3937_v16 = vld [vmem:[%s5557_s1 + $0x314] ss:$8 sps:$4 sm:$0xff]  }
  0x89   :  { %2912 = vmatprep.subr.bf16.mxu0 %v3844_v17  ;;  %v3940_v17 = vld [vmem:[%s5557_s1 + $0x914] ss:$8 sps:$4 sm:$0xff]  }
  0x8b   :  { %2655 = vmatpush1.bf16.msra.mxu1 %v3839_v18  ;;  %v4027_v18 = vld [vmem:[%s5558_s0 + $0x1c] ss:$100 sps:$4 sm:$0xff]  }
  0x8c   :  { %2913 = vmatpush1.bf16.msra.mxu0 %v3842_v20  ;;  %2656 = vmatprep.subr.bf16.mxu1 %v3847_v21  ;;  %v3935_v20 = vld [vmem:[%s5557_s1 + $0x310] ss:$8 sps:$4 sm:$0xff]  }
  0x8d   :  { %2914 = vmatprep.subr.bf16.mxu0 %v3850_v22  ;;  %v3938_v21 = vld [vmem:[%s5557_s1 + $0x910] ss:$8 sps:$4 sm:$0xff]   ;;  %v3943_v22 = vld [vmem:[%s5557_s1 + $0x324] ss:$8 sps:$4 sm:$0xff]  }
  0x8f   :  { %2657 = vmatpush1.bf16.msra.mxu1 %v3845_v24  ;;  %v3941_v24 = vld [vmem:[%s5557_s1 + $0x320] ss:$8 sps:$4 sm:$0xff]  }
  0x90   :  { %2915 = vmatpush1.bf16.msra.mxu0 %v3848_v25  ;;  %2658 = vmatprep.subr.bf16.mxu1 %v3853_v26  ;;  %v3944_v25 = vld [vmem:[%s5557_s1 + $0x920] ss:$8 sps:$4 sm:$0xff]   ;;  %v3949_v26 = vld [vmem:[%s5557_s1 + $0x334] ss:$8 sps:$4 sm:$0xff]  }
  0x91   :  { %2916 = vmatprep.subr.bf16.mxu0 %v3856_v27  ;;  %v3952_v27 = vld [vmem:[%s5557_s1 + $0x934] ss:$8 sps:$4 sm:$0xff]  }
  0x93   :  { %2659 = vmatpush1.bf16.msra.mxu1 %v3851_v28  ;;  %v3947_v28 = vld [vmem:[%s5557_s1 + $0x330] ss:$8 sps:$4 sm:$0xff]  }
  0x94   :  { %2917 = vmatpush1.bf16.msra.mxu0 %v3854_v29  ;;  %2660 = vmatprep.subr.bf16.mxu1 %v3859_v30  ;;  %v3950_v29 = vld [vmem:[%s5557_s1 + $0x930] ss:$8 sps:$4 sm:$0xff]   ;;  %v3955_v30 = vld [vmem:[%s5557_s1 + $0x344] ss:$8 sps:$4 sm:$0xff]  }
  0x95   :  { %2918 = vmatprep.subr.bf16.mxu0 %v3862_v31  ;;  %v3958_v31 = vld [vmem:[%s5557_s1 + $0x944] ss:$8 sps:$4 sm:$0xff]  }
  0x97   :  { %2661 = vmatpush1.bf16.msra.mxu1 %v3857_v32  ;;  %v3953_v32 = vld [vmem:[%s5557_s1 + $0x340] ss:$8 sps:$4 sm:$0xff]  }
  0x98   :  { %2919 = vmatpush1.bf16.msra.mxu0 %v3860_v33  ;;  %2662 = vmatprep.subr.bf16.mxu1 %v3865_v34  ;;  %v3956_v33 = vld [vmem:[%s5557_s1 + $0x940] ss:$8 sps:$4 sm:$0xff]   ;;  %v3961_v34 = vld [vmem:[%s5557_s1 + $0x354] ss:$8 sps:$4 sm:$0xff]  }
  0x99   :  { %2920 = vmatprep.subr.bf16.mxu0 %v3868_v35  ;;  %v3964_v35 = vld [vmem:[%s5557_s1 + $0x954] ss:$8 sps:$4 sm:$0xff]  }
  0x9b   :  { %2663 = vmatpush1.bf16.msra.mxu1 %v3863_v36  ;;  %v3959_v36 = vld [vmem:[%s5557_s1 + $0x350] ss:$8 sps:$4 sm:$0xff]  }
  0x9c   :  { %2921 = vmatpush1.bf16.msra.mxu0 %v3866_v37  ;;  %2664 = vmatprep.subr.bf16.mxu1 %v3871_v38  ;;  %v3962_v37 = vld [vmem:[%s5557_s1 + $0x950] ss:$8 sps:$4 sm:$0xff]   ;;  %v3967_v38 = vld [vmem:[%s5557_s1 + $0x364] ss:$8 sps:$4 sm:$0xff]  }
  0x9d   :  { %2922 = vmatprep.subr.bf16.mxu0 %v3874_v39  ;;  %v3970_v39 = vld [vmem:[%s5557_s1 + $0x964] ss:$8 sps:$4 sm:$0xff]  }
  0x9f   :  { %2665 = vmatpush1.bf16.msra.mxu1 %v3869_v40  ;;  %v3965_v40 = vld [vmem:[%s5557_s1 + $0x360] ss:$8 sps:$4 sm:$0xff]  }
  0xa0   :  { %2923 = vmatpush1.bf16.msra.mxu0 %v3872_v41  ;;  %2666 = vmatprep.subr.bf16.mxu1 %v3877_v42  ;;  %v3968_v41 = vld [vmem:[%s5557_s1 + $0x960] ss:$8 sps:$4 sm:$0xff]   ;;  %v3973_v42 = vld [vmem:[%s5557_s1 + $0x374] ss:$8 sps:$4 sm:$0xff]  }
  0xa1   :  { %2924 = vmatprep.subr.bf16.mxu0 %v3880_v43  ;;  %v3976_v43 = vld [vmem:[%s5557_s1 + $0x974] ss:$8 sps:$4 sm:$0xff]  }
  0xa3   :  { %2667 = vmatpush1.bf16.msra.mxu1 %v3875_v44  ;;  %v3971_v44 = vld [vmem:[%s5557_s1 + $0x370] ss:$8 sps:$4 sm:$0xff]  }
  0xa4   :  { %2925 = vmatpush1.bf16.msra.mxu0 %v3878_v45  ;;  %2668 = vmatprep.subr.bf16.mxu1 %v3883_v46  ;;  %v3974_v45 = vld [vmem:[%s5557_s1 + $0x970] ss:$8 sps:$4 sm:$0xff]   ;;  %v3979_v46 = vld [vmem:[%s5557_s1 + $0x384] ss:$8 sps:$4 sm:$0xff]  }
  0xa5   :  { %2926 = vmatprep.subr.bf16.mxu0 %v3886_v47  ;;  %v3982_v47 = vld [vmem:[%s5557_s1 + $0x984] ss:$8 sps:$4 sm:$0xff]  }
  0xa7   :  { %2669 = vmatpush1.bf16.msra.mxu1 %v3881_v48  ;;  %v3977_v48 = vld [vmem:[%s5557_s1 + $0x380] ss:$8 sps:$4 sm:$0xff]  }
  0xa8   :  { %2927 = vmatpush1.bf16.msra.mxu0 %v3884_v49  ;;  %2670 = vmatprep.subr.bf16.mxu1 %v3889_v50  ;;  %v3980_v49 = vld [vmem:[%s5557_s1 + $0x980] ss:$8 sps:$4 sm:$0xff]   ;;  %v3985_v50 = vld [vmem:[%s5557_s1 + $0x394] ss:$8 sps:$4 sm:$0xff]  }
  0xa9   :  { %2928 = vmatprep.subr.bf16.mxu0 %v3892_v51  ;;  %v3988_v51 = vld [vmem:[%s5557_s1 + $0x994] ss:$8 sps:$4 sm:$0xff]  }
  0xab   :  { %2671 = vmatpush1.bf16.msra.mxu1 %v3887_v52  ;;  %v3983_v52 = vld [vmem:[%s5557_s1 + $0x390] ss:$8 sps:$4 sm:$0xff]  }
  0xac   :  { %2929 = vmatpush1.bf16.msra.mxu0 %v3890_v53  ;;  %2672 = vmatprep.subr.bf16.mxu1 %v3895_v54  ;;  %v3986_v53 = vld [vmem:[%s5557_s1 + $0x990] ss:$8 sps:$4 sm:$0xff]   ;;  %v3991_v54 = vld [vmem:[%s5557_s1 + $0x3a4] ss:$8 sps:$4 sm:$0xff]  }
  0xad   :  { %2930 = vmatprep.subr.bf16.mxu0 %v3898_v55  ;;  %v3994_v55 = vld [vmem:[%s5557_s1 + $0x9a4] ss:$8 sps:$4 sm:$0xff]  }
  0xaf   :  { %2673 = vmatpush1.bf16.msra.mxu1 %v3893_v56  ;;  %v3989_v56 = vld [vmem:[%s5557_s1 + $0x3a0] ss:$8 sps:$4 sm:$0xff]  }
  0xb0   :  { %2931 = vmatpush1.bf16.msra.mxu0 %v3896_v57  ;;  %2674 = vmatprep.subr.bf16.mxu1 %v3901_v58  ;;  %v3992_v57 = vld [vmem:[%s5557_s1 + $0x9a0] ss:$8 sps:$4 sm:$0xff]   ;;  %v3997_v58 = vld [vmem:[%s5557_s1 + $0x3b4] ss:$8 sps:$4 sm:$0xff]  }
  0xb1   :  { %2932 = vmatprep.subr.bf16.mxu0 %v3904_v59  ;;  %v4000_v59 = vld [vmem:[%s5557_s1 + $0x9b4] ss:$8 sps:$4 sm:$0xff]  }
  0xb3   :  { %2675 = vmatpush1.bf16.msra.mxu1 %v3899_v60  ;;  %v3995_v60 = vld [vmem:[%s5557_s1 + $0x3b0] ss:$8 sps:$4 sm:$0xff]  }
  0xb4   :  { %2933 = vmatpush1.bf16.msra.mxu0 %v3902_v61  ;;  %2676 = vmatprep.subr.bf16.mxu1 %v3907_v62  ;;  %v3998_v61 = vld [vmem:[%s5557_s1 + $0x9b0] ss:$8 sps:$4 sm:$0xff]   ;;  %v4003_v62 = vld [vmem:[%s5557_s1 + $0x3c4] ss:$8 sps:$4 sm:$0xff]  }
  0xb5   :  { %2934 = vmatprep.subr.bf16.mxu0 %v3910_v63  ;;  %v4006_v63 = vld [vmem:[%s5557_s1 + $0x9c4] ss:$8 sps:$4 sm:$0xff]  }
  0xb7   :  { %2677 = vmatpush1.bf16.msra.mxu1 %v3905_v0  ;;  %v4001_v0 = vld [vmem:[%s5557_s1 + $0x3c0] ss:$8 sps:$4 sm:$0xff]  }
  0xb8   :  { %2935 = vmatpush1.bf16.msra.mxu0 %v3908_v1  ;;  %2678 = vmatprep.subr.bf16.mxu1 %v3913_v2  ;;  %v4004_v1 = vld [vmem:[%s5557_s1 + $0x9c0] ss:$8 sps:$4 sm:$0xff]   ;;  %v4009_v2 = vld [vmem:[%s5557_s1 + $0x3d4] ss:$8 sps:$4 sm:$0xff]  }
  0xb9   :  { %2936 = vmatprep.subr.bf16.mxu0 %v3916_v3  ;;  %v4012_v3 = vld [vmem:[%s5557_s1 + $0x9d4] ss:$8 sps:$4 sm:$0xff]  }
  0xbb   :  { %2679 = vmatpush1.bf16.msra.mxu1 %v3911_v4  ;;  %v4007_v4 = vld [vmem:[%s5557_s1 + $0x3d0] ss:$8 sps:$4 sm:$0xff]  }
  0xbc   :  { %2937 = vmatpush1.bf16.msra.mxu0 %v3914_v5  ;;  %2680 = vmatprep.subr.bf16.mxu1 %v3919_v6  ;;  %v4010_v5 = vld [vmem:[%s5557_s1 + $0x9d0] ss:$8 sps:$4 sm:$0xff]   ;;  %v4015_v6 = vld [vmem:[%s5557_s1 + $0x3e4] ss:$8 sps:$4 sm:$0xff]  }
  0xbd   :  { %2938 = vmatprep.subr.bf16.mxu0 %v3922_v7  ;;  %v4018_v7 = vld [vmem:[%s5557_s1 + $0x9e4] ss:$8 sps:$4 sm:$0xff]  }
  0xbf   :  { %2681 = vmatpush1.bf16.msra.mxu1 %v3917_v8  ;;  %v4013_v8 = vld [vmem:[%s5557_s1 + $0x3e0] ss:$8 sps:$4 sm:$0xff]  }
  0xc0   :  { %2939 = vmatpush1.bf16.msra.mxu0 %v3920_v9  ;;  %2693 = vmatprep.subr.bf16.mxu1 %v3928_v10  ;;  %v4016_v9 = vld [vmem:[%s5557_s1 + $0x9e0] ss:$8 sps:$4 sm:$0xff]   ;;  %v4021_v10 = vld [vmem:[%s5557_s1 + $0x3f4] ss:$8 sps:$4 sm:$0xff]  }
  0xc1   :  { %2951 = vmatprep.subr.bf16.mxu0 %v3934_v11  ;;  %v4024_v11 = vld [vmem:[%s5557_s1 + $0x9f4] ss:$8 sps:$4 sm:$0xff]  }
  0xc2   :  { %2683 = vmatmul.mubr.bf16.vlgmr.msra.gmra.mrb[0].mxu1 %v3923_v12  ;;  %v4019_v12 = vld [vmem:[%s5557_s1 + $0x3f0] ss:$8 sps:$4 sm:$0xff]  }
  0xc3   :  { %2941 = vmatmul.mubr.bf16.vlgmr.msra.gmra.mrb[0].mxu0 %v3929_v14  ;;  %2694 = vmatpush1.bf16.msra.mxu1 %v3926_v13  ;;  %v4022_v13 = vld [vmem:[%s5557_s1 + $0x9f0] ss:$8 sps:$4 sm:$0xff]   ;;  %v4030_v14 = vld [vmem:[%s5557_s1 + $0x404] ss:$8 sps:$4 sm:$0xff]  }
  0xc4   :  { %2952 = vmatpush1.bf16.msra.mxu0 %v3932_v15  ;;  %2695 = vmatprep.subr.bf16.mxu1 %v3937_v16  ;;  %v4036_v15 = vld [vmem:[%s5557_s1 + $0xa04] ss:$8 sps:$4 sm:$0xff]   ;;  %v4025_v16 = vld [vmem:[%s5558_s0 + $0x18] ss:$100 sps:$4 sm:$0xff]  }
  0xc5   :  { %2953 = vmatprep.subr.bf16.mxu0 %v3940_v17  ;;  %2725 = vmatprep.mubr.bf16.mxu1 %v4027_v18  ;;  %v4028_v17 = vld [vmem:[%s5557_s1 + $0x400] ss:$8 sps:$4 sm:$0xff]  }
  0xc6   :  { %2983 = vmatprep.mubr.bf16.mxu0 %v4033_v19  ;;  %v4031_v18 = vld [vmem:[%s5558_s0 + $0x48] ss:$100 sps:$4 sm:$0xff]  }
  0xc7   :  { %2696 = vmatpush1.bf16.msra.mxu1 %v3935_v20  ;;  %v4034_v19 = vld [vmem:[%s5557_s1 + $0xa00] ss:$8 sps:$4 sm:$0xff]   ;;  %v4039_v20 = vld [vmem:[%s5557_s1 + $0x414] ss:$8 sps:$4 sm:$0xff]  }
  0xc8   :  { %2954 = vmatpush1.bf16.msra.mxu0 %v3938_v21  ;;  %2697 = vmatprep.subr.bf16.mxu1 %v3943_v22  ;;  %v4042_v21 = vld [vmem:[%s5557_s1 + $0xa14] ss:$8 sps:$4 sm:$0xff]   ;;  %v4129_v22 = vld [vmem:[%s5558_s0 + $0x24] ss:$100 sps:$4 sm:$0xff]  }
  0xc9   :  { %2955 = vmatprep.subr.bf16.mxu0 %v3946_v23  ;;  %v4135_v23 = vld [vmem:[%s5558_s0 + $0x54] ss:$100 sps:$4 sm:$0xff]  }
  0xcb   :  { %2698 = vmatpush1.bf16.msra.mxu1 %v3941_v24  ;;  %v4037_v24 = vld [vmem:[%s5557_s1 + $0x410] ss:$8 sps:$4 sm:$0xff]  }
  0xcc   :  { %2956 = vmatpush1.bf16.msra.mxu0 %v3944_v25  ;;  %2699 = vmatprep.subr.bf16.mxu1 %v3949_v26  ;;  %v4040_v25 = vld [vmem:[%s5557_s1 + $0xa10] ss:$8 sps:$4 sm:$0xff]   ;;  %v4045_v26 = vld [vmem:[%s5557_s1 + $0x424] ss:$8 sps:$4 sm:$0xff]  }
  0xcd   :  { %2957 = vmatprep.subr.bf16.mxu0 %v3952_v27  ;;  %v4048_v27 = vld [vmem:[%s5557_s1 + $0xa24] ss:$8 sps:$4 sm:$0xff]  }
  0xcf   :  { %2700 = vmatpush1.bf16.msra.mxu1 %v3947_v28  ;;  %v4043_v28 = vld [vmem:[%s5557_s1 + $0x420] ss:$8 sps:$4 sm:$0xff]  }
  0xd0   :  { %2958 = vmatpush1.bf16.msra.mxu0 %v3950_v29  ;;  %2701 = vmatprep.subr.bf16.mxu1 %v3955_v30  ;;  %v4046_v29 = vld [vmem:[%s5557_s1 + $0xa20] ss:$8 sps:$4 sm:$0xff]   ;;  %v4051_v30 = vld [vmem:[%s5557_s1 + $0x434] ss:$8 sps:$4 sm:$0xff]  }
  0xd1   :  { %2959 = vmatprep.subr.bf16.mxu0 %v3958_v31  ;;  %v4054_v31 = vld [vmem:[%s5557_s1 + $0xa34] ss:$8 sps:$4 sm:$0xff]  }
  0xd3   :  { %2702 = vmatpush1.bf16.msra.mxu1 %v3953_v32  ;;  %v4049_v32 = vld [vmem:[%s5557_s1 + $0x430] ss:$8 sps:$4 sm:$0xff]  }
  0xd4   :  { %2960 = vmatpush1.bf16.msra.mxu0 %v3956_v33  ;;  %2703 = vmatprep.subr.bf16.mxu1 %v3961_v34  ;;  %v4052_v33 = vld [vmem:[%s5557_s1 + $0xa30] ss:$8 sps:$4 sm:$0xff]   ;;  %v4057_v34 = vld [vmem:[%s5557_s1 + $0x444] ss:$8 sps:$4 sm:$0xff]  }
  0xd5   :  { %2961 = vmatprep.subr.bf16.mxu0 %v3964_v35  ;;  %v4060_v35 = vld [vmem:[%s5557_s1 + $0xa44] ss:$8 sps:$4 sm:$0xff]  }
  0xd7   :  { %2704 = vmatpush1.bf16.msra.mxu1 %v3959_v36  ;;  %v4055_v36 = vld [vmem:[%s5557_s1 + $0x440] ss:$8 sps:$4 sm:$0xff]  }
  0xd8   :  { %2962 = vmatpush1.bf16.msra.mxu0 %v3962_v37  ;;  %2705 = vmatprep.subr.bf16.mxu1 %v3967_v38  ;;  %v4058_v37 = vld [vmem:[%s5557_s1 + $0xa40] ss:$8 sps:$4 sm:$0xff]   ;;  %v4063_v38 = vld [vmem:[%s5557_s1 + $0x454] ss:$8 sps:$4 sm:$0xff]  }
  0xd9   :  { %2963 = vmatprep.subr.bf16.mxu0 %v3970_v39  ;;  %v4066_v39 = vld [vmem:[%s5557_s1 + $0xa54] ss:$8 sps:$4 sm:$0xff]  }
  0xdb   :  { %2706 = vmatpush1.bf16.msra.mxu1 %v3965_v40  ;;  %v4061_v40 = vld [vmem:[%s5557_s1 + $0x450] ss:$8 sps:$4 sm:$0xff]  }
  0xdc   :  { %2964 = vmatpush1.bf16.msra.mxu0 %v3968_v41  ;;  %2707 = vmatprep.subr.bf16.mxu1 %v3973_v42  ;;  %v4064_v41 = vld [vmem:[%s5557_s1 + $0xa50] ss:$8 sps:$4 sm:$0xff]   ;;  %v4069_v42 = vld [vmem:[%s5557_s1 + $0x464] ss:$8 sps:$4 sm:$0xff]  }
  0xdd   :  { %2965 = vmatprep.subr.bf16.mxu0 %v3976_v43  ;;  %v4072_v43 = vld [vmem:[%s5557_s1 + $0xa64] ss:$8 sps:$4 sm:$0xff]  }
  0xdf   :  { %2708 = vmatpush1.bf16.msra.mxu1 %v3971_v44  ;;  %v4067_v44 = vld [vmem:[%s5557_s1 + $0x460] ss:$8 sps:$4 sm:$0xff]  }
  0xe0   :  { %2966 = vmatpush1.bf16.msra.mxu0 %v3974_v45  ;;  %2709 = vmatprep.subr.bf16.mxu1 %v3979_v46  ;;  %v4070_v45 = vld [vmem:[%s5557_s1 + $0xa60] ss:$8 sps:$4 sm:$0xff]   ;;  %v4075_v46 = vld [vmem:[%s5557_s1 + $0x474] ss:$8 sps:$4 sm:$0xff]  }
  0xe1   :  { %2967 = vmatprep.subr.bf16.mxu0 %v3982_v47  ;;  %v4078_v47 = vld [vmem:[%s5557_s1 + $0xa74] ss:$8 sps:$4 sm:$0xff]  }
  0xe3   :  { %2710 = vmatpush1.bf16.msra.mxu1 %v3977_v48  ;;  %v4073_v48 = vld [vmem:[%s5557_s1 + $0x470] ss:$8 sps:$4 sm:$0xff]  }
  0xe4   :  { %2968 = vmatpush1.bf16.msra.mxu0 %v3980_v49  ;;  %2711 = vmatprep.subr.bf16.mxu1 %v3985_v50  ;;  %v4076_v49 = vld [vmem:[%s5557_s1 + $0xa70] ss:$8 sps:$4 sm:$0xff]   ;;  %v4081_v50 = vld [vmem:[%s5557_s1 + $0x484] ss:$8 sps:$4 sm:$0xff]  }
  0xe5   :  { %2969 = vmatprep.subr.bf16.mxu0 %v3988_v51  ;;  %v4084_v51 = vld [vmem:[%s5557_s1 + $0xa84] ss:$8 sps:$4 sm:$0xff]  }
  0xe7   :  { %2712 = vmatpush1.bf16.msra.mxu1 %v3983_v52  ;;  %v4079_v52 = vld [vmem:[%s5557_s1 + $0x480] ss:$8 sps:$4 sm:$0xff]  }
  0xe8   :  { %2970 = vmatpush1.bf16.msra.mxu0 %v3986_v53  ;;  %2713 = vmatprep.subr.bf16.mxu1 %v3991_v54  ;;  %v4082_v53 = vld [vmem:[%s5557_s1 + $0xa80] ss:$8 sps:$4 sm:$0xff]   ;;  %v4087_v54 = vld [vmem:[%s5557_s1 + $0x494] ss:$8 sps:$4 sm:$0xff]  }
  0xe9   :  { %2971 = vmatprep.subr.bf16.mxu0 %v3994_v55  ;;  %v4090_v55 = vld [vmem:[%s5557_s1 + $0xa94] ss:$8 sps:$4 sm:$0xff]  }
  0xeb   :  { %2714 = vmatpush1.bf16.msra.mxu1 %v3989_v56  ;;  %v4085_v56 = vld [vmem:[%s5557_s1 + $0x490] ss:$8 sps:$4 sm:$0xff]  }
  0xec   :  { %2972 = vmatpush1.bf16.msra.mxu0 %v3992_v57  ;;  %2715 = vmatprep.subr.bf16.mxu1 %v3997_v58  ;;  %v4088_v57 = vld [vmem:[%s5557_s1 + $0xa90] ss:$8 sps:$4 sm:$0xff]   ;;  %v4093_v58 = vld [vmem:[%s5557_s1 + $0x4a4] ss:$8 sps:$4 sm:$0xff]  }
  0xed   :  { %2973 = vmatprep.subr.bf16.mxu0 %v4000_v59  ;;  %v4096_v59 = vld [vmem:[%s5557_s1 + $0xaa4] ss:$8 sps:$4 sm:$0xff]  }
  0xef   :  { %2716 = vmatpush1.bf16.msra.mxu1 %v3995_v60  ;;  %v4091_v60 = vld [vmem:[%s5557_s1 + $0x4a0] ss:$8 sps:$4 sm:$0xff]  }
  0xf0   :  { %2974 = vmatpush1.bf16.msra.mxu0 %v3998_v61  ;;  %2717 = vmatprep.subr.bf16.mxu1 %v4003_v62  ;;  %v4094_v61 = vld [vmem:[%s5557_s1 + $0xaa0] ss:$8 sps:$4 sm:$0xff]   ;;  %v4099_v62 = vld [vmem:[%s5557_s1 + $0x4b4] ss:$8 sps:$4 sm:$0xff]  }
  0xf1   :  { %2975 = vmatprep.subr.bf16.mxu0 %v4006_v63  ;;  %v4102_v63 = vld [vmem:[%s5557_s1 + $0xab4] ss:$8 sps:$4 sm:$0xff]  }
  0xf3   :  { %2718 = vmatpush1.bf16.msra.mxu1 %v4001_v0  ;;  %v4097_v0 = vld [vmem:[%s5557_s1 + $0x4b0] ss:$8 sps:$4 sm:$0xff]  }
  0xf4   :  { %2976 = vmatpush1.bf16.msra.mxu0 %v4004_v1  ;;  %2719 = vmatprep.subr.bf16.mxu1 %v4009_v2  ;;  %v4100_v1 = vld [vmem:[%s5557_s1 + $0xab0] ss:$8 sps:$4 sm:$0xff]   ;;  %v4105_v2 = vld [vmem:[%s5557_s1 + $0x4c4] ss:$8 sps:$4 sm:$0xff]  }
  0xf5   :  { %2977 = vmatprep.subr.bf16.mxu0 %v4012_v3  ;;  %v4108_v3 = vld [vmem:[%s5557_s1 + $0xac4] ss:$8 sps:$4 sm:$0xff]  }
  0xf7   :  { %2720 = vmatpush1.bf16.msra.mxu1 %v4007_v4  ;;  %v4103_v4 = vld [vmem:[%s5557_s1 + $0x4c0] ss:$8 sps:$4 sm:$0xff]  }
  0xf8   :  { %2978 = vmatpush1.bf16.msra.mxu0 %v4010_v5  ;;  %2721 = vmatprep.subr.bf16.mxu1 %v4015_v6  ;;  %v4106_v5 = vld [vmem:[%s5557_s1 + $0xac0] ss:$8 sps:$4 sm:$0xff]   ;;  %v4111_v6 = vld [vmem:[%s5557_s1 + $0x4d4] ss:$8 sps:$4 sm:$0xff]  }
  0xf9   :  { %2979 = vmatprep.subr.bf16.mxu0 %v4018_v7  ;;  %v4114_v7 = vld [vmem:[%s5557_s1 + $0xad4] ss:$8 sps:$4 sm:$0xff]  }
  0xfb   :  { %2722 = vmatpush1.bf16.msra.mxu1 %v4013_v8  ;;  %v4109_v8 = vld [vmem:[%s5557_s1 + $0x4d0] ss:$8 sps:$4 sm:$0xff]  }
  0xfc   :  { %2980 = vmatpush1.bf16.msra.mxu0 %v4016_v9  ;;  %2723 = vmatprep.subr.bf16.mxu1 %v4021_v10  ;;  %v4112_v9 = vld [vmem:[%s5557_s1 + $0xad0] ss:$8 sps:$4 sm:$0xff]   ;;  %v4117_v10 = vld [vmem:[%s5557_s1 + $0x4e4] ss:$8 sps:$4 sm:$0xff]  }
  0xfd   :  { %2981 = vmatprep.subr.bf16.mxu0 %v4024_v11  ;;  %v4120_v11 = vld [vmem:[%s5557_s1 + $0xae4] ss:$8 sps:$4 sm:$0xff]  }
  0xff   :  { %2724 = vmatpush1.bf16.msra.mxu1 %v4019_v12  ;;  %v4115_v12 = vld [vmem:[%s5557_s1 + $0x4e0] ss:$8 sps:$4 sm:$0xff]  }
 0x100   :  { %2982 = vmatpush1.bf16.msra.mxu0 %v4022_v13  ;;  %2736 = vmatprep.subr.bf16.mxu1 %v4030_v14  ;;  %v4118_v13 = vld [vmem:[%s5557_s1 + $0xae0] ss:$8 sps:$4 sm:$0xff]   ;;  %v4123_v14 = vld [vmem:[%s5557_s1 + $0x4f4] ss:$8 sps:$4 sm:$0xff]  }
 0x101   :  { %2994 = vmatprep.subr.bf16.mxu0 %v4036_v15  ;;  %v4126_v15 = vld [vmem:[%s5557_s1 + $0xaf4] ss:$8 sps:$4 sm:$0xff]  }
 0x102   :  { %2726 = vmatmul.mubr.bf16.vlgmr.msra.gmra.mrb[0].mxu1 %v4025_v16  ;;  %v4121_v16 = vld [vmem:[%s5557_s1 + $0x4f0] ss:$8 sps:$4 sm:$0xff]  }
 0x103   :  { %2984 = vmatmul.mubr.bf16.vlgmr.msra.gmra.mrb[0].mxu0 %v4031_v18  ;;  %2737 = vmatpush1.bf16.msra.mxu1 %v4028_v17  ;;  %v4124_v17 = vld [vmem:[%s5557_s1 + $0xaf0] ss:$8 sps:$4 sm:$0xff]   ;;  %v4132_v18 = vld [vmem:[%s5557_s1 + $0x504] ss:$8 sps:$4 sm:$0xff]  }
 0x104   :  { %2995 = vmatpush1.bf16.msra.mxu0 %v4034_v19  ;;  %2738 = vmatprep.subr.bf16.mxu1 %v4039_v20  ;;  %v4138_v19 = vld [vmem:[%s5557_s1 + $0xb04] ss:$8 sps:$4 sm:$0xff]  }
 0x105   :  { %2996 = vmatprep.subr.bf16.mxu0 %v4042_v21  ;;  %2768 = vmatprep.mubr.bf16.mxu1 %v4129_v22  ;;  %v4127_v20 = vld [vmem:[%s5558_s0 + $0x20] ss:$100 sps:$4 sm:$0xff]   ;;  %v4133_v21 = vld [vmem:[%s5558_s0 + $0x50] ss:$100 sps:$4 sm:$0xff]  }
 0x106   :  { %3026 = vmatprep.mubr.bf16.mxu0 %v4135_v23  ;;  %v4130_v22 = vld [vmem:[%s5557_s1 + $0x500] ss:$8 sps:$4 sm:$0xff]  }
 0x107   :  { %2739 = vmatpush1.bf16.msra.mxu1 %v4037_v24  ;;  %v4136_v23 = vld [vmem:[%s5557_s1 + $0xb00] ss:$8 sps:$4 sm:$0xff]   ;;  %v4141_v24 = vld [vmem:[%s5557_s1 + $0x514] ss:$8 sps:$4 sm:$0xff]  }
 0x108   :  { %2997 = vmatpush1.bf16.msra.mxu0 %v4040_v25  ;;  %2740 = vmatprep.subr.bf16.mxu1 %v4045_v26  ;;  %v4144_v25 = vld [vmem:[%s5557_s1 + $0xb14] ss:$8 sps:$4 sm:$0xff]   ;;  %v4231_v26 = vld [vmem:[%s5558_s0 + $0x2c] ss:$100 sps:$4 sm:$0xff]  }
 0x109   :  { %2998 = vmatprep.subr.bf16.mxu0 %v4048_v27  ;;  %v4234_v27 = vld [vmem:[%s5558_s0 + $0x5c] ss:$100 sps:$4 sm:$0xff]  }
 0x10b   :  { %2741 = vmatpush1.bf16.msra.mxu1 %v4043_v28  ;;  %v4139_v28 = vld [vmem:[%s5557_s1 + $0x510] ss:$8 sps:$4 sm:$0xff]  }
 0x10c   :  { %2999 = vmatpush1.bf16.msra.mxu0 %v4046_v29  ;;  %2742 = vmatprep.subr.bf16.mxu1 %v4051_v30  ;;  %v4142_v29 = vld [vmem:[%s5557_s1 + $0xb10] ss:$8 sps:$4 sm:$0xff]   ;;  %v4147_v30 = vld [vmem:[%s5557_s1 + $0x524] ss:$8 sps:$4 sm:$0xff]  }
 0x10d   :  { %3000 = vmatprep.subr.bf16.mxu0 %v4054_v31  ;;  %v4150_v31 = vld [vmem:[%s5557_s1 + $0xb24] ss:$8 sps:$4 sm:$0xff]  }
 0x10f   :  { %2743 = vmatpush1.bf16.msra.mxu1 %v4049_v32  ;;  %v4145_v32 = vld [vmem:[%s5557_s1 + $0x520] ss:$8 sps:$4 sm:$0xff]  }
 0x110   :  { %3001 = vmatpush1.bf16.msra.mxu0 %v4052_v33  ;;  %2744 = vmatprep.subr.bf16.mxu1 %v4057_v34  ;;  %v4148_v33 = vld [vmem:[%s5557_s1 + $0xb20] ss:$8 sps:$4 sm:$0xff]   ;;  %v4153_v34 = vld [vmem:[%s5557_s1 + $0x534] ss:$8 sps:$4 sm:$0xff]  }
 0x111   :  { %3002 = vmatprep.subr.bf16.mxu0 %v4060_v35  ;;  %v4156_v35 = vld [vmem:[%s5557_s1 + $0xb34] ss:$8 sps:$4 sm:$0xff]  }
 0x113   :  { %2745 = vmatpush1.bf16.msra.mxu1 %v4055_v36  ;;  %v4151_v36 = vld [vmem:[%s5557_s1 + $0x530] ss:$8 sps:$4 sm:$0xff]  }
 0x114   :  { %3003 = vmatpush1.bf16.msra.mxu0 %v4058_v37  ;;  %2746 = vmatprep.subr.bf16.mxu1 %v4063_v38  ;;  %v4154_v37 = vld [vmem:[%s5557_s1 + $0xb30] ss:$8 sps:$4 sm:$0xff]   ;;  %v4159_v38 = vld [vmem:[%s5557_s1 + $0x544] ss:$8 sps:$4 sm:$0xff]  }
 0x115   :  { %3004 = vmatprep.subr.bf16.mxu0 %v4066_v39  ;;  %v4162_v39 = vld [vmem:[%s5557_s1 + $0xb44] ss:$8 sps:$4 sm:$0xff]  }
 0x117   :  { %2747 = vmatpush1.bf16.msra.mxu1 %v4061_v40  ;;  %v4157_v40 = vld [vmem:[%s5557_s1 + $0x540] ss:$8 sps:$4 sm:$0xff]  }
 0x118   :  { %3005 = vmatpush1.bf16.msra.mxu0 %v4064_v41  ;;  %2748 = vmatprep.subr.bf16.mxu1 %v4069_v42  ;;  %v4160_v41 = vld [vmem:[%s5557_s1 + $0xb40] ss:$8 sps:$4 sm:$0xff]   ;;  %v4165_v42 = vld [vmem:[%s5557_s1 + $0x554] ss:$8 sps:$4 sm:$0xff]  }
 0x119   :  { %3006 = vmatprep.subr.bf16.mxu0 %v4072_v43  ;;  %v4168_v43 = vld [vmem:[%s5557_s1 + $0xb54] ss:$8 sps:$4 sm:$0xff]  }
 0x11b   :  { %2749 = vmatpush1.bf16.msra.mxu1 %v4067_v44  ;;  %v4163_v44 = vld [vmem:[%s5557_s1 + $0x550] ss:$8 sps:$4 sm:$0xff]  }
 0x11c   :  { %3007 = vmatpush1.bf16.msra.mxu0 %v4070_v45  ;;  %2750 = vmatprep.subr.bf16.mxu1 %v4075_v46  ;;  %v4166_v45 = vld [vmem:[%s5557_s1 + $0xb50] ss:$8 sps:$4 sm:$0xff]   ;;  %v4171_v46 = vld [vmem:[%s5557_s1 + $0x564] ss:$8 sps:$4 sm:$0xff]  }
 0x11d   :  { %3008 = vmatprep.subr.bf16.mxu0 %v4078_v47  ;;  %v4174_v47 = vld [vmem:[%s5557_s1 + $0xb64] ss:$8 sps:$4 sm:$0xff]  }
 0x11f   :  { %2751 = vmatpush1.bf16.msra.mxu1 %v4073_v48  ;;  %v4169_v48 = vld [vmem:[%s5557_s1 + $0x560] ss:$8 sps:$4 sm:$0xff]  }
 0x120   :  { %3009 = vmatpush1.bf16.msra.mxu0 %v4076_v49  ;;  %2752 = vmatprep.subr.bf16.mxu1 %v4081_v50  ;;  %v4172_v49 = vld [vmem:[%s5557_s1 + $0xb60] ss:$8 sps:$4 sm:$0xff]   ;;  %v4177_v50 = vld [vmem:[%s5557_s1 + $0x574] ss:$8 sps:$4 sm:$0xff]  }
 0x121   :  { %3010 = vmatprep.subr.bf16.mxu0 %v4084_v51  ;;  %v4180_v51 = vld [vmem:[%s5557_s1 + $0xb74] ss:$8 sps:$4 sm:$0xff]  }
 0x123   :  { %2753 = vmatpush1.bf16.msra.mxu1 %v4079_v52  ;;  %v4175_v52 = vld [vmem:[%s5557_s1 + $0x570] ss:$8 sps:$4 sm:$0xff]  }
 0x124   :  { %3011 = vmatpush1.bf16.msra.mxu0 %v4082_v53  ;;  %2754 = vmatprep.subr.bf16.mxu1 %v4087_v54  ;;  %v4178_v53 = vld [vmem:[%s5557_s1 + $0xb70] ss:$8 sps:$4 sm:$0xff]   ;;  %v4183_v54 = vld [vmem:[%s5557_s1 + $0x584] ss:$8 sps:$4 sm:$0xff]  }
 0x125   :  { %3012 = vmatprep.subr.bf16.mxu0 %v4090_v55  ;;  %v4186_v55 = vld [vmem:[%s5557_s1 + $0xb84] ss:$8 sps:$4 sm:$0xff]  }
 0x127   :  { %2755 = vmatpush1.bf16.msra.mxu1 %v4085_v56  ;;  %v4181_v56 = vld [vmem:[%s5557_s1 + $0x580] ss:$8 sps:$4 sm:$0xff]  }
 0x128   :  { %3013 = vmatpush1.bf16.msra.mxu0 %v4088_v57  ;;  %2756 = vmatprep.subr.bf16.mxu1 %v4093_v58  ;;  %v4184_v57 = vld [vmem:[%s5557_s1 + $0xb80] ss:$8 sps:$4 sm:$0xff]   ;;  %v4189_v58 = vld [vmem:[%s5557_s1 + $0x594] ss:$8 sps:$4 sm:$0xff]  }
 0x129   :  { %3014 = vmatprep.subr.bf16.mxu0 %v4096_v59  ;;  %v4192_v59 = vld [vmem:[%s5557_s1 + $0xb94] ss:$8 sps:$4 sm:$0xff]  }
 0x12b   :  { %2757 = vmatpush1.bf16.msra.mxu1 %v4091_v60  ;;  %v4187_v60 = vld [vmem:[%s5557_s1 + $0x590] ss:$8 sps:$4 sm:$0xff]  }
 0x12c   :  { %3015 = vmatpush1.bf16.msra.mxu0 %v4094_v61  ;;  %2758 = vmatprep.subr.bf16.mxu1 %v4099_v62  ;;  %v4190_v61 = vld [vmem:[%s5557_s1 + $0xb90] ss:$8 sps:$4 sm:$0xff]   ;;  %v4195_v62 = vld [vmem:[%s5557_s1 + $0x5a4] ss:$8 sps:$4 sm:$0xff]  }
 0x12d   :  { %3016 = vmatprep.subr.bf16.mxu0 %v4102_v63  ;;  %v4198_v63 = vld [vmem:[%s5557_s1 + $0xba4] ss:$8 sps:$4 sm:$0xff]  }
 0x12f   :  { %2759 = vmatpush1.bf16.msra.mxu1 %v4097_v0  ;;  %v4193_v0 = vld [vmem:[%s5557_s1 + $0x5a0] ss:$8 sps:$4 sm:$0xff]  }
 0x130   :  { %3017 = vmatpush1.bf16.msra.mxu0 %v4100_v1  ;;  %2760 = vmatprep.subr.bf16.mxu1 %v4105_v2  ;;  %v4196_v1 = vld [vmem:[%s5557_s1 + $0xba0] ss:$8 sps:$4 sm:$0xff]   ;;  %v4201_v2 = vld [vmem:[%s5557_s1 + $0x5b4] ss:$8 sps:$4 sm:$0xff]  }
 0x131   :  { %3018 = vmatprep.subr.bf16.mxu0 %v4108_v3  ;;  %v4204_v3 = vld [vmem:[%s5557_s1 + $0xbb4] ss:$8 sps:$4 sm:$0xff]  }
 0x133   :  { %2761 = vmatpush1.bf16.msra.mxu1 %v4103_v4  ;;  %v4199_v4 = vld [vmem:[%s5557_s1 + $0x5b0] ss:$8 sps:$4 sm:$0xff]  }
 0x134   :  { %3019 = vmatpush1.bf16.msra.mxu0 %v4106_v5  ;;  %2762 = vmatprep.subr.bf16.mxu1 %v4111_v6  ;;  %v4202_v5 = vld [vmem:[%s5557_s1 + $0xbb0] ss:$8 sps:$4 sm:$0xff]   ;;  %v4207_v6 = vld [vmem:[%s5557_s1 + $0x5c4] ss:$8 sps:$4 sm:$0xff]  }
 0x135   :  { %3020 = vmatprep.subr.bf16.mxu0 %v4114_v7  ;;  %v4210_v7 = vld [vmem:[%s5557_s1 + $0xbc4] ss:$8 sps:$4 sm:$0xff]  }
 0x137   :  { %2763 = vmatpush1.bf16.msra.mxu1 %v4109_v8  ;;  %v4205_v8 = vld [vmem:[%s5557_s1 + $0x5c0] ss:$8 sps:$4 sm:$0xff]  }
 0x138   :  { %3021 = vmatpush1.bf16.msra.mxu0 %v4112_v9  ;;  %2764 = vmatprep.subr.bf16.mxu1 %v4117_v10  ;;  %v4208_v9 = vld [vmem:[%s5557_s1 + $0xbc0] ss:$8 sps:$4 sm:$0xff]   ;;  %v4213_v10 = vld [vmem:[%s5557_s1 + $0x5d4] ss:$8 sps:$4 sm:$0xff]  }
 0x139   :  { %3022 = vmatprep.subr.bf16.mxu0 %v4120_v11  ;;  %v4216_v11 = vld [vmem:[%s5557_s1 + $0xbd4] ss:$8 sps:$4 sm:$0xff]  }
 0x13b   :  { %2765 = vmatpush1.bf16.msra.mxu1 %v4115_v12  ;;  %v4211_v12 = vld [vmem:[%s5557_s1 + $0x5d0] ss:$8 sps:$4 sm:$0xff]  }
 0x13c   :  { %3023 = vmatpush1.bf16.msra.mxu0 %v4118_v13  ;;  %2766 = vmatprep.subr.bf16.mxu1 %v4123_v14  ;;  %v4214_v13 = vld [vmem:[%s5557_s1 + $0xbd0] ss:$8 sps:$4 sm:$0xff]   ;;  %v4219_v14 = vld [vmem:[%s5557_s1 + $0x5e4] ss:$8 sps:$4 sm:$0xff]  }
 0x13d   :  { %3024 = vmatprep.subr.bf16.mxu0 %v4126_v15  ;;  %v4222_v15 = vld [vmem:[%s5557_s1 + $0xbe4] ss:$8 sps:$4 sm:$0xff]  }
 0x13f   :  { %2767 = vmatpush1.bf16.msra.mxu1 %v4121_v16  ;;  %v4217_v16 = vld [vmem:[%s5557_s1 + $0x5e0] ss:$8 sps:$4 sm:$0xff]  }
 0x140   :  { %3025 = vmatpush1.bf16.msra.mxu0 %v4124_v17  ;;  %2779 = vmatprep.subr.bf16.mxu1 %v4132_v18  ;;  %v4220_v17 = vld [vmem:[%s5557_s1 + $0xbe0] ss:$8 sps:$4 sm:$0xff]   ;;  %v4225_v18 = vld [vmem:[%s5557_s1 + $0x5f4] ss:$8 sps:$4 sm:$0xff]  }
 0x141   :  { %3037 = vmatprep.subr.bf16.mxu0 %v4138_v19  ;;  %v4228_v19 = vld [vmem:[%s5557_s1 + $0xbf4] ss:$8 sps:$4 sm:$0xff]  }
 0x142   :  { %2769 = vmatmul.mubr.bf16.vlgmr.msra.gmra.mrb[0].mxu1 %v4127_v20  ;;  %v4223_v20 = vld [vmem:[%s5557_s1 + $0x5f0] ss:$8 sps:$4 sm:$0xff]  }
 0x143   :  { %3027 = vmatmul.mubr.bf16.vlgmr.msra.gmra.mrb[0].mxu0 %v4133_v21  ;;  %2780 = vmatpush1.bf16.msra.mxu1 %v4130_v22  ;;  %v4226_v21 = vld [vmem:[%s5557_s1 + $0xbf0] ss:$8 sps:$4 sm:$0xff]   ;;  %v4237_v22 = vld [vmem:[%s5557_s1 + $0xc04] ss:$8 sps:$4 sm:$0xff]  }
 0x144   :  { %3038 = vmatpush1.bf16.msra.mxu0 %v4136_v23  ;;  %2781 = vmatprep.subr.bf16.mxu1 %v4141_v24  ;;  %v4229_v23 = vld [vmem:[%s5558_s0 + $0x28] ss:$100 sps:$4 sm:$0xff]   ;;  %v4232_v24 = vld [vmem:[%s5558_s0 + $0x58] ss:$100 sps:$4 sm:$0xff]  }
 0x145   :  { %3039 = vmatprep.subr.bf16.mxu0 %v4144_v25  ;;  %2811 = vmatprep.mubr.bf16.mxu1 %v4231_v26  ;;  %v4235_v25 = vld [vmem:[%s5557_s1 + $0xc00] ss:$8 sps:$4 sm:$0xff]   ;;  %v4240_v26 = vld [vmem:[%s5557_s1 + $0xc14] ss:$8 sps:$4 sm:$0xff]  }
 0x146   :  { %3069 = vmatprep.mubr.bf16.mxu0 %v4234_v27  ;;  %v4238_v27 = vld [vmem:[%s5557_s1 + $0xc10] ss:$8 sps:$4 sm:$0xff]  }
 0x147   :  { %2782 = vmatpush1.bf16.msra.mxu1 %v4139_v28  ;;  %v4260_v28 = vmov 0  }
 0x148   :  { %3040 = vmatpush1.bf16.msra.mxu0 %v4142_v29  ;;  %2783 = vmatprep.subr.bf16.mxu1 %v4147_v30  ;;  %v4243_v29 = vld [vmem:[%s5557_s1 + $0xc24] ss:$8 sps:$4 sm:$0xff]   ;;  %v4241_v30 = vld [vmem:[%s5557_s1 + $0xc20] ss:$8 sps:$4 sm:$0xff]  }
 0x149   :  { %3041 = vmatprep.subr.bf16.mxu0 %v4150_v31  ;;  %v4246_v31 = vld [vmem:[%s5557_s1 + $0xc34] ss:$8 sps:$4 sm:$0xff]  }
 0x14b   :  { %2784 = vmatpush1.bf16.msra.mxu1 %v4145_v32  ;;  %v4244_v32 = vld [vmem:[%s5557_s1 + $0xc30] ss:$8 sps:$4 sm:$0xff]  }
 0x14c   :  { %3042 = vmatpush1.bf16.msra.mxu0 %v4148_v33  ;;  %2785 = vmatprep.subr.bf16.mxu1 %v4153_v34  ;;  %v4249_v33 = vld [vmem:[%s5557_s1 + $0xc44] ss:$8 sps:$4 sm:$0xff]   ;;  %v4247_v34 = vld [vmem:[%s5557_s1 + $0xc40] ss:$8 sps:$4 sm:$0xff]  }
 0x14d   :  { %3043 = vmatprep.subr.bf16.mxu0 %v4156_v35  ;;  %v4252_v35 = vld [vmem:[%s5557_s1 + $0xc54] ss:$8 sps:$4 sm:$0xff]  }
 0x14f   :  { %2786 = vmatpush1.bf16.msra.mxu1 %v4151_v36  ;;  %v4250_v36 = vld [vmem:[%s5557_s1 + $0xc50] ss:$8 sps:$4 sm:$0xff]  }
 0x150   :  { %3044 = vmatpush1.bf16.msra.mxu0 %v4154_v37  ;;  %2787 = vmatprep.subr.bf16.mxu1 %v4159_v38  ;;  %v4255_v37 = vld [vmem:[%s5557_s1 + $0xc64] ss:$8 sps:$4 sm:$0xff]   ;;  %v4253_v38 = vld [vmem:[%s5557_s1 + $0xc60] ss:$8 sps:$4 sm:$0xff]  }
 0x151   :  { %3045 = vmatprep.subr.bf16.mxu0 %v4162_v39  ;;  %v4258_v39 = vld [vmem:[%s5557_s1 + $0xc74] ss:$8 sps:$4 sm:$0xff]  }
 0x153   :  { %2788 = vmatpush1.bf16.msra.mxu1 %v4157_v40  ;;  %v4256_v40 = vld [vmem:[%s5557_s1 + $0xc70] ss:$8 sps:$4 sm:$0xff]  }
 0x154   :  { %3046 = vmatpush1.bf16.msra.mxu0 %v4160_v41  ;;  %2789 = vmatprep.subr.bf16.mxu1 %v4165_v42  ;;  %v4259_v41 = vld [vmem:[%s5558_s0 + $0x60] ss:$100 sps:$4 sm:$0xff]  }
 0x155   :  { %3047 = vmatprep.subr.bf16.mxu0 %v4168_v43 }
 0x157   :  { %2790 = vmatpush1.bf16.msra.mxu1 %v4163_v44 }
 0x158   :  { %3048 = vmatpush1.bf16.msra.mxu0 %v4166_v45  ;;  %2791 = vmatprep.subr.bf16.mxu1 %v4171_v46 }
 0x159   :  { %3049 = vmatprep.subr.bf16.mxu0 %v4174_v47 }
 0x15b   :  { %2792 = vmatpush1.bf16.msra.mxu1 %v4169_v48 }
 0x15c   :  { %3050 = vmatpush1.bf16.msra.mxu0 %v4172_v49  ;;  %2793 = vmatprep.subr.bf16.mxu1 %v4177_v50 }
 0x15d   :  { %3051 = vmatprep.subr.bf16.mxu0 %v4180_v51 }
 0x15f   :  { %2794 = vmatpush1.bf16.msra.mxu1 %v4175_v52 }
 0x160   :  { %3052 = vmatpush1.bf16.msra.mxu0 %v4178_v53  ;;  %2795 = vmatprep.subr.bf16.mxu1 %v4183_v54 }
 0x161   :  { %3053 = vmatprep.subr.bf16.mxu0 %v4186_v55 }
 0x163   :  { %2796 = vmatpush1.bf16.msra.mxu1 %v4181_v56 }
 0x164   :  { %3054 = vmatpush1.bf16.msra.mxu0 %v4184_v57  ;;  %2797 = vmatprep.subr.bf16.mxu1 %v4189_v58 }
 0x165   :  { %3055 = vmatprep.subr.bf16.mxu0 %v4192_v59 }
 0x167   :  { %2798 = vmatpush1.bf16.msra.mxu1 %v4187_v60 }
 0x168   :  { %3056 = vmatpush1.bf16.msra.mxu0 %v4190_v61  ;;  %2799 = vmatprep.subr.bf16.mxu1 %v4195_v62 }
 0x169   :  { %3057 = vmatprep.subr.bf16.mxu0 %v4198_v63 }
 0x16b   :  { %2800 = vmatpush1.bf16.msra.mxu1 %v4193_v0 }
 0x16c   :  { %3058 = vmatpush1.bf16.msra.mxu0 %v4196_v1  ;;  %2801 = vmatprep.subr.bf16.mxu1 %v4201_v2 }
 0x16d   :  { %3059 = vmatprep.subr.bf16.mxu0 %v4204_v3 }
 0x16f   :  { %2802 = vmatpush1.bf16.msra.mxu1 %v4199_v4 }
 0x170   :  { %3060 = vmatpush1.bf16.msra.mxu0 %v4202_v5  ;;  %2803 = vmatprep.subr.bf16.mxu1 %v4207_v6 }
 0x171   :  { %3061 = vmatprep.subr.bf16.mxu0 %v4210_v7 }
 0x173   :  { %2804 = vmatpush1.bf16.msra.mxu1 %v4205_v8 }
 0x174   :  { %3062 = vmatpush1.bf16.msra.mxu0 %v4208_v9  ;;  %2805 = vmatprep.subr.bf16.mxu1 %v4213_v10 }
 0x175   :  { %3063 = vmatprep.subr.bf16.mxu0 %v4216_v11 }
 0x177   :  { %2806 = vmatpush1.bf16.msra.mxu1 %v4211_v12 }
 0x178   :  { %3064 = vmatpush1.bf16.msra.mxu0 %v4214_v13  ;;  %2807 = vmatprep.subr.bf16.mxu1 %v4219_v14 }
 0x179   :  { %3065 = vmatprep.subr.bf16.mxu0 %v4222_v15 }
 0x17b   :  { %2808 = vmatpush1.bf16.msra.mxu1 %v4217_v16 }
 0x17c   :  { %3066 = vmatpush1.bf16.msra.mxu0 %v4220_v17  ;;  %2809 = vmatprep.subr.bf16.mxu1 %v4225_v18 }
 0x17d   :  { %3067 = vmatprep.subr.bf16.mxu0 %v4228_v19 }
 0x17f   :  { %2810 = vmatpush1.bf16.msra.mxu1 %v4223_v20 }
 0x180   :  { %3068 = vmatpush1.bf16.msra.mxu0 %v4226_v21 }
 0x181   :  { %3080 = vmatprep.subr.bf16.mxu0 %v4237_v22 }
 0x182   :  { %2812 = vmatmul.mubr.bf16.vlgmr.msra.gmra.mrb[0].mxu1 %v4229_v23 }
 0x183   :  { %3070 = vmatmul.mubr.bf16.vlgmr.msra.gmra.mrb[0].mxu0 %v4232_v24 }
 0x184   :  { %3081 = vmatpush1.bf16.msra.mxu0 %v4235_v25  ;;  %3112 = vmatprep.mubr.bf16.mxu0 %v4260_v28 }
 0x185   :  { %3082 = vmatprep.subr.bf16.mxu0 %v4240_v26 }
 0x188   :  { %3083 = vmatpush1.bf16.msra.mxu0 %v4238_v27 }
 0x189   :  { %3084 = vmatprep.subr.bf16.mxu0 %v4243_v29 }
 0x18c   :  { %3085 = vmatpush1.bf16.msra.mxu0 %v4241_v30 }
 0x18d   :  { %3086 = vmatprep.subr.bf16.mxu0 %v4246_v31 }
 0x190   :  { %3087 = vmatpush1.bf16.msra.mxu0 %v4244_v32 }
 0x191   :  { %3088 = vmatprep.subr.bf16.mxu0 %v4249_v33 }
 0x194   :  { %3089 = vmatpush1.bf16.msra.mxu0 %v4247_v34 }
 0x195   :  { %3090 = vmatprep.subr.bf16.mxu0 %v4252_v35 }
 0x198   :  { %3091 = vmatpush1.bf16.msra.mxu0 %v4250_v36 }
 0x199   :  { %3092 = vmatprep.subr.bf16.mxu0 %v4255_v37 }
 0x19c   :  { %3093 = vmatpush1.bf16.msra.mxu0 %v4253_v38 }
 0x19d   :  { %3094 = vmatprep.subr.bf16.mxu0 %v4258_v39 }
 0x1a0   :  { %3095 = vmatpush1.bf16.msra.mxu0 %v4256_v40 }
 0x1a3   :  { %3113 = vmatmul.mubr.bf16.vlgmr.msra.gmra.mrb[0].mxu0 %v4259_v41 }
 0x255   :  { %v2813_v42 = vpop.f32.mrb[0].mxu1 }
 0x256   :  { %v2815_v43 = vpop.f32.mrb[1].mxu1 }
 0x257   :  { %v2817_v44 = vpop.f32.mrb[2].mxu1 }
 0x258   :  { %v2819_v45 = vpop.f32.mrb[3].mxu1 }
 0x276   :  { %v3114_v46 = vpop.f32.mrb[0].mxu0 }
 0x277   :  { %v3574_v47 = vadd.f32 %v3114_v46, %v2813_v42  ;;  %v3116_v48 = vpop.f32.mrb[1].mxu0 }
 0x278   :  { %v3575_v49 = vadd.f32 %v3116_v48, %v2815_v43  ;;  %v3118_v50 = vpop.f32.mrb[2].mxu0 }
 0x279   :  { %v3123_v51 = vmax.f32 %v3574_v47, 0.0  ;;  %v3576_v52 = vadd.f32 %v3118_v50, %v2817_v44  ;;  %v3120_v53 = vpop.f32.mrb[3].mxu0 }
 0x27a   :  { %v3124_v54 = vmax.f32 %v3575_v49, 0.0  ;;  %v3577_v55 = vadd.f32 %v3120_v53, %v2819_v45 }
 0x27b   :  { %v3125_v56 = vmax.f32 %v3576_v52, 0.0 }
 0x27c   :  { %v3572_v57 = vpack.c.bf16 %v3124_v54, %v3123_v51  ;;  %v3126_v58 = vmax.f32 %v3577_v55, 0.0 }
 0x27e   :  { %3139 = vst [vmem:[%s5559_s2] sm:$0xff] %v3572_v57  ;;  %v3573_v59 = vpack.c.bf16 %v3126_v58, %v3125_v56 }
 0x280   :  { %3140 = vst [vmem:[%s5559_s2 + $0x8] sm:$0xff] %v3573_v59 }

// kernel: light_flow_net.18
= control target key start
LH: loop header
LB: loop body
LE: loop exit
PB: predicated region body
PF: predicated region fallthrough
CT: control target
= control target key end

     0   :  { %s3996_s1 = inlined_call_operand.vmem [shape: bf16[2304,256], index: 1, kind: input, shape index: {}]   ;;  %s3997_s0 = inlined_call_operand.vmem [shape: bf16[16,2304], index: 0, kind: input, shape index: {}]   ;;  %s3998_s2 = inlined_call_operand.vmem [shape: bf16[16,256], index: 2, kind: output, shape index: {}]  }
   0x1   :  { %v2598_v0 = vld [vmem:[%s3996_s1 + $0x4] ss:$8 sps:$4 sm:$0xff]   ;;  %v2602_v2 = vld [vmem:[%s3996_s1] ss:$8 sps:$4 sm:$0xff]   ;;  %v2604_v4 = vld [vmem:[%s3996_s1 + $0x14] ss:$8 sps:$4 sm:$0xff]  }
   0x2   :  { %v2600_v1 = vld [vmem:[%s3996_s1 + $0x404] ss:$8 sps:$4 sm:$0xff]   ;;  %1847 = vmatprep.subr.bf16.mxu1 %v2598_v0  ;;  %v2603_v3 = vld [vmem:[%s3996_s1 + $0x400] ss:$8 sps:$4 sm:$0xff]   ;;  %v2606_v5 = vld [vmem:[%s3996_s1 + $0x414] ss:$8 sps:$4 sm:$0xff]  }
   0x3   :  { %2019 = vmatprep.subr.bf16.mxu0 %v2600_v1  ;;  %1848 = vmatpush1.bf16.msra.mxu1 %v2602_v2  ;;  %v2608_v6 = vld [vmem:[%s3996_s1 + $0x10] ss:$8 sps:$4 sm:$0xff]   ;;  %v2610_v8 = vld [vmem:[%s3996_s1 + $0x24] ss:$8 sps:$4 sm:$0xff]   ;;  %v2614_v10 = vld [vmem:[%s3996_s1 + $0x20] ss:$8 sps:$4 sm:$0xff]  }
   0x4   :  { %2020 = vmatpush1.bf16.msra.mxu0 %v2603_v3  ;;  %1849 = vmatprep.subr.bf16.mxu1 %v2604_v4  ;;  %v2609_v7 = vld [vmem:[%s3996_s1 + $0x410] ss:$8 sps:$4 sm:$0xff]   ;;  %v2612_v9 = vld [vmem:[%s3996_s1 + $0x424] ss:$8 sps:$4 sm:$0xff]   ;;  %v2615_v11 = vld [vmem:[%s3996_s1 + $0x420] ss:$8 sps:$4 sm:$0xff]  }
   0x5   :  { %2021 = vmatprep.subr.bf16.mxu0 %v2606_v5  ;;  %v2616_v12 = vld [vmem:[%s3996_s1 + $0x34] ss:$8 sps:$4 sm:$0xff]   ;;  %v2620_v14 = vld [vmem:[%s3996_s1 + $0x30] ss:$8 sps:$4 sm:$0xff]   ;;  %v2622_v16 = vld [vmem:[%s3996_s1 + $0x44] ss:$8 sps:$4 sm:$0xff]  }
   0x6   :  { %v2618_v13 = vld [vmem:[%s3996_s1 + $0x434] ss:$8 sps:$4 sm:$0xff]   ;;  %v2621_v15 = vld [vmem:[%s3996_s1 + $0x430] ss:$8 sps:$4 sm:$0xff]   ;;  %v2624_v17 = vld [vmem:[%s3996_s1 + $0x444] ss:$8 sps:$4 sm:$0xff]  }
   0x7   :  { %1850 = vmatpush1.bf16.msra.mxu1 %v2608_v6  ;;  %v2626_v18 = vld [vmem:[%s3996_s1 + $0x40] ss:$8 sps:$4 sm:$0xff]   ;;  %v2628_v20 = vld [vmem:[%s3996_s1 + $0x54] ss:$8 sps:$4 sm:$0xff]   ;;  %v2632_v22 = vld [vmem:[%s3996_s1 + $0x50] ss:$8 sps:$4 sm:$0xff]  }
   0x8   :  { %2022 = vmatpush1.bf16.msra.mxu0 %v2609_v7  ;;  %1851 = vmatprep.subr.bf16.mxu1 %v2610_v8  ;;  %v2627_v19 = vld [vmem:[%s3996_s1 + $0x440] ss:$8 sps:$4 sm:$0xff]   ;;  %v2630_v21 = vld [vmem:[%s3996_s1 + $0x454] ss:$8 sps:$4 sm:$0xff]   ;;  %v2633_v23 = vld [vmem:[%s3996_s1 + $0x450] ss:$8 sps:$4 sm:$0xff]  }
   0x9   :  { %2023 = vmatprep.subr.bf16.mxu0 %v2612_v9  ;;  %v2634_v24 = vld [vmem:[%s3996_s1 + $0x64] ss:$8 sps:$4 sm:$0xff]   ;;  %v2638_v26 = vld [vmem:[%s3996_s1 + $0x60] ss:$8 sps:$4 sm:$0xff]   ;;  %v2640_v28 = vld [vmem:[%s3996_s1 + $0x74] ss:$8 sps:$4 sm:$0xff]  }
   0xa   :  { %v2636_v25 = vld [vmem:[%s3996_s1 + $0x464] ss:$8 sps:$4 sm:$0xff]   ;;  %v2639_v27 = vld [vmem:[%s3996_s1 + $0x460] ss:$8 sps:$4 sm:$0xff]   ;;  %v2642_v29 = vld [vmem:[%s3996_s1 + $0x474] ss:$8 sps:$4 sm:$0xff]  }
   0xb   :  { %1852 = vmatpush1.bf16.msra.mxu1 %v2614_v10  ;;  %v2644_v30 = vld [vmem:[%s3996_s1 + $0x70] ss:$8 sps:$4 sm:$0xff]   ;;  %v2646_v32 = vld [vmem:[%s3996_s1 + $0x84] ss:$8 sps:$4 sm:$0xff]   ;;  %v2650_v34 = vld [vmem:[%s3996_s1 + $0x80] ss:$8 sps:$4 sm:$0xff]  }
   0xc   :  { %2024 = vmatpush1.bf16.msra.mxu0 %v2615_v11  ;;  %1853 = vmatprep.subr.bf16.mxu1 %v2616_v12  ;;  %v2645_v31 = vld [vmem:[%s3996_s1 + $0x470] ss:$8 sps:$4 sm:$0xff]   ;;  %v2648_v33 = vld [vmem:[%s3996_s1 + $0x484] ss:$8 sps:$4 sm:$0xff]   ;;  %v2651_v35 = vld [vmem:[%s3996_s1 + $0x480] ss:$8 sps:$4 sm:$0xff]  }
   0xd   :  { %2025 = vmatprep.subr.bf16.mxu0 %v2618_v13  ;;  %v2652_v36 = vld [vmem:[%s3996_s1 + $0x94] ss:$8 sps:$4 sm:$0xff]   ;;  %v2656_v38 = vld [vmem:[%s3996_s1 + $0x90] ss:$8 sps:$4 sm:$0xff]   ;;  %v2658_v40 = vld [vmem:[%s3996_s1 + $0xa4] ss:$8 sps:$4 sm:$0xff]  }
   0xe   :  { %v2654_v37 = vld [vmem:[%s3996_s1 + $0x494] ss:$8 sps:$4 sm:$0xff]   ;;  %v2657_v39 = vld [vmem:[%s3996_s1 + $0x490] ss:$8 sps:$4 sm:$0xff]   ;;  %v2660_v41 = vld [vmem:[%s3996_s1 + $0x4a4] ss:$8 sps:$4 sm:$0xff]  }
   0xf   :  { %1854 = vmatpush1.bf16.msra.mxu1 %v2620_v14  ;;  %v2662_v42 = vld [vmem:[%s3996_s1 + $0xa0] ss:$8 sps:$4 sm:$0xff]   ;;  %v2664_v44 = vld [vmem:[%s3996_s1 + $0xb4] ss:$8 sps:$4 sm:$0xff]   ;;  %v2668_v46 = vld [vmem:[%s3996_s1 + $0xb0] ss:$8 sps:$4 sm:$0xff]  }
  0x10   :  { %2026 = vmatpush1.bf16.msra.mxu0 %v2621_v15  ;;  %1855 = vmatprep.subr.bf16.mxu1 %v2622_v16  ;;  %v2663_v43 = vld [vmem:[%s3996_s1 + $0x4a0] ss:$8 sps:$4 sm:$0xff]   ;;  %v2666_v45 = vld [vmem:[%s3996_s1 + $0x4b4] ss:$8 sps:$4 sm:$0xff]   ;;  %v2669_v47 = vld [vmem:[%s3996_s1 + $0x4b0] ss:$8 sps:$4 sm:$0xff]  }
  0x11   :  { %2027 = vmatprep.subr.bf16.mxu0 %v2624_v17  ;;  %v2696_v48 = vld [vmem:[%s3997_s0 + $0x4] ss:$72 sps:$4 sm:$0xff]   ;;  %v2674_v52 = vld [vmem:[%s3996_s1 + $0xc0] ss:$8 sps:$4 sm:$0xff]   ;;  %v2676_v54 = vld [vmem:[%s3996_s1 + $0xd4] ss:$8 sps:$4 sm:$0xff]  }
  0x12   :  { %v2670_v49 = vld [vmem:[%s3996_s1 + $0xc4] ss:$8 sps:$4 sm:$0xff]   ;;  %1879 = vmatprep.mubr.bf16.mxu1 %v2696_v48  ;;  %v2675_v53 = vld [vmem:[%s3996_s1 + $0x4c0] ss:$8 sps:$4 sm:$0xff]   ;;  %v2678_v55 = vld [vmem:[%s3996_s1 + $0x4d4] ss:$8 sps:$4 sm:$0xff]  }
  0x13   :  { %1856 = vmatpush1.bf16.msra.mxu1 %v2626_v18  ;;  %v2672_v50 = vld [vmem:[%s3996_s1 + $0x4c4] ss:$8 sps:$4 sm:$0xff]   ;;  %v2680_v56 = vld [vmem:[%s3996_s1 + $0xd0] ss:$8 sps:$4 sm:$0xff]   ;;  %v2686_v60 = vld [vmem:[%s3996_s1 + $0xe0] ss:$8 sps:$4 sm:$0xff]  }
  0x14   :  { %2028 = vmatpush1.bf16.msra.mxu0 %v2627_v19  ;;  %1857 = vmatprep.subr.bf16.mxu1 %v2628_v20  ;;  %v2702_v51 = vld [vmem:[%s3997_s0 + $0x24] ss:$72 sps:$4 sm:$0xff]   ;;  %v2681_v57 = vld [vmem:[%s3996_s1 + $0x4d0] ss:$8 sps:$4 sm:$0xff]   ;;  %v2687_v61 = vld [vmem:[%s3996_s1 + $0x4e0] ss:$8 sps:$4 sm:$0xff]  }
  0x15   :  { %2029 = vmatprep.subr.bf16.mxu0 %v2630_v21  ;;  %2051 = vmatprep.mubr.bf16.mxu0 %v2702_v51  ;;  %v2682_v58 = vld [vmem:[%s3996_s1 + $0xe4] ss:$8 sps:$4 sm:$0xff]   ;;  %v2688_v62 = vld [vmem:[%s3996_s1 + $0xf4] ss:$8 sps:$4 sm:$0xff]   ;;  %v2692_v0 = vld [vmem:[%s3996_s1 + $0xf0] ss:$8 sps:$4 sm:$0xff]  }
  0x16   :  { %v2684_v59 = vld [vmem:[%s3996_s1 + $0x4e4] ss:$8 sps:$4 sm:$0xff]   ;;  %v2690_v63 = vld [vmem:[%s3996_s1 + $0x4f4] ss:$8 sps:$4 sm:$0xff]   ;;  %v2693_v1 = vld [vmem:[%s3996_s1 + $0x4f0] ss:$8 sps:$4 sm:$0xff]  }
  0x17   :  { %1858 = vmatpush1.bf16.msra.mxu1 %v2632_v22  ;;  %v2699_v2 = vld [vmem:[%s3996_s1 + $0x104] ss:$8 sps:$4 sm:$0xff]   ;;  %v2694_v4 = vld [vmem:[%s3997_s0] ss:$72 sps:$4 sm:$0xff]   ;;  %v2708_v8 = vld [vmem:[%s3996_s1 + $0x114] ss:$8 sps:$4 sm:$0xff]  }
  0x18   :  { %2030 = vmatpush1.bf16.msra.mxu0 %v2633_v23  ;;  %1859 = vmatprep.subr.bf16.mxu1 %v2634_v24  ;;  %v2705_v3 = vld [vmem:[%s3996_s1 + $0x504] ss:$8 sps:$4 sm:$0xff]   ;;  %v2697_v5 = vld [vmem:[%s3996_s1 + $0x100] ss:$8 sps:$4 sm:$0xff]   ;;  %v2711_v9 = vld [vmem:[%s3996_s1 + $0x514] ss:$8 sps:$4 sm:$0xff]  }
  0x19   :  { %2031 = vmatprep.subr.bf16.mxu0 %v2636_v25  ;;  %v2700_v6 = vld [vmem:[%s3997_s0 + $0x20] ss:$72 sps:$4 sm:$0xff]   ;;  %v2706_v10 = vld [vmem:[%s3996_s1 + $0x110] ss:$8 sps:$4 sm:$0xff]   ;;  %v2714_v12 = vld [vmem:[%s3996_s1 + $0x124] ss:$8 sps:$4 sm:$0xff]  }
  0x1a   :  { %v2703_v7 = vld [vmem:[%s3996_s1 + $0x500] ss:$8 sps:$4 sm:$0xff]   ;;  %v2709_v11 = vld [vmem:[%s3996_s1 + $0x510] ss:$8 sps:$4 sm:$0xff]   ;;  %v2717_v13 = vld [vmem:[%s3996_s1 + $0x524] ss:$8 sps:$4 sm:$0xff]  }
  0x1b   :  { %1860 = vmatpush1.bf16.msra.mxu1 %v2638_v26  ;;  %v2712_v14 = vld [vmem:[%s3996_s1 + $0x120] ss:$8 sps:$4 sm:$0xff]   ;;  %v2720_v16 = vld [vmem:[%s3996_s1 + $0x134] ss:$8 sps:$4 sm:$0xff]   ;;  %v2718_v18 = vld [vmem:[%s3996_s1 + $0x130] ss:$8 sps:$4 sm:$0xff]  }
  0x1c   :  { %2032 = vmatpush1.bf16.msra.mxu0 %v2639_v27  ;;  %1861 = vmatprep.subr.bf16.mxu1 %v2640_v28  ;;  %v2715_v15 = vld [vmem:[%s3996_s1 + $0x520] ss:$8 sps:$4 sm:$0xff]   ;;  %v2723_v17 = vld [vmem:[%s3996_s1 + $0x534] ss:$8 sps:$4 sm:$0xff]   ;;  %v2721_v19 = vld [vmem:[%s3996_s1 + $0x530] ss:$8 sps:$4 sm:$0xff]  }
  0x1d   :  { %2033 = vmatprep.subr.bf16.mxu0 %v2642_v29  ;;  %v2726_v20 = vld [vmem:[%s3996_s1 + $0x144] ss:$8 sps:$4 sm:$0xff]   ;;  %v2724_v22 = vld [vmem:[%s3996_s1 + $0x140] ss:$8 sps:$4 sm:$0xff]   ;;  %v2732_v24 = vld [vmem:[%s3996_s1 + $0x154] ss:$8 sps:$4 sm:$0xff]  }
  0x1e   :  { %v2729_v21 = vld [vmem:[%s3996_s1 + $0x544] ss:$8 sps:$4 sm:$0xff]   ;;  %v2727_v23 = vld [vmem:[%s3996_s1 + $0x540] ss:$8 sps:$4 sm:$0xff]   ;;  %v2735_v25 = vld [vmem:[%s3996_s1 + $0x554] ss:$8 sps:$4 sm:$0xff]  }
  0x1f   :  { %1862 = vmatpush1.bf16.msra.mxu1 %v2644_v30  ;;  %v2730_v26 = vld [vmem:[%s3996_s1 + $0x150] ss:$8 sps:$4 sm:$0xff]   ;;  %v2738_v28 = vld [vmem:[%s3996_s1 + $0x164] ss:$8 sps:$4 sm:$0xff]   ;;  %v2736_v30 = vld [vmem:[%s3996_s1 + $0x160] ss:$8 sps:$4 sm:$0xff]  }
  0x20   :  { %2034 = vmatpush1.bf16.msra.mxu0 %v2645_v31  ;;  %1863 = vmatprep.subr.bf16.mxu1 %v2646_v32  ;;  %v2733_v27 = vld [vmem:[%s3996_s1 + $0x550] ss:$8 sps:$4 sm:$0xff]   ;;  %v2741_v29 = vld [vmem:[%s3996_s1 + $0x564] ss:$8 sps:$4 sm:$0xff]   ;;  %v2739_v31 = vld [vmem:[%s3996_s1 + $0x560] ss:$8 sps:$4 sm:$0xff]  }
  0x21   :  { %2035 = vmatprep.subr.bf16.mxu0 %v2648_v33  ;;  %v2744_v32 = vld [vmem:[%s3996_s1 + $0x174] ss:$8 sps:$4 sm:$0xff]   ;;  %v2760_v48 = vld [vmem:[%s3996_s1 + $0x1a0] ss:$8 sps:$4 sm:$0xff]  }
  0x22   :  { %v2747_v33 = vld [vmem:[%s3996_s1 + $0x574] ss:$8 sps:$4 sm:$0xff]  }
  0x23   :  { %1864 = vmatpush1.bf16.msra.mxu1 %v2650_v34  ;;  %v2798_v34 = vld [vmem:[%s3997_s0 + $0xc] ss:$72 sps:$4 sm:$0xff]  }
  0x24   :  { %2036 = vmatpush1.bf16.msra.mxu0 %v2651_v35  ;;  %1865 = vmatprep.subr.bf16.mxu1 %v2652_v36  ;;  %v2742_v35 = vld [vmem:[%s3996_s1 + $0x170] ss:$8 sps:$4 sm:$0xff]   ;;  %v2771_v51 = vld [vmem:[%s3996_s1 + $0x5b4] ss:$8 sps:$4 sm:$0xff]  }
  0x25   :  { %2037 = vmatprep.subr.bf16.mxu0 %v2654_v37  ;;  %v2745_v36 = vld [vmem:[%s3996_s1 + $0x570] ss:$8 sps:$4 sm:$0xff]   ;;  %v2804_v37 = vld [vmem:[%s3997_s0 + $0x2c] ss:$72 sps:$4 sm:$0xff]  }
  0x27   :  { %1866 = vmatpush1.bf16.msra.mxu1 %v2656_v38  ;;  %v2750_v38 = vld [vmem:[%s3996_s1 + $0x184] ss:$8 sps:$4 sm:$0xff]  }
  0x28   :  { %2038 = vmatpush1.bf16.msra.mxu0 %v2657_v39  ;;  %1867 = vmatprep.subr.bf16.mxu1 %v2658_v40  ;;  %v2753_v39 = vld [vmem:[%s3996_s1 + $0x584] ss:$8 sps:$4 sm:$0xff]   ;;  %v2748_v40 = vld [vmem:[%s3996_s1 + $0x180] ss:$8 sps:$4 sm:$0xff]  }
  0x29   :  { %2039 = vmatprep.subr.bf16.mxu0 %v2660_v41  ;;  %v2751_v41 = vld [vmem:[%s3996_s1 + $0x580] ss:$8 sps:$4 sm:$0xff]  }
  0x2b   :  { %1868 = vmatpush1.bf16.msra.mxu1 %v2662_v42  ;;  %v2756_v42 = vld [vmem:[%s3996_s1 + $0x194] ss:$8 sps:$4 sm:$0xff]  }
  0x2c   :  { %2040 = vmatpush1.bf16.msra.mxu0 %v2663_v43  ;;  %1869 = vmatprep.subr.bf16.mxu1 %v2664_v44  ;;  %v2759_v43 = vld [vmem:[%s3996_s1 + $0x594] ss:$8 sps:$4 sm:$0xff]   ;;  %v2754_v44 = vld [vmem:[%s3996_s1 + $0x190] ss:$8 sps:$4 sm:$0xff]  }
  0x2d   :  { %2041 = vmatprep.subr.bf16.mxu0 %v2666_v45  ;;  %v2757_v45 = vld [vmem:[%s3996_s1 + $0x590] ss:$8 sps:$4 sm:$0xff]  }
  0x2f   :  { %1870 = vmatpush1.bf16.msra.mxu1 %v2668_v46  ;;  %v2762_v46 = vld [vmem:[%s3996_s1 + $0x1a4] ss:$8 sps:$4 sm:$0xff]  }
  0x30   :  { %2042 = vmatpush1.bf16.msra.mxu0 %v2669_v47  ;;  %1871 = vmatprep.subr.bf16.mxu1 %v2670_v49  ;;  %v2765_v47 = vld [vmem:[%s3996_s1 + $0x5a4] ss:$8 sps:$4 sm:$0xff]   ;;  %v2763_v49 = vld [vmem:[%s3996_s1 + $0x5a0] ss:$8 sps:$4 sm:$0xff]  }
  0x31   :  { %2043 = vmatprep.subr.bf16.mxu0 %v2672_v50  ;;  %v2768_v50 = vld [vmem:[%s3996_s1 + $0x1b4] ss:$8 sps:$4 sm:$0xff]  }
  0x33   :  { %1872 = vmatpush1.bf16.msra.mxu1 %v2674_v52  ;;  %v2766_v52 = vld [vmem:[%s3996_s1 + $0x1b0] ss:$8 sps:$4 sm:$0xff]  }
  0x34   :  { %2044 = vmatpush1.bf16.msra.mxu0 %v2675_v53  ;;  %1873 = vmatprep.subr.bf16.mxu1 %v2676_v54  ;;  %v2769_v53 = vld [vmem:[%s3996_s1 + $0x5b0] ss:$8 sps:$4 sm:$0xff]   ;;  %v2774_v54 = vld [vmem:[%s3996_s1 + $0x1c4] ss:$8 sps:$4 sm:$0xff]  }
  0x35   :  { %2045 = vmatprep.subr.bf16.mxu0 %v2678_v55  ;;  %v2777_v55 = vld [vmem:[%s3996_s1 + $0x5c4] ss:$8 sps:$4 sm:$0xff]  }
  0x37   :  { %1874 = vmatpush1.bf16.msra.mxu1 %v2680_v56  ;;  %v2772_v56 = vld [vmem:[%s3996_s1 + $0x1c0] ss:$8 sps:$4 sm:$0xff]  }
  0x38   :  { %2046 = vmatpush1.bf16.msra.mxu0 %v2681_v57  ;;  %1875 = vmatprep.subr.bf16.mxu1 %v2682_v58  ;;  %v2775_v57 = vld [vmem:[%s3996_s1 + $0x5c0] ss:$8 sps:$4 sm:$0xff]   ;;  %v2780_v58 = vld [vmem:[%s3996_s1 + $0x1d4] ss:$8 sps:$4 sm:$0xff]  }
  0x39   :  { %2047 = vmatprep.subr.bf16.mxu0 %v2684_v59  ;;  %v2783_v59 = vld [vmem:[%s3996_s1 + $0x5d4] ss:$8 sps:$4 sm:$0xff]  }
  0x3b   :  { %1876 = vmatpush1.bf16.msra.mxu1 %v2686_v60  ;;  %v2778_v60 = vld [vmem:[%s3996_s1 + $0x1d0] ss:$8 sps:$4 sm:$0xff]  }
  0x3c   :  { %2048 = vmatpush1.bf16.msra.mxu0 %v2687_v61  ;;  %1877 = vmatprep.subr.bf16.mxu1 %v2688_v62  ;;  %v2781_v61 = vld [vmem:[%s3996_s1 + $0x5d0] ss:$8 sps:$4 sm:$0xff]   ;;  %v2786_v62 = vld [vmem:[%s3996_s1 + $0x1e4] ss:$8 sps:$4 sm:$0xff]  }
  0x3d   :  { %2049 = vmatprep.subr.bf16.mxu0 %v2690_v63  ;;  %v2789_v63 = vld [vmem:[%s3996_s1 + $0x5e4] ss:$8 sps:$4 sm:$0xff]  }
  0x3f   :  { %1878 = vmatpush1.bf16.msra.mxu1 %v2692_v0  ;;  %v2784_v0 = vld [vmem:[%s3996_s1 + $0x1e0] ss:$8 sps:$4 sm:$0xff]  }
  0x40   :  { %2050 = vmatpush1.bf16.msra.mxu0 %v2693_v1  ;;  %1890 = vmatprep.subr.bf16.mxu1 %v2699_v2  ;;  %v2787_v1 = vld [vmem:[%s3996_s1 + $0x5e0] ss:$8 sps:$4 sm:$0xff]   ;;  %v2792_v2 = vld [vmem:[%s3996_s1 + $0x1f4] ss:$8 sps:$4 sm:$0xff]  }
  0x41   :  { %2062 = vmatprep.subr.bf16.mxu0 %v2705_v3  ;;  %v2795_v3 = vld [vmem:[%s3996_s1 + $0x5f4] ss:$8 sps:$4 sm:$0xff]  }
  0x42   :  { %1880 = vmatmul.mubr.bf16.vlgmr.msra.gmra.mrb[0].mxu1 %v2694_v4  ;;  %v2790_v4 = vld [vmem:[%s3996_s1 + $0x1f0] ss:$8 sps:$4 sm:$0xff]  }
  0x43   :  { %2052 = vmatmul.mubr.bf16.vlgmr.msra.gmra.mrb[0].mxu0 %v2700_v6  ;;  %1891 = vmatpush1.bf16.msra.mxu1 %v2697_v5  ;;  %v2793_v5 = vld [vmem:[%s3996_s1 + $0x5f0] ss:$8 sps:$4 sm:$0xff]   ;;  %v2801_v6 = vld [vmem:[%s3996_s1 + $0x204] ss:$8 sps:$4 sm:$0xff]  }
  0x44   :  { %2063 = vmatpush1.bf16.msra.mxu0 %v2703_v7  ;;  %1892 = vmatprep.subr.bf16.mxu1 %v2708_v8  ;;  %v2807_v7 = vld [vmem:[%s3996_s1 + $0x604] ss:$8 sps:$4 sm:$0xff]   ;;  %v2796_v8 = vld [vmem:[%s3997_s0 + $0x8] ss:$72 sps:$4 sm:$0xff]  }
  0x45   :  { %2064 = vmatprep.subr.bf16.mxu0 %v2711_v9  ;;  %1922 = vmatprep.mubr.bf16.mxu1 %v2798_v34  ;;  %v2799_v9 = vld [vmem:[%s3996_s1 + $0x200] ss:$8 sps:$4 sm:$0xff]   ;;  %v2840_v34 = vld [vmem:[%s3996_s1 + $0x264] ss:$8 sps:$4 sm:$0xff]  }
  0x46   :  { %2094 = vmatprep.mubr.bf16.mxu0 %v2804_v37  ;;  %v2841_v37 = vld [vmem:[%s3996_s1 + $0x660] ss:$8 sps:$4 sm:$0xff]  }
  0x47   :  { %1893 = vmatpush1.bf16.msra.mxu1 %v2706_v10  ;;  %v2802_v10 = vld [vmem:[%s3997_s0 + $0x28] ss:$72 sps:$4 sm:$0xff]  }
  0x48   :  { %2065 = vmatpush1.bf16.msra.mxu0 %v2709_v11  ;;  %1894 = vmatprep.subr.bf16.mxu1 %v2714_v12  ;;  %v2805_v11 = vld [vmem:[%s3996_s1 + $0x600] ss:$8 sps:$4 sm:$0xff]   ;;  %v2810_v12 = vld [vmem:[%s3996_s1 + $0x214] ss:$8 sps:$4 sm:$0xff]  }
  0x49   :  { %2066 = vmatprep.subr.bf16.mxu0 %v2717_v13  ;;  %v2813_v13 = vld [vmem:[%s3996_s1 + $0x614] ss:$8 sps:$4 sm:$0xff]  }
  0x4b   :  { %1895 = vmatpush1.bf16.msra.mxu1 %v2712_v14  ;;  %v2808_v14 = vld [vmem:[%s3996_s1 + $0x210] ss:$8 sps:$4 sm:$0xff]  }
  0x4c   :  { %2067 = vmatpush1.bf16.msra.mxu0 %v2715_v15  ;;  %1896 = vmatprep.subr.bf16.mxu1 %v2720_v16  ;;  %v2811_v15 = vld [vmem:[%s3996_s1 + $0x610] ss:$8 sps:$4 sm:$0xff]   ;;  %v2816_v16 = vld [vmem:[%s3996_s1 + $0x224] ss:$8 sps:$4 sm:$0xff]  }
  0x4d   :  { %2068 = vmatprep.subr.bf16.mxu0 %v2723_v17  ;;  %v2819_v17 = vld [vmem:[%s3996_s1 + $0x624] ss:$8 sps:$4 sm:$0xff]  }
  0x4f   :  { %1897 = vmatpush1.bf16.msra.mxu1 %v2718_v18  ;;  %v2814_v18 = vld [vmem:[%s3996_s1 + $0x220] ss:$8 sps:$4 sm:$0xff]  }
  0x50   :  { %2069 = vmatpush1.bf16.msra.mxu0 %v2721_v19  ;;  %1898 = vmatprep.subr.bf16.mxu1 %v2726_v20  ;;  %v2900_v19 = vld [vmem:[%s3997_s0 + $0x14] ss:$72 sps:$4 sm:$0xff]   ;;  %v2817_v20 = vld [vmem:[%s3996_s1 + $0x620] ss:$8 sps:$4 sm:$0xff]  }
  0x51   :  { %2070 = vmatprep.subr.bf16.mxu0 %v2729_v21  ;;  %v2822_v21 = vld [vmem:[%s3996_s1 + $0x234] ss:$8 sps:$4 sm:$0xff]  }
  0x53   :  { %1899 = vmatpush1.bf16.msra.mxu1 %v2724_v22  ;;  %v2825_v22 = vld [vmem:[%s3996_s1 + $0x634] ss:$8 sps:$4 sm:$0xff]  }
  0x54   :  { %2071 = vmatpush1.bf16.msra.mxu0 %v2727_v23  ;;  %1900 = vmatprep.subr.bf16.mxu1 %v2732_v24  ;;  %v2906_v23 = vld [vmem:[%s3997_s0 + $0x34] ss:$72 sps:$4 sm:$0xff]   ;;  %v2820_v24 = vld [vmem:[%s3996_s1 + $0x230] ss:$8 sps:$4 sm:$0xff]  }
  0x55   :  { %2072 = vmatprep.subr.bf16.mxu0 %v2735_v25  ;;  %v2823_v25 = vld [vmem:[%s3996_s1 + $0x630] ss:$8 sps:$4 sm:$0xff]  }
  0x57   :  { %1901 = vmatpush1.bf16.msra.mxu1 %v2730_v26  ;;  %v2828_v26 = vld [vmem:[%s3996_s1 + $0x244] ss:$8 sps:$4 sm:$0xff]  }
  0x58   :  { %2073 = vmatpush1.bf16.msra.mxu0 %v2733_v27  ;;  %1902 = vmatprep.subr.bf16.mxu1 %v2738_v28  ;;  %v2831_v27 = vld [vmem:[%s3996_s1 + $0x644] ss:$8 sps:$4 sm:$0xff]   ;;  %v2826_v28 = vld [vmem:[%s3996_s1 + $0x240] ss:$8 sps:$4 sm:$0xff]  }
  0x59   :  { %2074 = vmatprep.subr.bf16.mxu0 %v2741_v29  ;;  %v2829_v29 = vld [vmem:[%s3996_s1 + $0x640] ss:$8 sps:$4 sm:$0xff]  }
  0x5b   :  { %1903 = vmatpush1.bf16.msra.mxu1 %v2736_v30  ;;  %v2834_v30 = vld [vmem:[%s3996_s1 + $0x254] ss:$8 sps:$4 sm:$0xff]  }
  0x5c   :  { %2075 = vmatpush1.bf16.msra.mxu0 %v2739_v31  ;;  %1904 = vmatprep.subr.bf16.mxu1 %v2744_v32  ;;  %v2837_v31 = vld [vmem:[%s3996_s1 + $0x654] ss:$8 sps:$4 sm:$0xff]   ;;  %v2832_v32 = vld [vmem:[%s3996_s1 + $0x250] ss:$8 sps:$4 sm:$0xff]  }
  0x5d   :  { %2076 = vmatprep.subr.bf16.mxu0 %v2747_v33  ;;  %v2835_v33 = vld [vmem:[%s3996_s1 + $0x650] ss:$8 sps:$4 sm:$0xff]  }
  0x5f   :  { %1905 = vmatpush1.bf16.msra.mxu1 %v2742_v35  ;;  %v2843_v35 = vld [vmem:[%s3996_s1 + $0x664] ss:$8 sps:$4 sm:$0xff]  }
  0x60   :  { %2077 = vmatpush1.bf16.msra.mxu0 %v2745_v36  ;;  %1906 = vmatprep.subr.bf16.mxu1 %v2750_v38  ;;  %v2838_v36 = vld [vmem:[%s3996_s1 + $0x260] ss:$8 sps:$4 sm:$0xff]   ;;  %v2846_v38 = vld [vmem:[%s3996_s1 + $0x274] ss:$8 sps:$4 sm:$0xff]  }
  0x61   :  { %2078 = vmatprep.subr.bf16.mxu0 %v2753_v39  ;;  %v2849_v39 = vld [vmem:[%s3996_s1 + $0x674] ss:$8 sps:$4 sm:$0xff]  }
  0x63   :  { %1907 = vmatpush1.bf16.msra.mxu1 %v2748_v40  ;;  %v2844_v40 = vld [vmem:[%s3996_s1 + $0x270] ss:$8 sps:$4 sm:$0xff]  }
  0x64   :  { %2079 = vmatpush1.bf16.msra.mxu0 %v2751_v41  ;;  %1908 = vmatprep.subr.bf16.mxu1 %v2756_v42  ;;  %v2847_v41 = vld [vmem:[%s3996_s1 + $0x670] ss:$8 sps:$4 sm:$0xff]   ;;  %v2852_v42 = vld [vmem:[%s3996_s1 + $0x284] ss:$8 sps:$4 sm:$0xff]  }
  0x65   :  { %2080 = vmatprep.subr.bf16.mxu0 %v2759_v43  ;;  %v2855_v43 = vld [vmem:[%s3996_s1 + $0x684] ss:$8 sps:$4 sm:$0xff]  }
  0x67   :  { %1909 = vmatpush1.bf16.msra.mxu1 %v2754_v44  ;;  %v2850_v44 = vld [vmem:[%s3996_s1 + $0x280] ss:$8 sps:$4 sm:$0xff]  }
  0x68   :  { %2081 = vmatpush1.bf16.msra.mxu0 %v2757_v45  ;;  %1910 = vmatprep.subr.bf16.mxu1 %v2762_v46  ;;  %v2853_v45 = vld [vmem:[%s3996_s1 + $0x680] ss:$8 sps:$4 sm:$0xff]   ;;  %v2858_v46 = vld [vmem:[%s3996_s1 + $0x294] ss:$8 sps:$4 sm:$0xff]  }
  0x69   :  { %2082 = vmatprep.subr.bf16.mxu0 %v2765_v47  ;;  %v2861_v47 = vld [vmem:[%s3996_s1 + $0x694] ss:$8 sps:$4 sm:$0xff]  }
  0x6b   :  { %1911 = vmatpush1.bf16.msra.mxu1 %v2760_v48  ;;  %v2856_v48 = vld [vmem:[%s3996_s1 + $0x290] ss:$8 sps:$4 sm:$0xff]  }
  0x6c   :  { %2083 = vmatpush1.bf16.msra.mxu0 %v2763_v49  ;;  %1912 = vmatprep.subr.bf16.mxu1 %v2768_v50  ;;  %v2859_v49 = vld [vmem:[%s3996_s1 + $0x690] ss:$8 sps:$4 sm:$0xff]   ;;  %v2864_v50 = vld [vmem:[%s3996_s1 + $0x2a4] ss:$8 sps:$4 sm:$0xff]  }
  0x6d   :  { %2084 = vmatprep.subr.bf16.mxu0 %v2771_v51  ;;  %v2867_v51 = vld [vmem:[%s3996_s1 + $0x6a4] ss:$8 sps:$4 sm:$0xff]  }
  0x6f   :  { %1913 = vmatpush1.bf16.msra.mxu1 %v2766_v52  ;;  %v2862_v52 = vld [vmem:[%s3996_s1 + $0x2a0] ss:$8 sps:$4 sm:$0xff]  }
  0x70   :  { %2085 = vmatpush1.bf16.msra.mxu0 %v2769_v53  ;;  %1914 = vmatprep.subr.bf16.mxu1 %v2774_v54  ;;  %v2865_v53 = vld [vmem:[%s3996_s1 + $0x6a0] ss:$8 sps:$4 sm:$0xff]   ;;  %v2870_v54 = vld [vmem:[%s3996_s1 + $0x2b4] ss:$8 sps:$4 sm:$0xff]  }
  0x71   :  { %2086 = vmatprep.subr.bf16.mxu0 %v2777_v55  ;;  %v2873_v55 = vld [vmem:[%s3996_s1 + $0x6b4] ss:$8 sps:$4 sm:$0xff]  }
  0x73   :  { %1915 = vmatpush1.bf16.msra.mxu1 %v2772_v56  ;;  %v2868_v56 = vld [vmem:[%s3996_s1 + $0x2b0] ss:$8 sps:$4 sm:$0xff]  }
  0x74   :  { %2087 = vmatpush1.bf16.msra.mxu0 %v2775_v57  ;;  %1916 = vmatprep.subr.bf16.mxu1 %v2780_v58  ;;  %v2871_v57 = vld [vmem:[%s3996_s1 + $0x6b0] ss:$8 sps:$4 sm:$0xff]   ;;  %v2876_v58 = vld [vmem:[%s3996_s1 + $0x2c4] ss:$8 sps:$4 sm:$0xff]  }
  0x75   :  { %2088 = vmatprep.subr.bf16.mxu0 %v2783_v59  ;;  %v2879_v59 = vld [vmem:[%s3996_s1 + $0x6c4] ss:$8 sps:$4 sm:$0xff]  }
  0x77   :  { %1917 = vmatpush1.bf16.msra.mxu1 %v2778_v60  ;;  %v2874_v60 = vld [vmem:[%s3996_s1 + $0x2c0] ss:$8 sps:$4 sm:$0xff]  }
  0x78   :  { %2089 = vmatpush1.bf16.msra.mxu0 %v2781_v61  ;;  %1918 = vmatprep.subr.bf16.mxu1 %v2786_v62  ;;  %v2877_v61 = vld [vmem:[%s3996_s1 + $0x6c0] ss:$8 sps:$4 sm:$0xff]   ;;  %v2882_v62 = vld [vmem:[%s3996_s1 + $0x2d4] ss:$8 sps:$4 sm:$0xff]  }
  0x79   :  { %2090 = vmatprep.subr.bf16.mxu0 %v2789_v63  ;;  %v2885_v63 = vld [vmem:[%s3996_s1 + $0x6d4] ss:$8 sps:$4 sm:$0xff]  }
  0x7b   :  { %1919 = vmatpush1.bf16.msra.mxu1 %v2784_v0  ;;  %v2880_v0 = vld [vmem:[%s3996_s1 + $0x2d0] ss:$8 sps:$4 sm:$0xff]  }
  0x7c   :  { %2091 = vmatpush1.bf16.msra.mxu0 %v2787_v1  ;;  %1920 = vmatprep.subr.bf16.mxu1 %v2792_v2  ;;  %v2883_v1 = vld [vmem:[%s3996_s1 + $0x6d0] ss:$8 sps:$4 sm:$0xff]   ;;  %v2888_v2 = vld [vmem:[%s3996_s1 + $0x2e4] ss:$8 sps:$4 sm:$0xff]  }
  0x7d   :  { %2092 = vmatprep.subr.bf16.mxu0 %v2795_v3  ;;  %v2891_v3 = vld [vmem:[%s3996_s1 + $0x6e4] ss:$8 sps:$4 sm:$0xff]  }
  0x7f   :  { %1921 = vmatpush1.bf16.msra.mxu1 %v2790_v4  ;;  %v2886_v4 = vld [vmem:[%s3996_s1 + $0x2e0] ss:$8 sps:$4 sm:$0xff]  }
  0x80   :  { %2093 = vmatpush1.bf16.msra.mxu0 %v2793_v5  ;;  %1933 = vmatprep.subr.bf16.mxu1 %v2801_v6  ;;  %v2889_v5 = vld [vmem:[%s3996_s1 + $0x6e0] ss:$8 sps:$4 sm:$0xff]   ;;  %v2894_v6 = vld [vmem:[%s3996_s1 + $0x2f4] ss:$8 sps:$4 sm:$0xff]  }
  0x81   :  { %2105 = vmatprep.subr.bf16.mxu0 %v2807_v7  ;;  %v2897_v7 = vld [vmem:[%s3996_s1 + $0x6f4] ss:$8 sps:$4 sm:$0xff]  }
  0x82   :  { %1923 = vmatmul.mubr.bf16.vlgmr.msra.gmra.mrb[0].mxu1 %v2796_v8  ;;  %v2892_v8 = vld [vmem:[%s3996_s1 + $0x2f0] ss:$8 sps:$4 sm:$0xff]  }
  0x83   :  { %2095 = vmatmul.mubr.bf16.vlgmr.msra.gmra.mrb[0].mxu0 %v2802_v10  ;;  %1934 = vmatpush1.bf16.msra.mxu1 %v2799_v9  ;;  %v2895_v9 = vld [vmem:[%s3996_s1 + $0x6f0] ss:$8 sps:$4 sm:$0xff]   ;;  %v2903_v10 = vld [vmem:[%s3996_s1 + $0x304] ss:$8 sps:$4 sm:$0xff]  }
  0x84   :  { %2106 = vmatpush1.bf16.msra.mxu0 %v2805_v11  ;;  %1935 = vmatprep.subr.bf16.mxu1 %v2810_v12  ;;  %v2909_v11 = vld [vmem:[%s3996_s1 + $0x704] ss:$8 sps:$4 sm:$0xff]   ;;  %v2898_v12 = vld [vmem:[%s3997_s0 + $0x10] ss:$72 sps:$4 sm:$0xff]  }
  0x85   :  { %2107 = vmatprep.subr.bf16.mxu0 %v2813_v13  ;;  %1965 = vmatprep.mubr.bf16.mxu1 %v2900_v19  ;;  %v2901_v13 = vld [vmem:[%s3996_s1 + $0x300] ss:$8 sps:$4 sm:$0xff]   ;;  %v3005_v19 = vld [vmem:[%s3997_s0 + $0x3c] ss:$72 sps:$4 sm:$0xff]  }
  0x86   :  { %2137 = vmatprep.mubr.bf16.mxu0 %v2906_v23  ;;  %v2921_v23 = vld [vmem:[%s3996_s1 + $0x724] ss:$8 sps:$4 sm:$0xff]  }
  0x87   :  { %1936 = vmatpush1.bf16.msra.mxu1 %v2808_v14  ;;  %v2904_v14 = vld [vmem:[%s3997_s0 + $0x30] ss:$72 sps:$4 sm:$0xff]  }
  0x88   :  { %2108 = vmatpush1.bf16.msra.mxu0 %v2811_v15  ;;  %1937 = vmatprep.subr.bf16.mxu1 %v2816_v16  ;;  %v2907_v15 = vld [vmem:[%s3996_s1 + $0x700] ss:$8 sps:$4 sm:$0xff]   ;;  %v2912_v16 = vld [vmem:[%s3996_s1 + $0x314] ss:$8 sps:$4 sm:$0xff]  }
  0x89   :  { %2109 = vmatprep.subr.bf16.mxu0 %v2819_v17  ;;  %v2915_v17 = vld [vmem:[%s3996_s1 + $0x714] ss:$8 sps:$4 sm:$0xff]  }
  0x8b   :  { %1938 = vmatpush1.bf16.msra.mxu1 %v2814_v18  ;;  %v3002_v18 = vld [vmem:[%s3997_s0 + $0x1c] ss:$72 sps:$4 sm:$0xff]  }
  0x8c   :  { %2110 = vmatpush1.bf16.msra.mxu0 %v2817_v20  ;;  %1939 = vmatprep.subr.bf16.mxu1 %v2822_v21  ;;  %v2910_v20 = vld [vmem:[%s3996_s1 + $0x310] ss:$8 sps:$4 sm:$0xff]  }
  0x8d   :  { %2111 = vmatprep.subr.bf16.mxu0 %v2825_v22  ;;  %v2913_v21 = vld [vmem:[%s3996_s1 + $0x710] ss:$8 sps:$4 sm:$0xff]   ;;  %v2918_v22 = vld [vmem:[%s3996_s1 + $0x324] ss:$8 sps:$4 sm:$0xff]  }
  0x8f   :  { %1940 = vmatpush1.bf16.msra.mxu1 %v2820_v24  ;;  %v2916_v24 = vld [vmem:[%s3996_s1 + $0x320] ss:$8 sps:$4 sm:$0xff]  }
  0x90   :  { %2112 = vmatpush1.bf16.msra.mxu0 %v2823_v25  ;;  %1941 = vmatprep.subr.bf16.mxu1 %v2828_v26  ;;  %v2919_v25 = vld [vmem:[%s3996_s1 + $0x720] ss:$8 sps:$4 sm:$0xff]   ;;  %v2924_v26 = vld [vmem:[%s3996_s1 + $0x334] ss:$8 sps:$4 sm:$0xff]  }
  0x91   :  { %2113 = vmatprep.subr.bf16.mxu0 %v2831_v27  ;;  %v2927_v27 = vld [vmem:[%s3996_s1 + $0x734] ss:$8 sps:$4 sm:$0xff]  }
  0x93   :  { %1942 = vmatpush1.bf16.msra.mxu1 %v2826_v28  ;;  %v2922_v28 = vld [vmem:[%s3996_s1 + $0x330] ss:$8 sps:$4 sm:$0xff]  }
  0x94   :  { %2114 = vmatpush1.bf16.msra.mxu0 %v2829_v29  ;;  %1943 = vmatprep.subr.bf16.mxu1 %v2834_v30  ;;  %v2925_v29 = vld [vmem:[%s3996_s1 + $0x730] ss:$8 sps:$4 sm:$0xff]   ;;  %v2930_v30 = vld [vmem:[%s3996_s1 + $0x344] ss:$8 sps:$4 sm:$0xff]  }
  0x95   :  { %2115 = vmatprep.subr.bf16.mxu0 %v2837_v31  ;;  %v2933_v31 = vld [vmem:[%s3996_s1 + $0x744] ss:$8 sps:$4 sm:$0xff]  }
  0x97   :  { %1944 = vmatpush1.bf16.msra.mxu1 %v2832_v32  ;;  %v2928_v32 = vld [vmem:[%s3996_s1 + $0x340] ss:$8 sps:$4 sm:$0xff]  }
  0x98   :  { %2116 = vmatpush1.bf16.msra.mxu0 %v2835_v33  ;;  %1945 = vmatprep.subr.bf16.mxu1 %v2840_v34  ;;  %v2931_v33 = vld [vmem:[%s3996_s1 + $0x740] ss:$8 sps:$4 sm:$0xff]   ;;  %v2936_v34 = vld [vmem:[%s3996_s1 + $0x354] ss:$8 sps:$4 sm:$0xff]  }
  0x99   :  { %2117 = vmatprep.subr.bf16.mxu0 %v2843_v35  ;;  %v2939_v35 = vld [vmem:[%s3996_s1 + $0x754] ss:$8 sps:$4 sm:$0xff]  }
  0x9b   :  { %1946 = vmatpush1.bf16.msra.mxu1 %v2838_v36  ;;  %v2934_v36 = vld [vmem:[%s3996_s1 + $0x350] ss:$8 sps:$4 sm:$0xff]  }
  0x9c   :  { %2118 = vmatpush1.bf16.msra.mxu0 %v2841_v37  ;;  %1947 = vmatprep.subr.bf16.mxu1 %v2846_v38  ;;  %v2937_v37 = vld [vmem:[%s3996_s1 + $0x750] ss:$8 sps:$4 sm:$0xff]   ;;  %v2942_v38 = vld [vmem:[%s3996_s1 + $0x364] ss:$8 sps:$4 sm:$0xff]  }
  0x9d   :  { %2119 = vmatprep.subr.bf16.mxu0 %v2849_v39  ;;  %v2945_v39 = vld [vmem:[%s3996_s1 + $0x764] ss:$8 sps:$4 sm:$0xff]  }
  0x9f   :  { %1948 = vmatpush1.bf16.msra.mxu1 %v2844_v40  ;;  %v2940_v40 = vld [vmem:[%s3996_s1 + $0x360] ss:$8 sps:$4 sm:$0xff]  }
  0xa0   :  { %2120 = vmatpush1.bf16.msra.mxu0 %v2847_v41  ;;  %1949 = vmatprep.subr.bf16.mxu1 %v2852_v42  ;;  %v2943_v41 = vld [vmem:[%s3996_s1 + $0x760] ss:$8 sps:$4 sm:$0xff]   ;;  %v2948_v42 = vld [vmem:[%s3996_s1 + $0x374] ss:$8 sps:$4 sm:$0xff]  }
  0xa1   :  { %2121 = vmatprep.subr.bf16.mxu0 %v2855_v43  ;;  %v2951_v43 = vld [vmem:[%s3996_s1 + $0x774] ss:$8 sps:$4 sm:$0xff]  }
  0xa3   :  { %1950 = vmatpush1.bf16.msra.mxu1 %v2850_v44  ;;  %v2946_v44 = vld [vmem:[%s3996_s1 + $0x370] ss:$8 sps:$4 sm:$0xff]  }
  0xa4   :  { %2122 = vmatpush1.bf16.msra.mxu0 %v2853_v45  ;;  %1951 = vmatprep.subr.bf16.mxu1 %v2858_v46  ;;  %v2949_v45 = vld [vmem:[%s3996_s1 + $0x770] ss:$8 sps:$4 sm:$0xff]   ;;  %v2954_v46 = vld [vmem:[%s3996_s1 + $0x384] ss:$8 sps:$4 sm:$0xff]  }
  0xa5   :  { %2123 = vmatprep.subr.bf16.mxu0 %v2861_v47  ;;  %v2957_v47 = vld [vmem:[%s3996_s1 + $0x784] ss:$8 sps:$4 sm:$0xff]  }
  0xa7   :  { %1952 = vmatpush1.bf16.msra.mxu1 %v2856_v48  ;;  %v2952_v48 = vld [vmem:[%s3996_s1 + $0x380] ss:$8 sps:$4 sm:$0xff]  }
  0xa8   :  { %2124 = vmatpush1.bf16.msra.mxu0 %v2859_v49  ;;  %1953 = vmatprep.subr.bf16.mxu1 %v2864_v50  ;;  %v2955_v49 = vld [vmem:[%s3996_s1 + $0x780] ss:$8 sps:$4 sm:$0xff]   ;;  %v2960_v50 = vld [vmem:[%s3996_s1 + $0x394] ss:$8 sps:$4 sm:$0xff]  }
  0xa9   :  { %2125 = vmatprep.subr.bf16.mxu0 %v2867_v51  ;;  %v2963_v51 = vld [vmem:[%s3996_s1 + $0x794] ss:$8 sps:$4 sm:$0xff]  }
  0xab   :  { %1954 = vmatpush1.bf16.msra.mxu1 %v2862_v52  ;;  %v2958_v52 = vld [vmem:[%s3996_s1 + $0x390] ss:$8 sps:$4 sm:$0xff]  }
  0xac   :  { %2126 = vmatpush1.bf16.msra.mxu0 %v2865_v53  ;;  %1955 = vmatprep.subr.bf16.mxu1 %v2870_v54  ;;  %v2961_v53 = vld [vmem:[%s3996_s1 + $0x790] ss:$8 sps:$4 sm:$0xff]   ;;  %v2966_v54 = vld [vmem:[%s3996_s1 + $0x3a4] ss:$8 sps:$4 sm:$0xff]  }
  0xad   :  { %2127 = vmatprep.subr.bf16.mxu0 %v2873_v55  ;;  %v2969_v55 = vld [vmem:[%s3996_s1 + $0x7a4] ss:$8 sps:$4 sm:$0xff]  }
  0xaf   :  { %1956 = vmatpush1.bf16.msra.mxu1 %v2868_v56  ;;  %v2964_v56 = vld [vmem:[%s3996_s1 + $0x3a0] ss:$8 sps:$4 sm:$0xff]  }
  0xb0   :  { %2128 = vmatpush1.bf16.msra.mxu0 %v2871_v57  ;;  %1957 = vmatprep.subr.bf16.mxu1 %v2876_v58  ;;  %v2967_v57 = vld [vmem:[%s3996_s1 + $0x7a0] ss:$8 sps:$4 sm:$0xff]   ;;  %v2972_v58 = vld [vmem:[%s3996_s1 + $0x3b4] ss:$8 sps:$4 sm:$0xff]  }
  0xb1   :  { %2129 = vmatprep.subr.bf16.mxu0 %v2879_v59  ;;  %v2975_v59 = vld [vmem:[%s3996_s1 + $0x7b4] ss:$8 sps:$4 sm:$0xff]  }
  0xb3   :  { %1958 = vmatpush1.bf16.msra.mxu1 %v2874_v60  ;;  %v2970_v60 = vld [vmem:[%s3996_s1 + $0x3b0] ss:$8 sps:$4 sm:$0xff]  }
  0xb4   :  { %2130 = vmatpush1.bf16.msra.mxu0 %v2877_v61  ;;  %1959 = vmatprep.subr.bf16.mxu1 %v2882_v62  ;;  %v2973_v61 = vld [vmem:[%s3996_s1 + $0x7b0] ss:$8 sps:$4 sm:$0xff]   ;;  %v2978_v62 = vld [vmem:[%s3996_s1 + $0x3c4] ss:$8 sps:$4 sm:$0xff]  }
  0xb5   :  { %2131 = vmatprep.subr.bf16.mxu0 %v2885_v63  ;;  %v2981_v63 = vld [vmem:[%s3996_s1 + $0x7c4] ss:$8 sps:$4 sm:$0xff]  }
  0xb7   :  { %1960 = vmatpush1.bf16.msra.mxu1 %v2880_v0  ;;  %v2976_v0 = vld [vmem:[%s3996_s1 + $0x3c0] ss:$8 sps:$4 sm:$0xff]  }
  0xb8   :  { %2132 = vmatpush1.bf16.msra.mxu0 %v2883_v1  ;;  %1961 = vmatprep.subr.bf16.mxu1 %v2888_v2  ;;  %v2979_v1 = vld [vmem:[%s3996_s1 + $0x7c0] ss:$8 sps:$4 sm:$0xff]   ;;  %v2984_v2 = vld [vmem:[%s3996_s1 + $0x3d4] ss:$8 sps:$4 sm:$0xff]  }
  0xb9   :  { %2133 = vmatprep.subr.bf16.mxu0 %v2891_v3  ;;  %v2987_v3 = vld [vmem:[%s3996_s1 + $0x7d4] ss:$8 sps:$4 sm:$0xff]  }
  0xbb   :  { %1962 = vmatpush1.bf16.msra.mxu1 %v2886_v4  ;;  %v2982_v4 = vld [vmem:[%s3996_s1 + $0x3d0] ss:$8 sps:$4 sm:$0xff]  }
  0xbc   :  { %2134 = vmatpush1.bf16.msra.mxu0 %v2889_v5  ;;  %1963 = vmatprep.subr.bf16.mxu1 %v2894_v6  ;;  %v2985_v5 = vld [vmem:[%s3996_s1 + $0x7d0] ss:$8 sps:$4 sm:$0xff]   ;;  %v2990_v6 = vld [vmem:[%s3996_s1 + $0x3e4] ss:$8 sps:$4 sm:$0xff]  }
  0xbd   :  { %2135 = vmatprep.subr.bf16.mxu0 %v2897_v7  ;;  %v2993_v7 = vld [vmem:[%s3996_s1 + $0x7e4] ss:$8 sps:$4 sm:$0xff]  }
  0xbf   :  { %1964 = vmatpush1.bf16.msra.mxu1 %v2892_v8  ;;  %v2988_v8 = vld [vmem:[%s3996_s1 + $0x3e0] ss:$8 sps:$4 sm:$0xff]  }
  0xc0   :  { %2136 = vmatpush1.bf16.msra.mxu0 %v2895_v9  ;;  %1976 = vmatprep.subr.bf16.mxu1 %v2903_v10  ;;  %v2991_v9 = vld [vmem:[%s3996_s1 + $0x7e0] ss:$8 sps:$4 sm:$0xff]   ;;  %v2996_v10 = vld [vmem:[%s3996_s1 + $0x3f4] ss:$8 sps:$4 sm:$0xff]  }
  0xc1   :  { %2148 = vmatprep.subr.bf16.mxu0 %v2909_v11  ;;  %v2999_v11 = vld [vmem:[%s3996_s1 + $0x7f4] ss:$8 sps:$4 sm:$0xff]  }
  0xc2   :  { %1966 = vmatmul.mubr.bf16.vlgmr.msra.gmra.mrb[0].mxu1 %v2898_v12  ;;  %v2994_v12 = vld [vmem:[%s3996_s1 + $0x3f0] ss:$8 sps:$4 sm:$0xff]  }
  0xc3   :  { %2138 = vmatmul.mubr.bf16.vlgmr.msra.gmra.mrb[0].mxu0 %v2904_v14  ;;  %1977 = vmatpush1.bf16.msra.mxu1 %v2901_v13  ;;  %v2997_v13 = vld [vmem:[%s3996_s1 + $0x7f0] ss:$8 sps:$4 sm:$0xff]   ;;  %v3008_v14 = vld [vmem:[%s3996_s1 + $0x804] ss:$8 sps:$4 sm:$0xff]  }
  0xc4   :  { %2149 = vmatpush1.bf16.msra.mxu0 %v2907_v15  ;;  %1978 = vmatprep.subr.bf16.mxu1 %v2912_v16  ;;  %v3000_v15 = vld [vmem:[%s3997_s0 + $0x18] ss:$72 sps:$4 sm:$0xff]  }
  0xc5   :  { %2150 = vmatprep.subr.bf16.mxu0 %v2915_v17  ;;  %2008 = vmatprep.mubr.bf16.mxu1 %v3002_v18  ;;  %v3003_v16 = vld [vmem:[%s3997_s0 + $0x38] ss:$72 sps:$4 sm:$0xff]   ;;  %v3056_v18 = vld [vmem:[%s3997_s0 + $0x44] ss:$72 sps:$4 sm:$0xff]  }
  0xc6   :  { %2180 = vmatprep.mubr.bf16.mxu0 %v3005_v19  ;;  %v3006_v17 = vld [vmem:[%s3996_s1 + $0x800] ss:$8 sps:$4 sm:$0xff]   ;;  %v3011_v19 = vld [vmem:[%s3996_s1 + $0x814] ss:$8 sps:$4 sm:$0xff]  }
  0xc7   :  { %1979 = vmatpush1.bf16.msra.mxu1 %v2910_v20  ;;  %v3009_v20 = vld [vmem:[%s3996_s1 + $0x810] ss:$8 sps:$4 sm:$0xff]  }
  0xc8   :  { %2151 = vmatpush1.bf16.msra.mxu0 %v2913_v21  ;;  %1980 = vmatprep.subr.bf16.mxu1 %v2918_v22  ;;  %v3014_v21 = vld [vmem:[%s3996_s1 + $0x824] ss:$8 sps:$4 sm:$0xff]   ;;  %v3012_v22 = vld [vmem:[%s3996_s1 + $0x820] ss:$8 sps:$4 sm:$0xff]  }
  0xc9   :  { %2152 = vmatprep.subr.bf16.mxu0 %v2921_v23  ;;  %v3017_v23 = vld [vmem:[%s3996_s1 + $0x834] ss:$8 sps:$4 sm:$0xff]  }
  0xcb   :  { %1981 = vmatpush1.bf16.msra.mxu1 %v2916_v24  ;;  %v3015_v24 = vld [vmem:[%s3996_s1 + $0x830] ss:$8 sps:$4 sm:$0xff]  }
  0xcc   :  { %2153 = vmatpush1.bf16.msra.mxu0 %v2919_v25  ;;  %1982 = vmatprep.subr.bf16.mxu1 %v2924_v26  ;;  %v3020_v25 = vld [vmem:[%s3996_s1 + $0x844] ss:$8 sps:$4 sm:$0xff]   ;;  %v3018_v26 = vld [vmem:[%s3996_s1 + $0x840] ss:$8 sps:$4 sm:$0xff]  }
  0xcd   :  { %2154 = vmatprep.subr.bf16.mxu0 %v2927_v27  ;;  %v3023_v27 = vld [vmem:[%s3996_s1 + $0x854] ss:$8 sps:$4 sm:$0xff]  }
  0xcf   :  { %1983 = vmatpush1.bf16.msra.mxu1 %v2922_v28  ;;  %v3021_v28 = vld [vmem:[%s3996_s1 + $0x850] ss:$8 sps:$4 sm:$0xff]  }
  0xd0   :  { %2155 = vmatpush1.bf16.msra.mxu0 %v2925_v29  ;;  %1984 = vmatprep.subr.bf16.mxu1 %v2930_v30  ;;  %v3026_v29 = vld [vmem:[%s3996_s1 + $0x864] ss:$8 sps:$4 sm:$0xff]   ;;  %v3024_v30 = vld [vmem:[%s3996_s1 + $0x860] ss:$8 sps:$4 sm:$0xff]  }
  0xd1   :  { %2156 = vmatprep.subr.bf16.mxu0 %v2933_v31  ;;  %v3029_v31 = vld [vmem:[%s3996_s1 + $0x874] ss:$8 sps:$4 sm:$0xff]  }
  0xd3   :  { %1985 = vmatpush1.bf16.msra.mxu1 %v2928_v32  ;;  %v3027_v32 = vld [vmem:[%s3996_s1 + $0x870] ss:$8 sps:$4 sm:$0xff]  }
  0xd4   :  { %2157 = vmatpush1.bf16.msra.mxu0 %v2931_v33  ;;  %1986 = vmatprep.subr.bf16.mxu1 %v2936_v34  ;;  %v3032_v33 = vld [vmem:[%s3996_s1 + $0x884] ss:$8 sps:$4 sm:$0xff]   ;;  %v3030_v34 = vld [vmem:[%s3996_s1 + $0x880] ss:$8 sps:$4 sm:$0xff]  }
  0xd5   :  { %2158 = vmatprep.subr.bf16.mxu0 %v2939_v35  ;;  %v3035_v35 = vld [vmem:[%s3996_s1 + $0x894] ss:$8 sps:$4 sm:$0xff]  }
  0xd7   :  { %1987 = vmatpush1.bf16.msra.mxu1 %v2934_v36  ;;  %v3033_v36 = vld [vmem:[%s3996_s1 + $0x890] ss:$8 sps:$4 sm:$0xff]  }
  0xd8   :  { %2159 = vmatpush1.bf16.msra.mxu0 %v2937_v37  ;;  %1988 = vmatprep.subr.bf16.mxu1 %v2942_v38  ;;  %v3038_v37 = vld [vmem:[%s3996_s1 + $0x8a4] ss:$8 sps:$4 sm:$0xff]   ;;  %v3036_v38 = vld [vmem:[%s3996_s1 + $0x8a0] ss:$8 sps:$4 sm:$0xff]  }
  0xd9   :  { %2160 = vmatprep.subr.bf16.mxu0 %v2945_v39  ;;  %v3041_v39 = vld [vmem:[%s3996_s1 + $0x8b4] ss:$8 sps:$4 sm:$0xff]  }
  0xdb   :  { %1989 = vmatpush1.bf16.msra.mxu1 %v2940_v40  ;;  %v3039_v40 = vld [vmem:[%s3996_s1 + $0x8b0] ss:$8 sps:$4 sm:$0xff]  }
  0xdc   :  { %2161 = vmatpush1.bf16.msra.mxu0 %v2943_v41  ;;  %1990 = vmatprep.subr.bf16.mxu1 %v2948_v42  ;;  %v3044_v41 = vld [vmem:[%s3996_s1 + $0x8c4] ss:$8 sps:$4 sm:$0xff]   ;;  %v3042_v42 = vld [vmem:[%s3996_s1 + $0x8c0] ss:$8 sps:$4 sm:$0xff]  }
  0xdd   :  { %2162 = vmatprep.subr.bf16.mxu0 %v2951_v43  ;;  %v3047_v43 = vld [vmem:[%s3996_s1 + $0x8d4] ss:$8 sps:$4 sm:$0xff]  }
  0xdf   :  { %1991 = vmatpush1.bf16.msra.mxu1 %v2946_v44  ;;  %v3045_v44 = vld [vmem:[%s3996_s1 + $0x8d0] ss:$8 sps:$4 sm:$0xff]  }
  0xe0   :  { %2163 = vmatpush1.bf16.msra.mxu0 %v2949_v45  ;;  %1992 = vmatprep.subr.bf16.mxu1 %v2954_v46  ;;  %v3050_v45 = vld [vmem:[%s3996_s1 + $0x8e4] ss:$8 sps:$4 sm:$0xff]   ;;  %v3048_v46 = vld [vmem:[%s3996_s1 + $0x8e0] ss:$8 sps:$4 sm:$0xff]  }
  0xe1   :  { %2164 = vmatprep.subr.bf16.mxu0 %v2957_v47  ;;  %v3053_v47 = vld [vmem:[%s3996_s1 + $0x8f4] ss:$8 sps:$4 sm:$0xff]  }
  0xe3   :  { %1993 = vmatpush1.bf16.msra.mxu1 %v2952_v48  ;;  %v3051_v48 = vld [vmem:[%s3996_s1 + $0x8f0] ss:$8 sps:$4 sm:$0xff]  }
  0xe4   :  { %2165 = vmatpush1.bf16.msra.mxu0 %v2955_v49  ;;  %1994 = vmatprep.subr.bf16.mxu1 %v2960_v50  ;;  %v3054_v49 = vld [vmem:[%s3997_s0 + $0x40] ss:$72 sps:$4 sm:$0xff]  }
  0xe5   :  { %2166 = vmatprep.subr.bf16.mxu0 %v2963_v51 }
  0xe7   :  { %1995 = vmatpush1.bf16.msra.mxu1 %v2958_v52 }
  0xe8   :  { %2167 = vmatpush1.bf16.msra.mxu0 %v2961_v53  ;;  %1996 = vmatprep.subr.bf16.mxu1 %v2966_v54 }
  0xe9   :  { %2168 = vmatprep.subr.bf16.mxu0 %v2969_v55 }
  0xeb   :  { %1997 = vmatpush1.bf16.msra.mxu1 %v2964_v56 }
  0xec   :  { %2169 = vmatpush1.bf16.msra.mxu0 %v2967_v57  ;;  %1998 = vmatprep.subr.bf16.mxu1 %v2972_v58 }
  0xed   :  { %2170 = vmatprep.subr.bf16.mxu0 %v2975_v59 }
  0xef   :  { %1999 = vmatpush1.bf16.msra.mxu1 %v2970_v60 }
  0xf0   :  { %2171 = vmatpush1.bf16.msra.mxu0 %v2973_v61  ;;  %2000 = vmatprep.subr.bf16.mxu1 %v2978_v62 }
  0xf1   :  { %2172 = vmatprep.subr.bf16.mxu0 %v2981_v63 }
  0xf3   :  { %2001 = vmatpush1.bf16.msra.mxu1 %v2976_v0 }
  0xf4   :  { %2173 = vmatpush1.bf16.msra.mxu0 %v2979_v1  ;;  %2002 = vmatprep.subr.bf16.mxu1 %v2984_v2 }
  0xf5   :  { %2174 = vmatprep.subr.bf16.mxu0 %v2987_v3 }
  0xf7   :  { %2003 = vmatpush1.bf16.msra.mxu1 %v2982_v4 }
  0xf8   :  { %2175 = vmatpush1.bf16.msra.mxu0 %v2985_v5  ;;  %2004 = vmatprep.subr.bf16.mxu1 %v2990_v6 }
  0xf9   :  { %2176 = vmatprep.subr.bf16.mxu0 %v2993_v7 }
  0xfb   :  { %2005 = vmatpush1.bf16.msra.mxu1 %v2988_v8 }
  0xfc   :  { %2177 = vmatpush1.bf16.msra.mxu0 %v2991_v9  ;;  %2006 = vmatprep.subr.bf16.mxu1 %v2996_v10 }
  0xfd   :  { %2178 = vmatprep.subr.bf16.mxu0 %v2999_v11 }
  0xff   :  { %2007 = vmatpush1.bf16.msra.mxu1 %v2994_v12 }
 0x100   :  { %2179 = vmatpush1.bf16.msra.mxu0 %v2997_v13 }
 0x101   :  { %2191 = vmatprep.subr.bf16.mxu0 %v3008_v14 }
 0x102   :  { %2009 = vmatmul.mubr.bf16.vlgmr.msra.gmra.mrb[0].mxu1 %v3000_v15 }
 0x103   :  { %2181 = vmatmul.mubr.bf16.vlgmr.msra.gmra.mrb[0].mxu0 %v3003_v16 }
 0x104   :  { %2192 = vmatpush1.bf16.msra.mxu0 %v3006_v17  ;;  %2223 = vmatprep.mubr.bf16.mxu0 %v3056_v18 }
 0x105   :  { %2193 = vmatprep.subr.bf16.mxu0 %v3011_v19 }
 0x108   :  { %2194 = vmatpush1.bf16.msra.mxu0 %v3009_v20 }
 0x109   :  { %2195 = vmatprep.subr.bf16.mxu0 %v3014_v21 }
 0x10c   :  { %2196 = vmatpush1.bf16.msra.mxu0 %v3012_v22 }
 0x10d   :  { %2197 = vmatprep.subr.bf16.mxu0 %v3017_v23 }
 0x110   :  { %2198 = vmatpush1.bf16.msra.mxu0 %v3015_v24 }
 0x111   :  { %2199 = vmatprep.subr.bf16.mxu0 %v3020_v25 }
 0x114   :  { %2200 = vmatpush1.bf16.msra.mxu0 %v3018_v26 }
 0x115   :  { %2201 = vmatprep.subr.bf16.mxu0 %v3023_v27 }
 0x118   :  { %2202 = vmatpush1.bf16.msra.mxu0 %v3021_v28 }
 0x119   :  { %2203 = vmatprep.subr.bf16.mxu0 %v3026_v29 }
 0x11c   :  { %2204 = vmatpush1.bf16.msra.mxu0 %v3024_v30 }
 0x11d   :  { %2205 = vmatprep.subr.bf16.mxu0 %v3029_v31 }
 0x120   :  { %2206 = vmatpush1.bf16.msra.mxu0 %v3027_v32 }
 0x121   :  { %2207 = vmatprep.subr.bf16.mxu0 %v3032_v33 }
 0x124   :  { %2208 = vmatpush1.bf16.msra.mxu0 %v3030_v34 }
 0x125   :  { %2209 = vmatprep.subr.bf16.mxu0 %v3035_v35 }
 0x128   :  { %2210 = vmatpush1.bf16.msra.mxu0 %v3033_v36 }
 0x129   :  { %2211 = vmatprep.subr.bf16.mxu0 %v3038_v37 }
 0x12c   :  { %2212 = vmatpush1.bf16.msra.mxu0 %v3036_v38 }
 0x12d   :  { %2213 = vmatprep.subr.bf16.mxu0 %v3041_v39 }
 0x130   :  { %2214 = vmatpush1.bf16.msra.mxu0 %v3039_v40 }
 0x131   :  { %2215 = vmatprep.subr.bf16.mxu0 %v3044_v41 }
 0x134   :  { %2216 = vmatpush1.bf16.msra.mxu0 %v3042_v42 }
 0x135   :  { %2217 = vmatprep.subr.bf16.mxu0 %v3047_v43 }
 0x138   :  { %2218 = vmatpush1.bf16.msra.mxu0 %v3045_v44 }
 0x139   :  { %2219 = vmatprep.subr.bf16.mxu0 %v3050_v45 }
 0x13c   :  { %2220 = vmatpush1.bf16.msra.mxu0 %v3048_v46 }
 0x13d   :  { %2221 = vmatprep.subr.bf16.mxu0 %v3053_v47 }
 0x140   :  { %2222 = vmatpush1.bf16.msra.mxu0 %v3051_v48 }
 0x143   :  { %2224 = vmatmul.mubr.bf16.vlgmr.msra.gmra.mrb[0].mxu0 %v3054_v49 }
 0x1d5   :  { %v2010_v50 = vpop.f32.mrb[0].mxu1 }
 0x1d6   :  { %v2012_v51 = vpop.f32.mrb[1].mxu1 }
 0x1d7   :  { %v2014_v52 = vpop.f32.mrb[2].mxu1 }
 0x1d8   :  { %v2016_v53 = vpop.f32.mrb[3].mxu1 }
 0x216   :  { %v2225_v54 = vpop.f32.mrb[0].mxu0 }
 0x217   :  { %v2566_v55 = vadd.f32 %v2225_v54, %v2010_v50  ;;  %v2227_v56 = vpop.f32.mrb[1].mxu0 }
 0x218   :  { %v2567_v57 = vadd.f32 %v2227_v56, %v2012_v51  ;;  %v2229_v58 = vpop.f32.mrb[2].mxu0 }
 0x219   :  { %v2234_v59 = vmax.f32 %v2566_v55, 0.0  ;;  %v2568_v60 = vadd.f32 %v2229_v58, %v2014_v52  ;;  %v2231_v61 = vpop.f32.mrb[3].mxu0 }
 0x21a   :  { %v2235_v62 = vmax.f32 %v2567_v57, 0.0  ;;  %v2569_v63 = vadd.f32 %v2231_v61, %v2016_v53 }
 0x21b   :  { %v2236_v0 = vmax.f32 %v2568_v60, 0.0 }
 0x21c   :  { %v2564_v1 = vpack.c.bf16 %v2235_v62, %v2234_v59  ;;  %v2237_v2 = vmax.f32 %v2569_v63, 0.0 }
 0x21e   :  { %2250 = vst [vmem:[%s3998_s2] sm:$0xff] %v2564_v1  ;;  %v2565_v3 = vpack.c.bf16 %v2237_v2, %v2236_v0 }
 0x220   :  { %2251 = vst [vmem:[%s3998_s2 + $0x8] sm:$0xff] %v2565_v3 }

// kernel: light_flow_net.20
= control target key start
LH: loop header
LB: loop body
LE: loop exit
PB: predicated region body
PF: predicated region fallthrough
CT: control target
= control target key end

     0   :  { %vm526_vm0 = vcmask 404480   ;;  %s930_s1 = inlined_call_operand.vmem [shape: bf16[512,50], index: 1, kind: input, shape index: {}]   ;;  %s931_s0 = inlined_call_operand.vmem [shape: bf16[64,512], index: 0, kind: input, shape index: {}]   ;;  %s932_s2 = inlined_call_operand.vmem [shape: bf16[64,50], index: 2, kind: output, shape index: {}]  }
   0x1   :  { %v683_v0 = vld [vmem:[%s930_s1 + $0x40] sm:$0xff]   ;;  %v687_v4 = vld [vmem:[%s930_s1 + $0x48] sm:$0xff]   ;;  %v691_v8 = vld [vmem:[%s930_s1 + $0x50] sm:$0xff]  }
   0x2   :  { %v684_v1 = vld [vmem:[%s930_s1 + $0xc0] sm:$0xff]   ;;  %603 = vmatprep.subr.bf16.mxu0 %v683_v0  ;;  %v688_v5 = vld [vmem:[%s930_s1 + $0xc8] sm:$0xff]   ;;  %v692_v9 = vld [vmem:[%s930_s1 + $0xd0] sm:$0xff]  }
   0x3   :  { %v685_v2 = vld [vmem:[%s930_s1] sm:$0xff]   ;;  %643 = vmatprep.subr.bf16.mxu1 %v684_v1  ;;  %v689_v6 = vld [vmem:[%s930_s1 + $0x8] sm:$0xff]   ;;  %v693_v10 = vld [vmem:[%s930_s1 + $0x10] sm:$0xff]  }
   0x4   :  { %v686_v3 = vld [vmem:[%s930_s1 + $0x80] sm:$0xff]   ;;  %604 = vmatpush3.bf16.msra.mxu0 %v685_v2  ;;  %v690_v7 = vld [vmem:[%s930_s1 + $0x88] sm:$0xff]   ;;  %v694_v11 = vld [vmem:[%s930_s1 + $0x90] sm:$0xff]  }
   0x5   :  { %644 = vmatpush3.bf16.msra.mxu1 %v686_v3  ;;  %605 = vmatprep.subr.bf16.mxu0 %v687_v4  ;;  %v695_v12 = vld [vmem:[%s930_s1 + $0x58] sm:$0xff]   ;;  %v699_v16 = vld [vmem:[%s930_s1 + $0x60] sm:$0xff]   ;;  %v703_v20 = vld [vmem:[%s930_s1 + $0x68] sm:$0xff]  }
   0x6   :  { %645 = vmatprep.subr.bf16.mxu1 %v688_v5  ;;  %v696_v13 = vld [vmem:[%s930_s1 + $0xd8] sm:$0xff]   ;;  %v700_v17 = vld [vmem:[%s930_s1 + $0xe0] sm:$0xff]   ;;  %v704_v21 = vld [vmem:[%s930_s1 + $0xe8] sm:$0xff]  }
   0x7   :  { %v697_v14 = vld [vmem:[%s930_s1 + $0x18] sm:$0xff]   ;;  %v701_v18 = vld [vmem:[%s930_s1 + $0x20] sm:$0xff]   ;;  %v705_v22 = vld [vmem:[%s930_s1 + $0x28] sm:$0xff]  }
   0x8   :  { %606 = vmatpush3.bf16.msra.mxu0 %v689_v6  ;;  %v698_v15 = vld [vmem:[%s930_s1 + $0x98] sm:$0xff]   ;;  %v702_v19 = vld [vmem:[%s930_s1 + $0xa0] sm:$0xff]   ;;  %v706_v23 = vld [vmem:[%s930_s1 + $0xa8] sm:$0xff]  }
   0x9   :  { %646 = vmatpush3.bf16.msra.mxu1 %v690_v7  ;;  %607 = vmatprep.subr.bf16.mxu0 %v691_v8  ;;  %v707_v24 = vld [vmem:[%s930_s1 + $0x70] sm:$0xff]   ;;  %v711_v28 = vld [vmem:[%s930_s1 + $0x78] sm:$0xff]  }
   0xa   :  { %647 = vmatprep.subr.bf16.mxu1 %v692_v9  ;;  %v708_v25 = vld [vmem:[%s930_s1 + $0xf0] sm:$0xff]   ;;  %v712_v29 = vld [vmem:[%s930_s1 + $0xf8] sm:$0xff]  }
   0xb   :  { %v709_v26 = vld [vmem:[%s930_s1 + $0x30] sm:$0xff]   ;;  %v713_v30 = vld [vmem:[%s930_s1 + $0x38] sm:$0xff]  }
   0xc   :  { %608 = vmatpush3.bf16.msra.mxu0 %v693_v10  ;;  %v710_v27 = vld [vmem:[%s930_s1 + $0xb0] sm:$0xff]   ;;  %v714_v31 = vld [vmem:[%s930_s1 + $0xb8] sm:$0xff]  }
   0xd   :  { %648 = vmatpush3.bf16.msra.mxu1 %v694_v11  ;;  %609 = vmatprep.subr.bf16.mxu0 %v695_v12  ;;  %v715_v32 = vld [vmem:[%s931_s0] ss:$16 sps:$4 sm:$0xff]   ;;  %v717_v33 = vld [vmem:[%s931_s0 + $0x4] ss:$16 sps:$4 sm:$0xff]   ;;  %v718_v34 = vld [vmem:[%s931_s0 + $0x8] ss:$16 sps:$4 sm:$0xff]  }
   0xe   :  { %649 = vmatprep.subr.bf16.mxu1 %v696_v13  ;;  %v720_v35 = vld [vmem:[%s931_s0 + $0xc] ss:$16 sps:$4 sm:$0xff]   ;;  %396 = vmatprep.mubr.bf16.mxu0 %v717_v33  ;;  %v721_v36 = vld [vmem:[%s931_s0 + $0x24] ss:$16 sps:$4 sm:$0xff]   ;;  %v725_v38 = vld [vmem:[%s931_s0 + $0x20] ss:$16 sps:$4 sm:$0xff]  }
   0xf   :  { %461 = vmatprep.mubr.bf16.mxu1 %v720_v35  ;;  %v723_v37 = vld [vmem:[%s931_s0 + $0x2c] ss:$16 sps:$4 sm:$0xff]   ;;  %v726_v39 = vld [vmem:[%s931_s0 + $0x28] ss:$16 sps:$4 sm:$0xff]   ;;  %v727_v40 = vld [vmem:[%s931_s0 + $0x44] ss:$16 sps:$4 sm:$0xff]  }
  0x10   :  { %610 = vmatpush3.bf16.msra.mxu0 %v697_v14  ;;  %v729_v41 = vld [vmem:[%s931_s0 + $0x4c] ss:$16 sps:$4 sm:$0xff]   ;;  %v731_v42 = vld [vmem:[%s931_s0 + $0x40] ss:$16 sps:$4 sm:$0xff]   ;;  %v732_v43 = vld [vmem:[%s931_s0 + $0x48] ss:$16 sps:$4 sm:$0xff]  }
  0x11   :  { %650 = vmatpush3.bf16.msra.mxu1 %v698_v15  ;;  %611 = vmatprep.subr.bf16.mxu0 %v699_v16  ;;  %v733_v44 = vld [vmem:[%s931_s0 + $0x64] ss:$16 sps:$4 sm:$0xff]   ;;  %v735_v45 = vld [vmem:[%s931_s0 + $0x6c] ss:$16 sps:$4 sm:$0xff]   ;;  %v737_v46 = vld [vmem:[%s931_s0 + $0x60] ss:$16 sps:$4 sm:$0xff]  }
  0x12   :  { %651 = vmatprep.subr.bf16.mxu1 %v700_v17  ;;  %v738_v47 = vld [vmem:[%s931_s0 + $0x68] ss:$16 sps:$4 sm:$0xff]  }
  0x14   :  { %612 = vmatpush3.bf16.msra.mxu0 %v701_v18 }
  0x15   :  { %652 = vmatpush3.bf16.msra.mxu1 %v702_v19  ;;  %613 = vmatprep.subr.bf16.mxu0 %v703_v20 }
  0x16   :  { %653 = vmatprep.subr.bf16.mxu1 %v704_v21 }
  0x18   :  { %614 = vmatpush3.bf16.msra.mxu0 %v705_v22 }
  0x19   :  { %654 = vmatpush3.bf16.msra.mxu1 %v706_v23  ;;  %615 = vmatprep.subr.bf16.mxu0 %v707_v24 }
  0x1a   :  { %655 = vmatprep.subr.bf16.mxu1 %v708_v25 }
  0x1c   :  { %616 = vmatpush3.bf16.msra.mxu0 %v709_v26 }
  0x1d   :  { %656 = vmatpush3.bf16.msra.mxu1 %v710_v27  ;;  %617 = vmatprep.subr.bf16.mxu0 %v711_v28 }
  0x1e   :  { %657 = vmatprep.subr.bf16.mxu1 %v712_v29 }
  0x20   :  { %618 = vmatpush3.bf16.msra.mxu0 %v713_v30 }
  0x21   :  { %658 = vmatpush3.bf16.msra.mxu1 %v714_v31 }
  0x23   :  { %397 = vmatmul.mubr.bf16.vlgmr.msra.gmra.mrb[0].mxu0 %v715_v32 }
  0x24   :  { %462 = vmatmul.mubr.bf16.vlgmr.msra.gmra.mrb[0].mxu1 %v718_v34  ;;  %404 = vmatprep.mubr.bf16.mxu0 %v721_v36 }
  0x25   :  { %469 = vmatprep.mubr.bf16.mxu1 %v723_v37 }
  0x2b   :  { %405 = vmatmul.mubr.bf16.gmra.mrb[4].mxu0 %v725_v38 }
  0x2c   :  { %470 = vmatmul.mubr.bf16.gmra.mrb[4].mxu1 %v726_v39  ;;  %412 = vmatprep.mubr.bf16.mxu0 %v727_v40 }
  0x2d   :  { %477 = vmatprep.mubr.bf16.mxu1 %v729_v41 }
  0x33   :  { %413 = vmatmul.mubr.bf16.gmra.mrb[8].mxu0 %v731_v42 }
  0x34   :  { %478 = vmatmul.mubr.bf16.gmra.mrb[8].mxu1 %v732_v43  ;;  %420 = vmatprep.mubr.bf16.mxu0 %v733_v44 }
  0x35   :  { %485 = vmatprep.mubr.bf16.mxu1 %v735_v45 }
  0x3b   :  { %421 = vmatmul.mubr.bf16.gmra.mrb[12].mxu0 %v737_v46 }
  0x3c   :  { %486 = vmatmul.mubr.bf16.gmra.mrb[12].mxu1 %v738_v47 }
  0xf6   :  { %v619_v48 = vpop.f32.mrb[0].mxu0 }
  0xf7   :  { %v659_v49 = vpop.f32.mrb[0].mxu1  ;;  %v620_v50 = vpop.f32.mrb[1].mxu0 }
  0xf8   :  { %v621_v51 = vadd.f32 %v620_v50, %v619_v48  ;;  %v660_v52 = vpop.f32.mrb[1].mxu1  ;;  %v622_v53 = vpop.f32.mrb[2].mxu0 }
  0xf9   :  { %v661_v54 = vadd.f32 %v660_v52, %v659_v49  ;;  %v662_v55 = vpop.f32.mrb[2].mxu1  ;;  %v623_v56 = vpop.f32.mrb[3].mxu0 }
  0xfa   :  { %v624_v57 = vadd.f32 %v623_v56, %v622_v53  ;;  %v663_v58 = vpop.f32.mrb[3].mxu1 }
  0xfb   :  { %v464_v59 = vadd.f32 %v661_v54, %v621_v51  ;;  %v664_v60 = vadd.f32 %v663_v58, %v662_v55 }
  0xfd   :  { %v595_v61 = vpack.c.bf16 %v464_v59, %v464_v59  ;;  %v467_v62 = vadd.f32 %v664_v60, %v624_v57 }
  0xfe   :  { %v625_v63 = vpop.f32.mrb[4].mxu0 }
  0xff   :  { %527 = vst.msk [vmem:[%s932_s2] sm:$0xf] %vm526_vm0, %v595_v61  ;;  %v596_v0 = vpack.c.bf16 %v467_v62, %v467_v62  ;;  %v665_v1 = vpop.f32.mrb[4].mxu1  ;;  %v626_v2 = vpop.f32.mrb[5].mxu0 }
 0x100   :  { %v627_v3 = vadd.f32 %v626_v2, %v625_v63  ;;  %v666_v4 = vpop.f32.mrb[5].mxu1  ;;  %v628_v5 = vpop.f32.mrb[6].mxu0 }
 0x101   :  { %528 = vst.msk [vmem:[%s932_s2 + $0x4] sm:$0xf] %vm526_vm0, %v596_v0  ;;  %v667_v6 = vadd.f32 %v666_v4, %v665_v1  ;;  %v668_v7 = vpop.f32.mrb[6].mxu1  ;;  %v629_v8 = vpop.f32.mrb[7].mxu0 }
 0x102   :  { %v630_v9 = vadd.f32 %v629_v8, %v628_v5  ;;  %v669_v10 = vpop.f32.mrb[7].mxu1 }
 0x103   :  { %v472_v11 = vadd.f32 %v667_v6, %v627_v3  ;;  %v670_v12 = vadd.f32 %v669_v10, %v668_v7 }
 0x105   :  { %v597_v13 = vpack.c.bf16 %v472_v11, %v472_v11  ;;  %v475_v14 = vadd.f32 %v670_v12, %v630_v9 }
 0x106   :  { %v631_v15 = vpop.f32.mrb[8].mxu0 }
 0x107   :  { %529 = vst.msk [vmem:[%s932_s2 + $0x8] sm:$0xf] %vm526_vm0, %v597_v13  ;;  %v598_v16 = vpack.c.bf16 %v475_v14, %v475_v14  ;;  %v671_v17 = vpop.f32.mrb[8].mxu1  ;;  %v632_v18 = vpop.f32.mrb[9].mxu0 }
 0x108   :  { %v633_v19 = vadd.f32 %v632_v18, %v631_v15  ;;  %v672_v20 = vpop.f32.mrb[9].mxu1  ;;  %v634_v21 = vpop.f32.mrb[10].mxu0 }
 0x109   :  { %530 = vst.msk [vmem:[%s932_s2 + $0xc] sm:$0xf] %vm526_vm0, %v598_v16  ;;  %v673_v22 = vadd.f32 %v672_v20, %v671_v17  ;;  %v674_v23 = vpop.f32.mrb[10].mxu1  ;;  %v635_v24 = vpop.f32.mrb[11].mxu0 }
 0x10a   :  { %v636_v25 = vadd.f32 %v635_v24, %v634_v21  ;;  %v675_v26 = vpop.f32.mrb[11].mxu1 }
 0x10b   :  { %v480_v27 = vadd.f32 %v673_v22, %v633_v19  ;;  %v676_v28 = vadd.f32 %v675_v26, %v674_v23 }
 0x10d   :  { %v599_v29 = vpack.c.bf16 %v480_v27, %v480_v27  ;;  %v483_v30 = vadd.f32 %v676_v28, %v636_v25 }
 0x10e   :  { %v637_v31 = vpop.f32.mrb[12].mxu0 }
 0x10f   :  { %531 = vst.msk [vmem:[%s932_s2 + $0x10] sm:$0xf] %vm526_vm0, %v599_v29  ;;  %v600_v32 = vpack.c.bf16 %v483_v30, %v483_v30  ;;  %v677_v33 = vpop.f32.mrb[12].mxu1  ;;  %v638_v34 = vpop.f32.mrb[13].mxu0 }
 0x110   :  { %v639_v35 = vadd.f32 %v638_v34, %v637_v31  ;;  %v678_v36 = vpop.f32.mrb[13].mxu1  ;;  %v640_v37 = vpop.f32.mrb[14].mxu0 }
 0x111   :  { %532 = vst.msk [vmem:[%s932_s2 + $0x14] sm:$0xf] %vm526_vm0, %v600_v32  ;;  %v679_v38 = vadd.f32 %v678_v36, %v677_v33  ;;  %v680_v39 = vpop.f32.mrb[14].mxu1  ;;  %v641_v40 = vpop.f32.mrb[15].mxu0 }
 0x112   :  { %v642_v41 = vadd.f32 %v641_v40, %v640_v37  ;;  %v681_v42 = vpop.f32.mrb[15].mxu1 }
 0x113   :  { %v488_v43 = vadd.f32 %v679_v38, %v639_v35  ;;  %v682_v44 = vadd.f32 %v681_v42, %v680_v39 }
 0x115   :  { %v601_v45 = vpack.c.bf16 %v488_v43, %v488_v43  ;;  %v491_v46 = vadd.f32 %v682_v44, %v642_v41 }
 0x117   :  { %533 = vst.msk [vmem:[%s932_s2 + $0x18] sm:$0xf] %vm526_vm0, %v601_v45  ;;  %v602_v47 = vpack.c.bf16 %v491_v46, %v491_v46 }
 0x119   :  { %534 = vst.msk [vmem:[%s932_s2 + $0x1c] sm:$0xf] %vm526_vm0, %v602_v47 }

// kernel: light_flow_net.21
= control target key start
LH: loop header
LB: loop body
LE: loop exit
PB: predicated region body
PF: predicated region fallthrough
CT: control target
= control target key end

     0   :  { %s377_s6 = smov 0   ;;  %s412_s0 = inlined_call_operand.vmem [shape: bf16[2,5,5,50], index: 0, kind: input, shape index: {}]   ;;  %s413_s1 = inlined_call_operand.vmem [shape: f32[2,1,1,2], index: 1, kind: output, shape index: {}]  }
   0x1 LB: > { %s294_s7 = sadd.s32 4294967295, %s341_s6   ;;  %p298_p0 = scmp.ge.s32.totalorder %s341_s6, 1  ;;  %s341_s6 = sphi %s377_s6, %s11_s6  }
   0x2   : > { %p87_p1 = scmp.lt.s32.totalorder %s341_s6, 3 }
   0x4   : > { %p88_p2 = pnand %p298_p0, %p87_p1 }
   0x5   : > { %p105_p3 = scmp.lt.s32.totalorder (!%p88_p2), %s294_s7, 1  ;;  %s343_s12 = smov (!%p88_p2), 126   ;;  %vm245_vm0 = vcmask (!%p88_p2), 8192  }
   0x6   : > { %91 = sbr.rel (%p88_p2) target bundleno = 188 (0xbc), region = 24  ;;  %s344_s13 = smov (!%p88_p2), 122  }
   0x7   : > { %s345_s14 = smov (!%p88_p2), 124   ;;  %s346_s15 = smov (!%p88_p2), 120  }
   0x8   : > { %s347_s16 = smov (!%p88_p2), 118   ;;  %s348_s17 = smov (!%p88_p2), 116  }
   0x9   : > { %s349_s18 = smov (!%p88_p2), 114   ;;  %s350_s19 = smov (!%p88_p2), 112  }
   0xa   : > { %s351_s20 = smov (!%p88_p2), 110   ;;  %s352_s21 = smov (!%p88_p2), 108  }
   0xb   : > { %s353_s22 = smov (!%p88_p2), 106   ;;  %s354_s23 = smov (!%p88_p2), 104  }
   0xc   : > { %s355_s24 = smov (!%p88_p2), 102   ;;  %s356_s25 = smov (!%p88_p2), 100  }
   0xd   : > { %s415_s7 = smov (!%p105_p3, %s294_s7), 1  ;;  %s357_s26 = smov 98  }
   0xe   : > { %s302_s8 = smul.u32 20, %s415_s7  ;;  %s358_s27 = smov 96  }
   0xf   : > { %s359_s28 = smov 94   ;;  %s360_s29 = smov 92  }
  0x10   : > { %s391_s11 = scalar_lea.vmem %s412_s0, %s302_s8  ;;  %s361_s30 = smov 90  }
  0x11   : > { %v113_v0 = vld [vmem:[%s391_s11] sm:$0x7]  ;;  %v114_v2 = vld [vmem:[%s391_s11 + $0x4] sm:$0x7]  ;;  %v115_v11 = vld [vmem:[%s391_s11 + $0x8] sm:$0x7] }
  0x12   : > { %v394_v1 = vunpack.c.l.bf16 %v113_v0  ;;  %v141_v7 = vunpack.c.l.bf16 %v114_v2  ;;  %v167_v13 = vunpack.c.l.bf16 %v115_v11  ;;  %v116_v16 = vld [vmem:[%s391_s11 + $0xc] sm:$0x7]  ;;  %v117_v23 = vld [vmem:[%s391_s11 + $0x10] sm:$0x7]  ;;  %s362_s2 = smov 88   ;;  %s363_s3 = smov 86  }
  0x13   : > { %v193_v19 = vunpack.c.l.bf16 %v116_v16  ;;  %v219_v25 = vunpack.c.l.bf16 %v117_v23  ;;  %s364_s4 = smov 84   ;;  %s365_s5 = smov 82  }
  0x14   : > { %v121_v3 = vrot.slane %v394_v1, 1  ;;  %v131_v4 = vrot.slane %v394_v1, 3  ;;  %v126_v5 = vrot.slane %v394_v1, 2  ;;  %v136_v6 = vrot.slane %v394_v1, 4  ;;  %s366_s8 = smov 80   ;;  %s112_s11 = scalar_lea.vmem %s413_s1, %s415_s7 }
  0x15   : > { %v147_v8 = vrot.slane %v141_v7, 1  ;;  %v152_v9 = vrot.slane %v141_v7, 2  ;;  %v157_v10 = vrot.slane %v141_v7, 3  ;;  %v162_v12 = vrot.slane %v141_v7, 4 }
  0x16   : > { %122 = vrot.lane.b32.xlu0 %v121_v3, %s343_s12  ;;  %132 = vrot.lane.b32.xlu1 %v131_v4, %s344_s13  ;;  %v173_v14 = vrot.slane %v167_v13, 1  ;;  %v178_v15 = vrot.slane %v167_v13, 2  ;;  %v183_v17 = vrot.slane %v167_v13, 3  ;;  %v188_v18 = vrot.slane %v167_v13, 4 }
  0x17   : > { %v199_v20 = vrot.slane %v193_v19, 1  ;;  %v204_v21 = vrot.slane %v193_v19, 2  ;;  %v209_v22 = vrot.slane %v193_v19, 3  ;;  %v214_v24 = vrot.slane %v193_v19, 4 }
  0x18   : > { %v225_v26 = vrot.slane %v219_v25, 1  ;;  %v230_v27 = vrot.slane %v219_v25, 2  ;;  %v235_v28 = vrot.slane %v219_v25, 3  ;;  %v240_v29 = vrot.slane %v219_v25, 4 }
  0x1a   : > { %127 = vrot.lane.b32.xlu0 %v126_v5, %s345_s14  ;;  %137 = vrot.lane.b32.xlu1 %v136_v6, %s346_s15 }
  0x1e   : > { %143 = vrot.lane.b32.xlu0 %v141_v7, %s347_s16  ;;  %148 = vrot.lane.b32.xlu1 %v147_v8, %s348_s17 }
  0x22   : > { %153 = vrot.lane.b32.xlu0 %v152_v9, %s349_s18  ;;  %158 = vrot.lane.b32.xlu1 %v157_v10, %s350_s19 }
  0x26   : > { %163 = vrot.lane.b32.xlu0 %v162_v12, %s351_s20  ;;  %169 = vrot.lane.b32.xlu1 %v167_v13, %s352_s21 }
  0x2a   : > { %174 = vrot.lane.b32.xlu0 %v173_v14, %s353_s22  ;;  %179 = vrot.lane.b32.xlu1 %v178_v15, %s354_s23 }
  0x2e   : > { %184 = vrot.lane.b32.xlu0 %v183_v17, %s355_s24  ;;  %189 = vrot.lane.b32.xlu1 %v188_v18, %s356_s25 }
  0x32   : > { %195 = vrot.lane.b32.xlu0 %v193_v19, %s357_s26  ;;  %200 = vrot.lane.b32.xlu1 %v199_v20, %s358_s27 }
  0x36   : > { %205 = vrot.lane.b32.xlu0 %v204_v21, %s359_s28  ;;  %210 = vrot.lane.b32.xlu1 %v209_v22, %s360_s29 }
  0x3a   : > { %215 = vrot.lane.b32.xlu0 %v214_v24, %s361_s30  ;;  %221 = vrot.lane.b32.xlu1 %v219_v25, %s362_s2 }
  0x3e   : > { %226 = vrot.lane.b32.xlu0 %v225_v26, %s363_s3  ;;  %231 = vrot.lane.b32.xlu1 %v230_v27, %s364_s4 }
  0x42   : > { %236 = vrot.lane.b32.xlu0 %v235_v28, %s365_s5  ;;  %241 = vrot.lane.b32.xlu1 %v240_v29, %s366_s8 }
  0x88   : > { %v123_v30 = vpop.permute.xlu0 %122  ;;  %v133_v31 = vpop.permute.xlu1 %132 }
  0x89   : > { %v125_v32 = vadd.f32 %v123_v30, %v394_v1 }
  0x8c   : > { %v128_v33 = vpop.permute.xlu0 %127  ;;  %v138_v34 = vpop.permute.xlu1 %137 }
  0x8d   : > { %v130_v35 = vadd.f32 %v128_v33, %v125_v32 }
  0x8f   : > { %v135_v36 = vadd.f32 %v133_v31, %v130_v35 }
  0x90   : > { %v144_v37 = vpop.permute.xlu0 %143  ;;  %v149_v38 = vpop.permute.xlu1 %148 }
  0x91   : > { %v140_v39 = vadd.f32 %v138_v34, %v135_v36 }
  0x93   : > { %v146_v40 = vadd.f32 %v144_v37, %v140_v39 }
  0x94   : > { %v154_v41 = vpop.permute.xlu0 %153  ;;  %v159_v42 = vpop.permute.xlu1 %158 }
  0x95   : > { %v151_v43 = vadd.f32 %v149_v38, %v146_v40 }
  0x97   : > { %v156_v44 = vadd.f32 %v154_v41, %v151_v43 }
  0x98   : > { %v164_v45 = vpop.permute.xlu0 %163  ;;  %v170_v46 = vpop.permute.xlu1 %169 }
  0x99   : > { %v161_v47 = vadd.f32 %v159_v42, %v156_v44 }
  0x9b   : > { %v166_v48 = vadd.f32 %v164_v45, %v161_v47 }
  0x9c   : > { %v175_v49 = vpop.permute.xlu0 %174  ;;  %v180_v50 = vpop.permute.xlu1 %179 }
  0x9d   : > { %v172_v51 = vadd.f32 %v170_v46, %v166_v48 }
  0x9f   : > { %v177_v52 = vadd.f32 %v175_v49, %v172_v51 }
  0xa0   : > { %v185_v53 = vpop.permute.xlu0 %184  ;;  %v190_v54 = vpop.permute.xlu1 %189 }
  0xa1   : > { %v182_v55 = vadd.f32 %v180_v50, %v177_v52 }
  0xa3   : > { %v187_v56 = vadd.f32 %v185_v53, %v182_v55 }
  0xa4   : > { %v196_v57 = vpop.permute.xlu0 %195  ;;  %v201_v58 = vpop.permute.xlu1 %200 }
  0xa5   : > { %v192_v59 = vadd.f32 %v190_v54, %v187_v56 }
  0xa7   : > { %v198_v60 = vadd.f32 %v196_v57, %v192_v59 }
  0xa8   : > { %v206_v61 = vpop.permute.xlu0 %205  ;;  %v211_v62 = vpop.permute.xlu1 %210 }
  0xa9   : > { %v203_v63 = vadd.f32 %v201_v58, %v198_v60 }
  0xab   : > { %v208_v0 = vadd.f32 %v206_v61, %v203_v63 }
  0xac   : > { %v216_v1 = vpop.permute.xlu0 %215  ;;  %v222_v2 = vpop.permute.xlu1 %221 }
  0xad   : > { %v213_v3 = vadd.f32 %v211_v62, %v208_v0 }
  0xaf   : > { %v218_v4 = vadd.f32 %v216_v1, %v213_v3 }
  0xb0   : > { %v227_v5 = vpop.permute.xlu0 %226  ;;  %v232_v6 = vpop.permute.xlu1 %231 }
  0xb1   : > { %v224_v7 = vadd.f32 %v222_v2, %v218_v4 }
  0xb3   : > { %v229_v8 = vadd.f32 %v227_v5, %v224_v7 }
  0xb4   : > { %v237_v9 = vpop.permute.xlu0 %236  ;;  %v242_v11 = vpop.permute.xlu1 %241 }
  0xb5   : > { %v234_v10 = vadd.f32 %v232_v6, %v229_v8 }
  0xb7   : > { %v239_v12 = vadd.f32 %v237_v9, %v234_v10 }
  0xb9   : > { %v244_v13 = vadd.f32 %v242_v11, %v239_v12 }
  0xbb   : > { %246 = vst.msk [vmem:[%s112_s11] sm:$0x1] %vm245_vm0, %v244_v13 }
  0xbc PF: > { %s11_s6 = sadd.s32 1, %s341_s6  }
  0xbd   : > { %p8_p4 = scmp.ge.s32.totalorder %s11_s6, 4  }
  0xbf   :  { %10 = sbr.rel (!%p8_p4) target bundleno = 1 (0x1), region = 54 }

// kernel: light_flow_net.23
= control target key start
LH: loop header
LB: loop body
LE: loop exit
PB: predicated region body
PF: predicated region fallthrough
CT: control target
= control target key end

     0   :  { %s6934_s1 = inlined_call_operand.vmem [shape: bf16[2048,512], index: 1, kind: input, shape index: {}]   ;;  %s6935_s0 = inlined_call_operand.vmem [shape: bf16[16,2048], index: 0, kind: input, shape index: {}]   ;;  %s6936_s2 = inlined_call_operand.vmem [shape: bf16[16,512], index: 2, kind: output, shape index: {}]  }
   0x1   :  { %v4499_v0 = vld [vmem:[%s6934_s1 + $0x4] ss:$16 sps:$4 sm:$0xff]   ;;  %v4501_v1 = vld [vmem:[%s6934_s1 + $0xc] ss:$16 sps:$4 sm:$0xff]   ;;  %v4503_v2 = vld [vmem:[%s6934_s1] ss:$16 sps:$4 sm:$0xff]  }
   0x2   :  { %3179 = vmatprep.subr.bf16.mxu0 %v4499_v0  ;;  %v4504_v3 = vld [vmem:[%s6934_s1 + $0x8] ss:$16 sps:$4 sm:$0xff]   ;;  %3523 = vmatprep.subr.bf16.mxu1 %v4501_v1  ;;  %v4505_v4 = vld [vmem:[%s6934_s1 + $0x24] ss:$16 sps:$4 sm:$0xff]   ;;  %v4507_v5 = vld [vmem:[%s6934_s1 + $0x2c] ss:$16 sps:$4 sm:$0xff]  }
   0x3   :  { %3180 = vmatpush1.bf16.msra.mxu0 %v4503_v2  ;;  %3524 = vmatpush1.bf16.msra.mxu1 %v4504_v3  ;;  %v4509_v6 = vld [vmem:[%s6934_s1 + $0x20] ss:$16 sps:$4 sm:$0xff]   ;;  %v4510_v7 = vld [vmem:[%s6934_s1 + $0x28] ss:$16 sps:$4 sm:$0xff]   ;;  %v4511_v8 = vld [vmem:[%s6934_s1 + $0x44] ss:$16 sps:$4 sm:$0xff]  }
   0x4   :  { %3181 = vmatprep.subr.bf16.mxu0 %v4505_v4  ;;  %3525 = vmatprep.subr.bf16.mxu1 %v4507_v5  ;;  %v4513_v9 = vld [vmem:[%s6934_s1 + $0x4c] ss:$16 sps:$4 sm:$0xff]   ;;  %v4515_v10 = vld [vmem:[%s6934_s1 + $0x40] ss:$16 sps:$4 sm:$0xff]   ;;  %v4516_v11 = vld [vmem:[%s6934_s1 + $0x48] ss:$16 sps:$4 sm:$0xff]  }
   0x5   :  { %v4517_v12 = vld [vmem:[%s6934_s1 + $0x64] ss:$16 sps:$4 sm:$0xff]   ;;  %v4519_v13 = vld [vmem:[%s6934_s1 + $0x6c] ss:$16 sps:$4 sm:$0xff]   ;;  %v4521_v14 = vld [vmem:[%s6934_s1 + $0x60] ss:$16 sps:$4 sm:$0xff]  }
   0x6   :  { %v4522_v15 = vld [vmem:[%s6934_s1 + $0x68] ss:$16 sps:$4 sm:$0xff]   ;;  %v4523_v16 = vld [vmem:[%s6934_s1 + $0x84] ss:$16 sps:$4 sm:$0xff]   ;;  %v4525_v17 = vld [vmem:[%s6934_s1 + $0x8c] ss:$16 sps:$4 sm:$0xff]  }
   0x7   :  { %3182 = vmatpush1.bf16.msra.mxu0 %v4509_v6  ;;  %3526 = vmatpush1.bf16.msra.mxu1 %v4510_v7  ;;  %v4527_v18 = vld [vmem:[%s6934_s1 + $0x80] ss:$16 sps:$4 sm:$0xff]   ;;  %v4528_v19 = vld [vmem:[%s6934_s1 + $0x88] ss:$16 sps:$4 sm:$0xff]   ;;  %v4529_v20 = vld [vmem:[%s6934_s1 + $0xa4] ss:$16 sps:$4 sm:$0xff]  }
   0x8   :  { %3183 = vmatprep.subr.bf16.mxu0 %v4511_v8  ;;  %3527 = vmatprep.subr.bf16.mxu1 %v4513_v9  ;;  %v4531_v21 = vld [vmem:[%s6934_s1 + $0xac] ss:$16 sps:$4 sm:$0xff]   ;;  %v4533_v22 = vld [vmem:[%s6934_s1 + $0xa0] ss:$16 sps:$4 sm:$0xff]   ;;  %v4534_v23 = vld [vmem:[%s6934_s1 + $0xa8] ss:$16 sps:$4 sm:$0xff]  }
   0x9   :  { %v4535_v24 = vld [vmem:[%s6934_s1 + $0xc4] ss:$16 sps:$4 sm:$0xff]   ;;  %v4537_v25 = vld [vmem:[%s6934_s1 + $0xcc] ss:$16 sps:$4 sm:$0xff]   ;;  %v4539_v26 = vld [vmem:[%s6934_s1 + $0xc0] ss:$16 sps:$4 sm:$0xff]  }
   0xa   :  { %v4540_v27 = vld [vmem:[%s6934_s1 + $0xc8] ss:$16 sps:$4 sm:$0xff]   ;;  %v4541_v28 = vld [vmem:[%s6934_s1 + $0xe4] ss:$16 sps:$4 sm:$0xff]   ;;  %v4543_v29 = vld [vmem:[%s6934_s1 + $0xec] ss:$16 sps:$4 sm:$0xff]  }
   0xb   :  { %3184 = vmatpush1.bf16.msra.mxu0 %v4515_v10  ;;  %3528 = vmatpush1.bf16.msra.mxu1 %v4516_v11  ;;  %v4545_v30 = vld [vmem:[%s6934_s1 + $0xe0] ss:$16 sps:$4 sm:$0xff]   ;;  %v4546_v31 = vld [vmem:[%s6934_s1 + $0xe8] ss:$16 sps:$4 sm:$0xff]   ;;  %v4547_v32 = vld [vmem:[%s6934_s1 + $0x104] ss:$16 sps:$4 sm:$0xff]  }
   0xc   :  { %3185 = vmatprep.subr.bf16.mxu0 %v4517_v12  ;;  %3529 = vmatprep.subr.bf16.mxu1 %v4519_v13  ;;  %v4549_v33 = vld [vmem:[%s6934_s1 + $0x10c] ss:$16 sps:$4 sm:$0xff]   ;;  %v4551_v34 = vld [vmem:[%s6934_s1 + $0x100] ss:$16 sps:$4 sm:$0xff]   ;;  %v4552_v35 = vld [vmem:[%s6934_s1 + $0x108] ss:$16 sps:$4 sm:$0xff]  }
   0xd   :  { %v4553_v36 = vld [vmem:[%s6934_s1 + $0x124] ss:$16 sps:$4 sm:$0xff]   ;;  %v4555_v37 = vld [vmem:[%s6934_s1 + $0x12c] ss:$16 sps:$4 sm:$0xff]   ;;  %v4557_v38 = vld [vmem:[%s6934_s1 + $0x120] ss:$16 sps:$4 sm:$0xff]  }
   0xe   :  { %v4558_v39 = vld [vmem:[%s6934_s1 + $0x128] ss:$16 sps:$4 sm:$0xff]   ;;  %v4559_v40 = vld [vmem:[%s6934_s1 + $0x144] ss:$16 sps:$4 sm:$0xff]   ;;  %v4561_v41 = vld [vmem:[%s6934_s1 + $0x14c] ss:$16 sps:$4 sm:$0xff]  }
   0xf   :  { %3186 = vmatpush1.bf16.msra.mxu0 %v4521_v14  ;;  %3530 = vmatpush1.bf16.msra.mxu1 %v4522_v15  ;;  %v4563_v42 = vld [vmem:[%s6934_s1 + $0x140] ss:$16 sps:$4 sm:$0xff]   ;;  %v4564_v43 = vld [vmem:[%s6934_s1 + $0x148] ss:$16 sps:$4 sm:$0xff]   ;;  %v4565_v44 = vld [vmem:[%s6934_s1 + $0x164] ss:$16 sps:$4 sm:$0xff]  }
  0x10   :  { %3187 = vmatprep.subr.bf16.mxu0 %v4523_v16  ;;  %3531 = vmatprep.subr.bf16.mxu1 %v4525_v17  ;;  %v4567_v45 = vld [vmem:[%s6934_s1 + $0x16c] ss:$16 sps:$4 sm:$0xff]   ;;  %v11_v46 = vld [vmem:[%s6935_s0] sm:$0xff]  ;;  %v4570_v49 = vld [vmem:[%s6934_s1 + $0x168] ss:$16 sps:$4 sm:$0xff]  }
  0x11   :  { %v19_v47 = vld [vmem:[%s6935_s0 + $0x40] sm:$0xff]  ;;  %v4573_v52 = vld [vmem:[%s6934_s1 + $0x18c] ss:$16 sps:$4 sm:$0xff]   ;;  %v4576_v54 = vld [vmem:[%s6934_s1 + $0x188] ss:$16 sps:$4 sm:$0xff]  }
  0x12   :  { %v4569_v48 = vld [vmem:[%s6934_s1 + $0x160] ss:$16 sps:$4 sm:$0xff]   ;;  %v3908_v50 = vcombine.high %v11_v46, %v19_v47  ;;  %v4571_v51 = vld [vmem:[%s6934_s1 + $0x184] ss:$16 sps:$4 sm:$0xff]   ;;  %v4579_v56 = vld [vmem:[%s6934_s1 + $0x1ac] ss:$16 sps:$4 sm:$0xff]   ;;  %v3907_v5 = vcombine.low %v11_v46, %v19_v47 }
  0x13   :  { %3188 = vmatpush1.bf16.msra.mxu0 %v4527_v18  ;;  %3532 = vmatpush1.bf16.msra.mxu1 %v4528_v19  ;;  %v4575_v53 = vld [vmem:[%s6934_s1 + $0x180] ss:$16 sps:$4 sm:$0xff]   ;;  %v4577_v55 = vld [vmem:[%s6934_s1 + $0x1a4] ss:$16 sps:$4 sm:$0xff]   ;;  %v4582_v58 = vld [vmem:[%s6934_s1 + $0x1a8] ss:$16 sps:$4 sm:$0xff]  }
  0x14   :  { %3189 = vmatprep.subr.bf16.mxu0 %v4529_v20  ;;  %3533 = vmatprep.subr.bf16.mxu1 %v4531_v21  ;;  %v4581_v57 = vld [vmem:[%s6934_s1 + $0x1a0] ss:$16 sps:$4 sm:$0xff]   ;;  %v4583_v59 = vld [vmem:[%s6934_s1 + $0x1c4] ss:$16 sps:$4 sm:$0xff]   ;;  %v4585_v60 = vld [vmem:[%s6934_s1 + $0x1cc] ss:$16 sps:$4 sm:$0xff]  }
  0x15   :  { %3211 = vmatprep.mubr.bf16.mxu0 %v3908_v50  ;;  %3555 = vmatprep.mubr.bf16.mxu1 %v3908_v50  ;;  %v4587_v61 = vld [vmem:[%s6934_s1 + $0x1c0] ss:$16 sps:$4 sm:$0xff]   ;;  %v4588_v62 = vld [vmem:[%s6934_s1 + $0x1c8] ss:$16 sps:$4 sm:$0xff]   ;;  %v4589_v63 = vld [vmem:[%s6934_s1 + $0x1e4] ss:$16 sps:$4 sm:$0xff]  }
  0x16   :  { %v4591_v0 = vld [vmem:[%s6934_s1 + $0x1ec] ss:$16 sps:$4 sm:$0xff]   ;;  %v4593_v1 = vld [vmem:[%s6934_s1 + $0x1e0] ss:$16 sps:$4 sm:$0xff]   ;;  %v4594_v2 = vld [vmem:[%s6934_s1 + $0x1e8] ss:$16 sps:$4 sm:$0xff]  }
  0x17   :  { %3190 = vmatpush1.bf16.msra.mxu0 %v4533_v22  ;;  %3534 = vmatpush1.bf16.msra.mxu1 %v4534_v23  ;;  %v4597_v3 = vld [vmem:[%s6934_s1 + $0x204] ss:$16 sps:$4 sm:$0xff]   ;;  %v4600_v4 = vld [vmem:[%s6934_s1 + $0x20c] ss:$16 sps:$4 sm:$0xff]   ;;  %v4595_v6 = vld [vmem:[%s6934_s1 + $0x200] ss:$16 sps:$4 sm:$0xff]  }
  0x18   :  { %3191 = vmatprep.subr.bf16.mxu0 %v4535_v24  ;;  %3535 = vmatprep.subr.bf16.mxu1 %v4537_v25  ;;  %v4598_v7 = vld [vmem:[%s6934_s1 + $0x208] ss:$16 sps:$4 sm:$0xff]   ;;  %v4603_v8 = vld [vmem:[%s6934_s1 + $0x224] ss:$16 sps:$4 sm:$0xff]   ;;  %v4606_v9 = vld [vmem:[%s6934_s1 + $0x22c] ss:$16 sps:$4 sm:$0xff]  }
  0x19   :  { %v4601_v10 = vld [vmem:[%s6934_s1 + $0x220] ss:$16 sps:$4 sm:$0xff]   ;;  %v4604_v11 = vld [vmem:[%s6934_s1 + $0x228] ss:$16 sps:$4 sm:$0xff]   ;;  %v4609_v12 = vld [vmem:[%s6934_s1 + $0x244] ss:$16 sps:$4 sm:$0xff]  }
  0x1a   :  { %v4612_v13 = vld [vmem:[%s6934_s1 + $0x24c] ss:$16 sps:$4 sm:$0xff]   ;;  %v4607_v14 = vld [vmem:[%s6934_s1 + $0x240] ss:$16 sps:$4 sm:$0xff]   ;;  %v4610_v15 = vld [vmem:[%s6934_s1 + $0x248] ss:$16 sps:$4 sm:$0xff]  }
  0x1b   :  { %3192 = vmatpush1.bf16.msra.mxu0 %v4539_v26  ;;  %3536 = vmatpush1.bf16.msra.mxu1 %v4540_v27  ;;  %v4615_v16 = vld [vmem:[%s6934_s1 + $0x264] ss:$16 sps:$4 sm:$0xff]   ;;  %v4618_v17 = vld [vmem:[%s6934_s1 + $0x26c] ss:$16 sps:$4 sm:$0xff]   ;;  %v4613_v18 = vld [vmem:[%s6934_s1 + $0x260] ss:$16 sps:$4 sm:$0xff]  }
  0x1c   :  { %3193 = vmatprep.subr.bf16.mxu0 %v4541_v28  ;;  %3537 = vmatprep.subr.bf16.mxu1 %v4543_v29  ;;  %v4616_v19 = vld [vmem:[%s6934_s1 + $0x268] ss:$16 sps:$4 sm:$0xff]   ;;  %v4621_v20 = vld [vmem:[%s6934_s1 + $0x284] ss:$16 sps:$4 sm:$0xff]   ;;  %v4624_v21 = vld [vmem:[%s6934_s1 + $0x28c] ss:$16 sps:$4 sm:$0xff]  }
  0x1d   :  { %v4619_v22 = vld [vmem:[%s6934_s1 + $0x280] ss:$16 sps:$4 sm:$0xff]   ;;  %v4622_v23 = vld [vmem:[%s6934_s1 + $0x288] ss:$16 sps:$4 sm:$0xff]   ;;  %v4627_v24 = vld [vmem:[%s6934_s1 + $0x2a4] ss:$16 sps:$4 sm:$0xff]  }
  0x1e   :  { %v4630_v25 = vld [vmem:[%s6934_s1 + $0x2ac] ss:$16 sps:$4 sm:$0xff]   ;;  %v4625_v26 = vld [vmem:[%s6934_s1 + $0x2a0] ss:$16 sps:$4 sm:$0xff]   ;;  %v4628_v27 = vld [vmem:[%s6934_s1 + $0x2a8] ss:$16 sps:$4 sm:$0xff]  }
  0x1f   :  { %3194 = vmatpush1.bf16.msra.mxu0 %v4545_v30  ;;  %3538 = vmatpush1.bf16.msra.mxu1 %v4546_v31  ;;  %v4633_v28 = vld [vmem:[%s6934_s1 + $0x2c4] ss:$16 sps:$4 sm:$0xff]   ;;  %v4636_v29 = vld [vmem:[%s6934_s1 + $0x2cc] ss:$16 sps:$4 sm:$0xff]   ;;  %v4652_v46 = vld [vmem:[%s6934_s1 + $0x328] ss:$16 sps:$4 sm:$0xff]  }
  0x20   :  { %3195 = vmatprep.subr.bf16.mxu0 %v4547_v32  ;;  %3539 = vmatprep.subr.bf16.mxu1 %v4549_v33  ;;  %v5561_v30 = vld [vmem:[%s6935_s0 + $0x8] sm:$0xff]  ;;  %v4631_v32 = vld [vmem:[%s6934_s1 + $0x2c0] ss:$16 sps:$4 sm:$0xff]   ;;  %v4657_v47 = vld [vmem:[%s6934_s1 + $0x344] ss:$16 sps:$4 sm:$0xff]  }
  0x21   :  { %v5566_v31 = vld [vmem:[%s6935_s0 + $0x48] sm:$0xff] }
  0x22   :  { %v4634_v33 = vld [vmem:[%s6934_s1 + $0x2c8] ss:$16 sps:$4 sm:$0xff]  }
  0x23   :  { %3196 = vmatpush1.bf16.msra.mxu0 %v4551_v34  ;;  %3540 = vmatpush1.bf16.msra.mxu1 %v4552_v35  ;;  %v3910_v34 = vcombine.high %v5561_v30, %v5566_v31  ;;  %v4639_v35 = vld [vmem:[%s6934_s1 + $0x2e4] ss:$16 sps:$4 sm:$0xff]   ;;  %v4658_v50 = vld [vmem:[%s6934_s1 + $0x348] ss:$16 sps:$4 sm:$0xff]  }
  0x24   :  { %3197 = vmatprep.subr.bf16.mxu0 %v4553_v36  ;;  %3541 = vmatprep.subr.bf16.mxu1 %v4555_v37  ;;  %v4642_v36 = vld [vmem:[%s6934_s1 + $0x2ec] ss:$16 sps:$4 sm:$0xff]   ;;  %v4637_v37 = vld [vmem:[%s6934_s1 + $0x2e0] ss:$16 sps:$4 sm:$0xff]  }
  0x27   :  { %3198 = vmatpush1.bf16.msra.mxu0 %v4557_v38  ;;  %3542 = vmatpush1.bf16.msra.mxu1 %v4558_v39  ;;  %v4640_v38 = vld [vmem:[%s6934_s1 + $0x2e8] ss:$16 sps:$4 sm:$0xff]   ;;  %v4645_v39 = vld [vmem:[%s6934_s1 + $0x304] ss:$16 sps:$4 sm:$0xff]  }
  0x28   :  { %3199 = vmatprep.subr.bf16.mxu0 %v4559_v40  ;;  %3543 = vmatprep.subr.bf16.mxu1 %v4561_v41  ;;  %v4648_v40 = vld [vmem:[%s6934_s1 + $0x30c] ss:$16 sps:$4 sm:$0xff]   ;;  %v4643_v41 = vld [vmem:[%s6934_s1 + $0x300] ss:$16 sps:$4 sm:$0xff]  }
  0x2b   :  { %3200 = vmatpush1.bf16.msra.mxu0 %v4563_v42  ;;  %3544 = vmatpush1.bf16.msra.mxu1 %v4564_v43  ;;  %v4646_v42 = vld [vmem:[%s6934_s1 + $0x308] ss:$16 sps:$4 sm:$0xff]   ;;  %v4651_v43 = vld [vmem:[%s6934_s1 + $0x324] ss:$16 sps:$4 sm:$0xff]  }
  0x2c   :  { %3201 = vmatprep.subr.bf16.mxu0 %v4565_v44  ;;  %3545 = vmatprep.subr.bf16.mxu1 %v4567_v45  ;;  %v4654_v44 = vld [vmem:[%s6934_s1 + $0x32c] ss:$16 sps:$4 sm:$0xff]   ;;  %v4649_v45 = vld [vmem:[%s6934_s1 + $0x320] ss:$16 sps:$4 sm:$0xff]  }
  0x2f   :  { %3202 = vmatpush1.bf16.msra.mxu0 %v4569_v48  ;;  %3546 = vmatpush1.bf16.msra.mxu1 %v4570_v49  ;;  %v4660_v48 = vld [vmem:[%s6934_s1 + $0x34c] ss:$16 sps:$4 sm:$0xff]   ;;  %v4655_v49 = vld [vmem:[%s6934_s1 + $0x340] ss:$16 sps:$4 sm:$0xff]  }
  0x30   :  { %3203 = vmatprep.subr.bf16.mxu0 %v4571_v51  ;;  %3547 = vmatprep.subr.bf16.mxu1 %v4573_v52  ;;  %v4663_v51 = vld [vmem:[%s6934_s1 + $0x364] ss:$16 sps:$4 sm:$0xff]   ;;  %v4666_v52 = vld [vmem:[%s6934_s1 + $0x36c] ss:$16 sps:$4 sm:$0xff]  }
  0x33   :  { %3204 = vmatpush1.bf16.msra.mxu0 %v4575_v53  ;;  %3548 = vmatpush1.bf16.msra.mxu1 %v4576_v54  ;;  %v4661_v53 = vld [vmem:[%s6934_s1 + $0x360] ss:$16 sps:$4 sm:$0xff]   ;;  %v4664_v54 = vld [vmem:[%s6934_s1 + $0x368] ss:$16 sps:$4 sm:$0xff]  }
  0x34   :  { %3205 = vmatprep.subr.bf16.mxu0 %v4577_v55  ;;  %3549 = vmatprep.subr.bf16.mxu1 %v4579_v56  ;;  %v4669_v55 = vld [vmem:[%s6934_s1 + $0x384] ss:$16 sps:$4 sm:$0xff]   ;;  %v4672_v56 = vld [vmem:[%s6934_s1 + $0x38c] ss:$16 sps:$4 sm:$0xff]  }
  0x37   :  { %3206 = vmatpush1.bf16.msra.mxu0 %v4581_v57  ;;  %3550 = vmatpush1.bf16.msra.mxu1 %v4582_v58  ;;  %v4667_v57 = vld [vmem:[%s6934_s1 + $0x380] ss:$16 sps:$4 sm:$0xff]   ;;  %v4670_v58 = vld [vmem:[%s6934_s1 + $0x388] ss:$16 sps:$4 sm:$0xff]  }
  0x38   :  { %3207 = vmatprep.subr.bf16.mxu0 %v4583_v59  ;;  %3551 = vmatprep.subr.bf16.mxu1 %v4585_v60  ;;  %v4675_v59 = vld [vmem:[%s6934_s1 + $0x3a4] ss:$16 sps:$4 sm:$0xff]   ;;  %v4678_v60 = vld [vmem:[%s6934_s1 + $0x3ac] ss:$16 sps:$4 sm:$0xff]  }
  0x3b   :  { %3208 = vmatpush1.bf16.msra.mxu0 %v4587_v61  ;;  %3552 = vmatpush1.bf16.msra.mxu1 %v4588_v62  ;;  %v4673_v61 = vld [vmem:[%s6934_s1 + $0x3a0] ss:$16 sps:$4 sm:$0xff]   ;;  %v4676_v62 = vld [vmem:[%s6934_s1 + $0x3a8] ss:$16 sps:$4 sm:$0xff]  }
  0x3c   :  { %3209 = vmatprep.subr.bf16.mxu0 %v4589_v63  ;;  %3553 = vmatprep.subr.bf16.mxu1 %v4591_v0  ;;  %v4681_v63 = vld [vmem:[%s6934_s1 + $0x3c4] ss:$16 sps:$4 sm:$0xff]   ;;  %v4684_v0 = vld [vmem:[%s6934_s1 + $0x3cc] ss:$16 sps:$4 sm:$0xff]  }
  0x3f   :  { %3210 = vmatpush1.bf16.msra.mxu0 %v4593_v1  ;;  %3554 = vmatpush1.bf16.msra.mxu1 %v4594_v2  ;;  %v4679_v1 = vld [vmem:[%s6934_s1 + $0x3c0] ss:$16 sps:$4 sm:$0xff]   ;;  %v4682_v2 = vld [vmem:[%s6934_s1 + $0x3c8] ss:$16 sps:$4 sm:$0xff]  }
  0x40   :  { %3222 = vmatprep.subr.bf16.mxu0 %v4597_v3  ;;  %3566 = vmatprep.subr.bf16.mxu1 %v4600_v4  ;;  %v4687_v3 = vld [vmem:[%s6934_s1 + $0x3e4] ss:$16 sps:$4 sm:$0xff]   ;;  %v4690_v4 = vld [vmem:[%s6934_s1 + $0x3ec] ss:$16 sps:$4 sm:$0xff]  }
  0x42   :  { %3212 = vmatmul.mubr.bf16.vlgmr.msra.gmra.mrb[0].mxu0 %v3907_v5  ;;  %3556 = vmatmul.mubr.bf16.vlgmr.msra.gmra.mrb[0].mxu1 %v3907_v5  ;;  %v4685_v5 = vld [vmem:[%s6934_s1 + $0x3e0] ss:$16 sps:$4 sm:$0xff]  }
  0x43   :  { %3223 = vmatpush1.bf16.msra.mxu0 %v4595_v6  ;;  %3567 = vmatpush1.bf16.msra.mxu1 %v4598_v7  ;;  %v4688_v6 = vld [vmem:[%s6934_s1 + $0x3e8] ss:$16 sps:$4 sm:$0xff]   ;;  %v4693_v7 = vld [vmem:[%s6934_s1 + $0x404] ss:$16 sps:$4 sm:$0xff]  }
  0x44   :  { %3224 = vmatprep.subr.bf16.mxu0 %v4603_v8  ;;  %3568 = vmatprep.subr.bf16.mxu1 %v4606_v9  ;;  %v4696_v8 = vld [vmem:[%s6934_s1 + $0x40c] ss:$16 sps:$4 sm:$0xff]   ;;  %v3909_v9 = vcombine.low %v5561_v30, %v5566_v31  ;;  %v4718_v30 = vld [vmem:[%s6934_s1 + $0x488] ss:$16 sps:$4 sm:$0xff]   ;;  %v4723_v31 = vld [vmem:[%s6934_s1 + $0x4a4] ss:$16 sps:$4 sm:$0xff]  }
  0x45   :  { %3254 = vmatprep.mubr.bf16.mxu0 %v3910_v34  ;;  %3598 = vmatprep.mubr.bf16.mxu1 %v3910_v34  ;;  %v4724_v34 = vld [vmem:[%s6934_s1 + $0x4a8] ss:$16 sps:$4 sm:$0xff]  }
  0x47   :  { %3225 = vmatpush1.bf16.msra.mxu0 %v4601_v10  ;;  %3569 = vmatpush1.bf16.msra.mxu1 %v4604_v11  ;;  %v4691_v10 = vld [vmem:[%s6934_s1 + $0x400] ss:$16 sps:$4 sm:$0xff]   ;;  %v4694_v11 = vld [vmem:[%s6934_s1 + $0x408] ss:$16 sps:$4 sm:$0xff]  }
  0x48   :  { %3226 = vmatprep.subr.bf16.mxu0 %v4609_v12  ;;  %3570 = vmatprep.subr.bf16.mxu1 %v4612_v13  ;;  %v4699_v12 = vld [vmem:[%s6934_s1 + $0x424] ss:$16 sps:$4 sm:$0xff]   ;;  %v4702_v13 = vld [vmem:[%s6934_s1 + $0x42c] ss:$16 sps:$4 sm:$0xff]  }
  0x4b   :  { %3227 = vmatpush1.bf16.msra.mxu0 %v4607_v14  ;;  %3571 = vmatpush1.bf16.msra.mxu1 %v4610_v15  ;;  %v5707_v14 = vld [vmem:[%s6935_s0 + $0x10] sm:$0xff] }
  0x4c   :  { %3228 = vmatprep.subr.bf16.mxu0 %v4615_v16  ;;  %3572 = vmatprep.subr.bf16.mxu1 %v4618_v17  ;;  %v5712_v15 = vld [vmem:[%s6935_s0 + $0x50] sm:$0xff] }
  0x4d   :  { %v3912_v16 = vcombine.high %v5707_v14, %v5712_v15  ;;  %v4697_v17 = vld [vmem:[%s6934_s1 + $0x420] ss:$16 sps:$4 sm:$0xff]  }
  0x4f   :  { %3229 = vmatpush1.bf16.msra.mxu0 %v4613_v18  ;;  %3573 = vmatpush1.bf16.msra.mxu1 %v4616_v19  ;;  %v4700_v18 = vld [vmem:[%s6934_s1 + $0x428] ss:$16 sps:$4 sm:$0xff]   ;;  %v4705_v19 = vld [vmem:[%s6934_s1 + $0x444] ss:$16 sps:$4 sm:$0xff]  }
  0x50   :  { %3230 = vmatprep.subr.bf16.mxu0 %v4621_v20  ;;  %3574 = vmatprep.subr.bf16.mxu1 %v4624_v21  ;;  %v4708_v20 = vld [vmem:[%s6934_s1 + $0x44c] ss:$16 sps:$4 sm:$0xff]   ;;  %v4703_v21 = vld [vmem:[%s6934_s1 + $0x440] ss:$16 sps:$4 sm:$0xff]  }
  0x53   :  { %3231 = vmatpush1.bf16.msra.mxu0 %v4619_v22  ;;  %3575 = vmatpush1.bf16.msra.mxu1 %v4622_v23  ;;  %v4706_v22 = vld [vmem:[%s6934_s1 + $0x448] ss:$16 sps:$4 sm:$0xff]   ;;  %v4711_v23 = vld [vmem:[%s6934_s1 + $0x464] ss:$16 sps:$4 sm:$0xff]  }
  0x54   :  { %3232 = vmatprep.subr.bf16.mxu0 %v4627_v24  ;;  %3576 = vmatprep.subr.bf16.mxu1 %v4630_v25  ;;  %v4714_v24 = vld [vmem:[%s6934_s1 + $0x46c] ss:$16 sps:$4 sm:$0xff]   ;;  %v4709_v25 = vld [vmem:[%s6934_s1 + $0x460] ss:$16 sps:$4 sm:$0xff]  }
  0x57   :  { %3233 = vmatpush1.bf16.msra.mxu0 %v4625_v26  ;;  %3577 = vmatpush1.bf16.msra.mxu1 %v4628_v27  ;;  %v4712_v26 = vld [vmem:[%s6934_s1 + $0x468] ss:$16 sps:$4 sm:$0xff]   ;;  %v4717_v27 = vld [vmem:[%s6934_s1 + $0x484] ss:$16 sps:$4 sm:$0xff]  }
  0x58   :  { %3234 = vmatprep.subr.bf16.mxu0 %v4633_v28  ;;  %3578 = vmatprep.subr.bf16.mxu1 %v4636_v29  ;;  %v4720_v28 = vld [vmem:[%s6934_s1 + $0x48c] ss:$16 sps:$4 sm:$0xff]   ;;  %v4715_v29 = vld [vmem:[%s6934_s1 + $0x480] ss:$16 sps:$4 sm:$0xff]  }
  0x5b   :  { %3235 = vmatpush1.bf16.msra.mxu0 %v4631_v32  ;;  %3579 = vmatpush1.bf16.msra.mxu1 %v4634_v33  ;;  %v4726_v32 = vld [vmem:[%s6934_s1 + $0x4ac] ss:$16 sps:$4 sm:$0xff]   ;;  %v4721_v33 = vld [vmem:[%s6934_s1 + $0x4a0] ss:$16 sps:$4 sm:$0xff]  }
  0x5c   :  { %3236 = vmatprep.subr.bf16.mxu0 %v4639_v35  ;;  %3580 = vmatprep.subr.bf16.mxu1 %v4642_v36  ;;  %v4729_v35 = vld [vmem:[%s6934_s1 + $0x4c4] ss:$16 sps:$4 sm:$0xff]   ;;  %v4732_v36 = vld [vmem:[%s6934_s1 + $0x4cc] ss:$16 sps:$4 sm:$0xff]  }
  0x5f   :  { %3237 = vmatpush1.bf16.msra.mxu0 %v4637_v37  ;;  %3581 = vmatpush1.bf16.msra.mxu1 %v4640_v38  ;;  %v4727_v37 = vld [vmem:[%s6934_s1 + $0x4c0] ss:$16 sps:$4 sm:$0xff]   ;;  %v4730_v38 = vld [vmem:[%s6934_s1 + $0x4c8] ss:$16 sps:$4 sm:$0xff]  }
  0x60   :  { %3238 = vmatprep.subr.bf16.mxu0 %v4645_v39  ;;  %3582 = vmatprep.subr.bf16.mxu1 %v4648_v40  ;;  %v4735_v39 = vld [vmem:[%s6934_s1 + $0x4e4] ss:$16 sps:$4 sm:$0xff]   ;;  %v4738_v40 = vld [vmem:[%s6934_s1 + $0x4ec] ss:$16 sps:$4 sm:$0xff]  }
  0x63   :  { %3239 = vmatpush1.bf16.msra.mxu0 %v4643_v41  ;;  %3583 = vmatpush1.bf16.msra.mxu1 %v4646_v42  ;;  %v4733_v41 = vld [vmem:[%s6934_s1 + $0x4e0] ss:$16 sps:$4 sm:$0xff]   ;;  %v4736_v42 = vld [vmem:[%s6934_s1 + $0x4e8] ss:$16 sps:$4 sm:$0xff]  }
  0x64   :  { %3240 = vmatprep.subr.bf16.mxu0 %v4651_v43  ;;  %3584 = vmatprep.subr.bf16.mxu1 %v4654_v44  ;;  %v4741_v43 = vld [vmem:[%s6934_s1 + $0x504] ss:$16 sps:$4 sm:$0xff]   ;;  %v4744_v44 = vld [vmem:[%s6934_s1 + $0x50c] ss:$16 sps:$4 sm:$0xff]  }
  0x67   :  { %3241 = vmatpush1.bf16.msra.mxu0 %v4649_v45  ;;  %3585 = vmatpush1.bf16.msra.mxu1 %v4652_v46  ;;  %v4739_v45 = vld [vmem:[%s6934_s1 + $0x500] ss:$16 sps:$4 sm:$0xff]   ;;  %v4742_v46 = vld [vmem:[%s6934_s1 + $0x508] ss:$16 sps:$4 sm:$0xff]  }
  0x68   :  { %3242 = vmatprep.subr.bf16.mxu0 %v4657_v47  ;;  %3586 = vmatprep.subr.bf16.mxu1 %v4660_v48  ;;  %v4747_v47 = vld [vmem:[%s6934_s1 + $0x524] ss:$16 sps:$4 sm:$0xff]   ;;  %v4750_v48 = vld [vmem:[%s6934_s1 + $0x52c] ss:$16 sps:$4 sm:$0xff]  }
  0x6b   :  { %3243 = vmatpush1.bf16.msra.mxu0 %v4655_v49  ;;  %3587 = vmatpush1.bf16.msra.mxu1 %v4658_v50  ;;  %v4745_v49 = vld [vmem:[%s6934_s1 + $0x520] ss:$16 sps:$4 sm:$0xff]   ;;  %v4748_v50 = vld [vmem:[%s6934_s1 + $0x528] ss:$16 sps:$4 sm:$0xff]  }
  0x6c   :  { %3244 = vmatprep.subr.bf16.mxu0 %v4663_v51  ;;  %3588 = vmatprep.subr.bf16.mxu1 %v4666_v52  ;;  %v4753_v51 = vld [vmem:[%s6934_s1 + $0x544] ss:$16 sps:$4 sm:$0xff]   ;;  %v4756_v52 = vld [vmem:[%s6934_s1 + $0x54c] ss:$16 sps:$4 sm:$0xff]  }
  0x6f   :  { %3245 = vmatpush1.bf16.msra.mxu0 %v4661_v53  ;;  %3589 = vmatpush1.bf16.msra.mxu1 %v4664_v54  ;;  %v4751_v53 = vld [vmem:[%s6934_s1 + $0x540] ss:$16 sps:$4 sm:$0xff]   ;;  %v4754_v54 = vld [vmem:[%s6934_s1 + $0x548] ss:$16 sps:$4 sm:$0xff]  }
  0x70   :  { %3246 = vmatprep.subr.bf16.mxu0 %v4669_v55  ;;  %3590 = vmatprep.subr.bf16.mxu1 %v4672_v56  ;;  %v4759_v55 = vld [vmem:[%s6934_s1 + $0x564] ss:$16 sps:$4 sm:$0xff]   ;;  %v4762_v56 = vld [vmem:[%s6934_s1 + $0x56c] ss:$16 sps:$4 sm:$0xff]  }
  0x73   :  { %3247 = vmatpush1.bf16.msra.mxu0 %v4667_v57  ;;  %3591 = vmatpush1.bf16.msra.mxu1 %v4670_v58  ;;  %v4757_v57 = vld [vmem:[%s6934_s1 + $0x560] ss:$16 sps:$4 sm:$0xff]   ;;  %v4760_v58 = vld [vmem:[%s6934_s1 + $0x568] ss:$16 sps:$4 sm:$0xff]  }
  0x74   :  { %3248 = vmatprep.subr.bf16.mxu0 %v4675_v59  ;;  %3592 = vmatprep.subr.bf16.mxu1 %v4678_v60  ;;  %v4765_v59 = vld [vmem:[%s6934_s1 + $0x584] ss:$16 sps:$4 sm:$0xff]   ;;  %v4768_v60 = vld [vmem:[%s6934_s1 + $0x58c] ss:$16 sps:$4 sm:$0xff]  }
  0x77   :  { %3249 = vmatpush1.bf16.msra.mxu0 %v4673_v61  ;;  %3593 = vmatpush1.bf16.msra.mxu1 %v4676_v62  ;;  %v4763_v61 = vld [vmem:[%s6934_s1 + $0x580] ss:$16 sps:$4 sm:$0xff]   ;;  %v4766_v62 = vld [vmem:[%s6934_s1 + $0x588] ss:$16 sps:$4 sm:$0xff]  }
  0x78   :  { %3250 = vmatprep.subr.bf16.mxu0 %v4681_v63  ;;  %3594 = vmatprep.subr.bf16.mxu1 %v4684_v0  ;;  %v4771_v63 = vld [vmem:[%s6934_s1 + $0x5a4] ss:$16 sps:$4 sm:$0xff]   ;;  %v4774_v0 = vld [vmem:[%s6934_s1 + $0x5ac] ss:$16 sps:$4 sm:$0xff]  }
  0x7b   :  { %3251 = vmatpush1.bf16.msra.mxu0 %v4679_v1  ;;  %3595 = vmatpush1.bf16.msra.mxu1 %v4682_v2  ;;  %v4769_v1 = vld [vmem:[%s6934_s1 + $0x5a0] ss:$16 sps:$4 sm:$0xff]   ;;  %v4772_v2 = vld [vmem:[%s6934_s1 + $0x5a8] ss:$16 sps:$4 sm:$0xff]  }
  0x7c   :  { %3252 = vmatprep.subr.bf16.mxu0 %v4687_v3  ;;  %3596 = vmatprep.subr.bf16.mxu1 %v4690_v4  ;;  %v4777_v3 = vld [vmem:[%s6934_s1 + $0x5c4] ss:$16 sps:$4 sm:$0xff]   ;;  %v4780_v4 = vld [vmem:[%s6934_s1 + $0x5cc] ss:$16 sps:$4 sm:$0xff]  }
  0x7f   :  { %3253 = vmatpush1.bf16.msra.mxu0 %v4685_v5  ;;  %3597 = vmatpush1.bf16.msra.mxu1 %v4688_v6  ;;  %v4775_v5 = vld [vmem:[%s6934_s1 + $0x5c0] ss:$16 sps:$4 sm:$0xff]   ;;  %v4778_v6 = vld [vmem:[%s6934_s1 + $0x5c8] ss:$16 sps:$4 sm:$0xff]  }
  0x80   :  { %3265 = vmatprep.subr.bf16.mxu0 %v4693_v7  ;;  %3609 = vmatprep.subr.bf16.mxu1 %v4696_v8  ;;  %v4783_v7 = vld [vmem:[%s6934_s1 + $0x5e4] ss:$16 sps:$4 sm:$0xff]   ;;  %v4786_v8 = vld [vmem:[%s6934_s1 + $0x5ec] ss:$16 sps:$4 sm:$0xff]  }
  0x82   :  { %3255 = vmatmul.mubr.bf16.vlgmr.msra.gmra.mrb[0].mxu0 %v3909_v9  ;;  %3599 = vmatmul.mubr.bf16.vlgmr.msra.gmra.mrb[0].mxu1 %v3909_v9  ;;  %v4781_v9 = vld [vmem:[%s6934_s1 + $0x5e0] ss:$16 sps:$4 sm:$0xff]  }
  0x83   :  { %3266 = vmatpush1.bf16.msra.mxu0 %v4691_v10  ;;  %3610 = vmatpush1.bf16.msra.mxu1 %v4694_v11  ;;  %v4784_v10 = vld [vmem:[%s6934_s1 + $0x5e8] ss:$16 sps:$4 sm:$0xff]   ;;  %v4789_v11 = vld [vmem:[%s6934_s1 + $0x604] ss:$16 sps:$4 sm:$0xff]  }
  0x84   :  { %3267 = vmatprep.subr.bf16.mxu0 %v4699_v12  ;;  %3611 = vmatprep.subr.bf16.mxu1 %v4702_v13  ;;  %v4792_v12 = vld [vmem:[%s6934_s1 + $0x60c] ss:$16 sps:$4 sm:$0xff]   ;;  %v4787_v13 = vld [vmem:[%s6934_s1 + $0x600] ss:$16 sps:$4 sm:$0xff]  }
  0x85   :  { %3297 = vmatprep.mubr.bf16.mxu0 %v3912_v16  ;;  %3641 = vmatprep.mubr.bf16.mxu1 %v3912_v16  ;;  %v4790_v16 = vld [vmem:[%s6934_s1 + $0x608] ss:$16 sps:$4 sm:$0xff]  }
  0x87   :  { %3268 = vmatpush1.bf16.msra.mxu0 %v4697_v17  ;;  %3612 = vmatpush1.bf16.msra.mxu1 %v4700_v18  ;;  %v3911_v17 = vcombine.low %v5707_v14, %v5712_v15  ;;  %v5907_v18 = vld [vmem:[%s6935_s0 + $0x18] sm:$0xff] }
  0x88   :  { %3269 = vmatprep.subr.bf16.mxu0 %v4705_v19  ;;  %3613 = vmatprep.subr.bf16.mxu1 %v4708_v20  ;;  %v5912_v19 = vld [vmem:[%s6935_s0 + $0x58] sm:$0xff]  ;;  %v4795_v20 = vld [vmem:[%s6934_s1 + $0x624] ss:$16 sps:$4 sm:$0xff]  }
  0x89   :  { %v4798_v14 = vld [vmem:[%s6934_s1 + $0x62c] ss:$16 sps:$4 sm:$0xff]   ;;  %v3914_v15 = vcombine.high %v5907_v18, %v5912_v19 }
  0x8b   :  { %3270 = vmatpush1.bf16.msra.mxu0 %v4703_v21  ;;  %3614 = vmatpush1.bf16.msra.mxu1 %v4706_v22  ;;  %v4793_v21 = vld [vmem:[%s6934_s1 + $0x620] ss:$16 sps:$4 sm:$0xff]   ;;  %v4796_v22 = vld [vmem:[%s6934_s1 + $0x628] ss:$16 sps:$4 sm:$0xff]  }
  0x8c   :  { %3271 = vmatprep.subr.bf16.mxu0 %v4711_v23  ;;  %3615 = vmatprep.subr.bf16.mxu1 %v4714_v24  ;;  %v4801_v23 = vld [vmem:[%s6934_s1 + $0x644] ss:$16 sps:$4 sm:$0xff]   ;;  %v4804_v24 = vld [vmem:[%s6934_s1 + $0x64c] ss:$16 sps:$4 sm:$0xff]  }
  0x8f   :  { %3272 = vmatpush1.bf16.msra.mxu0 %v4709_v25  ;;  %3616 = vmatpush1.bf16.msra.mxu1 %v4712_v26  ;;  %v4799_v25 = vld [vmem:[%s6934_s1 + $0x640] ss:$16 sps:$4 sm:$0xff]   ;;  %v4802_v26 = vld [vmem:[%s6934_s1 + $0x648] ss:$16 sps:$4 sm:$0xff]  }
  0x90   :  { %3273 = vmatprep.subr.bf16.mxu0 %v4717_v27  ;;  %3617 = vmatprep.subr.bf16.mxu1 %v4720_v28  ;;  %v4807_v27 = vld [vmem:[%s6934_s1 + $0x664] ss:$16 sps:$4 sm:$0xff]   ;;  %v4810_v28 = vld [vmem:[%s6934_s1 + $0x66c] ss:$16 sps:$4 sm:$0xff]  }
  0x93   :  { %3274 = vmatpush1.bf16.msra.mxu0 %v4715_v29  ;;  %3618 = vmatpush1.bf16.msra.mxu1 %v4718_v30  ;;  %v4805_v29 = vld [vmem:[%s6934_s1 + $0x660] ss:$16 sps:$4 sm:$0xff]   ;;  %v4808_v30 = vld [vmem:[%s6934_s1 + $0x668] ss:$16 sps:$4 sm:$0xff]  }
  0x94   :  { %3275 = vmatprep.subr.bf16.mxu0 %v4723_v31  ;;  %3619 = vmatprep.subr.bf16.mxu1 %v4726_v32  ;;  %v4813_v31 = vld [vmem:[%s6934_s1 + $0x684] ss:$16 sps:$4 sm:$0xff]   ;;  %v4816_v32 = vld [vmem:[%s6934_s1 + $0x68c] ss:$16 sps:$4 sm:$0xff]  }
  0x97   :  { %3276 = vmatpush1.bf16.msra.mxu0 %v4721_v33  ;;  %3620 = vmatpush1.bf16.msra.mxu1 %v4724_v34  ;;  %v4811_v33 = vld [vmem:[%s6934_s1 + $0x680] ss:$16 sps:$4 sm:$0xff]   ;;  %v4814_v34 = vld [vmem:[%s6934_s1 + $0x688] ss:$16 sps:$4 sm:$0xff]  }
  0x98   :  { %3277 = vmatprep.subr.bf16.mxu0 %v4729_v35  ;;  %3621 = vmatprep.subr.bf16.mxu1 %v4732_v36  ;;  %v4819_v35 = vld [vmem:[%s6934_s1 + $0x6a4] ss:$16 sps:$4 sm:$0xff]   ;;  %v4822_v36 = vld [vmem:[%s6934_s1 + $0x6ac] ss:$16 sps:$4 sm:$0xff]  }
  0x9b   :  { %3278 = vmatpush1.bf16.msra.mxu0 %v4727_v37  ;;  %3622 = vmatpush1.bf16.msra.mxu1 %v4730_v38  ;;  %v4817_v37 = vld [vmem:[%s6934_s1 + $0x6a0] ss:$16 sps:$4 sm:$0xff]   ;;  %v4820_v38 = vld [vmem:[%s6934_s1 + $0x6a8] ss:$16 sps:$4 sm:$0xff]  }
  0x9c   :  { %3279 = vmatprep.subr.bf16.mxu0 %v4735_v39  ;;  %3623 = vmatprep.subr.bf16.mxu1 %v4738_v40  ;;  %v4825_v39 = vld [vmem:[%s6934_s1 + $0x6c4] ss:$16 sps:$4 sm:$0xff]   ;;  %v4828_v40 = vld [vmem:[%s6934_s1 + $0x6cc] ss:$16 sps:$4 sm:$0xff]  }
  0x9f   :  { %3280 = vmatpush1.bf16.msra.mxu0 %v4733_v41  ;;  %3624 = vmatpush1.bf16.msra.mxu1 %v4736_v42  ;;  %v4823_v41 = vld [vmem:[%s6934_s1 + $0x6c0] ss:$16 sps:$4 sm:$0xff]   ;;  %v4826_v42 = vld [vmem:[%s6934_s1 + $0x6c8] ss:$16 sps:$4 sm:$0xff]  }
  0xa0   :  { %3281 = vmatprep.subr.bf16.mxu0 %v4741_v43  ;;  %3625 = vmatprep.subr.bf16.mxu1 %v4744_v44  ;;  %v4831_v43 = vld [vmem:[%s6934_s1 + $0x6e4] ss:$16 sps:$4 sm:$0xff]   ;;  %v4834_v44 = vld [vmem:[%s6934_s1 + $0x6ec] ss:$16 sps:$4 sm:$0xff]  }
  0xa3   :  { %3282 = vmatpush1.bf16.msra.mxu0 %v4739_v45  ;;  %3626 = vmatpush1.bf16.msra.mxu1 %v4742_v46  ;;  %v4829_v45 = vld [vmem:[%s6934_s1 + $0x6e0] ss:$16 sps:$4 sm:$0xff]   ;;  %v4832_v46 = vld [vmem:[%s6934_s1 + $0x6e8] ss:$16 sps:$4 sm:$0xff]  }
  0xa4   :  { %3283 = vmatprep.subr.bf16.mxu0 %v4747_v47  ;;  %3627 = vmatprep.subr.bf16.mxu1 %v4750_v48  ;;  %v4837_v47 = vld [vmem:[%s6934_s1 + $0x704] ss:$16 sps:$4 sm:$0xff]   ;;  %v4840_v48 = vld [vmem:[%s6934_s1 + $0x70c] ss:$16 sps:$4 sm:$0xff]  }
  0xa7   :  { %3284 = vmatpush1.bf16.msra.mxu0 %v4745_v49  ;;  %3628 = vmatpush1.bf16.msra.mxu1 %v4748_v50  ;;  %v4835_v49 = vld [vmem:[%s6934_s1 + $0x700] ss:$16 sps:$4 sm:$0xff]   ;;  %v4838_v50 = vld [vmem:[%s6934_s1 + $0x708] ss:$16 sps:$4 sm:$0xff]  }
  0xa8   :  { %3285 = vmatprep.subr.bf16.mxu0 %v4753_v51  ;;  %3629 = vmatprep.subr.bf16.mxu1 %v4756_v52  ;;  %v4843_v51 = vld [vmem:[%s6934_s1 + $0x724] ss:$16 sps:$4 sm:$0xff]   ;;  %v4846_v52 = vld [vmem:[%s6934_s1 + $0x72c] ss:$16 sps:$4 sm:$0xff]  }
  0xab   :  { %3286 = vmatpush1.bf16.msra.mxu0 %v4751_v53  ;;  %3630 = vmatpush1.bf16.msra.mxu1 %v4754_v54  ;;  %v4841_v53 = vld [vmem:[%s6934_s1 + $0x720] ss:$16 sps:$4 sm:$0xff]   ;;  %v4844_v54 = vld [vmem:[%s6934_s1 + $0x728] ss:$16 sps:$4 sm:$0xff]  }
  0xac   :  { %3287 = vmatprep.subr.bf16.mxu0 %v4759_v55  ;;  %3631 = vmatprep.subr.bf16.mxu1 %v4762_v56  ;;  %v4849_v55 = vld [vmem:[%s6934_s1 + $0x744] ss:$16 sps:$4 sm:$0xff]   ;;  %v4852_v56 = vld [vmem:[%s6934_s1 + $0x74c] ss:$16 sps:$4 sm:$0xff]  }
  0xaf   :  { %3288 = vmatpush1.bf16.msra.mxu0 %v4757_v57  ;;  %3632 = vmatpush1.bf16.msra.mxu1 %v4760_v58  ;;  %v4847_v57 = vld [vmem:[%s6934_s1 + $0x740] ss:$16 sps:$4 sm:$0xff]   ;;  %v4850_v58 = vld [vmem:[%s6934_s1 + $0x748] ss:$16 sps:$4 sm:$0xff]  }
  0xb0   :  { %3289 = vmatprep.subr.bf16.mxu0 %v4765_v59  ;;  %3633 = vmatprep.subr.bf16.mxu1 %v4768_v60  ;;  %v4855_v59 = vld [vmem:[%s6934_s1 + $0x764] ss:$16 sps:$4 sm:$0xff]   ;;  %v4858_v60 = vld [vmem:[%s6934_s1 + $0x76c] ss:$16 sps:$4 sm:$0xff]  }
  0xb3   :  { %3290 = vmatpush1.bf16.msra.mxu0 %v4763_v61  ;;  %3634 = vmatpush1.bf16.msra.mxu1 %v4766_v62  ;;  %v4853_v61 = vld [vmem:[%s6934_s1 + $0x760] ss:$16 sps:$4 sm:$0xff]   ;;  %v4856_v62 = vld [vmem:[%s6934_s1 + $0x768] ss:$16 sps:$4 sm:$0xff]  }
  0xb4   :  { %3291 = vmatprep.subr.bf16.mxu0 %v4771_v63  ;;  %3635 = vmatprep.subr.bf16.mxu1 %v4774_v0  ;;  %v4861_v63 = vld [vmem:[%s6934_s1 + $0x784] ss:$16 sps:$4 sm:$0xff]   ;;  %v4864_v0 = vld [vmem:[%s6934_s1 + $0x78c] ss:$16 sps:$4 sm:$0xff]  }
  0xb7   :  { %3292 = vmatpush1.bf16.msra.mxu0 %v4769_v1  ;;  %3636 = vmatpush1.bf16.msra.mxu1 %v4772_v2  ;;  %v4859_v1 = vld [vmem:[%s6934_s1 + $0x780] ss:$16 sps:$4 sm:$0xff]   ;;  %v4862_v2 = vld [vmem:[%s6934_s1 + $0x788] ss:$16 sps:$4 sm:$0xff]  }
  0xb8   :  { %3293 = vmatprep.subr.bf16.mxu0 %v4777_v3  ;;  %3637 = vmatprep.subr.bf16.mxu1 %v4780_v4  ;;  %v4867_v3 = vld [vmem:[%s6934_s1 + $0x7a4] ss:$16 sps:$4 sm:$0xff]   ;;  %v4870_v4 = vld [vmem:[%s6934_s1 + $0x7ac] ss:$16 sps:$4 sm:$0xff]  }
  0xbb   :  { %3294 = vmatpush1.bf16.msra.mxu0 %v4775_v5  ;;  %3638 = vmatpush1.bf16.msra.mxu1 %v4778_v6  ;;  %v4865_v5 = vld [vmem:[%s6934_s1 + $0x7a0] ss:$16 sps:$4 sm:$0xff]   ;;  %v4868_v6 = vld [vmem:[%s6934_s1 + $0x7a8] ss:$16 sps:$4 sm:$0xff]  }
  0xbc   :  { %3295 = vmatprep.subr.bf16.mxu0 %v4783_v7  ;;  %3639 = vmatprep.subr.bf16.mxu1 %v4786_v8  ;;  %v4873_v7 = vld [vmem:[%s6934_s1 + $0x7c4] ss:$16 sps:$4 sm:$0xff]   ;;  %v4876_v8 = vld [vmem:[%s6934_s1 + $0x7cc] ss:$16 sps:$4 sm:$0xff]  }
  0xbf   :  { %3296 = vmatpush1.bf16.msra.mxu0 %v4781_v9  ;;  %3640 = vmatpush1.bf16.msra.mxu1 %v4784_v10  ;;  %v4871_v9 = vld [vmem:[%s6934_s1 + $0x7c0] ss:$16 sps:$4 sm:$0xff]   ;;  %v4874_v10 = vld [vmem:[%s6934_s1 + $0x7c8] ss:$16 sps:$4 sm:$0xff]  }
  0xc0   :  { %3308 = vmatprep.subr.bf16.mxu0 %v4789_v11  ;;  %3652 = vmatprep.subr.bf16.mxu1 %v4792_v12  ;;  %v4879_v11 = vld [vmem:[%s6934_s1 + $0x7e4] ss:$16 sps:$4 sm:$0xff]   ;;  %v4882_v12 = vld [vmem:[%s6934_s1 + $0x7ec] ss:$16 sps:$4 sm:$0xff]  }
  0xc2   :  { %3298 = vmatmul.mubr.bf16.vlgmr.msra.gmra.mrb[0].mxu0 %v3911_v17  ;;  %3642 = vmatmul.mubr.bf16.vlgmr.msra.gmra.mrb[0].mxu1 %v3911_v17  ;;  %v4885_v17 = vld [vmem:[%s6934_s1 + $0x804] ss:$16 sps:$4 sm:$0xff]  }
  0xc3   :  { %3309 = vmatpush1.bf16.msra.mxu0 %v4787_v13  ;;  %3653 = vmatpush1.bf16.msra.mxu1 %v4790_v16  ;;  %v4877_v13 = vld [vmem:[%s6934_s1 + $0x7e0] ss:$16 sps:$4 sm:$0xff]   ;;  %v4880_v16 = vld [vmem:[%s6934_s1 + $0x7e8] ss:$16 sps:$4 sm:$0xff]  }
  0xc4   :  { %3310 = vmatprep.subr.bf16.mxu0 %v4795_v20  ;;  %3654 = vmatprep.subr.bf16.mxu1 %v4798_v14  ;;  %v4888_v20 = vld [vmem:[%s6934_s1 + $0x80c] ss:$16 sps:$4 sm:$0xff]   ;;  %v6105_v14 = vld [vmem:[%s6935_s0 + $0x20] sm:$0xff] }
  0xc5   :  { %3340 = vmatprep.mubr.bf16.mxu0 %v3914_v15  ;;  %3684 = vmatprep.mubr.bf16.mxu1 %v3914_v15  ;;  %v3913_v15 = vcombine.low %v5907_v18, %v5912_v19  ;;  %v4891_v18 = vld [vmem:[%s6934_s1 + $0x824] ss:$16 sps:$4 sm:$0xff]   ;;  %v4894_v19 = vld [vmem:[%s6934_s1 + $0x82c] ss:$16 sps:$4 sm:$0xff]  }
  0xc7   :  { %3311 = vmatpush1.bf16.msra.mxu0 %v4793_v21  ;;  %3655 = vmatpush1.bf16.msra.mxu1 %v4796_v22  ;;  %v6112_v21 = vld [vmem:[%s6935_s0 + $0x60] sm:$0xff] }
  0xc8   :  { %3312 = vmatprep.subr.bf16.mxu0 %v4801_v23  ;;  %3656 = vmatprep.subr.bf16.mxu1 %v4804_v24  ;;  %v4883_v22 = vld [vmem:[%s6934_s1 + $0x800] ss:$16 sps:$4 sm:$0xff]   ;;  %v4886_v23 = vld [vmem:[%s6934_s1 + $0x808] ss:$16 sps:$4 sm:$0xff]   ;;  %v3916_v24 = vcombine.high %v6105_v14, %v6112_v21 }
  0xcb   :  { %3313 = vmatpush1.bf16.msra.mxu0 %v4799_v25  ;;  %3657 = vmatpush1.bf16.msra.mxu1 %v4802_v26  ;;  %v4889_v25 = vld [vmem:[%s6934_s1 + $0x820] ss:$16 sps:$4 sm:$0xff]   ;;  %v4892_v26 = vld [vmem:[%s6934_s1 + $0x828] ss:$16 sps:$4 sm:$0xff]  }
  0xcc   :  { %3314 = vmatprep.subr.bf16.mxu0 %v4807_v27  ;;  %3658 = vmatprep.subr.bf16.mxu1 %v4810_v28  ;;  %v4897_v27 = vld [vmem:[%s6934_s1 + $0x844] ss:$16 sps:$4 sm:$0xff]   ;;  %v4900_v28 = vld [vmem:[%s6934_s1 + $0x84c] ss:$16 sps:$4 sm:$0xff]  }
  0xcf   :  { %3315 = vmatpush1.bf16.msra.mxu0 %v4805_v29  ;;  %3659 = vmatpush1.bf16.msra.mxu1 %v4808_v30  ;;  %v4895_v29 = vld [vmem:[%s6934_s1 + $0x840] ss:$16 sps:$4 sm:$0xff]   ;;  %v4898_v30 = vld [vmem:[%s6934_s1 + $0x848] ss:$16 sps:$4 sm:$0xff]  }
  0xd0   :  { %3316 = vmatprep.subr.bf16.mxu0 %v4813_v31  ;;  %3660 = vmatprep.subr.bf16.mxu1 %v4816_v32  ;;  %v4903_v31 = vld [vmem:[%s6934_s1 + $0x864] ss:$16 sps:$4 sm:$0xff]   ;;  %v4906_v32 = vld [vmem:[%s6934_s1 + $0x86c] ss:$16 sps:$4 sm:$0xff]  }
  0xd3   :  { %3317 = vmatpush1.bf16.msra.mxu0 %v4811_v33  ;;  %3661 = vmatpush1.bf16.msra.mxu1 %v4814_v34  ;;  %v4901_v33 = vld [vmem:[%s6934_s1 + $0x860] ss:$16 sps:$4 sm:$0xff]   ;;  %v4904_v34 = vld [vmem:[%s6934_s1 + $0x868] ss:$16 sps:$4 sm:$0xff]  }
  0xd4   :  { %3318 = vmatprep.subr.bf16.mxu0 %v4819_v35  ;;  %3662 = vmatprep.subr.bf16.mxu1 %v4822_v36  ;;  %v4909_v35 = vld [vmem:[%s6934_s1 + $0x884] ss:$16 sps:$4 sm:$0xff]   ;;  %v4912_v36 = vld [vmem:[%s6934_s1 + $0x88c] ss:$16 sps:$4 sm:$0xff]  }
  0xd7   :  { %3319 = vmatpush1.bf16.msra.mxu0 %v4817_v37  ;;  %3663 = vmatpush1.bf16.msra.mxu1 %v4820_v38  ;;  %v4907_v37 = vld [vmem:[%s6934_s1 + $0x880] ss:$16 sps:$4 sm:$0xff]   ;;  %v4910_v38 = vld [vmem:[%s6934_s1 + $0x888] ss:$16 sps:$4 sm:$0xff]  }
  0xd8   :  { %3320 = vmatprep.subr.bf16.mxu0 %v4825_v39  ;;  %3664 = vmatprep.subr.bf16.mxu1 %v4828_v40  ;;  %v4915_v39 = vld [vmem:[%s6934_s1 + $0x8a4] ss:$16 sps:$4 sm:$0xff]   ;;  %v4918_v40 = vld [vmem:[%s6934_s1 + $0x8ac] ss:$16 sps:$4 sm:$0xff]  }
  0xdb   :  { %3321 = vmatpush1.bf16.msra.mxu0 %v4823_v41  ;;  %3665 = vmatpush1.bf16.msra.mxu1 %v4826_v42  ;;  %v4913_v41 = vld [vmem:[%s6934_s1 + $0x8a0] ss:$16 sps:$4 sm:$0xff]   ;;  %v4916_v42 = vld [vmem:[%s6934_s1 + $0x8a8] ss:$16 sps:$4 sm:$0xff]  }
  0xdc   :  { %3322 = vmatprep.subr.bf16.mxu0 %v4831_v43  ;;  %3666 = vmatprep.subr.bf16.mxu1 %v4834_v44  ;;  %v4921_v43 = vld [vmem:[%s6934_s1 + $0x8c4] ss:$16 sps:$4 sm:$0xff]   ;;  %v4924_v44 = vld [vmem:[%s6934_s1 + $0x8cc] ss:$16 sps:$4 sm:$0xff]  }
  0xdf   :  { %3323 = vmatpush1.bf16.msra.mxu0 %v4829_v45  ;;  %3667 = vmatpush1.bf16.msra.mxu1 %v4832_v46  ;;  %v4919_v45 = vld [vmem:[%s6934_s1 + $0x8c0] ss:$16 sps:$4 sm:$0xff]   ;;  %v4922_v46 = vld [vmem:[%s6934_s1 + $0x8c8] ss:$16 sps:$4 sm:$0xff]  }
  0xe0   :  { %3324 = vmatprep.subr.bf16.mxu0 %v4837_v47  ;;  %3668 = vmatprep.subr.bf16.mxu1 %v4840_v48  ;;  %v4927_v47 = vld [vmem:[%s6934_s1 + $0x8e4] ss:$16 sps:$4 sm:$0xff]   ;;  %v4930_v48 = vld [vmem:[%s6934_s1 + $0x8ec] ss:$16 sps:$4 sm:$0xff]  }
  0xe3   :  { %3325 = vmatpush1.bf16.msra.mxu0 %v4835_v49  ;;  %3669 = vmatpush1.bf16.msra.mxu1 %v4838_v50  ;;  %v4925_v49 = vld [vmem:[%s6934_s1 + $0x8e0] ss:$16 sps:$4 sm:$0xff]   ;;  %v4928_v50 = vld [vmem:[%s6934_s1 + $0x8e8] ss:$16 sps:$4 sm:$0xff]  }
  0xe4   :  { %3326 = vmatprep.subr.bf16.mxu0 %v4843_v51  ;;  %3670 = vmatprep.subr.bf16.mxu1 %v4846_v52  ;;  %v4933_v51 = vld [vmem:[%s6934_s1 + $0x904] ss:$16 sps:$4 sm:$0xff]   ;;  %v4936_v52 = vld [vmem:[%s6934_s1 + $0x90c] ss:$16 sps:$4 sm:$0xff]  }
  0xe7   :  { %3327 = vmatpush1.bf16.msra.mxu0 %v4841_v53  ;;  %3671 = vmatpush1.bf16.msra.mxu1 %v4844_v54  ;;  %v4931_v53 = vld [vmem:[%s6934_s1 + $0x900] ss:$16 sps:$4 sm:$0xff]   ;;  %v4934_v54 = vld [vmem:[%s6934_s1 + $0x908] ss:$16 sps:$4 sm:$0xff]  }
  0xe8   :  { %3328 = vmatprep.subr.bf16.mxu0 %v4849_v55  ;;  %3672 = vmatprep.subr.bf16.mxu1 %v4852_v56  ;;  %v4939_v55 = vld [vmem:[%s6934_s1 + $0x924] ss:$16 sps:$4 sm:$0xff]   ;;  %v4942_v56 = vld [vmem:[%s6934_s1 + $0x92c] ss:$16 sps:$4 sm:$0xff]  }
  0xeb   :  { %3329 = vmatpush1.bf16.msra.mxu0 %v4847_v57  ;;  %3673 = vmatpush1.bf16.msra.mxu1 %v4850_v58  ;;  %v4937_v57 = vld [vmem:[%s6934_s1 + $0x920] ss:$16 sps:$4 sm:$0xff]   ;;  %v4940_v58 = vld [vmem:[%s6934_s1 + $0x928] ss:$16 sps:$4 sm:$0xff]  }
  0xec   :  { %3330 = vmatprep.subr.bf16.mxu0 %v4855_v59  ;;  %3674 = vmatprep.subr.bf16.mxu1 %v4858_v60  ;;  %v4945_v59 = vld [vmem:[%s6934_s1 + $0x944] ss:$16 sps:$4 sm:$0xff]   ;;  %v4948_v60 = vld [vmem:[%s6934_s1 + $0x94c] ss:$16 sps:$4 sm:$0xff]  }
  0xef   :  { %3331 = vmatpush1.bf16.msra.mxu0 %v4853_v61  ;;  %3675 = vmatpush1.bf16.msra.mxu1 %v4856_v62  ;;  %v4943_v61 = vld [vmem:[%s6934_s1 + $0x940] ss:$16 sps:$4 sm:$0xff]   ;;  %v4946_v62 = vld [vmem:[%s6934_s1 + $0x948] ss:$16 sps:$4 sm:$0xff]  }
  0xf0   :  { %3332 = vmatprep.subr.bf16.mxu0 %v4861_v63  ;;  %3676 = vmatprep.subr.bf16.mxu1 %v4864_v0  ;;  %v4951_v63 = vld [vmem:[%s6934_s1 + $0x964] ss:$16 sps:$4 sm:$0xff]   ;;  %v4954_v0 = vld [vmem:[%s6934_s1 + $0x96c] ss:$16 sps:$4 sm:$0xff]  }
  0xf3   :  { %3333 = vmatpush1.bf16.msra.mxu0 %v4859_v1  ;;  %3677 = vmatpush1.bf16.msra.mxu1 %v4862_v2  ;;  %v4949_v1 = vld [vmem:[%s6934_s1 + $0x960] ss:$16 sps:$4 sm:$0xff]   ;;  %v4952_v2 = vld [vmem:[%s6934_s1 + $0x968] ss:$16 sps:$4 sm:$0xff]  }
  0xf4   :  { %3334 = vmatprep.subr.bf16.mxu0 %v4867_v3  ;;  %3678 = vmatprep.subr.bf16.mxu1 %v4870_v4  ;;  %v4957_v3 = vld [vmem:[%s6934_s1 + $0x984] ss:$16 sps:$4 sm:$0xff]   ;;  %v4960_v4 = vld [vmem:[%s6934_s1 + $0x98c] ss:$16 sps:$4 sm:$0xff]  }
  0xf7   :  { %3335 = vmatpush1.bf16.msra.mxu0 %v4865_v5  ;;  %3679 = vmatpush1.bf16.msra.mxu1 %v4868_v6  ;;  %v4955_v5 = vld [vmem:[%s6934_s1 + $0x980] ss:$16 sps:$4 sm:$0xff]   ;;  %v4958_v6 = vld [vmem:[%s6934_s1 + $0x988] ss:$16 sps:$4 sm:$0xff]  }
  0xf8   :  { %3336 = vmatprep.subr.bf16.mxu0 %v4873_v7  ;;  %3680 = vmatprep.subr.bf16.mxu1 %v4876_v8  ;;  %v4963_v7 = vld [vmem:[%s6934_s1 + $0x9a4] ss:$16 sps:$4 sm:$0xff]   ;;  %v4966_v8 = vld [vmem:[%s6934_s1 + $0x9ac] ss:$16 sps:$4 sm:$0xff]  }
  0xfb   :  { %3337 = vmatpush1.bf16.msra.mxu0 %v4871_v9  ;;  %3681 = vmatpush1.bf16.msra.mxu1 %v4874_v10  ;;  %v4961_v9 = vld [vmem:[%s6934_s1 + $0x9a0] ss:$16 sps:$4 sm:$0xff]   ;;  %v4964_v10 = vld [vmem:[%s6934_s1 + $0x9a8] ss:$16 sps:$4 sm:$0xff]  }
  0xfc   :  { %3338 = vmatprep.subr.bf16.mxu0 %v4879_v11  ;;  %3682 = vmatprep.subr.bf16.mxu1 %v4882_v12  ;;  %v4969_v11 = vld [vmem:[%s6934_s1 + $0x9c4] ss:$16 sps:$4 sm:$0xff]   ;;  %v4972_v12 = vld [vmem:[%s6934_s1 + $0x9cc] ss:$16 sps:$4 sm:$0xff]  }
  0xff   :  { %3339 = vmatpush1.bf16.msra.mxu0 %v4877_v13  ;;  %3683 = vmatpush1.bf16.msra.mxu1 %v4880_v16  ;;  %v4967_v13 = vld [vmem:[%s6934_s1 + $0x9c0] ss:$16 sps:$4 sm:$0xff]   ;;  %v4970_v16 = vld [vmem:[%s6934_s1 + $0x9c8] ss:$16 sps:$4 sm:$0xff]  }
 0x100   :  { %3351 = vmatprep.subr.bf16.mxu0 %v4885_v17  ;;  %3695 = vmatprep.subr.bf16.mxu1 %v4888_v20  ;;  %v4975_v17 = vld [vmem:[%s6934_s1 + $0x9e4] ss:$16 sps:$4 sm:$0xff]   ;;  %v4978_v20 = vld [vmem:[%s6934_s1 + $0x9ec] ss:$16 sps:$4 sm:$0xff]  }
 0x102   :  { %3341 = vmatmul.mubr.bf16.vlgmr.msra.gmra.mrb[0].mxu0 %v3913_v15  ;;  %3685 = vmatmul.mubr.bf16.vlgmr.msra.gmra.mrb[0].mxu1 %v3913_v15  ;;  %v4973_v15 = vld [vmem:[%s6934_s1 + $0x9e0] ss:$16 sps:$4 sm:$0xff]  }
 0x103   :  { %3352 = vmatpush1.bf16.msra.mxu0 %v4883_v22  ;;  %3696 = vmatpush1.bf16.msra.mxu1 %v4886_v23  ;;  %v4976_v22 = vld [vmem:[%s6934_s1 + $0x9e8] ss:$16 sps:$4 sm:$0xff]   ;;  %v4981_v23 = vld [vmem:[%s6934_s1 + $0xa04] ss:$16 sps:$4 sm:$0xff]  }
 0x104   :  { %3353 = vmatprep.subr.bf16.mxu0 %v4891_v18  ;;  %3697 = vmatprep.subr.bf16.mxu1 %v4894_v19  ;;  %v4984_v18 = vld [vmem:[%s6934_s1 + $0xa0c] ss:$16 sps:$4 sm:$0xff]  }
 0x105   :  { %3383 = vmatprep.mubr.bf16.mxu0 %v3916_v24  ;;  %3727 = vmatprep.mubr.bf16.mxu1 %v3916_v24  ;;  %v6311_v19 = vld [vmem:[%s6935_s0 + $0x28] sm:$0xff] }
 0x106   :  { %v6316_v24 = vld [vmem:[%s6935_s0 + $0x68] sm:$0xff] }
 0x107   :  { %3354 = vmatpush1.bf16.msra.mxu0 %v4889_v25  ;;  %3698 = vmatpush1.bf16.msra.mxu1 %v4892_v26  ;;  %v3915_v25 = vcombine.low %v6105_v14, %v6112_v21  ;;  %v4979_v26 = vld [vmem:[%s6934_s1 + $0xa00] ss:$16 sps:$4 sm:$0xff]   ;;  %v4990_v14 = vld [vmem:[%s6934_s1 + $0xa2c] ss:$16 sps:$4 sm:$0xff]   ;;  %v3918_v21 = vcombine.high %v6311_v19, %v6316_v24 }
 0x108   :  { %3355 = vmatprep.subr.bf16.mxu0 %v4897_v27  ;;  %3699 = vmatprep.subr.bf16.mxu1 %v4900_v28  ;;  %v4982_v27 = vld [vmem:[%s6934_s1 + $0xa08] ss:$16 sps:$4 sm:$0xff]   ;;  %v4987_v28 = vld [vmem:[%s6934_s1 + $0xa24] ss:$16 sps:$4 sm:$0xff]  }
 0x10b   :  { %3356 = vmatpush1.bf16.msra.mxu0 %v4895_v29  ;;  %3700 = vmatpush1.bf16.msra.mxu1 %v4898_v30  ;;  %v4985_v29 = vld [vmem:[%s6934_s1 + $0xa20] ss:$16 sps:$4 sm:$0xff]   ;;  %v4988_v30 = vld [vmem:[%s6934_s1 + $0xa28] ss:$16 sps:$4 sm:$0xff]  }
 0x10c   :  { %3357 = vmatprep.subr.bf16.mxu0 %v4903_v31  ;;  %3701 = vmatprep.subr.bf16.mxu1 %v4906_v32  ;;  %v4993_v31 = vld [vmem:[%s6934_s1 + $0xa44] ss:$16 sps:$4 sm:$0xff]   ;;  %v4996_v32 = vld [vmem:[%s6934_s1 + $0xa4c] ss:$16 sps:$4 sm:$0xff]  }
 0x10f   :  { %3358 = vmatpush1.bf16.msra.mxu0 %v4901_v33  ;;  %3702 = vmatpush1.bf16.msra.mxu1 %v4904_v34  ;;  %v4991_v33 = vld [vmem:[%s6934_s1 + $0xa40] ss:$16 sps:$4 sm:$0xff]   ;;  %v4994_v34 = vld [vmem:[%s6934_s1 + $0xa48] ss:$16 sps:$4 sm:$0xff]  }
 0x110   :  { %3359 = vmatprep.subr.bf16.mxu0 %v4909_v35  ;;  %3703 = vmatprep.subr.bf16.mxu1 %v4912_v36  ;;  %v4999_v35 = vld [vmem:[%s6934_s1 + $0xa64] ss:$16 sps:$4 sm:$0xff]   ;;  %v5002_v36 = vld [vmem:[%s6934_s1 + $0xa6c] ss:$16 sps:$4 sm:$0xff]  }
 0x113   :  { %3360 = vmatpush1.bf16.msra.mxu0 %v4907_v37  ;;  %3704 = vmatpush1.bf16.msra.mxu1 %v4910_v38  ;;  %v4997_v37 = vld [vmem:[%s6934_s1 + $0xa60] ss:$16 sps:$4 sm:$0xff]   ;;  %v5000_v38 = vld [vmem:[%s6934_s1 + $0xa68] ss:$16 sps:$4 sm:$0xff]  }
 0x114   :  { %3361 = vmatprep.subr.bf16.mxu0 %v4915_v39  ;;  %3705 = vmatprep.subr.bf16.mxu1 %v4918_v40  ;;  %v5005_v39 = vld [vmem:[%s6934_s1 + $0xa84] ss:$16 sps:$4 sm:$0xff]   ;;  %v5008_v40 = vld [vmem:[%s6934_s1 + $0xa8c] ss:$16 sps:$4 sm:$0xff]  }
 0x117   :  { %3362 = vmatpush1.bf16.msra.mxu0 %v4913_v41  ;;  %3706 = vmatpush1.bf16.msra.mxu1 %v4916_v42  ;;  %v5003_v41 = vld [vmem:[%s6934_s1 + $0xa80] ss:$16 sps:$4 sm:$0xff]   ;;  %v5006_v42 = vld [vmem:[%s6934_s1 + $0xa88] ss:$16 sps:$4 sm:$0xff]  }
 0x118   :  { %3363 = vmatprep.subr.bf16.mxu0 %v4921_v43  ;;  %3707 = vmatprep.subr.bf16.mxu1 %v4924_v44  ;;  %v5011_v43 = vld [vmem:[%s6934_s1 + $0xaa4] ss:$16 sps:$4 sm:$0xff]   ;;  %v5014_v44 = vld [vmem:[%s6934_s1 + $0xaac] ss:$16 sps:$4 sm:$0xff]  }
 0x11b   :  { %3364 = vmatpush1.bf16.msra.mxu0 %v4919_v45  ;;  %3708 = vmatpush1.bf16.msra.mxu1 %v4922_v46  ;;  %v5009_v45 = vld [vmem:[%s6934_s1 + $0xaa0] ss:$16 sps:$4 sm:$0xff]   ;;  %v5012_v46 = vld [vmem:[%s6934_s1 + $0xaa8] ss:$16 sps:$4 sm:$0xff]  }
 0x11c   :  { %3365 = vmatprep.subr.bf16.mxu0 %v4927_v47  ;;  %3709 = vmatprep.subr.bf16.mxu1 %v4930_v48  ;;  %v5017_v47 = vld [vmem:[%s6934_s1 + $0xac4] ss:$16 sps:$4 sm:$0xff]   ;;  %v5020_v48 = vld [vmem:[%s6934_s1 + $0xacc] ss:$16 sps:$4 sm:$0xff]  }
 0x11f   :  { %3366 = vmatpush1.bf16.msra.mxu0 %v4925_v49  ;;  %3710 = vmatpush1.bf16.msra.mxu1 %v4928_v50  ;;  %v5015_v49 = vld [vmem:[%s6934_s1 + $0xac0] ss:$16 sps:$4 sm:$0xff]   ;;  %v5018_v50 = vld [vmem:[%s6934_s1 + $0xac8] ss:$16 sps:$4 sm:$0xff]  }
 0x120   :  { %3367 = vmatprep.subr.bf16.mxu0 %v4933_v51  ;;  %3711 = vmatprep.subr.bf16.mxu1 %v4936_v52  ;;  %v5023_v51 = vld [vmem:[%s6934_s1 + $0xae4] ss:$16 sps:$4 sm:$0xff]   ;;  %v5026_v52 = vld [vmem:[%s6934_s1 + $0xaec] ss:$16 sps:$4 sm:$0xff]  }
 0x123   :  { %3368 = vmatpush1.bf16.msra.mxu0 %v4931_v53  ;;  %3712 = vmatpush1.bf16.msra.mxu1 %v4934_v54  ;;  %v5021_v53 = vld [vmem:[%s6934_s1 + $0xae0] ss:$16 sps:$4 sm:$0xff]   ;;  %v5024_v54 = vld [vmem:[%s6934_s1 + $0xae8] ss:$16 sps:$4 sm:$0xff]  }
 0x124   :  { %3369 = vmatprep.subr.bf16.mxu0 %v4939_v55  ;;  %3713 = vmatprep.subr.bf16.mxu1 %v4942_v56  ;;  %v5029_v55 = vld [vmem:[%s6934_s1 + $0xb04] ss:$16 sps:$4 sm:$0xff]   ;;  %v5032_v56 = vld [vmem:[%s6934_s1 + $0xb0c] ss:$16 sps:$4 sm:$0xff]  }
 0x127   :  { %3370 = vmatpush1.bf16.msra.mxu0 %v4937_v57  ;;  %3714 = vmatpush1.bf16.msra.mxu1 %v4940_v58  ;;  %v5027_v57 = vld [vmem:[%s6934_s1 + $0xb00] ss:$16 sps:$4 sm:$0xff]   ;;  %v5030_v58 = vld [vmem:[%s6934_s1 + $0xb08] ss:$16 sps:$4 sm:$0xff]  }
 0x128   :  { %3371 = vmatprep.subr.bf16.mxu0 %v4945_v59  ;;  %3715 = vmatprep.subr.bf16.mxu1 %v4948_v60  ;;  %v5035_v59 = vld [vmem:[%s6934_s1 + $0xb24] ss:$16 sps:$4 sm:$0xff]   ;;  %v5038_v60 = vld [vmem:[%s6934_s1 + $0xb2c] ss:$16 sps:$4 sm:$0xff]  }
 0x12b   :  { %3372 = vmatpush1.bf16.msra.mxu0 %v4943_v61  ;;  %3716 = vmatpush1.bf16.msra.mxu1 %v4946_v62  ;;  %v5033_v61 = vld [vmem:[%s6934_s1 + $0xb20] ss:$16 sps:$4 sm:$0xff]   ;;  %v5036_v62 = vld [vmem:[%s6934_s1 + $0xb28] ss:$16 sps:$4 sm:$0xff]  }
 0x12c   :  { %3373 = vmatprep.subr.bf16.mxu0 %v4951_v63  ;;  %3717 = vmatprep.subr.bf16.mxu1 %v4954_v0  ;;  %v5041_v63 = vld [vmem:[%s6934_s1 + $0xb44] ss:$16 sps:$4 sm:$0xff]   ;;  %v5044_v0 = vld [vmem:[%s6934_s1 + $0xb4c] ss:$16 sps:$4 sm:$0xff]  }
 0x12f   :  { %3374 = vmatpush1.bf16.msra.mxu0 %v4949_v1  ;;  %3718 = vmatpush1.bf16.msra.mxu1 %v4952_v2  ;;  %v5039_v1 = vld [vmem:[%s6934_s1 + $0xb40] ss:$16 sps:$4 sm:$0xff]   ;;  %v5042_v2 = vld [vmem:[%s6934_s1 + $0xb48] ss:$16 sps:$4 sm:$0xff]  }
 0x130   :  { %3375 = vmatprep.subr.bf16.mxu0 %v4957_v3  ;;  %3719 = vmatprep.subr.bf16.mxu1 %v4960_v4  ;;  %v5047_v3 = vld [vmem:[%s6934_s1 + $0xb64] ss:$16 sps:$4 sm:$0xff]   ;;  %v5050_v4 = vld [vmem:[%s6934_s1 + $0xb6c] ss:$16 sps:$4 sm:$0xff]  }
 0x133   :  { %3376 = vmatpush1.bf16.msra.mxu0 %v4955_v5  ;;  %3720 = vmatpush1.bf16.msra.mxu1 %v4958_v6  ;;  %v5045_v5 = vld [vmem:[%s6934_s1 + $0xb60] ss:$16 sps:$4 sm:$0xff]   ;;  %v5048_v6 = vld [vmem:[%s6934_s1 + $0xb68] ss:$16 sps:$4 sm:$0xff]  }
 0x134   :  { %3377 = vmatprep.subr.bf16.mxu0 %v4963_v7  ;;  %3721 = vmatprep.subr.bf16.mxu1 %v4966_v8  ;;  %v5053_v7 = vld [vmem:[%s6934_s1 + $0xb84] ss:$16 sps:$4 sm:$0xff]   ;;  %v5056_v8 = vld [vmem:[%s6934_s1 + $0xb8c] ss:$16 sps:$4 sm:$0xff]  }
 0x137   :  { %3378 = vmatpush1.bf16.msra.mxu0 %v4961_v9  ;;  %3722 = vmatpush1.bf16.msra.mxu1 %v4964_v10  ;;  %v5051_v9 = vld [vmem:[%s6934_s1 + $0xb80] ss:$16 sps:$4 sm:$0xff]   ;;  %v5054_v10 = vld [vmem:[%s6934_s1 + $0xb88] ss:$16 sps:$4 sm:$0xff]  }
 0x138   :  { %3379 = vmatprep.subr.bf16.mxu0 %v4969_v11  ;;  %3723 = vmatprep.subr.bf16.mxu1 %v4972_v12  ;;  %v5059_v11 = vld [vmem:[%s6934_s1 + $0xba4] ss:$16 sps:$4 sm:$0xff]   ;;  %v5062_v12 = vld [vmem:[%s6934_s1 + $0xbac] ss:$16 sps:$4 sm:$0xff]  }
 0x13b   :  { %3380 = vmatpush1.bf16.msra.mxu0 %v4967_v13  ;;  %3724 = vmatpush1.bf16.msra.mxu1 %v4970_v16  ;;  %v5057_v13 = vld [vmem:[%s6934_s1 + $0xba0] ss:$16 sps:$4 sm:$0xff]   ;;  %v5060_v16 = vld [vmem:[%s6934_s1 + $0xba8] ss:$16 sps:$4 sm:$0xff]  }
 0x13c   :  { %3381 = vmatprep.subr.bf16.mxu0 %v4975_v17  ;;  %3725 = vmatprep.subr.bf16.mxu1 %v4978_v20  ;;  %v5065_v17 = vld [vmem:[%s6934_s1 + $0xbc4] ss:$16 sps:$4 sm:$0xff]   ;;  %v5068_v20 = vld [vmem:[%s6934_s1 + $0xbcc] ss:$16 sps:$4 sm:$0xff]  }
 0x13f   :  { %3382 = vmatpush1.bf16.msra.mxu0 %v4973_v15  ;;  %3726 = vmatpush1.bf16.msra.mxu1 %v4976_v22  ;;  %v5063_v15 = vld [vmem:[%s6934_s1 + $0xbc0] ss:$16 sps:$4 sm:$0xff]   ;;  %v5066_v22 = vld [vmem:[%s6934_s1 + $0xbc8] ss:$16 sps:$4 sm:$0xff]  }
 0x140   :  { %3394 = vmatprep.subr.bf16.mxu0 %v4981_v23  ;;  %3738 = vmatprep.subr.bf16.mxu1 %v4984_v18  ;;  %v5071_v23 = vld [vmem:[%s6934_s1 + $0xbe4] ss:$16 sps:$4 sm:$0xff]   ;;  %v5074_v18 = vld [vmem:[%s6934_s1 + $0xbec] ss:$16 sps:$4 sm:$0xff]  }
 0x142   :  { %3384 = vmatmul.mubr.bf16.vlgmr.msra.gmra.mrb[0].mxu0 %v3915_v25  ;;  %3728 = vmatmul.mubr.bf16.vlgmr.msra.gmra.mrb[0].mxu1 %v3915_v25  ;;  %v5069_v25 = vld [vmem:[%s6934_s1 + $0xbe0] ss:$16 sps:$4 sm:$0xff]  }
 0x143   :  { %3395 = vmatpush1.bf16.msra.mxu0 %v4979_v26  ;;  %3739 = vmatpush1.bf16.msra.mxu1 %v4982_v27  ;;  %v5072_v26 = vld [vmem:[%s6934_s1 + $0xbe8] ss:$16 sps:$4 sm:$0xff]   ;;  %v5077_v27 = vld [vmem:[%s6934_s1 + $0xc04] ss:$16 sps:$4 sm:$0xff]  }
 0x144   :  { %3396 = vmatprep.subr.bf16.mxu0 %v4987_v28  ;;  %3740 = vmatprep.subr.bf16.mxu1 %v4990_v14  ;;  %v5080_v28 = vld [vmem:[%s6934_s1 + $0xc0c] ss:$16 sps:$4 sm:$0xff]   ;;  %v3917_v14 = vcombine.low %v6311_v19, %v6316_v24  ;;  %v5078_v19 = vld [vmem:[%s6934_s1 + $0xc08] ss:$16 sps:$4 sm:$0xff]   ;;  %v5083_v24 = vld [vmem:[%s6934_s1 + $0xc24] ss:$16 sps:$4 sm:$0xff]  }
 0x145   :  { %3426 = vmatprep.mubr.bf16.mxu0 %v3918_v21  ;;  %3770 = vmatprep.mubr.bf16.mxu1 %v3918_v21  ;;  %v6519_v21 = vld [vmem:[%s6935_s0 + $0x30] sm:$0xff] }
 0x147   :  { %3397 = vmatpush1.bf16.msra.mxu0 %v4985_v29  ;;  %3741 = vmatpush1.bf16.msra.mxu1 %v4988_v30  ;;  %v6524_v29 = vld [vmem:[%s6935_s0 + $0x70] sm:$0xff] }
 0x148   :  { %3398 = vmatprep.subr.bf16.mxu0 %v4993_v31  ;;  %3742 = vmatprep.subr.bf16.mxu1 %v4996_v32  ;;  %v5075_v30 = vld [vmem:[%s6934_s1 + $0xc00] ss:$16 sps:$4 sm:$0xff]   ;;  %v5086_v31 = vld [vmem:[%s6934_s1 + $0xc2c] ss:$16 sps:$4 sm:$0xff]   ;;  %v3920_v32 = vcombine.high %v6519_v21, %v6524_v29 }
 0x14b   :  { %3399 = vmatpush1.bf16.msra.mxu0 %v4991_v33  ;;  %3743 = vmatpush1.bf16.msra.mxu1 %v4994_v34  ;;  %v5081_v33 = vld [vmem:[%s6934_s1 + $0xc20] ss:$16 sps:$4 sm:$0xff]   ;;  %v5084_v34 = vld [vmem:[%s6934_s1 + $0xc28] ss:$16 sps:$4 sm:$0xff]  }
 0x14c   :  { %3400 = vmatprep.subr.bf16.mxu0 %v4999_v35  ;;  %3744 = vmatprep.subr.bf16.mxu1 %v5002_v36  ;;  %v5089_v35 = vld [vmem:[%s6934_s1 + $0xc44] ss:$16 sps:$4 sm:$0xff]   ;;  %v5092_v36 = vld [vmem:[%s6934_s1 + $0xc4c] ss:$16 sps:$4 sm:$0xff]  }
 0x14f   :  { %3401 = vmatpush1.bf16.msra.mxu0 %v4997_v37  ;;  %3745 = vmatpush1.bf16.msra.mxu1 %v5000_v38  ;;  %v5087_v37 = vld [vmem:[%s6934_s1 + $0xc40] ss:$16 sps:$4 sm:$0xff]   ;;  %v5090_v38 = vld [vmem:[%s6934_s1 + $0xc48] ss:$16 sps:$4 sm:$0xff]  }
 0x150   :  { %3402 = vmatprep.subr.bf16.mxu0 %v5005_v39  ;;  %3746 = vmatprep.subr.bf16.mxu1 %v5008_v40  ;;  %v5095_v39 = vld [vmem:[%s6934_s1 + $0xc64] ss:$16 sps:$4 sm:$0xff]   ;;  %v5098_v40 = vld [vmem:[%s6934_s1 + $0xc6c] ss:$16 sps:$4 sm:$0xff]  }
 0x153   :  { %3403 = vmatpush1.bf16.msra.mxu0 %v5003_v41  ;;  %3747 = vmatpush1.bf16.msra.mxu1 %v5006_v42  ;;  %v5093_v41 = vld [vmem:[%s6934_s1 + $0xc60] ss:$16 sps:$4 sm:$0xff]   ;;  %v5096_v42 = vld [vmem:[%s6934_s1 + $0xc68] ss:$16 sps:$4 sm:$0xff]  }
 0x154   :  { %3404 = vmatprep.subr.bf16.mxu0 %v5011_v43  ;;  %3748 = vmatprep.subr.bf16.mxu1 %v5014_v44  ;;  %v5101_v43 = vld [vmem:[%s6934_s1 + $0xc84] ss:$16 sps:$4 sm:$0xff]   ;;  %v5104_v44 = vld [vmem:[%s6934_s1 + $0xc8c] ss:$16 sps:$4 sm:$0xff]  }
 0x157   :  { %3405 = vmatpush1.bf16.msra.mxu0 %v5009_v45  ;;  %3749 = vmatpush1.bf16.msra.mxu1 %v5012_v46  ;;  %v5099_v45 = vld [vmem:[%s6934_s1 + $0xc80] ss:$16 sps:$4 sm:$0xff]   ;;  %v5102_v46 = vld [vmem:[%s6934_s1 + $0xc88] ss:$16 sps:$4 sm:$0xff]  }
 0x158   :  { %3406 = vmatprep.subr.bf16.mxu0 %v5017_v47  ;;  %3750 = vmatprep.subr.bf16.mxu1 %v5020_v48  ;;  %v5107_v47 = vld [vmem:[%s6934_s1 + $0xca4] ss:$16 sps:$4 sm:$0xff]   ;;  %v5110_v48 = vld [vmem:[%s6934_s1 + $0xcac] ss:$16 sps:$4 sm:$0xff]  }
 0x15b   :  { %3407 = vmatpush1.bf16.msra.mxu0 %v5015_v49  ;;  %3751 = vmatpush1.bf16.msra.mxu1 %v5018_v50  ;;  %v5105_v49 = vld [vmem:[%s6934_s1 + $0xca0] ss:$16 sps:$4 sm:$0xff]   ;;  %v5108_v50 = vld [vmem:[%s6934_s1 + $0xca8] ss:$16 sps:$4 sm:$0xff]  }
 0x15c   :  { %3408 = vmatprep.subr.bf16.mxu0 %v5023_v51  ;;  %3752 = vmatprep.subr.bf16.mxu1 %v5026_v52  ;;  %v5113_v51 = vld [vmem:[%s6934_s1 + $0xcc4] ss:$16 sps:$4 sm:$0xff]   ;;  %v5116_v52 = vld [vmem:[%s6934_s1 + $0xccc] ss:$16 sps:$4 sm:$0xff]  }
 0x15f   :  { %3409 = vmatpush1.bf16.msra.mxu0 %v5021_v53  ;;  %3753 = vmatpush1.bf16.msra.mxu1 %v5024_v54  ;;  %v5111_v53 = vld [vmem:[%s6934_s1 + $0xcc0] ss:$16 sps:$4 sm:$0xff]   ;;  %v5114_v54 = vld [vmem:[%s6934_s1 + $0xcc8] ss:$16 sps:$4 sm:$0xff]  }
 0x160   :  { %3410 = vmatprep.subr.bf16.mxu0 %v5029_v55  ;;  %3754 = vmatprep.subr.bf16.mxu1 %v5032_v56  ;;  %v5119_v55 = vld [vmem:[%s6934_s1 + $0xce4] ss:$16 sps:$4 sm:$0xff]   ;;  %v5122_v56 = vld [vmem:[%s6934_s1 + $0xcec] ss:$16 sps:$4 sm:$0xff]  }
 0x163   :  { %3411 = vmatpush1.bf16.msra.mxu0 %v5027_v57  ;;  %3755 = vmatpush1.bf16.msra.mxu1 %v5030_v58  ;;  %v5117_v57 = vld [vmem:[%s6934_s1 + $0xce0] ss:$16 sps:$4 sm:$0xff]   ;;  %v5120_v58 = vld [vmem:[%s6934_s1 + $0xce8] ss:$16 sps:$4 sm:$0xff]  }
 0x164   :  { %3412 = vmatprep.subr.bf16.mxu0 %v5035_v59  ;;  %3756 = vmatprep.subr.bf16.mxu1 %v5038_v60  ;;  %v5125_v59 = vld [vmem:[%s6934_s1 + $0xd04] ss:$16 sps:$4 sm:$0xff]   ;;  %v5128_v60 = vld [vmem:[%s6934_s1 + $0xd0c] ss:$16 sps:$4 sm:$0xff]  }
 0x167   :  { %3413 = vmatpush1.bf16.msra.mxu0 %v5033_v61  ;;  %3757 = vmatpush1.bf16.msra.mxu1 %v5036_v62  ;;  %v5123_v61 = vld [vmem:[%s6934_s1 + $0xd00] ss:$16 sps:$4 sm:$0xff]   ;;  %v5126_v62 = vld [vmem:[%s6934_s1 + $0xd08] ss:$16 sps:$4 sm:$0xff]  }
 0x168   :  { %3414 = vmatprep.subr.bf16.mxu0 %v5041_v63  ;;  %3758 = vmatprep.subr.bf16.mxu1 %v5044_v0  ;;  %v5131_v63 = vld [vmem:[%s6934_s1 + $0xd24] ss:$16 sps:$4 sm:$0xff]   ;;  %v5134_v0 = vld [vmem:[%s6934_s1 + $0xd2c] ss:$16 sps:$4 sm:$0xff]  }
 0x16b   :  { %3415 = vmatpush1.bf16.msra.mxu0 %v5039_v1  ;;  %3759 = vmatpush1.bf16.msra.mxu1 %v5042_v2  ;;  %v5129_v1 = vld [vmem:[%s6934_s1 + $0xd20] ss:$16 sps:$4 sm:$0xff]   ;;  %v5132_v2 = vld [vmem:[%s6934_s1 + $0xd28] ss:$16 sps:$4 sm:$0xff]  }
 0x16c   :  { %3416 = vmatprep.subr.bf16.mxu0 %v5047_v3  ;;  %3760 = vmatprep.subr.bf16.mxu1 %v5050_v4  ;;  %v5137_v3 = vld [vmem:[%s6934_s1 + $0xd44] ss:$16 sps:$4 sm:$0xff]   ;;  %v5140_v4 = vld [vmem:[%s6934_s1 + $0xd4c] ss:$16 sps:$4 sm:$0xff]  }
 0x16f   :  { %3417 = vmatpush1.bf16.msra.mxu0 %v5045_v5  ;;  %3761 = vmatpush1.bf16.msra.mxu1 %v5048_v6  ;;  %v5135_v5 = vld [vmem:[%s6934_s1 + $0xd40] ss:$16 sps:$4 sm:$0xff]   ;;  %v5138_v6 = vld [vmem:[%s6934_s1 + $0xd48] ss:$16 sps:$4 sm:$0xff]  }
 0x170   :  { %3418 = vmatprep.subr.bf16.mxu0 %v5053_v7  ;;  %3762 = vmatprep.subr.bf16.mxu1 %v5056_v8  ;;  %v5143_v7 = vld [vmem:[%s6934_s1 + $0xd64] ss:$16 sps:$4 sm:$0xff]   ;;  %v5146_v8 = vld [vmem:[%s6934_s1 + $0xd6c] ss:$16 sps:$4 sm:$0xff]  }
 0x173   :  { %3419 = vmatpush1.bf16.msra.mxu0 %v5051_v9  ;;  %3763 = vmatpush1.bf16.msra.mxu1 %v5054_v10  ;;  %v5141_v9 = vld [vmem:[%s6934_s1 + $0xd60] ss:$16 sps:$4 sm:$0xff]   ;;  %v5144_v10 = vld [vmem:[%s6934_s1 + $0xd68] ss:$16 sps:$4 sm:$0xff]  }
 0x174   :  { %3420 = vmatprep.subr.bf16.mxu0 %v5059_v11  ;;  %3764 = vmatprep.subr.bf16.mxu1 %v5062_v12  ;;  %v5149_v11 = vld [vmem:[%s6934_s1 + $0xd84] ss:$16 sps:$4 sm:$0xff]   ;;  %v5152_v12 = vld [vmem:[%s6934_s1 + $0xd8c] ss:$16 sps:$4 sm:$0xff]  }
 0x177   :  { %3421 = vmatpush1.bf16.msra.mxu0 %v5057_v13  ;;  %3765 = vmatpush1.bf16.msra.mxu1 %v5060_v16  ;;  %v5147_v13 = vld [vmem:[%s6934_s1 + $0xd80] ss:$16 sps:$4 sm:$0xff]   ;;  %v5150_v16 = vld [vmem:[%s6934_s1 + $0xd88] ss:$16 sps:$4 sm:$0xff]  }
 0x178   :  { %3422 = vmatprep.subr.bf16.mxu0 %v5065_v17  ;;  %3766 = vmatprep.subr.bf16.mxu1 %v5068_v20  ;;  %v5155_v17 = vld [vmem:[%s6934_s1 + $0xda4] ss:$16 sps:$4 sm:$0xff]   ;;  %v5158_v20 = vld [vmem:[%s6934_s1 + $0xdac] ss:$16 sps:$4 sm:$0xff]  }
 0x17b   :  { %3423 = vmatpush1.bf16.msra.mxu0 %v5063_v15  ;;  %3767 = vmatpush1.bf16.msra.mxu1 %v5066_v22  ;;  %v5153_v15 = vld [vmem:[%s6934_s1 + $0xda0] ss:$16 sps:$4 sm:$0xff]   ;;  %v5156_v22 = vld [vmem:[%s6934_s1 + $0xda8] ss:$16 sps:$4 sm:$0xff]  }
 0x17c   :  { %3424 = vmatprep.subr.bf16.mxu0 %v5071_v23  ;;  %3768 = vmatprep.subr.bf16.mxu1 %v5074_v18  ;;  %v5161_v23 = vld [vmem:[%s6934_s1 + $0xdc4] ss:$16 sps:$4 sm:$0xff]   ;;  %v5164_v18 = vld [vmem:[%s6934_s1 + $0xdcc] ss:$16 sps:$4 sm:$0xff]  }
 0x17f   :  { %3425 = vmatpush1.bf16.msra.mxu0 %v5069_v25  ;;  %3769 = vmatpush1.bf16.msra.mxu1 %v5072_v26  ;;  %v5159_v25 = vld [vmem:[%s6934_s1 + $0xdc0] ss:$16 sps:$4 sm:$0xff]   ;;  %v5162_v26 = vld [vmem:[%s6934_s1 + $0xdc8] ss:$16 sps:$4 sm:$0xff]  }
 0x180   :  { %3437 = vmatprep.subr.bf16.mxu0 %v5077_v27  ;;  %3781 = vmatprep.subr.bf16.mxu1 %v5080_v28  ;;  %v5167_v27 = vld [vmem:[%s6934_s1 + $0xde4] ss:$16 sps:$4 sm:$0xff]   ;;  %v5170_v28 = vld [vmem:[%s6934_s1 + $0xdec] ss:$16 sps:$4 sm:$0xff]  }
 0x182   :  { %3427 = vmatmul.mubr.bf16.vlgmr.msra.gmra.mrb[0].mxu0 %v3917_v14  ;;  %3771 = vmatmul.mubr.bf16.vlgmr.msra.gmra.mrb[0].mxu1 %v3917_v14  ;;  %v5165_v14 = vld [vmem:[%s6934_s1 + $0xde0] ss:$16 sps:$4 sm:$0xff]  }
 0x183   :  { %3438 = vmatpush1.bf16.msra.mxu0 %v5075_v30  ;;  %3782 = vmatpush1.bf16.msra.mxu1 %v5078_v19  ;;  %v5168_v30 = vld [vmem:[%s6934_s1 + $0xde8] ss:$16 sps:$4 sm:$0xff]   ;;  %v5173_v19 = vld [vmem:[%s6934_s1 + $0xe04] ss:$16 sps:$4 sm:$0xff]  }
 0x184   :  { %3439 = vmatprep.subr.bf16.mxu0 %v5083_v24  ;;  %3783 = vmatprep.subr.bf16.mxu1 %v5086_v31  ;;  %v5176_v24 = vld [vmem:[%s6934_s1 + $0xe0c] ss:$16 sps:$4 sm:$0xff]   ;;  %v3919_v31 = vcombine.low %v6519_v21, %v6524_v29  ;;  %v5174_v21 = vld [vmem:[%s6934_s1 + $0xe08] ss:$16 sps:$4 sm:$0xff]   ;;  %v5179_v29 = vld [vmem:[%s6934_s1 + $0xe24] ss:$16 sps:$4 sm:$0xff]  }
 0x185   :  { %3469 = vmatprep.mubr.bf16.mxu0 %v3920_v32  ;;  %3813 = vmatprep.mubr.bf16.mxu1 %v3920_v32  ;;  %v6725_v32 = vld [vmem:[%s6935_s0 + $0x38] sm:$0xff] }
 0x187   :  { %3440 = vmatpush1.bf16.msra.mxu0 %v5081_v33  ;;  %3784 = vmatpush1.bf16.msra.mxu1 %v5084_v34  ;;  %v6730_v33 = vld [vmem:[%s6935_s0 + $0x78] sm:$0xff]  ;;  %v5171_v34 = vld [vmem:[%s6934_s1 + $0xe00] ss:$16 sps:$4 sm:$0xff]  }
 0x188   :  { %3441 = vmatprep.subr.bf16.mxu0 %v5089_v35  ;;  %3785 = vmatprep.subr.bf16.mxu1 %v5092_v36  ;;  %v5182_v35 = vld [vmem:[%s6934_s1 + $0xe2c] ss:$16 sps:$4 sm:$0xff]   ;;  %v3922_v36 = vcombine.high %v6725_v32, %v6730_v33 }
 0x18b   :  { %3442 = vmatpush1.bf16.msra.mxu0 %v5087_v37  ;;  %3786 = vmatpush1.bf16.msra.mxu1 %v5090_v38  ;;  %v5177_v37 = vld [vmem:[%s6934_s1 + $0xe20] ss:$16 sps:$4 sm:$0xff]   ;;  %v5180_v38 = vld [vmem:[%s6934_s1 + $0xe28] ss:$16 sps:$4 sm:$0xff]  }
 0x18c   :  { %3443 = vmatprep.subr.bf16.mxu0 %v5095_v39  ;;  %3787 = vmatprep.subr.bf16.mxu1 %v5098_v40  ;;  %v5185_v39 = vld [vmem:[%s6934_s1 + $0xe44] ss:$16 sps:$4 sm:$0xff]   ;;  %v5188_v40 = vld [vmem:[%s6934_s1 + $0xe4c] ss:$16 sps:$4 sm:$0xff]  }
 0x18f   :  { %3444 = vmatpush1.bf16.msra.mxu0 %v5093_v41  ;;  %3788 = vmatpush1.bf16.msra.mxu1 %v5096_v42  ;;  %v5183_v41 = vld [vmem:[%s6934_s1 + $0xe40] ss:$16 sps:$4 sm:$0xff]   ;;  %v5186_v42 = vld [vmem:[%s6934_s1 + $0xe48] ss:$16 sps:$4 sm:$0xff]  }
 0x190   :  { %3445 = vmatprep.subr.bf16.mxu0 %v5101_v43  ;;  %3789 = vmatprep.subr.bf16.mxu1 %v5104_v44  ;;  %v5191_v43 = vld [vmem:[%s6934_s1 + $0xe64] ss:$16 sps:$4 sm:$0xff]   ;;  %v5194_v44 = vld [vmem:[%s6934_s1 + $0xe6c] ss:$16 sps:$4 sm:$0xff]  }
 0x193   :  { %3446 = vmatpush1.bf16.msra.mxu0 %v5099_v45  ;;  %3790 = vmatpush1.bf16.msra.mxu1 %v5102_v46  ;;  %v5189_v45 = vld [vmem:[%s6934_s1 + $0xe60] ss:$16 sps:$4 sm:$0xff]   ;;  %v5192_v46 = vld [vmem:[%s6934_s1 + $0xe68] ss:$16 sps:$4 sm:$0xff]  }
 0x194   :  { %3447 = vmatprep.subr.bf16.mxu0 %v5107_v47  ;;  %3791 = vmatprep.subr.bf16.mxu1 %v5110_v48  ;;  %v5197_v47 = vld [vmem:[%s6934_s1 + $0xe84] ss:$16 sps:$4 sm:$0xff]   ;;  %v5200_v48 = vld [vmem:[%s6934_s1 + $0xe8c] ss:$16 sps:$4 sm:$0xff]  }
 0x197   :  { %3448 = vmatpush1.bf16.msra.mxu0 %v5105_v49  ;;  %3792 = vmatpush1.bf16.msra.mxu1 %v5108_v50  ;;  %v5195_v49 = vld [vmem:[%s6934_s1 + $0xe80] ss:$16 sps:$4 sm:$0xff]   ;;  %v5198_v50 = vld [vmem:[%s6934_s1 + $0xe88] ss:$16 sps:$4 sm:$0xff]  }
 0x198   :  { %3449 = vmatprep.subr.bf16.mxu0 %v5113_v51  ;;  %3793 = vmatprep.subr.bf16.mxu1 %v5116_v52  ;;  %v5203_v51 = vld [vmem:[%s6934_s1 + $0xea4] ss:$16 sps:$4 sm:$0xff]   ;;  %v5206_v52 = vld [vmem:[%s6934_s1 + $0xeac] ss:$16 sps:$4 sm:$0xff]  }
 0x19b   :  { %3450 = vmatpush1.bf16.msra.mxu0 %v5111_v53  ;;  %3794 = vmatpush1.bf16.msra.mxu1 %v5114_v54  ;;  %v5201_v53 = vld [vmem:[%s6934_s1 + $0xea0] ss:$16 sps:$4 sm:$0xff]   ;;  %v5204_v54 = vld [vmem:[%s6934_s1 + $0xea8] ss:$16 sps:$4 sm:$0xff]  }
 0x19c   :  { %3451 = vmatprep.subr.bf16.mxu0 %v5119_v55  ;;  %3795 = vmatprep.subr.bf16.mxu1 %v5122_v56  ;;  %v5209_v55 = vld [vmem:[%s6934_s1 + $0xec4] ss:$16 sps:$4 sm:$0xff]   ;;  %v5212_v56 = vld [vmem:[%s6934_s1 + $0xecc] ss:$16 sps:$4 sm:$0xff]  }
 0x19f   :  { %3452 = vmatpush1.bf16.msra.mxu0 %v5117_v57  ;;  %3796 = vmatpush1.bf16.msra.mxu1 %v5120_v58  ;;  %v5207_v57 = vld [vmem:[%s6934_s1 + $0xec0] ss:$16 sps:$4 sm:$0xff]   ;;  %v5210_v58 = vld [vmem:[%s6934_s1 + $0xec8] ss:$16 sps:$4 sm:$0xff]  }
 0x1a0   :  { %3453 = vmatprep.subr.bf16.mxu0 %v5125_v59  ;;  %3797 = vmatprep.subr.bf16.mxu1 %v5128_v60  ;;  %v5215_v59 = vld [vmem:[%s6934_s1 + $0xee4] ss:$16 sps:$4 sm:$0xff]   ;;  %v5218_v60 = vld [vmem:[%s6934_s1 + $0xeec] ss:$16 sps:$4 sm:$0xff]  }
 0x1a3   :  { %3454 = vmatpush1.bf16.msra.mxu0 %v5123_v61  ;;  %3798 = vmatpush1.bf16.msra.mxu1 %v5126_v62  ;;  %v5213_v61 = vld [vmem:[%s6934_s1 + $0xee0] ss:$16 sps:$4 sm:$0xff]   ;;  %v5216_v62 = vld [vmem:[%s6934_s1 + $0xee8] ss:$16 sps:$4 sm:$0xff]  }
 0x1a4   :  { %3455 = vmatprep.subr.bf16.mxu0 %v5131_v63  ;;  %3799 = vmatprep.subr.bf16.mxu1 %v5134_v0  ;;  %v5221_v63 = vld [vmem:[%s6934_s1 + $0xf04] ss:$16 sps:$4 sm:$0xff]   ;;  %v5224_v0 = vld [vmem:[%s6934_s1 + $0xf0c] ss:$16 sps:$4 sm:$0xff]  }
 0x1a7   :  { %3456 = vmatpush1.bf16.msra.mxu0 %v5129_v1  ;;  %3800 = vmatpush1.bf16.msra.mxu1 %v5132_v2  ;;  %v5219_v1 = vld [vmem:[%s6934_s1 + $0xf00] ss:$16 sps:$4 sm:$0xff]   ;;  %v5222_v2 = vld [vmem:[%s6934_s1 + $0xf08] ss:$16 sps:$4 sm:$0xff]  }
 0x1a8   :  { %3457 = vmatprep.subr.bf16.mxu0 %v5137_v3  ;;  %3801 = vmatprep.subr.bf16.mxu1 %v5140_v4  ;;  %v5227_v3 = vld [vmem:[%s6934_s1 + $0xf24] ss:$16 sps:$4 sm:$0xff]   ;;  %v5230_v4 = vld [vmem:[%s6934_s1 + $0xf2c] ss:$16 sps:$4 sm:$0xff]  }
 0x1ab   :  { %3458 = vmatpush1.bf16.msra.mxu0 %v5135_v5  ;;  %3802 = vmatpush1.bf16.msra.mxu1 %v5138_v6  ;;  %v5225_v5 = vld [vmem:[%s6934_s1 + $0xf20] ss:$16 sps:$4 sm:$0xff]   ;;  %v5228_v6 = vld [vmem:[%s6934_s1 + $0xf28] ss:$16 sps:$4 sm:$0xff]  }
 0x1ac   :  { %3459 = vmatprep.subr.bf16.mxu0 %v5143_v7  ;;  %3803 = vmatprep.subr.bf16.mxu1 %v5146_v8  ;;  %v5233_v7 = vld [vmem:[%s6934_s1 + $0xf44] ss:$16 sps:$4 sm:$0xff]   ;;  %v5236_v8 = vld [vmem:[%s6934_s1 + $0xf4c] ss:$16 sps:$4 sm:$0xff]  }
 0x1af   :  { %3460 = vmatpush1.bf16.msra.mxu0 %v5141_v9  ;;  %3804 = vmatpush1.bf16.msra.mxu1 %v5144_v10  ;;  %v5231_v9 = vld [vmem:[%s6934_s1 + $0xf40] ss:$16 sps:$4 sm:$0xff]   ;;  %v5234_v10 = vld [vmem:[%s6934_s1 + $0xf48] ss:$16 sps:$4 sm:$0xff]  }
 0x1b0   :  { %3461 = vmatprep.subr.bf16.mxu0 %v5149_v11  ;;  %3805 = vmatprep.subr.bf16.mxu1 %v5152_v12  ;;  %v5239_v11 = vld [vmem:[%s6934_s1 + $0xf64] ss:$16 sps:$4 sm:$0xff]   ;;  %v5242_v12 = vld [vmem:[%s6934_s1 + $0xf6c] ss:$16 sps:$4 sm:$0xff]  }
 0x1b3   :  { %3462 = vmatpush1.bf16.msra.mxu0 %v5147_v13  ;;  %3806 = vmatpush1.bf16.msra.mxu1 %v5150_v16  ;;  %v5237_v13 = vld [vmem:[%s6934_s1 + $0xf60] ss:$16 sps:$4 sm:$0xff]   ;;  %v5240_v16 = vld [vmem:[%s6934_s1 + $0xf68] ss:$16 sps:$4 sm:$0xff]  }
 0x1b4   :  { %3463 = vmatprep.subr.bf16.mxu0 %v5155_v17  ;;  %3807 = vmatprep.subr.bf16.mxu1 %v5158_v20  ;;  %v5245_v17 = vld [vmem:[%s6934_s1 + $0xf84] ss:$16 sps:$4 sm:$0xff]   ;;  %v5248_v20 = vld [vmem:[%s6934_s1 + $0xf8c] ss:$16 sps:$4 sm:$0xff]  }
 0x1b7   :  { %3464 = vmatpush1.bf16.msra.mxu0 %v5153_v15  ;;  %3808 = vmatpush1.bf16.msra.mxu1 %v5156_v22  ;;  %v5243_v15 = vld [vmem:[%s6934_s1 + $0xf80] ss:$16 sps:$4 sm:$0xff]   ;;  %v5246_v22 = vld [vmem:[%s6934_s1 + $0xf88] ss:$16 sps:$4 sm:$0xff]  }
 0x1b8   :  { %3465 = vmatprep.subr.bf16.mxu0 %v5161_v23  ;;  %3809 = vmatprep.subr.bf16.mxu1 %v5164_v18  ;;  %v5251_v23 = vld [vmem:[%s6934_s1 + $0xfa4] ss:$16 sps:$4 sm:$0xff]   ;;  %v5254_v18 = vld [vmem:[%s6934_s1 + $0xfac] ss:$16 sps:$4 sm:$0xff]  }
 0x1bb   :  { %3466 = vmatpush1.bf16.msra.mxu0 %v5159_v25  ;;  %3810 = vmatpush1.bf16.msra.mxu1 %v5162_v26  ;;  %v5249_v25 = vld [vmem:[%s6934_s1 + $0xfa0] ss:$16 sps:$4 sm:$0xff]   ;;  %v5252_v26 = vld [vmem:[%s6934_s1 + $0xfa8] ss:$16 sps:$4 sm:$0xff]  }
 0x1bc   :  { %3467 = vmatprep.subr.bf16.mxu0 %v5167_v27  ;;  %3811 = vmatprep.subr.bf16.mxu1 %v5170_v28  ;;  %v5257_v27 = vld [vmem:[%s6934_s1 + $0xfc4] ss:$16 sps:$4 sm:$0xff]   ;;  %v5260_v28 = vld [vmem:[%s6934_s1 + $0xfcc] ss:$16 sps:$4 sm:$0xff]  }
 0x1bf   :  { %3468 = vmatpush1.bf16.msra.mxu0 %v5165_v14  ;;  %3812 = vmatpush1.bf16.msra.mxu1 %v5168_v30  ;;  %v5255_v14 = vld [vmem:[%s6934_s1 + $0xfc0] ss:$16 sps:$4 sm:$0xff]   ;;  %v5258_v30 = vld [vmem:[%s6934_s1 + $0xfc8] ss:$16 sps:$4 sm:$0xff]  }
 0x1c0   :  { %3480 = vmatprep.subr.bf16.mxu0 %v5173_v19  ;;  %3824 = vmatprep.subr.bf16.mxu1 %v5176_v24  ;;  %v5263_v19 = vld [vmem:[%s6934_s1 + $0xfe4] ss:$16 sps:$4 sm:$0xff]   ;;  %v5266_v24 = vld [vmem:[%s6934_s1 + $0xfec] ss:$16 sps:$4 sm:$0xff]  }
 0x1c2   :  { %3470 = vmatmul.mubr.bf16.vlgmr.msra.gmra.mrb[0].mxu0 %v3919_v31  ;;  %3814 = vmatmul.mubr.bf16.vlgmr.msra.gmra.mrb[0].mxu1 %v3919_v31  ;;  %v5261_v31 = vld [vmem:[%s6934_s1 + $0xfe0] ss:$16 sps:$4 sm:$0xff]  }
 0x1c3   :  { %3481 = vmatpush1.bf16.msra.mxu0 %v5171_v34  ;;  %3825 = vmatpush1.bf16.msra.mxu1 %v5174_v21  ;;  %v5264_v34 = vld [vmem:[%s6934_s1 + $0xfe8] ss:$16 sps:$4 sm:$0xff]   ;;  %v3921_v21 = vcombine.low %v6725_v32, %v6730_v33 }
 0x1c4   :  { %3482 = vmatprep.subr.bf16.mxu0 %v5179_v29  ;;  %3826 = vmatprep.subr.bf16.mxu1 %v5182_v35 }
 0x1c5   :  { %3512 = vmatprep.mubr.bf16.mxu0 %v3922_v36  ;;  %3856 = vmatprep.mubr.bf16.mxu1 %v3922_v36 }
 0x1c7   :  { %3483 = vmatpush1.bf16.msra.mxu0 %v5177_v37  ;;  %3827 = vmatpush1.bf16.msra.mxu1 %v5180_v38 }
 0x1c8   :  { %3484 = vmatprep.subr.bf16.mxu0 %v5185_v39  ;;  %3828 = vmatprep.subr.bf16.mxu1 %v5188_v40 }
 0x1cb   :  { %3485 = vmatpush1.bf16.msra.mxu0 %v5183_v41  ;;  %3829 = vmatpush1.bf16.msra.mxu1 %v5186_v42 }
 0x1cc   :  { %3486 = vmatprep.subr.bf16.mxu0 %v5191_v43  ;;  %3830 = vmatprep.subr.bf16.mxu1 %v5194_v44 }
 0x1cf   :  { %3487 = vmatpush1.bf16.msra.mxu0 %v5189_v45  ;;  %3831 = vmatpush1.bf16.msra.mxu1 %v5192_v46 }
 0x1d0   :  { %3488 = vmatprep.subr.bf16.mxu0 %v5197_v47  ;;  %3832 = vmatprep.subr.bf16.mxu1 %v5200_v48 }
 0x1d3   :  { %3489 = vmatpush1.bf16.msra.mxu0 %v5195_v49  ;;  %3833 = vmatpush1.bf16.msra.mxu1 %v5198_v50 }
 0x1d4   :  { %3490 = vmatprep.subr.bf16.mxu0 %v5203_v51  ;;  %3834 = vmatprep.subr.bf16.mxu1 %v5206_v52 }
 0x1d7   :  { %3491 = vmatpush1.bf16.msra.mxu0 %v5201_v53  ;;  %3835 = vmatpush1.bf16.msra.mxu1 %v5204_v54 }
 0x1d8   :  { %3492 = vmatprep.subr.bf16.mxu0 %v5209_v55  ;;  %3836 = vmatprep.subr.bf16.mxu1 %v5212_v56 }
 0x1db   :  { %3493 = vmatpush1.bf16.msra.mxu0 %v5207_v57  ;;  %3837 = vmatpush1.bf16.msra.mxu1 %v5210_v58 }
 0x1dc   :  { %3494 = vmatprep.subr.bf16.mxu0 %v5215_v59  ;;  %3838 = vmatprep.subr.bf16.mxu1 %v5218_v60 }
 0x1df   :  { %3495 = vmatpush1.bf16.msra.mxu0 %v5213_v61  ;;  %3839 = vmatpush1.bf16.msra.mxu1 %v5216_v62 }
 0x1e0   :  { %3496 = vmatprep.subr.bf16.mxu0 %v5221_v63  ;;  %3840 = vmatprep.subr.bf16.mxu1 %v5224_v0 }
 0x1e3   :  { %3497 = vmatpush1.bf16.msra.mxu0 %v5219_v1  ;;  %3841 = vmatpush1.bf16.msra.mxu1 %v5222_v2 }
 0x1e4   :  { %3498 = vmatprep.subr.bf16.mxu0 %v5227_v3  ;;  %3842 = vmatprep.subr.bf16.mxu1 %v5230_v4 }
 0x1e7   :  { %3499 = vmatpush1.bf16.msra.mxu0 %v5225_v5  ;;  %3843 = vmatpush1.bf16.msra.mxu1 %v5228_v6 }
 0x1e8   :  { %3500 = vmatprep.subr.bf16.mxu0 %v5233_v7  ;;  %3844 = vmatprep.subr.bf16.mxu1 %v5236_v8 }
 0x1eb   :  { %3501 = vmatpush1.bf16.msra.mxu0 %v5231_v9  ;;  %3845 = vmatpush1.bf16.msra.mxu1 %v5234_v10 }
 0x1ec   :  { %3502 = vmatprep.subr.bf16.mxu0 %v5239_v11  ;;  %3846 = vmatprep.subr.bf16.mxu1 %v5242_v12 }
 0x1ef   :  { %3503 = vmatpush1.bf16.msra.mxu0 %v5237_v13  ;;  %3847 = vmatpush1.bf16.msra.mxu1 %v5240_v16 }
 0x1f0   :  { %3504 = vmatprep.subr.bf16.mxu0 %v5245_v17  ;;  %3848 = vmatprep.subr.bf16.mxu1 %v5248_v20 }
 0x1f3   :  { %3505 = vmatpush1.bf16.msra.mxu0 %v5243_v15  ;;  %3849 = vmatpush1.bf16.msra.mxu1 %v5246_v22 }
 0x1f4   :  { %3506 = vmatprep.subr.bf16.mxu0 %v5251_v23  ;;  %3850 = vmatprep.subr.bf16.mxu1 %v5254_v18 }
 0x1f7   :  { %3507 = vmatpush1.bf16.msra.mxu0 %v5249_v25  ;;  %3851 = vmatpush1.bf16.msra.mxu1 %v5252_v26 }
 0x1f8   :  { %3508 = vmatprep.subr.bf16.mxu0 %v5257_v27  ;;  %3852 = vmatprep.subr.bf16.mxu1 %v5260_v28 }
 0x1fb   :  { %3509 = vmatpush1.bf16.msra.mxu0 %v5255_v14  ;;  %3853 = vmatpush1.bf16.msra.mxu1 %v5258_v30 }
 0x1fc   :  { %3510 = vmatprep.subr.bf16.mxu0 %v5263_v19  ;;  %3854 = vmatprep.subr.bf16.mxu1 %v5266_v24 }
 0x1ff   :  { %3511 = vmatpush1.bf16.msra.mxu0 %v5261_v31  ;;  %3855 = vmatpush1.bf16.msra.mxu1 %v5264_v34 }
 0x202   :  { %3513 = vmatmul.mubr.bf16.vlgmr.msra.gmra.mrb[0].mxu0 %v3921_v21  ;;  %3857 = vmatmul.mubr.bf16.vlgmr.msra.gmra.mrb[0].mxu1 %v3921_v21 }
 0x2d5   :  { %v3514_v29 = vpop.f32.mrb[0].mxu0  ;;  %v3858_v35 = vpop.f32.mrb[0].mxu1 }
 0x2d6   :  { %v3867_v36 = vmax.f32 %v3514_v29, 0.0  ;;  %v3869_v37 = vmax.f32 %v3858_v35, 0.0  ;;  %v3516_v38 = vpop.f32.mrb[1].mxu0  ;;  %v3860_v39 = vpop.f32.mrb[1].mxu1 }
 0x2d7   :  { %v3868_v40 = vmax.f32 %v3516_v38, 0.0  ;;  %v3870_v41 = vmax.f32 %v3860_v39, 0.0  ;;  %v3518_v42 = vpop.f32.mrb[2].mxu0  ;;  %v3862_v43 = vpop.f32.mrb[2].mxu1 }
 0x2d8   :  { %v3871_v44 = vmax.f32 %v3518_v42, 0.0  ;;  %v3873_v45 = vmax.f32 %v3862_v43, 0.0  ;;  %v3520_v46 = vpop.f32.mrb[3].mxu0  ;;  %v3864_v47 = vpop.f32.mrb[3].mxu1 }
 0x2d9   :  { %v4439_v48 = vpack.c.bf16 %v3868_v40, %v3867_v36  ;;  %v4440_v32 = vpack.c.bf16 %v3870_v41, %v3869_v37  ;;  %v3872_v33 = vmax.f32 %v3520_v46, 0.0  ;;  %v3874_v49 = vmax.f32 %v3864_v47, 0.0 }
 0x2db   :  { %3899 = vst [vmem:[%s6936_s2] sm:$0xff] %v4439_v48  ;;  %3900 = vst [vmem:[%s6936_s2 + $0x8] sm:$0xff] %v4440_v32  ;;  %v4441_v50 = vpack.c.bf16 %v3872_v33, %v3871_v44  ;;  %v4442_v51 = vpack.c.bf16 %v3874_v49, %v3873_v45 }
 0x2dd   :  { %3901 = vst [vmem:[%s6936_s2 + $0x10] sm:$0xff] %v4441_v50  ;;  %3902 = vst [vmem:[%s6936_s2 + $0x18] sm:$0xff] %v4442_v51 }

// kernel: light_flow_net.22
= control target key start
LH: loop header
LB: loop body
LE: loop exit
PB: predicated region body
PF: predicated region fallthrough
CT: control target
= control target key end

     0   :  { %vm24_vm0 = vcmask 1043456   ;;  %v101_v0 = vmov 0.0   ;;  %vm102_vm1 = vmmov 0   ;;  %vm20_vm2 = vcmask 64512   ;;  %s130_s1 = inlined_call_operand.vmem [shape: bf16[8,8], index: 1, kind: input, shape index: {}]   ;;  %s131_s0 = inlined_call_operand.vmem [shape: bf16[16,8], index: 0, kind: input, shape index: {}]   ;;  %s132_s2 = inlined_call_operand.vmem [shape: bf16[16,8], index: 2, kind: output, shape index: {}]  }
   0x1   :  { %92 = vmatprep.subr.bf16.mxu0 %v101_v0  ;;  %v14_v1 = vld [vmem:[%s130_s1] sm:$0xf]  ;;  %94 = vmatprep.mubr.msk.bf16.mxu0 %vm102_vm1, %v101_v0  ;;  %vm77_vm3 = vcmask 60416  }
   0x2   :  { %v26_v2 = vsel %vm24_vm0, %v14_v1, 0  ;;  %v100_v3 = vld [vmem:[%s131_s0] sm:$0xff]  }
   0x3   :  { %93 = vmatpush3.bf16.msra.mxu0 %v26_v2 }
   0x6   :  { %95 = vmatmul.mubr.msk.bf16.vlgmr.msra.gmra.mrb[0].mxu0 %vm20_vm2, %v100_v3 }
  0xd9   :  { %v62_v4 = vpop.f32.mrb[0].mxu0 }
  0xda   :  { %v88_v5 = vpack.c.bf16 %v62_v4, %v62_v4  ;;  %v96_v6 = vpop.f32.mrb[1].mxu0 }
  0xdb   :  { %v65_v7 = vpop.f32.mrb[2].mxu0 }
  0xdc   :  { %78 = vst.msk [vmem:[%s132_s2] sm:$0xf] %vm77_vm3, %v88_v5  ;;  %v89_v8 = vpack.c.bf16 %v65_v7, %v65_v7  ;;  %v97_v9 = vpop.f32.mrb[3].mxu0 }
  0xde   :  { %79 = vst.msk [vmem:[%s132_s2 + $0x4] sm:$0xf] %vm77_vm3, %v89_v8 }

// kernel: light_flow_net.19
= control target key start
LH: loop header
LB: loop body
LE: loop exit
PB: predicated region body
PF: predicated region fallthrough
CT: control target
= control target key end

     0   :  { %s7755_s1 = inlined_call_operand.vmem [shape: bf16[2304,512], index: 1, kind: input, shape index: {}]   ;;  %s7756_s0 = inlined_call_operand.vmem [shape: bf16[16,2304], index: 0, kind: input, shape index: {}]   ;;  %s7757_s2 = inlined_call_operand.vmem [shape: bf16[16,512], index: 2, kind: output, shape index: {}]  }
   0x1   :  { %v5055_v0 = vld [vmem:[%s7755_s1 + $0x4] ss:$16 sps:$4 sm:$0xff]   ;;  %v5057_v1 = vld [vmem:[%s7755_s1 + $0xc] ss:$16 sps:$4 sm:$0xff]   ;;  %v5059_v2 = vld [vmem:[%s7755_s1] ss:$16 sps:$4 sm:$0xff]  }
   0x2   :  { %3575 = vmatprep.subr.bf16.mxu0 %v5055_v0  ;;  %v5060_v3 = vld [vmem:[%s7755_s1 + $0x8] ss:$16 sps:$4 sm:$0xff]   ;;  %3962 = vmatprep.subr.bf16.mxu1 %v5057_v1  ;;  %v5061_v4 = vld [vmem:[%s7755_s1 + $0x24] ss:$16 sps:$4 sm:$0xff]   ;;  %v5063_v5 = vld [vmem:[%s7755_s1 + $0x2c] ss:$16 sps:$4 sm:$0xff]  }
   0x3   :  { %3576 = vmatpush1.bf16.msra.mxu0 %v5059_v2  ;;  %3963 = vmatpush1.bf16.msra.mxu1 %v5060_v3  ;;  %v5065_v6 = vld [vmem:[%s7755_s1 + $0x20] ss:$16 sps:$4 sm:$0xff]   ;;  %v5066_v7 = vld [vmem:[%s7755_s1 + $0x28] ss:$16 sps:$4 sm:$0xff]   ;;  %v5067_v8 = vld [vmem:[%s7755_s1 + $0x44] ss:$16 sps:$4 sm:$0xff]  }
   0x4   :  { %3577 = vmatprep.subr.bf16.mxu0 %v5061_v4  ;;  %3964 = vmatprep.subr.bf16.mxu1 %v5063_v5  ;;  %v5069_v9 = vld [vmem:[%s7755_s1 + $0x4c] ss:$16 sps:$4 sm:$0xff]   ;;  %v5071_v10 = vld [vmem:[%s7755_s1 + $0x40] ss:$16 sps:$4 sm:$0xff]   ;;  %v5072_v11 = vld [vmem:[%s7755_s1 + $0x48] ss:$16 sps:$4 sm:$0xff]  }
   0x5   :  { %v5073_v12 = vld [vmem:[%s7755_s1 + $0x64] ss:$16 sps:$4 sm:$0xff]   ;;  %v5075_v13 = vld [vmem:[%s7755_s1 + $0x6c] ss:$16 sps:$4 sm:$0xff]   ;;  %v5077_v14 = vld [vmem:[%s7755_s1 + $0x60] ss:$16 sps:$4 sm:$0xff]  }
   0x6   :  { %v5078_v15 = vld [vmem:[%s7755_s1 + $0x68] ss:$16 sps:$4 sm:$0xff]   ;;  %v5079_v16 = vld [vmem:[%s7755_s1 + $0x84] ss:$16 sps:$4 sm:$0xff]   ;;  %v5081_v17 = vld [vmem:[%s7755_s1 + $0x8c] ss:$16 sps:$4 sm:$0xff]  }
   0x7   :  { %3578 = vmatpush1.bf16.msra.mxu0 %v5065_v6  ;;  %3965 = vmatpush1.bf16.msra.mxu1 %v5066_v7  ;;  %v5083_v18 = vld [vmem:[%s7755_s1 + $0x80] ss:$16 sps:$4 sm:$0xff]   ;;  %v5084_v19 = vld [vmem:[%s7755_s1 + $0x88] ss:$16 sps:$4 sm:$0xff]   ;;  %v5085_v20 = vld [vmem:[%s7755_s1 + $0xa4] ss:$16 sps:$4 sm:$0xff]  }
   0x8   :  { %3579 = vmatprep.subr.bf16.mxu0 %v5067_v8  ;;  %3966 = vmatprep.subr.bf16.mxu1 %v5069_v9  ;;  %v5087_v21 = vld [vmem:[%s7755_s1 + $0xac] ss:$16 sps:$4 sm:$0xff]   ;;  %v5089_v22 = vld [vmem:[%s7755_s1 + $0xa0] ss:$16 sps:$4 sm:$0xff]   ;;  %v5090_v23 = vld [vmem:[%s7755_s1 + $0xa8] ss:$16 sps:$4 sm:$0xff]  }
   0x9   :  { %v5091_v24 = vld [vmem:[%s7755_s1 + $0xc4] ss:$16 sps:$4 sm:$0xff]   ;;  %v5093_v25 = vld [vmem:[%s7755_s1 + $0xcc] ss:$16 sps:$4 sm:$0xff]   ;;  %v5095_v26 = vld [vmem:[%s7755_s1 + $0xc0] ss:$16 sps:$4 sm:$0xff]  }
   0xa   :  { %v5096_v27 = vld [vmem:[%s7755_s1 + $0xc8] ss:$16 sps:$4 sm:$0xff]   ;;  %v5097_v28 = vld [vmem:[%s7755_s1 + $0xe4] ss:$16 sps:$4 sm:$0xff]   ;;  %v5099_v29 = vld [vmem:[%s7755_s1 + $0xec] ss:$16 sps:$4 sm:$0xff]  }
   0xb   :  { %3580 = vmatpush1.bf16.msra.mxu0 %v5071_v10  ;;  %3967 = vmatpush1.bf16.msra.mxu1 %v5072_v11  ;;  %v5101_v30 = vld [vmem:[%s7755_s1 + $0xe0] ss:$16 sps:$4 sm:$0xff]   ;;  %v5102_v31 = vld [vmem:[%s7755_s1 + $0xe8] ss:$16 sps:$4 sm:$0xff]   ;;  %v5103_v32 = vld [vmem:[%s7755_s1 + $0x104] ss:$16 sps:$4 sm:$0xff]  }
   0xc   :  { %3581 = vmatprep.subr.bf16.mxu0 %v5073_v12  ;;  %3968 = vmatprep.subr.bf16.mxu1 %v5075_v13  ;;  %v5105_v33 = vld [vmem:[%s7755_s1 + $0x10c] ss:$16 sps:$4 sm:$0xff]   ;;  %v5107_v34 = vld [vmem:[%s7755_s1 + $0x100] ss:$16 sps:$4 sm:$0xff]   ;;  %v5108_v35 = vld [vmem:[%s7755_s1 + $0x108] ss:$16 sps:$4 sm:$0xff]  }
   0xd   :  { %v5109_v36 = vld [vmem:[%s7755_s1 + $0x124] ss:$16 sps:$4 sm:$0xff]   ;;  %v5111_v37 = vld [vmem:[%s7755_s1 + $0x12c] ss:$16 sps:$4 sm:$0xff]   ;;  %v5113_v38 = vld [vmem:[%s7755_s1 + $0x120] ss:$16 sps:$4 sm:$0xff]  }
   0xe   :  { %v5114_v39 = vld [vmem:[%s7755_s1 + $0x128] ss:$16 sps:$4 sm:$0xff]   ;;  %v5115_v40 = vld [vmem:[%s7755_s1 + $0x144] ss:$16 sps:$4 sm:$0xff]   ;;  %v5117_v41 = vld [vmem:[%s7755_s1 + $0x14c] ss:$16 sps:$4 sm:$0xff]  }
   0xf   :  { %3582 = vmatpush1.bf16.msra.mxu0 %v5077_v14  ;;  %3969 = vmatpush1.bf16.msra.mxu1 %v5078_v15  ;;  %v5119_v42 = vld [vmem:[%s7755_s1 + $0x140] ss:$16 sps:$4 sm:$0xff]   ;;  %v5120_v43 = vld [vmem:[%s7755_s1 + $0x148] ss:$16 sps:$4 sm:$0xff]   ;;  %v5121_v44 = vld [vmem:[%s7755_s1 + $0x164] ss:$16 sps:$4 sm:$0xff]  }
  0x10   :  { %3583 = vmatprep.subr.bf16.mxu0 %v5079_v16  ;;  %3970 = vmatprep.subr.bf16.mxu1 %v5081_v17  ;;  %v5123_v45 = vld [vmem:[%s7755_s1 + $0x16c] ss:$16 sps:$4 sm:$0xff]   ;;  %v5125_v46 = vld [vmem:[%s7755_s1 + $0x160] ss:$16 sps:$4 sm:$0xff]   ;;  %v5126_v47 = vld [vmem:[%s7755_s1 + $0x168] ss:$16 sps:$4 sm:$0xff]  }
  0x11   :  { %v5153_v48 = vld [vmem:[%s7756_s0 + $0x4] ss:$72 sps:$4 sm:$0xff]   ;;  %v5131_v51 = vld [vmem:[%s7755_s1 + $0x180] ss:$16 sps:$4 sm:$0xff]   ;;  %v5132_v52 = vld [vmem:[%s7755_s1 + $0x188] ss:$16 sps:$4 sm:$0xff]  }
  0x12   :  { %v5127_v49 = vld [vmem:[%s7755_s1 + $0x184] ss:$16 sps:$4 sm:$0xff]   ;;  %v5129_v50 = vld [vmem:[%s7755_s1 + $0x18c] ss:$16 sps:$4 sm:$0xff]   ;;  %3607 = vmatprep.mubr.bf16.mxu0 %v5153_v48  ;;  %3994 = vmatprep.mubr.bf16.mxu1 %v5153_v48  ;;  %v5137_v55 = vld [vmem:[%s7755_s1 + $0x1a0] ss:$16 sps:$4 sm:$0xff]  }
  0x13   :  { %3584 = vmatpush1.bf16.msra.mxu0 %v5083_v18  ;;  %3971 = vmatpush1.bf16.msra.mxu1 %v5084_v19  ;;  %v5133_v53 = vld [vmem:[%s7755_s1 + $0x1a4] ss:$16 sps:$4 sm:$0xff]   ;;  %v5135_v54 = vld [vmem:[%s7755_s1 + $0x1ac] ss:$16 sps:$4 sm:$0xff]   ;;  %v5138_v56 = vld [vmem:[%s7755_s1 + $0x1a8] ss:$16 sps:$4 sm:$0xff]  }
  0x14   :  { %3585 = vmatprep.subr.bf16.mxu0 %v5085_v20  ;;  %3972 = vmatprep.subr.bf16.mxu1 %v5087_v21  ;;  %v5139_v57 = vld [vmem:[%s7755_s1 + $0x1c4] ss:$16 sps:$4 sm:$0xff]   ;;  %v5141_v58 = vld [vmem:[%s7755_s1 + $0x1cc] ss:$16 sps:$4 sm:$0xff]   ;;  %v5143_v59 = vld [vmem:[%s7755_s1 + $0x1c0] ss:$16 sps:$4 sm:$0xff]  }
  0x15   :  { %v5144_v60 = vld [vmem:[%s7755_s1 + $0x1c8] ss:$16 sps:$4 sm:$0xff]   ;;  %v5145_v61 = vld [vmem:[%s7755_s1 + $0x1e4] ss:$16 sps:$4 sm:$0xff]   ;;  %v5147_v62 = vld [vmem:[%s7755_s1 + $0x1ec] ss:$16 sps:$4 sm:$0xff]  }
  0x16   :  { %v5149_v63 = vld [vmem:[%s7755_s1 + $0x1e0] ss:$16 sps:$4 sm:$0xff]   ;;  %v5150_v0 = vld [vmem:[%s7755_s1 + $0x1e8] ss:$16 sps:$4 sm:$0xff]   ;;  %v5156_v1 = vld [vmem:[%s7755_s1 + $0x204] ss:$16 sps:$4 sm:$0xff]  }
  0x17   :  { %3586 = vmatpush1.bf16.msra.mxu0 %v5089_v22  ;;  %3973 = vmatpush1.bf16.msra.mxu1 %v5090_v23  ;;  %v5159_v2 = vld [vmem:[%s7755_s1 + $0x20c] ss:$16 sps:$4 sm:$0xff]   ;;  %v5151_v3 = vld [vmem:[%s7756_s0] ss:$72 sps:$4 sm:$0xff]   ;;  %v5162_v6 = vld [vmem:[%s7755_s1 + $0x224] ss:$16 sps:$4 sm:$0xff]  }
  0x18   :  { %3587 = vmatprep.subr.bf16.mxu0 %v5091_v24  ;;  %3974 = vmatprep.subr.bf16.mxu1 %v5093_v25  ;;  %v5154_v4 = vld [vmem:[%s7755_s1 + $0x200] ss:$16 sps:$4 sm:$0xff]   ;;  %v5157_v5 = vld [vmem:[%s7755_s1 + $0x208] ss:$16 sps:$4 sm:$0xff]   ;;  %v5165_v7 = vld [vmem:[%s7755_s1 + $0x22c] ss:$16 sps:$4 sm:$0xff]  }
  0x19   :  { %v5160_v8 = vld [vmem:[%s7755_s1 + $0x220] ss:$16 sps:$4 sm:$0xff]   ;;  %v5163_v9 = vld [vmem:[%s7755_s1 + $0x228] ss:$16 sps:$4 sm:$0xff]   ;;  %v5168_v10 = vld [vmem:[%s7755_s1 + $0x244] ss:$16 sps:$4 sm:$0xff]  }
  0x1a   :  { %v5171_v11 = vld [vmem:[%s7755_s1 + $0x24c] ss:$16 sps:$4 sm:$0xff]   ;;  %v5166_v12 = vld [vmem:[%s7755_s1 + $0x240] ss:$16 sps:$4 sm:$0xff]   ;;  %v5169_v13 = vld [vmem:[%s7755_s1 + $0x248] ss:$16 sps:$4 sm:$0xff]  }
  0x1b   :  { %3588 = vmatpush1.bf16.msra.mxu0 %v5095_v26  ;;  %3975 = vmatpush1.bf16.msra.mxu1 %v5096_v27  ;;  %v5174_v14 = vld [vmem:[%s7755_s1 + $0x264] ss:$16 sps:$4 sm:$0xff]   ;;  %v5177_v15 = vld [vmem:[%s7755_s1 + $0x26c] ss:$16 sps:$4 sm:$0xff]   ;;  %v5172_v16 = vld [vmem:[%s7755_s1 + $0x260] ss:$16 sps:$4 sm:$0xff]  }
  0x1c   :  { %3589 = vmatprep.subr.bf16.mxu0 %v5097_v28  ;;  %3976 = vmatprep.subr.bf16.mxu1 %v5099_v29  ;;  %v5175_v17 = vld [vmem:[%s7755_s1 + $0x268] ss:$16 sps:$4 sm:$0xff]   ;;  %v5180_v18 = vld [vmem:[%s7755_s1 + $0x284] ss:$16 sps:$4 sm:$0xff]   ;;  %v5183_v19 = vld [vmem:[%s7755_s1 + $0x28c] ss:$16 sps:$4 sm:$0xff]  }
  0x1d   :  { %v5178_v20 = vld [vmem:[%s7755_s1 + $0x280] ss:$16 sps:$4 sm:$0xff]   ;;  %v5181_v21 = vld [vmem:[%s7755_s1 + $0x288] ss:$16 sps:$4 sm:$0xff]   ;;  %v5186_v22 = vld [vmem:[%s7755_s1 + $0x2a4] ss:$16 sps:$4 sm:$0xff]  }
  0x1e   :  { %v5189_v23 = vld [vmem:[%s7755_s1 + $0x2ac] ss:$16 sps:$4 sm:$0xff]   ;;  %v5184_v24 = vld [vmem:[%s7755_s1 + $0x2a0] ss:$16 sps:$4 sm:$0xff]   ;;  %v5187_v25 = vld [vmem:[%s7755_s1 + $0x2a8] ss:$16 sps:$4 sm:$0xff]  }
  0x1f   :  { %3590 = vmatpush1.bf16.msra.mxu0 %v5101_v30  ;;  %3977 = vmatpush1.bf16.msra.mxu1 %v5102_v31  ;;  %v5192_v26 = vld [vmem:[%s7755_s1 + $0x2c4] ss:$16 sps:$4 sm:$0xff]   ;;  %v5195_v27 = vld [vmem:[%s7755_s1 + $0x2cc] ss:$16 sps:$4 sm:$0xff]   ;;  %v5190_v28 = vld [vmem:[%s7755_s1 + $0x2c0] ss:$16 sps:$4 sm:$0xff]  }
  0x20   :  { %3591 = vmatprep.subr.bf16.mxu0 %v5103_v32  ;;  %3978 = vmatprep.subr.bf16.mxu1 %v5105_v33  ;;  %v5193_v29 = vld [vmem:[%s7755_s1 + $0x2c8] ss:$16 sps:$4 sm:$0xff]   ;;  %v5252_v30 = vld [vmem:[%s7756_s0 + $0xc] ss:$72 sps:$4 sm:$0xff]   ;;  %v5196_v33 = vld [vmem:[%s7755_s1 + $0x2e0] ss:$16 sps:$4 sm:$0xff]  }
  0x21   :  { %v5198_v31 = vld [vmem:[%s7755_s1 + $0x2e4] ss:$16 sps:$4 sm:$0xff]   ;;  %v5201_v32 = vld [vmem:[%s7755_s1 + $0x2ec] ss:$16 sps:$4 sm:$0xff]  }
  0x22   :  { %v5225_v48 = vld [vmem:[%s7755_s1 + $0x36c] ss:$16 sps:$4 sm:$0xff]  }
  0x23   :  { %3592 = vmatpush1.bf16.msra.mxu0 %v5107_v34  ;;  %3979 = vmatpush1.bf16.msra.mxu1 %v5108_v35  ;;  %v5199_v34 = vld [vmem:[%s7755_s1 + $0x2e8] ss:$16 sps:$4 sm:$0xff]   ;;  %v5204_v35 = vld [vmem:[%s7755_s1 + $0x304] ss:$16 sps:$4 sm:$0xff]  }
  0x24   :  { %3593 = vmatprep.subr.bf16.mxu0 %v5109_v36  ;;  %3980 = vmatprep.subr.bf16.mxu1 %v5111_v37  ;;  %v5207_v36 = vld [vmem:[%s7755_s1 + $0x30c] ss:$16 sps:$4 sm:$0xff]   ;;  %v5202_v37 = vld [vmem:[%s7755_s1 + $0x300] ss:$16 sps:$4 sm:$0xff]  }
  0x27   :  { %3594 = vmatpush1.bf16.msra.mxu0 %v5113_v38  ;;  %3981 = vmatpush1.bf16.msra.mxu1 %v5114_v39  ;;  %v5205_v38 = vld [vmem:[%s7755_s1 + $0x308] ss:$16 sps:$4 sm:$0xff]   ;;  %v5210_v39 = vld [vmem:[%s7755_s1 + $0x324] ss:$16 sps:$4 sm:$0xff]  }
  0x28   :  { %3595 = vmatprep.subr.bf16.mxu0 %v5115_v40  ;;  %3982 = vmatprep.subr.bf16.mxu1 %v5117_v41  ;;  %v5213_v40 = vld [vmem:[%s7755_s1 + $0x32c] ss:$16 sps:$4 sm:$0xff]   ;;  %v5208_v41 = vld [vmem:[%s7755_s1 + $0x320] ss:$16 sps:$4 sm:$0xff]  }
  0x2b   :  { %3596 = vmatpush1.bf16.msra.mxu0 %v5119_v42  ;;  %3983 = vmatpush1.bf16.msra.mxu1 %v5120_v43  ;;  %v5211_v42 = vld [vmem:[%s7755_s1 + $0x328] ss:$16 sps:$4 sm:$0xff]   ;;  %v5216_v43 = vld [vmem:[%s7755_s1 + $0x344] ss:$16 sps:$4 sm:$0xff]  }
  0x2c   :  { %3597 = vmatprep.subr.bf16.mxu0 %v5121_v44  ;;  %3984 = vmatprep.subr.bf16.mxu1 %v5123_v45  ;;  %v5219_v44 = vld [vmem:[%s7755_s1 + $0x34c] ss:$16 sps:$4 sm:$0xff]   ;;  %v5214_v45 = vld [vmem:[%s7755_s1 + $0x340] ss:$16 sps:$4 sm:$0xff]  }
  0x2f   :  { %3598 = vmatpush1.bf16.msra.mxu0 %v5125_v46  ;;  %3985 = vmatpush1.bf16.msra.mxu1 %v5126_v47  ;;  %v5217_v46 = vld [vmem:[%s7755_s1 + $0x348] ss:$16 sps:$4 sm:$0xff]   ;;  %v5222_v47 = vld [vmem:[%s7755_s1 + $0x364] ss:$16 sps:$4 sm:$0xff]  }
  0x30   :  { %3599 = vmatprep.subr.bf16.mxu0 %v5127_v49  ;;  %3986 = vmatprep.subr.bf16.mxu1 %v5129_v50  ;;  %v5220_v49 = vld [vmem:[%s7755_s1 + $0x360] ss:$16 sps:$4 sm:$0xff]   ;;  %v5223_v50 = vld [vmem:[%s7755_s1 + $0x368] ss:$16 sps:$4 sm:$0xff]  }
  0x33   :  { %3600 = vmatpush1.bf16.msra.mxu0 %v5131_v51  ;;  %3987 = vmatpush1.bf16.msra.mxu1 %v5132_v52  ;;  %v5228_v51 = vld [vmem:[%s7755_s1 + $0x384] ss:$16 sps:$4 sm:$0xff]   ;;  %v5231_v52 = vld [vmem:[%s7755_s1 + $0x38c] ss:$16 sps:$4 sm:$0xff]  }
  0x34   :  { %3601 = vmatprep.subr.bf16.mxu0 %v5133_v53  ;;  %3988 = vmatprep.subr.bf16.mxu1 %v5135_v54  ;;  %v5226_v53 = vld [vmem:[%s7755_s1 + $0x380] ss:$16 sps:$4 sm:$0xff]   ;;  %v5229_v54 = vld [vmem:[%s7755_s1 + $0x388] ss:$16 sps:$4 sm:$0xff]  }
  0x37   :  { %3602 = vmatpush1.bf16.msra.mxu0 %v5137_v55  ;;  %3989 = vmatpush1.bf16.msra.mxu1 %v5138_v56  ;;  %v5234_v55 = vld [vmem:[%s7755_s1 + $0x3a4] ss:$16 sps:$4 sm:$0xff]   ;;  %v5237_v56 = vld [vmem:[%s7755_s1 + $0x3ac] ss:$16 sps:$4 sm:$0xff]  }
  0x38   :  { %3603 = vmatprep.subr.bf16.mxu0 %v5139_v57  ;;  %3990 = vmatprep.subr.bf16.mxu1 %v5141_v58  ;;  %v5232_v57 = vld [vmem:[%s7755_s1 + $0x3a0] ss:$16 sps:$4 sm:$0xff]   ;;  %v5235_v58 = vld [vmem:[%s7755_s1 + $0x3a8] ss:$16 sps:$4 sm:$0xff]  }
  0x3b   :  { %3604 = vmatpush1.bf16.msra.mxu0 %v5143_v59  ;;  %3991 = vmatpush1.bf16.msra.mxu1 %v5144_v60  ;;  %v5240_v59 = vld [vmem:[%s7755_s1 + $0x3c4] ss:$16 sps:$4 sm:$0xff]   ;;  %v5243_v60 = vld [vmem:[%s7755_s1 + $0x3cc] ss:$16 sps:$4 sm:$0xff]  }
  0x3c   :  { %3605 = vmatprep.subr.bf16.mxu0 %v5145_v61  ;;  %3992 = vmatprep.subr.bf16.mxu1 %v5147_v62  ;;  %v5238_v61 = vld [vmem:[%s7755_s1 + $0x3c0] ss:$16 sps:$4 sm:$0xff]   ;;  %v5241_v62 = vld [vmem:[%s7755_s1 + $0x3c8] ss:$16 sps:$4 sm:$0xff]  }
  0x3f   :  { %3606 = vmatpush1.bf16.msra.mxu0 %v5149_v63  ;;  %3993 = vmatpush1.bf16.msra.mxu1 %v5150_v0  ;;  %v5246_v63 = vld [vmem:[%s7755_s1 + $0x3e4] ss:$16 sps:$4 sm:$0xff]   ;;  %v5249_v0 = vld [vmem:[%s7755_s1 + $0x3ec] ss:$16 sps:$4 sm:$0xff]  }
  0x40   :  { %3618 = vmatprep.subr.bf16.mxu0 %v5156_v1  ;;  %4005 = vmatprep.subr.bf16.mxu1 %v5159_v2  ;;  %v5244_v1 = vld [vmem:[%s7755_s1 + $0x3e0] ss:$16 sps:$4 sm:$0xff]   ;;  %v5247_v2 = vld [vmem:[%s7755_s1 + $0x3e8] ss:$16 sps:$4 sm:$0xff]  }
  0x42   :  { %3608 = vmatmul.mubr.bf16.vlgmr.msra.gmra.mrb[0].mxu0 %v5151_v3  ;;  %3995 = vmatmul.mubr.bf16.vlgmr.msra.gmra.mrb[0].mxu1 %v5151_v3  ;;  %v5255_v3 = vld [vmem:[%s7755_s1 + $0x404] ss:$16 sps:$4 sm:$0xff]  }
  0x43   :  { %3619 = vmatpush1.bf16.msra.mxu0 %v5154_v4  ;;  %4006 = vmatpush1.bf16.msra.mxu1 %v5157_v5  ;;  %v5258_v4 = vld [vmem:[%s7755_s1 + $0x40c] ss:$16 sps:$4 sm:$0xff]   ;;  %v5250_v5 = vld [vmem:[%s7756_s0 + $0x8] ss:$72 sps:$4 sm:$0xff]  }
  0x44   :  { %3620 = vmatprep.subr.bf16.mxu0 %v5162_v6  ;;  %4007 = vmatprep.subr.bf16.mxu1 %v5165_v7  ;;  %v5253_v6 = vld [vmem:[%s7755_s1 + $0x400] ss:$16 sps:$4 sm:$0xff]   ;;  %v5256_v7 = vld [vmem:[%s7755_s1 + $0x408] ss:$16 sps:$4 sm:$0xff]  }
  0x45   :  { %3650 = vmatprep.mubr.bf16.mxu0 %v5252_v30  ;;  %4037 = vmatprep.mubr.bf16.mxu1 %v5252_v30  ;;  %v5294_v30 = vld [vmem:[%s7755_s1 + $0x4cc] ss:$16 sps:$4 sm:$0xff]  }
  0x47   :  { %3621 = vmatpush1.bf16.msra.mxu0 %v5160_v8  ;;  %4008 = vmatpush1.bf16.msra.mxu1 %v5163_v9  ;;  %v5261_v8 = vld [vmem:[%s7755_s1 + $0x424] ss:$16 sps:$4 sm:$0xff]   ;;  %v5264_v9 = vld [vmem:[%s7755_s1 + $0x42c] ss:$16 sps:$4 sm:$0xff]  }
  0x48   :  { %3622 = vmatprep.subr.bf16.mxu0 %v5168_v10  ;;  %4009 = vmatprep.subr.bf16.mxu1 %v5171_v11  ;;  %v5259_v10 = vld [vmem:[%s7755_s1 + $0x420] ss:$16 sps:$4 sm:$0xff]   ;;  %v5262_v11 = vld [vmem:[%s7755_s1 + $0x428] ss:$16 sps:$4 sm:$0xff]  }
  0x4b   :  { %3623 = vmatpush1.bf16.msra.mxu0 %v5166_v12  ;;  %4010 = vmatpush1.bf16.msra.mxu1 %v5169_v13  ;;  %v5351_v12 = vld [vmem:[%s7756_s0 + $0x14] ss:$72 sps:$4 sm:$0xff]  }
  0x4c   :  { %3624 = vmatprep.subr.bf16.mxu0 %v5174_v14  ;;  %4011 = vmatprep.subr.bf16.mxu1 %v5177_v15  ;;  %v5267_v13 = vld [vmem:[%s7755_s1 + $0x444] ss:$16 sps:$4 sm:$0xff]   ;;  %v5270_v14 = vld [vmem:[%s7755_s1 + $0x44c] ss:$16 sps:$4 sm:$0xff]   ;;  %v5265_v15 = vld [vmem:[%s7755_s1 + $0x440] ss:$16 sps:$4 sm:$0xff]  }
  0x4f   :  { %3625 = vmatpush1.bf16.msra.mxu0 %v5172_v16  ;;  %4012 = vmatpush1.bf16.msra.mxu1 %v5175_v17  ;;  %v5268_v16 = vld [vmem:[%s7755_s1 + $0x448] ss:$16 sps:$4 sm:$0xff]   ;;  %v5273_v17 = vld [vmem:[%s7755_s1 + $0x464] ss:$16 sps:$4 sm:$0xff]  }
  0x50   :  { %3626 = vmatprep.subr.bf16.mxu0 %v5180_v18  ;;  %4013 = vmatprep.subr.bf16.mxu1 %v5183_v19  ;;  %v5276_v18 = vld [vmem:[%s7755_s1 + $0x46c] ss:$16 sps:$4 sm:$0xff]   ;;  %v5271_v19 = vld [vmem:[%s7755_s1 + $0x460] ss:$16 sps:$4 sm:$0xff]  }
  0x53   :  { %3627 = vmatpush1.bf16.msra.mxu0 %v5178_v20  ;;  %4014 = vmatpush1.bf16.msra.mxu1 %v5181_v21  ;;  %v5274_v20 = vld [vmem:[%s7755_s1 + $0x468] ss:$16 sps:$4 sm:$0xff]   ;;  %v5279_v21 = vld [vmem:[%s7755_s1 + $0x484] ss:$16 sps:$4 sm:$0xff]  }
  0x54   :  { %3628 = vmatprep.subr.bf16.mxu0 %v5186_v22  ;;  %4015 = vmatprep.subr.bf16.mxu1 %v5189_v23  ;;  %v5282_v22 = vld [vmem:[%s7755_s1 + $0x48c] ss:$16 sps:$4 sm:$0xff]   ;;  %v5277_v23 = vld [vmem:[%s7755_s1 + $0x480] ss:$16 sps:$4 sm:$0xff]  }
  0x57   :  { %3629 = vmatpush1.bf16.msra.mxu0 %v5184_v24  ;;  %4016 = vmatpush1.bf16.msra.mxu1 %v5187_v25  ;;  %v5280_v24 = vld [vmem:[%s7755_s1 + $0x488] ss:$16 sps:$4 sm:$0xff]   ;;  %v5285_v25 = vld [vmem:[%s7755_s1 + $0x4a4] ss:$16 sps:$4 sm:$0xff]  }
  0x58   :  { %3630 = vmatprep.subr.bf16.mxu0 %v5192_v26  ;;  %4017 = vmatprep.subr.bf16.mxu1 %v5195_v27  ;;  %v5288_v26 = vld [vmem:[%s7755_s1 + $0x4ac] ss:$16 sps:$4 sm:$0xff]   ;;  %v5283_v27 = vld [vmem:[%s7755_s1 + $0x4a0] ss:$16 sps:$4 sm:$0xff]  }
  0x5b   :  { %3631 = vmatpush1.bf16.msra.mxu0 %v5190_v28  ;;  %4018 = vmatpush1.bf16.msra.mxu1 %v5193_v29  ;;  %v5286_v28 = vld [vmem:[%s7755_s1 + $0x4a8] ss:$16 sps:$4 sm:$0xff]   ;;  %v5291_v29 = vld [vmem:[%s7755_s1 + $0x4c4] ss:$16 sps:$4 sm:$0xff]  }
  0x5c   :  { %3632 = vmatprep.subr.bf16.mxu0 %v5198_v31  ;;  %4019 = vmatprep.subr.bf16.mxu1 %v5201_v32  ;;  %v5289_v31 = vld [vmem:[%s7755_s1 + $0x4c0] ss:$16 sps:$4 sm:$0xff]   ;;  %v5292_v32 = vld [vmem:[%s7755_s1 + $0x4c8] ss:$16 sps:$4 sm:$0xff]  }
  0x5f   :  { %3633 = vmatpush1.bf16.msra.mxu0 %v5196_v33  ;;  %4020 = vmatpush1.bf16.msra.mxu1 %v5199_v34  ;;  %v5297_v33 = vld [vmem:[%s7755_s1 + $0x4e4] ss:$16 sps:$4 sm:$0xff]   ;;  %v5300_v34 = vld [vmem:[%s7755_s1 + $0x4ec] ss:$16 sps:$4 sm:$0xff]  }
  0x60   :  { %3634 = vmatprep.subr.bf16.mxu0 %v5204_v35  ;;  %4021 = vmatprep.subr.bf16.mxu1 %v5207_v36  ;;  %v5295_v35 = vld [vmem:[%s7755_s1 + $0x4e0] ss:$16 sps:$4 sm:$0xff]   ;;  %v5298_v36 = vld [vmem:[%s7755_s1 + $0x4e8] ss:$16 sps:$4 sm:$0xff]  }
  0x63   :  { %3635 = vmatpush1.bf16.msra.mxu0 %v5202_v37  ;;  %4022 = vmatpush1.bf16.msra.mxu1 %v5205_v38  ;;  %v5303_v37 = vld [vmem:[%s7755_s1 + $0x504] ss:$16 sps:$4 sm:$0xff]   ;;  %v5306_v38 = vld [vmem:[%s7755_s1 + $0x50c] ss:$16 sps:$4 sm:$0xff]  }
  0x64   :  { %3636 = vmatprep.subr.bf16.mxu0 %v5210_v39  ;;  %4023 = vmatprep.subr.bf16.mxu1 %v5213_v40  ;;  %v5301_v39 = vld [vmem:[%s7755_s1 + $0x500] ss:$16 sps:$4 sm:$0xff]   ;;  %v5304_v40 = vld [vmem:[%s7755_s1 + $0x508] ss:$16 sps:$4 sm:$0xff]  }
  0x67   :  { %3637 = vmatpush1.bf16.msra.mxu0 %v5208_v41  ;;  %4024 = vmatpush1.bf16.msra.mxu1 %v5211_v42  ;;  %v5309_v41 = vld [vmem:[%s7755_s1 + $0x524] ss:$16 sps:$4 sm:$0xff]   ;;  %v5312_v42 = vld [vmem:[%s7755_s1 + $0x52c] ss:$16 sps:$4 sm:$0xff]  }
  0x68   :  { %3638 = vmatprep.subr.bf16.mxu0 %v5216_v43  ;;  %4025 = vmatprep.subr.bf16.mxu1 %v5219_v44  ;;  %v5307_v43 = vld [vmem:[%s7755_s1 + $0x520] ss:$16 sps:$4 sm:$0xff]   ;;  %v5310_v44 = vld [vmem:[%s7755_s1 + $0x528] ss:$16 sps:$4 sm:$0xff]  }
  0x6b   :  { %3639 = vmatpush1.bf16.msra.mxu0 %v5214_v45  ;;  %4026 = vmatpush1.bf16.msra.mxu1 %v5217_v46  ;;  %v5315_v45 = vld [vmem:[%s7755_s1 + $0x544] ss:$16 sps:$4 sm:$0xff]   ;;  %v5318_v46 = vld [vmem:[%s7755_s1 + $0x54c] ss:$16 sps:$4 sm:$0xff]  }
  0x6c   :  { %3640 = vmatprep.subr.bf16.mxu0 %v5222_v47  ;;  %4027 = vmatprep.subr.bf16.mxu1 %v5225_v48  ;;  %v5313_v47 = vld [vmem:[%s7755_s1 + $0x540] ss:$16 sps:$4 sm:$0xff]   ;;  %v5316_v48 = vld [vmem:[%s7755_s1 + $0x548] ss:$16 sps:$4 sm:$0xff]  }
  0x6f   :  { %3641 = vmatpush1.bf16.msra.mxu0 %v5220_v49  ;;  %4028 = vmatpush1.bf16.msra.mxu1 %v5223_v50  ;;  %v5321_v49 = vld [vmem:[%s7755_s1 + $0x564] ss:$16 sps:$4 sm:$0xff]   ;;  %v5324_v50 = vld [vmem:[%s7755_s1 + $0x56c] ss:$16 sps:$4 sm:$0xff]  }
  0x70   :  { %3642 = vmatprep.subr.bf16.mxu0 %v5228_v51  ;;  %4029 = vmatprep.subr.bf16.mxu1 %v5231_v52  ;;  %v5319_v51 = vld [vmem:[%s7755_s1 + $0x560] ss:$16 sps:$4 sm:$0xff]   ;;  %v5322_v52 = vld [vmem:[%s7755_s1 + $0x568] ss:$16 sps:$4 sm:$0xff]  }
  0x73   :  { %3643 = vmatpush1.bf16.msra.mxu0 %v5226_v53  ;;  %4030 = vmatpush1.bf16.msra.mxu1 %v5229_v54  ;;  %v5327_v53 = vld [vmem:[%s7755_s1 + $0x584] ss:$16 sps:$4 sm:$0xff]   ;;  %v5330_v54 = vld [vmem:[%s7755_s1 + $0x58c] ss:$16 sps:$4 sm:$0xff]  }
  0x74   :  { %3644 = vmatprep.subr.bf16.mxu0 %v5234_v55  ;;  %4031 = vmatprep.subr.bf16.mxu1 %v5237_v56  ;;  %v5325_v55 = vld [vmem:[%s7755_s1 + $0x580] ss:$16 sps:$4 sm:$0xff]   ;;  %v5328_v56 = vld [vmem:[%s7755_s1 + $0x588] ss:$16 sps:$4 sm:$0xff]  }
  0x77   :  { %3645 = vmatpush1.bf16.msra.mxu0 %v5232_v57  ;;  %4032 = vmatpush1.bf16.msra.mxu1 %v5235_v58  ;;  %v5333_v57 = vld [vmem:[%s7755_s1 + $0x5a4] ss:$16 sps:$4 sm:$0xff]   ;;  %v5336_v58 = vld [vmem:[%s7755_s1 + $0x5ac] ss:$16 sps:$4 sm:$0xff]  }
  0x78   :  { %3646 = vmatprep.subr.bf16.mxu0 %v5240_v59  ;;  %4033 = vmatprep.subr.bf16.mxu1 %v5243_v60  ;;  %v5331_v59 = vld [vmem:[%s7755_s1 + $0x5a0] ss:$16 sps:$4 sm:$0xff]   ;;  %v5334_v60 = vld [vmem:[%s7755_s1 + $0x5a8] ss:$16 sps:$4 sm:$0xff]  }
  0x7b   :  { %3647 = vmatpush1.bf16.msra.mxu0 %v5238_v61  ;;  %4034 = vmatpush1.bf16.msra.mxu1 %v5241_v62  ;;  %v5339_v61 = vld [vmem:[%s7755_s1 + $0x5c4] ss:$16 sps:$4 sm:$0xff]   ;;  %v5342_v62 = vld [vmem:[%s7755_s1 + $0x5cc] ss:$16 sps:$4 sm:$0xff]  }
  0x7c   :  { %3648 = vmatprep.subr.bf16.mxu0 %v5246_v63  ;;  %4035 = vmatprep.subr.bf16.mxu1 %v5249_v0  ;;  %v5337_v63 = vld [vmem:[%s7755_s1 + $0x5c0] ss:$16 sps:$4 sm:$0xff]   ;;  %v5340_v0 = vld [vmem:[%s7755_s1 + $0x5c8] ss:$16 sps:$4 sm:$0xff]  }
  0x7f   :  { %3649 = vmatpush1.bf16.msra.mxu0 %v5244_v1  ;;  %4036 = vmatpush1.bf16.msra.mxu1 %v5247_v2  ;;  %v5345_v1 = vld [vmem:[%s7755_s1 + $0x5e4] ss:$16 sps:$4 sm:$0xff]   ;;  %v5348_v2 = vld [vmem:[%s7755_s1 + $0x5ec] ss:$16 sps:$4 sm:$0xff]  }
  0x80   :  { %3661 = vmatprep.subr.bf16.mxu0 %v5255_v3  ;;  %4048 = vmatprep.subr.bf16.mxu1 %v5258_v4  ;;  %v5343_v3 = vld [vmem:[%s7755_s1 + $0x5e0] ss:$16 sps:$4 sm:$0xff]   ;;  %v5346_v4 = vld [vmem:[%s7755_s1 + $0x5e8] ss:$16 sps:$4 sm:$0xff]  }
  0x82   :  { %3651 = vmatmul.mubr.bf16.vlgmr.msra.gmra.mrb[0].mxu0 %v5250_v5  ;;  %4038 = vmatmul.mubr.bf16.vlgmr.msra.gmra.mrb[0].mxu1 %v5250_v5  ;;  %v5354_v5 = vld [vmem:[%s7755_s1 + $0x604] ss:$16 sps:$4 sm:$0xff]  }
  0x83   :  { %3662 = vmatpush1.bf16.msra.mxu0 %v5253_v6  ;;  %4049 = vmatpush1.bf16.msra.mxu1 %v5256_v7  ;;  %v5357_v6 = vld [vmem:[%s7755_s1 + $0x60c] ss:$16 sps:$4 sm:$0xff]   ;;  %v5349_v7 = vld [vmem:[%s7756_s0 + $0x10] ss:$72 sps:$4 sm:$0xff]  }
  0x84   :  { %3663 = vmatprep.subr.bf16.mxu0 %v5261_v8  ;;  %4050 = vmatprep.subr.bf16.mxu1 %v5264_v9  ;;  %v5352_v8 = vld [vmem:[%s7755_s1 + $0x600] ss:$16 sps:$4 sm:$0xff]   ;;  %v5355_v9 = vld [vmem:[%s7755_s1 + $0x608] ss:$16 sps:$4 sm:$0xff]  }
  0x85   :  { %3693 = vmatprep.mubr.bf16.mxu0 %v5351_v12  ;;  %4080 = vmatprep.mubr.bf16.mxu1 %v5351_v12  ;;  %v5450_v12 = vld [vmem:[%s7756_s0 + $0x1c] ss:$72 sps:$4 sm:$0xff]  }
  0x87   :  { %3664 = vmatpush1.bf16.msra.mxu0 %v5259_v10  ;;  %4051 = vmatpush1.bf16.msra.mxu1 %v5262_v11  ;;  %v5360_v10 = vld [vmem:[%s7755_s1 + $0x624] ss:$16 sps:$4 sm:$0xff]   ;;  %v5363_v11 = vld [vmem:[%s7755_s1 + $0x62c] ss:$16 sps:$4 sm:$0xff]  }
  0x88   :  { %3665 = vmatprep.subr.bf16.mxu0 %v5267_v13  ;;  %4052 = vmatprep.subr.bf16.mxu1 %v5270_v14  ;;  %v5358_v13 = vld [vmem:[%s7755_s1 + $0x620] ss:$16 sps:$4 sm:$0xff]   ;;  %v5361_v14 = vld [vmem:[%s7755_s1 + $0x628] ss:$16 sps:$4 sm:$0xff]  }
  0x8b   :  { %3666 = vmatpush1.bf16.msra.mxu0 %v5265_v15  ;;  %4053 = vmatpush1.bf16.msra.mxu1 %v5268_v16  ;;  %v5366_v15 = vld [vmem:[%s7755_s1 + $0x644] ss:$16 sps:$4 sm:$0xff]   ;;  %v5369_v16 = vld [vmem:[%s7755_s1 + $0x64c] ss:$16 sps:$4 sm:$0xff]  }
  0x8c   :  { %3667 = vmatprep.subr.bf16.mxu0 %v5273_v17  ;;  %4054 = vmatprep.subr.bf16.mxu1 %v5276_v18  ;;  %v5364_v17 = vld [vmem:[%s7755_s1 + $0x640] ss:$16 sps:$4 sm:$0xff]   ;;  %v5367_v18 = vld [vmem:[%s7755_s1 + $0x648] ss:$16 sps:$4 sm:$0xff]  }
  0x8f   :  { %3668 = vmatpush1.bf16.msra.mxu0 %v5271_v19  ;;  %4055 = vmatpush1.bf16.msra.mxu1 %v5274_v20  ;;  %v5372_v19 = vld [vmem:[%s7755_s1 + $0x664] ss:$16 sps:$4 sm:$0xff]   ;;  %v5375_v20 = vld [vmem:[%s7755_s1 + $0x66c] ss:$16 sps:$4 sm:$0xff]  }
  0x90   :  { %3669 = vmatprep.subr.bf16.mxu0 %v5279_v21  ;;  %4056 = vmatprep.subr.bf16.mxu1 %v5282_v22  ;;  %v5370_v21 = vld [vmem:[%s7755_s1 + $0x660] ss:$16 sps:$4 sm:$0xff]   ;;  %v5373_v22 = vld [vmem:[%s7755_s1 + $0x668] ss:$16 sps:$4 sm:$0xff]  }
  0x93   :  { %3670 = vmatpush1.bf16.msra.mxu0 %v5277_v23  ;;  %4057 = vmatpush1.bf16.msra.mxu1 %v5280_v24  ;;  %v5378_v23 = vld [vmem:[%s7755_s1 + $0x684] ss:$16 sps:$4 sm:$0xff]   ;;  %v5381_v24 = vld [vmem:[%s7755_s1 + $0x68c] ss:$16 sps:$4 sm:$0xff]  }
  0x94   :  { %3671 = vmatprep.subr.bf16.mxu0 %v5285_v25  ;;  %4058 = vmatprep.subr.bf16.mxu1 %v5288_v26  ;;  %v5376_v25 = vld [vmem:[%s7755_s1 + $0x680] ss:$16 sps:$4 sm:$0xff]   ;;  %v5379_v26 = vld [vmem:[%s7755_s1 + $0x688] ss:$16 sps:$4 sm:$0xff]  }
  0x97   :  { %3672 = vmatpush1.bf16.msra.mxu0 %v5283_v27  ;;  %4059 = vmatpush1.bf16.msra.mxu1 %v5286_v28  ;;  %v5384_v27 = vld [vmem:[%s7755_s1 + $0x6a4] ss:$16 sps:$4 sm:$0xff]   ;;  %v5387_v28 = vld [vmem:[%s7755_s1 + $0x6ac] ss:$16 sps:$4 sm:$0xff]  }
  0x98   :  { %3673 = vmatprep.subr.bf16.mxu0 %v5291_v29  ;;  %4060 = vmatprep.subr.bf16.mxu1 %v5294_v30  ;;  %v5382_v29 = vld [vmem:[%s7755_s1 + $0x6a0] ss:$16 sps:$4 sm:$0xff]   ;;  %v5385_v30 = vld [vmem:[%s7755_s1 + $0x6a8] ss:$16 sps:$4 sm:$0xff]  }
  0x9b   :  { %3674 = vmatpush1.bf16.msra.mxu0 %v5289_v31  ;;  %4061 = vmatpush1.bf16.msra.mxu1 %v5292_v32  ;;  %v5390_v31 = vld [vmem:[%s7755_s1 + $0x6c4] ss:$16 sps:$4 sm:$0xff]   ;;  %v5393_v32 = vld [vmem:[%s7755_s1 + $0x6cc] ss:$16 sps:$4 sm:$0xff]  }
  0x9c   :  { %3675 = vmatprep.subr.bf16.mxu0 %v5297_v33  ;;  %4062 = vmatprep.subr.bf16.mxu1 %v5300_v34  ;;  %v5388_v33 = vld [vmem:[%s7755_s1 + $0x6c0] ss:$16 sps:$4 sm:$0xff]   ;;  %v5391_v34 = vld [vmem:[%s7755_s1 + $0x6c8] ss:$16 sps:$4 sm:$0xff]  }
  0x9f   :  { %3676 = vmatpush1.bf16.msra.mxu0 %v5295_v35  ;;  %4063 = vmatpush1.bf16.msra.mxu1 %v5298_v36  ;;  %v5396_v35 = vld [vmem:[%s7755_s1 + $0x6e4] ss:$16 sps:$4 sm:$0xff]   ;;  %v5399_v36 = vld [vmem:[%s7755_s1 + $0x6ec] ss:$16 sps:$4 sm:$0xff]  }
  0xa0   :  { %3677 = vmatprep.subr.bf16.mxu0 %v5303_v37  ;;  %4064 = vmatprep.subr.bf16.mxu1 %v5306_v38  ;;  %v5394_v37 = vld [vmem:[%s7755_s1 + $0x6e0] ss:$16 sps:$4 sm:$0xff]   ;;  %v5397_v38 = vld [vmem:[%s7755_s1 + $0x6e8] ss:$16 sps:$4 sm:$0xff]  }
  0xa3   :  { %3678 = vmatpush1.bf16.msra.mxu0 %v5301_v39  ;;  %4065 = vmatpush1.bf16.msra.mxu1 %v5304_v40  ;;  %v5402_v39 = vld [vmem:[%s7755_s1 + $0x704] ss:$16 sps:$4 sm:$0xff]   ;;  %v5405_v40 = vld [vmem:[%s7755_s1 + $0x70c] ss:$16 sps:$4 sm:$0xff]  }
  0xa4   :  { %3679 = vmatprep.subr.bf16.mxu0 %v5309_v41  ;;  %4066 = vmatprep.subr.bf16.mxu1 %v5312_v42  ;;  %v5400_v41 = vld [vmem:[%s7755_s1 + $0x700] ss:$16 sps:$4 sm:$0xff]   ;;  %v5403_v42 = vld [vmem:[%s7755_s1 + $0x708] ss:$16 sps:$4 sm:$0xff]  }
  0xa7   :  { %3680 = vmatpush1.bf16.msra.mxu0 %v5307_v43  ;;  %4067 = vmatpush1.bf16.msra.mxu1 %v5310_v44  ;;  %v5408_v43 = vld [vmem:[%s7755_s1 + $0x724] ss:$16 sps:$4 sm:$0xff]   ;;  %v5411_v44 = vld [vmem:[%s7755_s1 + $0x72c] ss:$16 sps:$4 sm:$0xff]  }
  0xa8   :  { %3681 = vmatprep.subr.bf16.mxu0 %v5315_v45  ;;  %4068 = vmatprep.subr.bf16.mxu1 %v5318_v46  ;;  %v5406_v45 = vld [vmem:[%s7755_s1 + $0x720] ss:$16 sps:$4 sm:$0xff]   ;;  %v5409_v46 = vld [vmem:[%s7755_s1 + $0x728] ss:$16 sps:$4 sm:$0xff]  }
  0xab   :  { %3682 = vmatpush1.bf16.msra.mxu0 %v5313_v47  ;;  %4069 = vmatpush1.bf16.msra.mxu1 %v5316_v48  ;;  %v5414_v47 = vld [vmem:[%s7755_s1 + $0x744] ss:$16 sps:$4 sm:$0xff]   ;;  %v5417_v48 = vld [vmem:[%s7755_s1 + $0x74c] ss:$16 sps:$4 sm:$0xff]  }
  0xac   :  { %3683 = vmatprep.subr.bf16.mxu0 %v5321_v49  ;;  %4070 = vmatprep.subr.bf16.mxu1 %v5324_v50  ;;  %v5412_v49 = vld [vmem:[%s7755_s1 + $0x740] ss:$16 sps:$4 sm:$0xff]   ;;  %v5415_v50 = vld [vmem:[%s7755_s1 + $0x748] ss:$16 sps:$4 sm:$0xff]  }
  0xaf   :  { %3684 = vmatpush1.bf16.msra.mxu0 %v5319_v51  ;;  %4071 = vmatpush1.bf16.msra.mxu1 %v5322_v52  ;;  %v5420_v51 = vld [vmem:[%s7755_s1 + $0x764] ss:$16 sps:$4 sm:$0xff]   ;;  %v5423_v52 = vld [vmem:[%s7755_s1 + $0x76c] ss:$16 sps:$4 sm:$0xff]  }
  0xb0   :  { %3685 = vmatprep.subr.bf16.mxu0 %v5327_v53  ;;  %4072 = vmatprep.subr.bf16.mxu1 %v5330_v54  ;;  %v5418_v53 = vld [vmem:[%s7755_s1 + $0x760] ss:$16 sps:$4 sm:$0xff]   ;;  %v5421_v54 = vld [vmem:[%s7755_s1 + $0x768] ss:$16 sps:$4 sm:$0xff]  }
  0xb3   :  { %3686 = vmatpush1.bf16.msra.mxu0 %v5325_v55  ;;  %4073 = vmatpush1.bf16.msra.mxu1 %v5328_v56  ;;  %v5426_v55 = vld [vmem:[%s7755_s1 + $0x784] ss:$16 sps:$4 sm:$0xff]   ;;  %v5429_v56 = vld [vmem:[%s7755_s1 + $0x78c] ss:$16 sps:$4 sm:$0xff]  }
  0xb4   :  { %3687 = vmatprep.subr.bf16.mxu0 %v5333_v57  ;;  %4074 = vmatprep.subr.bf16.mxu1 %v5336_v58  ;;  %v5424_v57 = vld [vmem:[%s7755_s1 + $0x780] ss:$16 sps:$4 sm:$0xff]   ;;  %v5427_v58 = vld [vmem:[%s7755_s1 + $0x788] ss:$16 sps:$4 sm:$0xff]  }
  0xb7   :  { %3688 = vmatpush1.bf16.msra.mxu0 %v5331_v59  ;;  %4075 = vmatpush1.bf16.msra.mxu1 %v5334_v60  ;;  %v5432_v59 = vld [vmem:[%s7755_s1 + $0x7a4] ss:$16 sps:$4 sm:$0xff]   ;;  %v5435_v60 = vld [vmem:[%s7755_s1 + $0x7ac] ss:$16 sps:$4 sm:$0xff]  }
  0xb8   :  { %3689 = vmatprep.subr.bf16.mxu0 %v5339_v61  ;;  %4076 = vmatprep.subr.bf16.mxu1 %v5342_v62  ;;  %v5430_v61 = vld [vmem:[%s7755_s1 + $0x7a0] ss:$16 sps:$4 sm:$0xff]   ;;  %v5433_v62 = vld [vmem:[%s7755_s1 + $0x7a8] ss:$16 sps:$4 sm:$0xff]  }
  0xbb   :  { %3690 = vmatpush1.bf16.msra.mxu0 %v5337_v63  ;;  %4077 = vmatpush1.bf16.msra.mxu1 %v5340_v0  ;;  %v5438_v63 = vld [vmem:[%s7755_s1 + $0x7c4] ss:$16 sps:$4 sm:$0xff]   ;;  %v5441_v0 = vld [vmem:[%s7755_s1 + $0x7cc] ss:$16 sps:$4 sm:$0xff]  }
  0xbc   :  { %3691 = vmatprep.subr.bf16.mxu0 %v5345_v1  ;;  %4078 = vmatprep.subr.bf16.mxu1 %v5348_v2  ;;  %v5436_v1 = vld [vmem:[%s7755_s1 + $0x7c0] ss:$16 sps:$4 sm:$0xff]   ;;  %v5439_v2 = vld [vmem:[%s7755_s1 + $0x7c8] ss:$16 sps:$4 sm:$0xff]  }
  0xbf   :  { %3692 = vmatpush1.bf16.msra.mxu0 %v5343_v3  ;;  %4079 = vmatpush1.bf16.msra.mxu1 %v5346_v4  ;;  %v5444_v3 = vld [vmem:[%s7755_s1 + $0x7e4] ss:$16 sps:$4 sm:$0xff]   ;;  %v5447_v4 = vld [vmem:[%s7755_s1 + $0x7ec] ss:$16 sps:$4 sm:$0xff]  }
  0xc0   :  { %3704 = vmatprep.subr.bf16.mxu0 %v5354_v5  ;;  %4091 = vmatprep.subr.bf16.mxu1 %v5357_v6  ;;  %v5442_v5 = vld [vmem:[%s7755_s1 + $0x7e0] ss:$16 sps:$4 sm:$0xff]   ;;  %v5445_v6 = vld [vmem:[%s7755_s1 + $0x7e8] ss:$16 sps:$4 sm:$0xff]  }
  0xc2   :  { %3694 = vmatmul.mubr.bf16.vlgmr.msra.gmra.mrb[0].mxu0 %v5349_v7  ;;  %4081 = vmatmul.mubr.bf16.vlgmr.msra.gmra.mrb[0].mxu1 %v5349_v7  ;;  %v5453_v7 = vld [vmem:[%s7755_s1 + $0x804] ss:$16 sps:$4 sm:$0xff]  }
  0xc3   :  { %3705 = vmatpush1.bf16.msra.mxu0 %v5352_v8  ;;  %4092 = vmatpush1.bf16.msra.mxu1 %v5355_v9  ;;  %v5456_v8 = vld [vmem:[%s7755_s1 + $0x80c] ss:$16 sps:$4 sm:$0xff]   ;;  %v5448_v9 = vld [vmem:[%s7756_s0 + $0x18] ss:$72 sps:$4 sm:$0xff]  }
  0xc4   :  { %3706 = vmatprep.subr.bf16.mxu0 %v5360_v10  ;;  %4093 = vmatprep.subr.bf16.mxu1 %v5363_v11  ;;  %v5451_v10 = vld [vmem:[%s7755_s1 + $0x800] ss:$16 sps:$4 sm:$0xff]   ;;  %v5454_v11 = vld [vmem:[%s7755_s1 + $0x808] ss:$16 sps:$4 sm:$0xff]  }
  0xc5   :  { %3736 = vmatprep.mubr.bf16.mxu0 %v5450_v12  ;;  %4123 = vmatprep.mubr.bf16.mxu1 %v5450_v12  ;;  %v5459_v12 = vld [vmem:[%s7755_s1 + $0x824] ss:$16 sps:$4 sm:$0xff]  }
  0xc7   :  { %3707 = vmatpush1.bf16.msra.mxu0 %v5358_v13  ;;  %4094 = vmatpush1.bf16.msra.mxu1 %v5361_v14  ;;  %v5462_v13 = vld [vmem:[%s7755_s1 + $0x82c] ss:$16 sps:$4 sm:$0xff]  }
  0xc8   :  { %3708 = vmatprep.subr.bf16.mxu0 %v5366_v15  ;;  %4095 = vmatprep.subr.bf16.mxu1 %v5369_v16  ;;  %v5549_v14 = vld [vmem:[%s7756_s0 + $0x24] ss:$72 sps:$4 sm:$0xff]   ;;  %v5457_v15 = vld [vmem:[%s7755_s1 + $0x820] ss:$16 sps:$4 sm:$0xff]   ;;  %v5460_v16 = vld [vmem:[%s7755_s1 + $0x828] ss:$16 sps:$4 sm:$0xff]  }
  0xcb   :  { %3709 = vmatpush1.bf16.msra.mxu0 %v5364_v17  ;;  %4096 = vmatpush1.bf16.msra.mxu1 %v5367_v18  ;;  %v5465_v17 = vld [vmem:[%s7755_s1 + $0x844] ss:$16 sps:$4 sm:$0xff]   ;;  %v5468_v18 = vld [vmem:[%s7755_s1 + $0x84c] ss:$16 sps:$4 sm:$0xff]  }
  0xcc   :  { %3710 = vmatprep.subr.bf16.mxu0 %v5372_v19  ;;  %4097 = vmatprep.subr.bf16.mxu1 %v5375_v20  ;;  %v5463_v19 = vld [vmem:[%s7755_s1 + $0x840] ss:$16 sps:$4 sm:$0xff]   ;;  %v5466_v20 = vld [vmem:[%s7755_s1 + $0x848] ss:$16 sps:$4 sm:$0xff]  }
  0xcf   :  { %3711 = vmatpush1.bf16.msra.mxu0 %v5370_v21  ;;  %4098 = vmatpush1.bf16.msra.mxu1 %v5373_v22  ;;  %v5471_v21 = vld [vmem:[%s7755_s1 + $0x864] ss:$16 sps:$4 sm:$0xff]   ;;  %v5474_v22 = vld [vmem:[%s7755_s1 + $0x86c] ss:$16 sps:$4 sm:$0xff]  }
  0xd0   :  { %3712 = vmatprep.subr.bf16.mxu0 %v5378_v23  ;;  %4099 = vmatprep.subr.bf16.mxu1 %v5381_v24  ;;  %v5469_v23 = vld [vmem:[%s7755_s1 + $0x860] ss:$16 sps:$4 sm:$0xff]   ;;  %v5472_v24 = vld [vmem:[%s7755_s1 + $0x868] ss:$16 sps:$4 sm:$0xff]  }
  0xd3   :  { %3713 = vmatpush1.bf16.msra.mxu0 %v5376_v25  ;;  %4100 = vmatpush1.bf16.msra.mxu1 %v5379_v26  ;;  %v5477_v25 = vld [vmem:[%s7755_s1 + $0x884] ss:$16 sps:$4 sm:$0xff]   ;;  %v5480_v26 = vld [vmem:[%s7755_s1 + $0x88c] ss:$16 sps:$4 sm:$0xff]  }
  0xd4   :  { %3714 = vmatprep.subr.bf16.mxu0 %v5384_v27  ;;  %4101 = vmatprep.subr.bf16.mxu1 %v5387_v28  ;;  %v5475_v27 = vld [vmem:[%s7755_s1 + $0x880] ss:$16 sps:$4 sm:$0xff]   ;;  %v5478_v28 = vld [vmem:[%s7755_s1 + $0x888] ss:$16 sps:$4 sm:$0xff]  }
  0xd7   :  { %3715 = vmatpush1.bf16.msra.mxu0 %v5382_v29  ;;  %4102 = vmatpush1.bf16.msra.mxu1 %v5385_v30  ;;  %v5483_v29 = vld [vmem:[%s7755_s1 + $0x8a4] ss:$16 sps:$4 sm:$0xff]   ;;  %v5486_v30 = vld [vmem:[%s7755_s1 + $0x8ac] ss:$16 sps:$4 sm:$0xff]  }
  0xd8   :  { %3716 = vmatprep.subr.bf16.mxu0 %v5390_v31  ;;  %4103 = vmatprep.subr.bf16.mxu1 %v5393_v32  ;;  %v5481_v31 = vld [vmem:[%s7755_s1 + $0x8a0] ss:$16 sps:$4 sm:$0xff]   ;;  %v5484_v32 = vld [vmem:[%s7755_s1 + $0x8a8] ss:$16 sps:$4 sm:$0xff]  }
  0xdb   :  { %3717 = vmatpush1.bf16.msra.mxu0 %v5388_v33  ;;  %4104 = vmatpush1.bf16.msra.mxu1 %v5391_v34  ;;  %v5489_v33 = vld [vmem:[%s7755_s1 + $0x8c4] ss:$16 sps:$4 sm:$0xff]   ;;  %v5492_v34 = vld [vmem:[%s7755_s1 + $0x8cc] ss:$16 sps:$4 sm:$0xff]  }
  0xdc   :  { %3718 = vmatprep.subr.bf16.mxu0 %v5396_v35  ;;  %4105 = vmatprep.subr.bf16.mxu1 %v5399_v36  ;;  %v5487_v35 = vld [vmem:[%s7755_s1 + $0x8c0] ss:$16 sps:$4 sm:$0xff]   ;;  %v5490_v36 = vld [vmem:[%s7755_s1 + $0x8c8] ss:$16 sps:$4 sm:$0xff]  }
  0xdf   :  { %3719 = vmatpush1.bf16.msra.mxu0 %v5394_v37  ;;  %4106 = vmatpush1.bf16.msra.mxu1 %v5397_v38  ;;  %v5495_v37 = vld [vmem:[%s7755_s1 + $0x8e4] ss:$16 sps:$4 sm:$0xff]   ;;  %v5498_v38 = vld [vmem:[%s7755_s1 + $0x8ec] ss:$16 sps:$4 sm:$0xff]  }
  0xe0   :  { %3720 = vmatprep.subr.bf16.mxu0 %v5402_v39  ;;  %4107 = vmatprep.subr.bf16.mxu1 %v5405_v40  ;;  %v5493_v39 = vld [vmem:[%s7755_s1 + $0x8e0] ss:$16 sps:$4 sm:$0xff]   ;;  %v5496_v40 = vld [vmem:[%s7755_s1 + $0x8e8] ss:$16 sps:$4 sm:$0xff]  }
  0xe3   :  { %3721 = vmatpush1.bf16.msra.mxu0 %v5400_v41  ;;  %4108 = vmatpush1.bf16.msra.mxu1 %v5403_v42  ;;  %v5501_v41 = vld [vmem:[%s7755_s1 + $0x904] ss:$16 sps:$4 sm:$0xff]   ;;  %v5504_v42 = vld [vmem:[%s7755_s1 + $0x90c] ss:$16 sps:$4 sm:$0xff]  }
  0xe4   :  { %3722 = vmatprep.subr.bf16.mxu0 %v5408_v43  ;;  %4109 = vmatprep.subr.bf16.mxu1 %v5411_v44  ;;  %v5499_v43 = vld [vmem:[%s7755_s1 + $0x900] ss:$16 sps:$4 sm:$0xff]   ;;  %v5502_v44 = vld [vmem:[%s7755_s1 + $0x908] ss:$16 sps:$4 sm:$0xff]  }
  0xe7   :  { %3723 = vmatpush1.bf16.msra.mxu0 %v5406_v45  ;;  %4110 = vmatpush1.bf16.msra.mxu1 %v5409_v46  ;;  %v5507_v45 = vld [vmem:[%s7755_s1 + $0x924] ss:$16 sps:$4 sm:$0xff]   ;;  %v5510_v46 = vld [vmem:[%s7755_s1 + $0x92c] ss:$16 sps:$4 sm:$0xff]  }
  0xe8   :  { %3724 = vmatprep.subr.bf16.mxu0 %v5414_v47  ;;  %4111 = vmatprep.subr.bf16.mxu1 %v5417_v48  ;;  %v5505_v47 = vld [vmem:[%s7755_s1 + $0x920] ss:$16 sps:$4 sm:$0xff]   ;;  %v5508_v48 = vld [vmem:[%s7755_s1 + $0x928] ss:$16 sps:$4 sm:$0xff]  }
  0xeb   :  { %3725 = vmatpush1.bf16.msra.mxu0 %v5412_v49  ;;  %4112 = vmatpush1.bf16.msra.mxu1 %v5415_v50  ;;  %v5513_v49 = vld [vmem:[%s7755_s1 + $0x944] ss:$16 sps:$4 sm:$0xff]   ;;  %v5516_v50 = vld [vmem:[%s7755_s1 + $0x94c] ss:$16 sps:$4 sm:$0xff]  }
  0xec   :  { %3726 = vmatprep.subr.bf16.mxu0 %v5420_v51  ;;  %4113 = vmatprep.subr.bf16.mxu1 %v5423_v52  ;;  %v5511_v51 = vld [vmem:[%s7755_s1 + $0x940] ss:$16 sps:$4 sm:$0xff]   ;;  %v5514_v52 = vld [vmem:[%s7755_s1 + $0x948] ss:$16 sps:$4 sm:$0xff]  }
  0xef   :  { %3727 = vmatpush1.bf16.msra.mxu0 %v5418_v53  ;;  %4114 = vmatpush1.bf16.msra.mxu1 %v5421_v54  ;;  %v5519_v53 = vld [vmem:[%s7755_s1 + $0x964] ss:$16 sps:$4 sm:$0xff]   ;;  %v5522_v54 = vld [vmem:[%s7755_s1 + $0x96c] ss:$16 sps:$4 sm:$0xff]  }
  0xf0   :  { %3728 = vmatprep.subr.bf16.mxu0 %v5426_v55  ;;  %4115 = vmatprep.subr.bf16.mxu1 %v5429_v56  ;;  %v5517_v55 = vld [vmem:[%s7755_s1 + $0x960] ss:$16 sps:$4 sm:$0xff]   ;;  %v5520_v56 = vld [vmem:[%s7755_s1 + $0x968] ss:$16 sps:$4 sm:$0xff]  }
  0xf3   :  { %3729 = vmatpush1.bf16.msra.mxu0 %v5424_v57  ;;  %4116 = vmatpush1.bf16.msra.mxu1 %v5427_v58  ;;  %v5525_v57 = vld [vmem:[%s7755_s1 + $0x984] ss:$16 sps:$4 sm:$0xff]   ;;  %v5528_v58 = vld [vmem:[%s7755_s1 + $0x98c] ss:$16 sps:$4 sm:$0xff]  }
  0xf4   :  { %3730 = vmatprep.subr.bf16.mxu0 %v5432_v59  ;;  %4117 = vmatprep.subr.bf16.mxu1 %v5435_v60  ;;  %v5523_v59 = vld [vmem:[%s7755_s1 + $0x980] ss:$16 sps:$4 sm:$0xff]   ;;  %v5526_v60 = vld [vmem:[%s7755_s1 + $0x988] ss:$16 sps:$4 sm:$0xff]  }
  0xf7   :  { %3731 = vmatpush1.bf16.msra.mxu0 %v5430_v61  ;;  %4118 = vmatpush1.bf16.msra.mxu1 %v5433_v62  ;;  %v5531_v61 = vld [vmem:[%s7755_s1 + $0x9a4] ss:$16 sps:$4 sm:$0xff]   ;;  %v5534_v62 = vld [vmem:[%s7755_s1 + $0x9ac] ss:$16 sps:$4 sm:$0xff]  }
  0xf8   :  { %3732 = vmatprep.subr.bf16.mxu0 %v5438_v63  ;;  %4119 = vmatprep.subr.bf16.mxu1 %v5441_v0  ;;  %v5529_v63 = vld [vmem:[%s7755_s1 + $0x9a0] ss:$16 sps:$4 sm:$0xff]   ;;  %v5532_v0 = vld [vmem:[%s7755_s1 + $0x9a8] ss:$16 sps:$4 sm:$0xff]  }
  0xfb   :  { %3733 = vmatpush1.bf16.msra.mxu0 %v5436_v1  ;;  %4120 = vmatpush1.bf16.msra.mxu1 %v5439_v2  ;;  %v5537_v1 = vld [vmem:[%s7755_s1 + $0x9c4] ss:$16 sps:$4 sm:$0xff]   ;;  %v5540_v2 = vld [vmem:[%s7755_s1 + $0x9cc] ss:$16 sps:$4 sm:$0xff]  }
  0xfc   :  { %3734 = vmatprep.subr.bf16.mxu0 %v5444_v3  ;;  %4121 = vmatprep.subr.bf16.mxu1 %v5447_v4  ;;  %v5535_v3 = vld [vmem:[%s7755_s1 + $0x9c0] ss:$16 sps:$4 sm:$0xff]   ;;  %v5538_v4 = vld [vmem:[%s7755_s1 + $0x9c8] ss:$16 sps:$4 sm:$0xff]  }
  0xff   :  { %3735 = vmatpush1.bf16.msra.mxu0 %v5442_v5  ;;  %4122 = vmatpush1.bf16.msra.mxu1 %v5445_v6  ;;  %v5543_v5 = vld [vmem:[%s7755_s1 + $0x9e4] ss:$16 sps:$4 sm:$0xff]   ;;  %v5546_v6 = vld [vmem:[%s7755_s1 + $0x9ec] ss:$16 sps:$4 sm:$0xff]  }
 0x100   :  { %3747 = vmatprep.subr.bf16.mxu0 %v5453_v7  ;;  %4134 = vmatprep.subr.bf16.mxu1 %v5456_v8  ;;  %v5541_v7 = vld [vmem:[%s7755_s1 + $0x9e0] ss:$16 sps:$4 sm:$0xff]   ;;  %v5544_v8 = vld [vmem:[%s7755_s1 + $0x9e8] ss:$16 sps:$4 sm:$0xff]  }
 0x102   :  { %3737 = vmatmul.mubr.bf16.vlgmr.msra.gmra.mrb[0].mxu0 %v5448_v9  ;;  %4124 = vmatmul.mubr.bf16.vlgmr.msra.gmra.mrb[0].mxu1 %v5448_v9  ;;  %v5547_v9 = vld [vmem:[%s7756_s0 + $0x20] ss:$72 sps:$4 sm:$0xff]  }
 0x103   :  { %3748 = vmatpush1.bf16.msra.mxu0 %v5451_v10  ;;  %4135 = vmatpush1.bf16.msra.mxu1 %v5454_v11  ;;  %v5552_v10 = vld [vmem:[%s7755_s1 + $0xa04] ss:$16 sps:$4 sm:$0xff]   ;;  %v5555_v11 = vld [vmem:[%s7755_s1 + $0xa0c] ss:$16 sps:$4 sm:$0xff]  }
 0x104   :  { %3749 = vmatprep.subr.bf16.mxu0 %v5459_v12  ;;  %4136 = vmatprep.subr.bf16.mxu1 %v5462_v13  ;;  %v5550_v12 = vld [vmem:[%s7755_s1 + $0xa00] ss:$16 sps:$4 sm:$0xff]   ;;  %v5553_v13 = vld [vmem:[%s7755_s1 + $0xa08] ss:$16 sps:$4 sm:$0xff]  }
 0x105   :  { %3779 = vmatprep.mubr.bf16.mxu0 %v5549_v14  ;;  %4166 = vmatprep.mubr.bf16.mxu1 %v5549_v14  ;;  %v5558_v14 = vld [vmem:[%s7755_s1 + $0xa24] ss:$16 sps:$4 sm:$0xff]  }
 0x107   :  { %3750 = vmatpush1.bf16.msra.mxu0 %v5457_v15  ;;  %4137 = vmatpush1.bf16.msra.mxu1 %v5460_v16  ;;  %v5561_v15 = vld [vmem:[%s7755_s1 + $0xa2c] ss:$16 sps:$4 sm:$0xff]  }
 0x108   :  { %3751 = vmatprep.subr.bf16.mxu0 %v5465_v17  ;;  %4138 = vmatprep.subr.bf16.mxu1 %v5468_v18  ;;  %v5648_v16 = vld [vmem:[%s7756_s0 + $0x2c] ss:$72 sps:$4 sm:$0xff]   ;;  %v5556_v17 = vld [vmem:[%s7755_s1 + $0xa20] ss:$16 sps:$4 sm:$0xff]   ;;  %v5559_v18 = vld [vmem:[%s7755_s1 + $0xa28] ss:$16 sps:$4 sm:$0xff]  }
 0x10b   :  { %3752 = vmatpush1.bf16.msra.mxu0 %v5463_v19  ;;  %4139 = vmatpush1.bf16.msra.mxu1 %v5466_v20  ;;  %v5564_v19 = vld [vmem:[%s7755_s1 + $0xa44] ss:$16 sps:$4 sm:$0xff]   ;;  %v5567_v20 = vld [vmem:[%s7755_s1 + $0xa4c] ss:$16 sps:$4 sm:$0xff]  }
 0x10c   :  { %3753 = vmatprep.subr.bf16.mxu0 %v5471_v21  ;;  %4140 = vmatprep.subr.bf16.mxu1 %v5474_v22  ;;  %v5562_v21 = vld [vmem:[%s7755_s1 + $0xa40] ss:$16 sps:$4 sm:$0xff]   ;;  %v5565_v22 = vld [vmem:[%s7755_s1 + $0xa48] ss:$16 sps:$4 sm:$0xff]  }
 0x10f   :  { %3754 = vmatpush1.bf16.msra.mxu0 %v5469_v23  ;;  %4141 = vmatpush1.bf16.msra.mxu1 %v5472_v24  ;;  %v5570_v23 = vld [vmem:[%s7755_s1 + $0xa64] ss:$16 sps:$4 sm:$0xff]   ;;  %v5573_v24 = vld [vmem:[%s7755_s1 + $0xa6c] ss:$16 sps:$4 sm:$0xff]  }
 0x110   :  { %3755 = vmatprep.subr.bf16.mxu0 %v5477_v25  ;;  %4142 = vmatprep.subr.bf16.mxu1 %v5480_v26  ;;  %v5568_v25 = vld [vmem:[%s7755_s1 + $0xa60] ss:$16 sps:$4 sm:$0xff]   ;;  %v5571_v26 = vld [vmem:[%s7755_s1 + $0xa68] ss:$16 sps:$4 sm:$0xff]  }
 0x113   :  { %3756 = vmatpush1.bf16.msra.mxu0 %v5475_v27  ;;  %4143 = vmatpush1.bf16.msra.mxu1 %v5478_v28  ;;  %v5576_v27 = vld [vmem:[%s7755_s1 + $0xa84] ss:$16 sps:$4 sm:$0xff]   ;;  %v5579_v28 = vld [vmem:[%s7755_s1 + $0xa8c] ss:$16 sps:$4 sm:$0xff]  }
 0x114   :  { %3757 = vmatprep.subr.bf16.mxu0 %v5483_v29  ;;  %4144 = vmatprep.subr.bf16.mxu1 %v5486_v30  ;;  %v5574_v29 = vld [vmem:[%s7755_s1 + $0xa80] ss:$16 sps:$4 sm:$0xff]   ;;  %v5577_v30 = vld [vmem:[%s7755_s1 + $0xa88] ss:$16 sps:$4 sm:$0xff]  }
 0x117   :  { %3758 = vmatpush1.bf16.msra.mxu0 %v5481_v31  ;;  %4145 = vmatpush1.bf16.msra.mxu1 %v5484_v32  ;;  %v5582_v31 = vld [vmem:[%s7755_s1 + $0xaa4] ss:$16 sps:$4 sm:$0xff]   ;;  %v5585_v32 = vld [vmem:[%s7755_s1 + $0xaac] ss:$16 sps:$4 sm:$0xff]  }
 0x118   :  { %3759 = vmatprep.subr.bf16.mxu0 %v5489_v33  ;;  %4146 = vmatprep.subr.bf16.mxu1 %v5492_v34  ;;  %v5580_v33 = vld [vmem:[%s7755_s1 + $0xaa0] ss:$16 sps:$4 sm:$0xff]   ;;  %v5583_v34 = vld [vmem:[%s7755_s1 + $0xaa8] ss:$16 sps:$4 sm:$0xff]  }
 0x11b   :  { %3760 = vmatpush1.bf16.msra.mxu0 %v5487_v35  ;;  %4147 = vmatpush1.bf16.msra.mxu1 %v5490_v36  ;;  %v5588_v35 = vld [vmem:[%s7755_s1 + $0xac4] ss:$16 sps:$4 sm:$0xff]   ;;  %v5591_v36 = vld [vmem:[%s7755_s1 + $0xacc] ss:$16 sps:$4 sm:$0xff]  }
 0x11c   :  { %3761 = vmatprep.subr.bf16.mxu0 %v5495_v37  ;;  %4148 = vmatprep.subr.bf16.mxu1 %v5498_v38  ;;  %v5586_v37 = vld [vmem:[%s7755_s1 + $0xac0] ss:$16 sps:$4 sm:$0xff]   ;;  %v5589_v38 = vld [vmem:[%s7755_s1 + $0xac8] ss:$16 sps:$4 sm:$0xff]  }
 0x11f   :  { %3762 = vmatpush1.bf16.msra.mxu0 %v5493_v39  ;;  %4149 = vmatpush1.bf16.msra.mxu1 %v5496_v40  ;;  %v5594_v39 = vld [vmem:[%s7755_s1 + $0xae4] ss:$16 sps:$4 sm:$0xff]   ;;  %v5597_v40 = vld [vmem:[%s7755_s1 + $0xaec] ss:$16 sps:$4 sm:$0xff]  }
 0x120   :  { %3763 = vmatprep.subr.bf16.mxu0 %v5501_v41  ;;  %4150 = vmatprep.subr.bf16.mxu1 %v5504_v42  ;;  %v5592_v41 = vld [vmem:[%s7755_s1 + $0xae0] ss:$16 sps:$4 sm:$0xff]   ;;  %v5595_v42 = vld [vmem:[%s7755_s1 + $0xae8] ss:$16 sps:$4 sm:$0xff]  }
 0x123   :  { %3764 = vmatpush1.bf16.msra.mxu0 %v5499_v43  ;;  %4151 = vmatpush1.bf16.msra.mxu1 %v5502_v44  ;;  %v5600_v43 = vld [vmem:[%s7755_s1 + $0xb04] ss:$16 sps:$4 sm:$0xff]   ;;  %v5603_v44 = vld [vmem:[%s7755_s1 + $0xb0c] ss:$16 sps:$4 sm:$0xff]  }
 0x124   :  { %3765 = vmatprep.subr.bf16.mxu0 %v5507_v45  ;;  %4152 = vmatprep.subr.bf16.mxu1 %v5510_v46  ;;  %v5598_v45 = vld [vmem:[%s7755_s1 + $0xb00] ss:$16 sps:$4 sm:$0xff]   ;;  %v5601_v46 = vld [vmem:[%s7755_s1 + $0xb08] ss:$16 sps:$4 sm:$0xff]  }
 0x127   :  { %3766 = vmatpush1.bf16.msra.mxu0 %v5505_v47  ;;  %4153 = vmatpush1.bf16.msra.mxu1 %v5508_v48  ;;  %v5606_v47 = vld [vmem:[%s7755_s1 + $0xb24] ss:$16 sps:$4 sm:$0xff]   ;;  %v5609_v48 = vld [vmem:[%s7755_s1 + $0xb2c] ss:$16 sps:$4 sm:$0xff]  }
 0x128   :  { %3767 = vmatprep.subr.bf16.mxu0 %v5513_v49  ;;  %4154 = vmatprep.subr.bf16.mxu1 %v5516_v50  ;;  %v5604_v49 = vld [vmem:[%s7755_s1 + $0xb20] ss:$16 sps:$4 sm:$0xff]   ;;  %v5607_v50 = vld [vmem:[%s7755_s1 + $0xb28] ss:$16 sps:$4 sm:$0xff]  }
 0x12b   :  { %3768 = vmatpush1.bf16.msra.mxu0 %v5511_v51  ;;  %4155 = vmatpush1.bf16.msra.mxu1 %v5514_v52  ;;  %v5612_v51 = vld [vmem:[%s7755_s1 + $0xb44] ss:$16 sps:$4 sm:$0xff]   ;;  %v5615_v52 = vld [vmem:[%s7755_s1 + $0xb4c] ss:$16 sps:$4 sm:$0xff]  }
 0x12c   :  { %3769 = vmatprep.subr.bf16.mxu0 %v5519_v53  ;;  %4156 = vmatprep.subr.bf16.mxu1 %v5522_v54  ;;  %v5610_v53 = vld [vmem:[%s7755_s1 + $0xb40] ss:$16 sps:$4 sm:$0xff]   ;;  %v5613_v54 = vld [vmem:[%s7755_s1 + $0xb48] ss:$16 sps:$4 sm:$0xff]  }
 0x12f   :  { %3770 = vmatpush1.bf16.msra.mxu0 %v5517_v55  ;;  %4157 = vmatpush1.bf16.msra.mxu1 %v5520_v56  ;;  %v5618_v55 = vld [vmem:[%s7755_s1 + $0xb64] ss:$16 sps:$4 sm:$0xff]   ;;  %v5621_v56 = vld [vmem:[%s7755_s1 + $0xb6c] ss:$16 sps:$4 sm:$0xff]  }
 0x130   :  { %3771 = vmatprep.subr.bf16.mxu0 %v5525_v57  ;;  %4158 = vmatprep.subr.bf16.mxu1 %v5528_v58  ;;  %v5616_v57 = vld [vmem:[%s7755_s1 + $0xb60] ss:$16 sps:$4 sm:$0xff]   ;;  %v5619_v58 = vld [vmem:[%s7755_s1 + $0xb68] ss:$16 sps:$4 sm:$0xff]  }
 0x133   :  { %3772 = vmatpush1.bf16.msra.mxu0 %v5523_v59  ;;  %4159 = vmatpush1.bf16.msra.mxu1 %v5526_v60  ;;  %v5624_v59 = vld [vmem:[%s7755_s1 + $0xb84] ss:$16 sps:$4 sm:$0xff]   ;;  %v5627_v60 = vld [vmem:[%s7755_s1 + $0xb8c] ss:$16 sps:$4 sm:$0xff]  }
 0x134   :  { %3773 = vmatprep.subr.bf16.mxu0 %v5531_v61  ;;  %4160 = vmatprep.subr.bf16.mxu1 %v5534_v62  ;;  %v5622_v61 = vld [vmem:[%s7755_s1 + $0xb80] ss:$16 sps:$4 sm:$0xff]   ;;  %v5625_v62 = vld [vmem:[%s7755_s1 + $0xb88] ss:$16 sps:$4 sm:$0xff]  }
 0x137   :  { %3774 = vmatpush1.bf16.msra.mxu0 %v5529_v63  ;;  %4161 = vmatpush1.bf16.msra.mxu1 %v5532_v0  ;;  %v5630_v63 = vld [vmem:[%s7755_s1 + $0xba4] ss:$16 sps:$4 sm:$0xff]   ;;  %v5633_v0 = vld [vmem:[%s7755_s1 + $0xbac] ss:$16 sps:$4 sm:$0xff]  }
 0x138   :  { %3775 = vmatprep.subr.bf16.mxu0 %v5537_v1  ;;  %4162 = vmatprep.subr.bf16.mxu1 %v5540_v2  ;;  %v5628_v1 = vld [vmem:[%s7755_s1 + $0xba0] ss:$16 sps:$4 sm:$0xff]   ;;  %v5631_v2 = vld [vmem:[%s7755_s1 + $0xba8] ss:$16 sps:$4 sm:$0xff]  }
 0x13b   :  { %3776 = vmatpush1.bf16.msra.mxu0 %v5535_v3  ;;  %4163 = vmatpush1.bf16.msra.mxu1 %v5538_v4  ;;  %v5636_v3 = vld [vmem:[%s7755_s1 + $0xbc4] ss:$16 sps:$4 sm:$0xff]   ;;  %v5639_v4 = vld [vmem:[%s7755_s1 + $0xbcc] ss:$16 sps:$4 sm:$0xff]  }
 0x13c   :  { %3777 = vmatprep.subr.bf16.mxu0 %v5543_v5  ;;  %4164 = vmatprep.subr.bf16.mxu1 %v5546_v6  ;;  %v5634_v5 = vld [vmem:[%s7755_s1 + $0xbc0] ss:$16 sps:$4 sm:$0xff]   ;;  %v5637_v6 = vld [vmem:[%s7755_s1 + $0xbc8] ss:$16 sps:$4 sm:$0xff]  }
 0x13f   :  { %3778 = vmatpush1.bf16.msra.mxu0 %v5541_v7  ;;  %4165 = vmatpush1.bf16.msra.mxu1 %v5544_v8  ;;  %v5642_v7 = vld [vmem:[%s7755_s1 + $0xbe4] ss:$16 sps:$4 sm:$0xff]   ;;  %v5645_v8 = vld [vmem:[%s7755_s1 + $0xbec] ss:$16 sps:$4 sm:$0xff]  }
 0x140   :  { %3790 = vmatprep.subr.bf16.mxu0 %v5552_v10  ;;  %4177 = vmatprep.subr.bf16.mxu1 %v5555_v11  ;;  %v5643_v10 = vld [vmem:[%s7755_s1 + $0xbe8] ss:$16 sps:$4 sm:$0xff]   ;;  %v5651_v11 = vld [vmem:[%s7755_s1 + $0xc04] ss:$16 sps:$4 sm:$0xff]  }
 0x142   :  { %3780 = vmatmul.mubr.bf16.vlgmr.msra.gmra.mrb[0].mxu0 %v5547_v9  ;;  %4167 = vmatmul.mubr.bf16.vlgmr.msra.gmra.mrb[0].mxu1 %v5547_v9  ;;  %v5640_v9 = vld [vmem:[%s7755_s1 + $0xbe0] ss:$16 sps:$4 sm:$0xff]  }
 0x143   :  { %3791 = vmatpush1.bf16.msra.mxu0 %v5550_v12  ;;  %4178 = vmatpush1.bf16.msra.mxu1 %v5553_v13  ;;  %v5654_v12 = vld [vmem:[%s7755_s1 + $0xc0c] ss:$16 sps:$4 sm:$0xff]   ;;  %v5646_v13 = vld [vmem:[%s7756_s0 + $0x28] ss:$72 sps:$4 sm:$0xff]  }
 0x144   :  { %3792 = vmatprep.subr.bf16.mxu0 %v5558_v14  ;;  %4179 = vmatprep.subr.bf16.mxu1 %v5561_v15  ;;  %v5649_v14 = vld [vmem:[%s7755_s1 + $0xc00] ss:$16 sps:$4 sm:$0xff]   ;;  %v5652_v15 = vld [vmem:[%s7755_s1 + $0xc08] ss:$16 sps:$4 sm:$0xff]  }
 0x145   :  { %3822 = vmatprep.mubr.bf16.mxu0 %v5648_v16  ;;  %4209 = vmatprep.mubr.bf16.mxu1 %v5648_v16  ;;  %v5657_v16 = vld [vmem:[%s7755_s1 + $0xc24] ss:$16 sps:$4 sm:$0xff]  }
 0x147   :  { %3793 = vmatpush1.bf16.msra.mxu0 %v5556_v17  ;;  %4180 = vmatpush1.bf16.msra.mxu1 %v5559_v18  ;;  %v5660_v17 = vld [vmem:[%s7755_s1 + $0xc2c] ss:$16 sps:$4 sm:$0xff]  }
 0x148   :  { %3794 = vmatprep.subr.bf16.mxu0 %v5564_v19  ;;  %4181 = vmatprep.subr.bf16.mxu1 %v5567_v20  ;;  %v5747_v18 = vld [vmem:[%s7756_s0 + $0x34] ss:$72 sps:$4 sm:$0xff]   ;;  %v5655_v19 = vld [vmem:[%s7755_s1 + $0xc20] ss:$16 sps:$4 sm:$0xff]   ;;  %v5658_v20 = vld [vmem:[%s7755_s1 + $0xc28] ss:$16 sps:$4 sm:$0xff]  }
 0x14b   :  { %3795 = vmatpush1.bf16.msra.mxu0 %v5562_v21  ;;  %4182 = vmatpush1.bf16.msra.mxu1 %v5565_v22  ;;  %v5663_v21 = vld [vmem:[%s7755_s1 + $0xc44] ss:$16 sps:$4 sm:$0xff]   ;;  %v5666_v22 = vld [vmem:[%s7755_s1 + $0xc4c] ss:$16 sps:$4 sm:$0xff]  }
 0x14c   :  { %3796 = vmatprep.subr.bf16.mxu0 %v5570_v23  ;;  %4183 = vmatprep.subr.bf16.mxu1 %v5573_v24  ;;  %v5661_v23 = vld [vmem:[%s7755_s1 + $0xc40] ss:$16 sps:$4 sm:$0xff]   ;;  %v5664_v24 = vld [vmem:[%s7755_s1 + $0xc48] ss:$16 sps:$4 sm:$0xff]  }
 0x14f   :  { %3797 = vmatpush1.bf16.msra.mxu0 %v5568_v25  ;;  %4184 = vmatpush1.bf16.msra.mxu1 %v5571_v26  ;;  %v5669_v25 = vld [vmem:[%s7755_s1 + $0xc64] ss:$16 sps:$4 sm:$0xff]   ;;  %v5672_v26 = vld [vmem:[%s7755_s1 + $0xc6c] ss:$16 sps:$4 sm:$0xff]  }
 0x150   :  { %3798 = vmatprep.subr.bf16.mxu0 %v5576_v27  ;;  %4185 = vmatprep.subr.bf16.mxu1 %v5579_v28  ;;  %v5667_v27 = vld [vmem:[%s7755_s1 + $0xc60] ss:$16 sps:$4 sm:$0xff]   ;;  %v5670_v28 = vld [vmem:[%s7755_s1 + $0xc68] ss:$16 sps:$4 sm:$0xff]  }
 0x153   :  { %3799 = vmatpush1.bf16.msra.mxu0 %v5574_v29  ;;  %4186 = vmatpush1.bf16.msra.mxu1 %v5577_v30  ;;  %v5675_v29 = vld [vmem:[%s7755_s1 + $0xc84] ss:$16 sps:$4 sm:$0xff]   ;;  %v5678_v30 = vld [vmem:[%s7755_s1 + $0xc8c] ss:$16 sps:$4 sm:$0xff]  }
 0x154   :  { %3800 = vmatprep.subr.bf16.mxu0 %v5582_v31  ;;  %4187 = vmatprep.subr.bf16.mxu1 %v5585_v32  ;;  %v5673_v31 = vld [vmem:[%s7755_s1 + $0xc80] ss:$16 sps:$4 sm:$0xff]   ;;  %v5676_v32 = vld [vmem:[%s7755_s1 + $0xc88] ss:$16 sps:$4 sm:$0xff]  }
 0x157   :  { %3801 = vmatpush1.bf16.msra.mxu0 %v5580_v33  ;;  %4188 = vmatpush1.bf16.msra.mxu1 %v5583_v34  ;;  %v5681_v33 = vld [vmem:[%s7755_s1 + $0xca4] ss:$16 sps:$4 sm:$0xff]   ;;  %v5684_v34 = vld [vmem:[%s7755_s1 + $0xcac] ss:$16 sps:$4 sm:$0xff]  }
 0x158   :  { %3802 = vmatprep.subr.bf16.mxu0 %v5588_v35  ;;  %4189 = vmatprep.subr.bf16.mxu1 %v5591_v36  ;;  %v5679_v35 = vld [vmem:[%s7755_s1 + $0xca0] ss:$16 sps:$4 sm:$0xff]   ;;  %v5682_v36 = vld [vmem:[%s7755_s1 + $0xca8] ss:$16 sps:$4 sm:$0xff]  }
 0x15b   :  { %3803 = vmatpush1.bf16.msra.mxu0 %v5586_v37  ;;  %4190 = vmatpush1.bf16.msra.mxu1 %v5589_v38  ;;  %v5687_v37 = vld [vmem:[%s7755_s1 + $0xcc4] ss:$16 sps:$4 sm:$0xff]   ;;  %v5690_v38 = vld [vmem:[%s7755_s1 + $0xccc] ss:$16 sps:$4 sm:$0xff]  }
 0x15c   :  { %3804 = vmatprep.subr.bf16.mxu0 %v5594_v39  ;;  %4191 = vmatprep.subr.bf16.mxu1 %v5597_v40  ;;  %v5685_v39 = vld [vmem:[%s7755_s1 + $0xcc0] ss:$16 sps:$4 sm:$0xff]   ;;  %v5688_v40 = vld [vmem:[%s7755_s1 + $0xcc8] ss:$16 sps:$4 sm:$0xff]  }
 0x15f   :  { %3805 = vmatpush1.bf16.msra.mxu0 %v5592_v41  ;;  %4192 = vmatpush1.bf16.msra.mxu1 %v5595_v42  ;;  %v5693_v41 = vld [vmem:[%s7755_s1 + $0xce4] ss:$16 sps:$4 sm:$0xff]   ;;  %v5696_v42 = vld [vmem:[%s7755_s1 + $0xcec] ss:$16 sps:$4 sm:$0xff]  }
 0x160   :  { %3806 = vmatprep.subr.bf16.mxu0 %v5600_v43  ;;  %4193 = vmatprep.subr.bf16.mxu1 %v5603_v44  ;;  %v5691_v43 = vld [vmem:[%s7755_s1 + $0xce0] ss:$16 sps:$4 sm:$0xff]   ;;  %v5694_v44 = vld [vmem:[%s7755_s1 + $0xce8] ss:$16 sps:$4 sm:$0xff]  }
 0x163   :  { %3807 = vmatpush1.bf16.msra.mxu0 %v5598_v45  ;;  %4194 = vmatpush1.bf16.msra.mxu1 %v5601_v46  ;;  %v5699_v45 = vld [vmem:[%s7755_s1 + $0xd04] ss:$16 sps:$4 sm:$0xff]   ;;  %v5702_v46 = vld [vmem:[%s7755_s1 + $0xd0c] ss:$16 sps:$4 sm:$0xff]  }
 0x164   :  { %3808 = vmatprep.subr.bf16.mxu0 %v5606_v47  ;;  %4195 = vmatprep.subr.bf16.mxu1 %v5609_v48  ;;  %v5697_v47 = vld [vmem:[%s7755_s1 + $0xd00] ss:$16 sps:$4 sm:$0xff]   ;;  %v5700_v48 = vld [vmem:[%s7755_s1 + $0xd08] ss:$16 sps:$4 sm:$0xff]  }
 0x167   :  { %3809 = vmatpush1.bf16.msra.mxu0 %v5604_v49  ;;  %4196 = vmatpush1.bf16.msra.mxu1 %v5607_v50  ;;  %v5705_v49 = vld [vmem:[%s7755_s1 + $0xd24] ss:$16 sps:$4 sm:$0xff]   ;;  %v5708_v50 = vld [vmem:[%s7755_s1 + $0xd2c] ss:$16 sps:$4 sm:$0xff]  }
 0x168   :  { %3810 = vmatprep.subr.bf16.mxu0 %v5612_v51  ;;  %4197 = vmatprep.subr.bf16.mxu1 %v5615_v52  ;;  %v5703_v51 = vld [vmem:[%s7755_s1 + $0xd20] ss:$16 sps:$4 sm:$0xff]   ;;  %v5706_v52 = vld [vmem:[%s7755_s1 + $0xd28] ss:$16 sps:$4 sm:$0xff]  }
 0x16b   :  { %3811 = vmatpush1.bf16.msra.mxu0 %v5610_v53  ;;  %4198 = vmatpush1.bf16.msra.mxu1 %v5613_v54  ;;  %v5711_v53 = vld [vmem:[%s7755_s1 + $0xd44] ss:$16 sps:$4 sm:$0xff]   ;;  %v5714_v54 = vld [vmem:[%s7755_s1 + $0xd4c] ss:$16 sps:$4 sm:$0xff]  }
 0x16c   :  { %3812 = vmatprep.subr.bf16.mxu0 %v5618_v55  ;;  %4199 = vmatprep.subr.bf16.mxu1 %v5621_v56  ;;  %v5709_v55 = vld [vmem:[%s7755_s1 + $0xd40] ss:$16 sps:$4 sm:$0xff]   ;;  %v5712_v56 = vld [vmem:[%s7755_s1 + $0xd48] ss:$16 sps:$4 sm:$0xff]  }
 0x16f   :  { %3813 = vmatpush1.bf16.msra.mxu0 %v5616_v57  ;;  %4200 = vmatpush1.bf16.msra.mxu1 %v5619_v58  ;;  %v5717_v57 = vld [vmem:[%s7755_s1 + $0xd64] ss:$16 sps:$4 sm:$0xff]   ;;  %v5720_v58 = vld [vmem:[%s7755_s1 + $0xd6c] ss:$16 sps:$4 sm:$0xff]  }
 0x170   :  { %3814 = vmatprep.subr.bf16.mxu0 %v5624_v59  ;;  %4201 = vmatprep.subr.bf16.mxu1 %v5627_v60  ;;  %v5715_v59 = vld [vmem:[%s7755_s1 + $0xd60] ss:$16 sps:$4 sm:$0xff]   ;;  %v5718_v60 = vld [vmem:[%s7755_s1 + $0xd68] ss:$16 sps:$4 sm:$0xff]  }
 0x173   :  { %3815 = vmatpush1.bf16.msra.mxu0 %v5622_v61  ;;  %4202 = vmatpush1.bf16.msra.mxu1 %v5625_v62  ;;  %v5723_v61 = vld [vmem:[%s7755_s1 + $0xd84] ss:$16 sps:$4 sm:$0xff]   ;;  %v5726_v62 = vld [vmem:[%s7755_s1 + $0xd8c] ss:$16 sps:$4 sm:$0xff]  }
 0x174   :  { %3816 = vmatprep.subr.bf16.mxu0 %v5630_v63  ;;  %4203 = vmatprep.subr.bf16.mxu1 %v5633_v0  ;;  %v5721_v63 = vld [vmem:[%s7755_s1 + $0xd80] ss:$16 sps:$4 sm:$0xff]   ;;  %v5724_v0 = vld [vmem:[%s7755_s1 + $0xd88] ss:$16 sps:$4 sm:$0xff]  }
 0x177   :  { %3817 = vmatpush1.bf16.msra.mxu0 %v5628_v1  ;;  %4204 = vmatpush1.bf16.msra.mxu1 %v5631_v2  ;;  %v5729_v1 = vld [vmem:[%s7755_s1 + $0xda4] ss:$16 sps:$4 sm:$0xff]   ;;  %v5732_v2 = vld [vmem:[%s7755_s1 + $0xdac] ss:$16 sps:$4 sm:$0xff]  }
 0x178   :  { %3818 = vmatprep.subr.bf16.mxu0 %v5636_v3  ;;  %4205 = vmatprep.subr.bf16.mxu1 %v5639_v4  ;;  %v5727_v3 = vld [vmem:[%s7755_s1 + $0xda0] ss:$16 sps:$4 sm:$0xff]   ;;  %v5730_v4 = vld [vmem:[%s7755_s1 + $0xda8] ss:$16 sps:$4 sm:$0xff]  }
 0x17b   :  { %3819 = vmatpush1.bf16.msra.mxu0 %v5634_v5  ;;  %4206 = vmatpush1.bf16.msra.mxu1 %v5637_v6  ;;  %v5735_v5 = vld [vmem:[%s7755_s1 + $0xdc4] ss:$16 sps:$4 sm:$0xff]   ;;  %v5738_v6 = vld [vmem:[%s7755_s1 + $0xdcc] ss:$16 sps:$4 sm:$0xff]  }
 0x17c   :  { %3820 = vmatprep.subr.bf16.mxu0 %v5642_v7  ;;  %4207 = vmatprep.subr.bf16.mxu1 %v5645_v8  ;;  %v5733_v7 = vld [vmem:[%s7755_s1 + $0xdc0] ss:$16 sps:$4 sm:$0xff]   ;;  %v5736_v8 = vld [vmem:[%s7755_s1 + $0xdc8] ss:$16 sps:$4 sm:$0xff]  }
 0x17f   :  { %3821 = vmatpush1.bf16.msra.mxu0 %v5640_v9  ;;  %4208 = vmatpush1.bf16.msra.mxu1 %v5643_v10  ;;  %v5741_v9 = vld [vmem:[%s7755_s1 + $0xde4] ss:$16 sps:$4 sm:$0xff]   ;;  %v5744_v10 = vld [vmem:[%s7755_s1 + $0xdec] ss:$16 sps:$4 sm:$0xff]  }
 0x180   :  { %3833 = vmatprep.subr.bf16.mxu0 %v5651_v11  ;;  %4220 = vmatprep.subr.bf16.mxu1 %v5654_v12  ;;  %v5739_v11 = vld [vmem:[%s7755_s1 + $0xde0] ss:$16 sps:$4 sm:$0xff]   ;;  %v5742_v12 = vld [vmem:[%s7755_s1 + $0xde8] ss:$16 sps:$4 sm:$0xff]  }
 0x182   :  { %3823 = vmatmul.mubr.bf16.vlgmr.msra.gmra.mrb[0].mxu0 %v5646_v13  ;;  %4210 = vmatmul.mubr.bf16.vlgmr.msra.gmra.mrb[0].mxu1 %v5646_v13  ;;  %v5750_v13 = vld [vmem:[%s7755_s1 + $0xe04] ss:$16 sps:$4 sm:$0xff]  }
 0x183   :  { %3834 = vmatpush1.bf16.msra.mxu0 %v5649_v14  ;;  %4221 = vmatpush1.bf16.msra.mxu1 %v5652_v15  ;;  %v5753_v14 = vld [vmem:[%s7755_s1 + $0xe0c] ss:$16 sps:$4 sm:$0xff]   ;;  %v5745_v15 = vld [vmem:[%s7756_s0 + $0x30] ss:$72 sps:$4 sm:$0xff]  }
 0x184   :  { %3835 = vmatprep.subr.bf16.mxu0 %v5657_v16  ;;  %4222 = vmatprep.subr.bf16.mxu1 %v5660_v17  ;;  %v5748_v16 = vld [vmem:[%s7755_s1 + $0xe00] ss:$16 sps:$4 sm:$0xff]   ;;  %v5751_v17 = vld [vmem:[%s7755_s1 + $0xe08] ss:$16 sps:$4 sm:$0xff]  }
 0x185   :  { %3865 = vmatprep.mubr.bf16.mxu0 %v5747_v18  ;;  %4252 = vmatprep.mubr.bf16.mxu1 %v5747_v18  ;;  %v5756_v18 = vld [vmem:[%s7755_s1 + $0xe24] ss:$16 sps:$4 sm:$0xff]  }
 0x187   :  { %3836 = vmatpush1.bf16.msra.mxu0 %v5655_v19  ;;  %4223 = vmatpush1.bf16.msra.mxu1 %v5658_v20  ;;  %v5759_v19 = vld [vmem:[%s7755_s1 + $0xe2c] ss:$16 sps:$4 sm:$0xff]  }
 0x188   :  { %3837 = vmatprep.subr.bf16.mxu0 %v5663_v21  ;;  %4224 = vmatprep.subr.bf16.mxu1 %v5666_v22  ;;  %v5846_v20 = vld [vmem:[%s7756_s0 + $0x3c] ss:$72 sps:$4 sm:$0xff]   ;;  %v5754_v21 = vld [vmem:[%s7755_s1 + $0xe20] ss:$16 sps:$4 sm:$0xff]   ;;  %v5757_v22 = vld [vmem:[%s7755_s1 + $0xe28] ss:$16 sps:$4 sm:$0xff]  }
 0x18b   :  { %3838 = vmatpush1.bf16.msra.mxu0 %v5661_v23  ;;  %4225 = vmatpush1.bf16.msra.mxu1 %v5664_v24  ;;  %v5762_v23 = vld [vmem:[%s7755_s1 + $0xe44] ss:$16 sps:$4 sm:$0xff]   ;;  %v5765_v24 = vld [vmem:[%s7755_s1 + $0xe4c] ss:$16 sps:$4 sm:$0xff]  }
 0x18c   :  { %3839 = vmatprep.subr.bf16.mxu0 %v5669_v25  ;;  %4226 = vmatprep.subr.bf16.mxu1 %v5672_v26  ;;  %v5760_v25 = vld [vmem:[%s7755_s1 + $0xe40] ss:$16 sps:$4 sm:$0xff]   ;;  %v5763_v26 = vld [vmem:[%s7755_s1 + $0xe48] ss:$16 sps:$4 sm:$0xff]  }
 0x18f   :  { %3840 = vmatpush1.bf16.msra.mxu0 %v5667_v27  ;;  %4227 = vmatpush1.bf16.msra.mxu1 %v5670_v28  ;;  %v5768_v27 = vld [vmem:[%s7755_s1 + $0xe64] ss:$16 sps:$4 sm:$0xff]   ;;  %v5771_v28 = vld [vmem:[%s7755_s1 + $0xe6c] ss:$16 sps:$4 sm:$0xff]  }
 0x190   :  { %3841 = vmatprep.subr.bf16.mxu0 %v5675_v29  ;;  %4228 = vmatprep.subr.bf16.mxu1 %v5678_v30  ;;  %v5766_v29 = vld [vmem:[%s7755_s1 + $0xe60] ss:$16 sps:$4 sm:$0xff]   ;;  %v5769_v30 = vld [vmem:[%s7755_s1 + $0xe68] ss:$16 sps:$4 sm:$0xff]  }
 0x193   :  { %3842 = vmatpush1.bf16.msra.mxu0 %v5673_v31  ;;  %4229 = vmatpush1.bf16.msra.mxu1 %v5676_v32  ;;  %v5774_v31 = vld [vmem:[%s7755_s1 + $0xe84] ss:$16 sps:$4 sm:$0xff]   ;;  %v5777_v32 = vld [vmem:[%s7755_s1 + $0xe8c] ss:$16 sps:$4 sm:$0xff]  }
 0x194   :  { %3843 = vmatprep.subr.bf16.mxu0 %v5681_v33  ;;  %4230 = vmatprep.subr.bf16.mxu1 %v5684_v34  ;;  %v5772_v33 = vld [vmem:[%s7755_s1 + $0xe80] ss:$16 sps:$4 sm:$0xff]   ;;  %v5775_v34 = vld [vmem:[%s7755_s1 + $0xe88] ss:$16 sps:$4 sm:$0xff]  }
 0x197   :  { %3844 = vmatpush1.bf16.msra.mxu0 %v5679_v35  ;;  %4231 = vmatpush1.bf16.msra.mxu1 %v5682_v36  ;;  %v5780_v35 = vld [vmem:[%s7755_s1 + $0xea4] ss:$16 sps:$4 sm:$0xff]   ;;  %v5783_v36 = vld [vmem:[%s7755_s1 + $0xeac] ss:$16 sps:$4 sm:$0xff]  }
 0x198   :  { %3845 = vmatprep.subr.bf16.mxu0 %v5687_v37  ;;  %4232 = vmatprep.subr.bf16.mxu1 %v5690_v38  ;;  %v5778_v37 = vld [vmem:[%s7755_s1 + $0xea0] ss:$16 sps:$4 sm:$0xff]   ;;  %v5781_v38 = vld [vmem:[%s7755_s1 + $0xea8] ss:$16 sps:$4 sm:$0xff]  }
 0x19b   :  { %3846 = vmatpush1.bf16.msra.mxu0 %v5685_v39  ;;  %4233 = vmatpush1.bf16.msra.mxu1 %v5688_v40  ;;  %v5786_v39 = vld [vmem:[%s7755_s1 + $0xec4] ss:$16 sps:$4 sm:$0xff]   ;;  %v5789_v40 = vld [vmem:[%s7755_s1 + $0xecc] ss:$16 sps:$4 sm:$0xff]  }
 0x19c   :  { %3847 = vmatprep.subr.bf16.mxu0 %v5693_v41  ;;  %4234 = vmatprep.subr.bf16.mxu1 %v5696_v42  ;;  %v5784_v41 = vld [vmem:[%s7755_s1 + $0xec0] ss:$16 sps:$4 sm:$0xff]   ;;  %v5787_v42 = vld [vmem:[%s7755_s1 + $0xec8] ss:$16 sps:$4 sm:$0xff]  }
 0x19f   :  { %3848 = vmatpush1.bf16.msra.mxu0 %v5691_v43  ;;  %4235 = vmatpush1.bf16.msra.mxu1 %v5694_v44  ;;  %v5792_v43 = vld [vmem:[%s7755_s1 + $0xee4] ss:$16 sps:$4 sm:$0xff]   ;;  %v5795_v44 = vld [vmem:[%s7755_s1 + $0xeec] ss:$16 sps:$4 sm:$0xff]  }
 0x1a0   :  { %3849 = vmatprep.subr.bf16.mxu0 %v5699_v45  ;;  %4236 = vmatprep.subr.bf16.mxu1 %v5702_v46  ;;  %v5790_v45 = vld [vmem:[%s7755_s1 + $0xee0] ss:$16 sps:$4 sm:$0xff]   ;;  %v5793_v46 = vld [vmem:[%s7755_s1 + $0xee8] ss:$16 sps:$4 sm:$0xff]  }
 0x1a3   :  { %3850 = vmatpush1.bf16.msra.mxu0 %v5697_v47  ;;  %4237 = vmatpush1.bf16.msra.mxu1 %v5700_v48  ;;  %v5798_v47 = vld [vmem:[%s7755_s1 + $0xf04] ss:$16 sps:$4 sm:$0xff]   ;;  %v5801_v48 = vld [vmem:[%s7755_s1 + $0xf0c] ss:$16 sps:$4 sm:$0xff]  }
 0x1a4   :  { %3851 = vmatprep.subr.bf16.mxu0 %v5705_v49  ;;  %4238 = vmatprep.subr.bf16.mxu1 %v5708_v50  ;;  %v5796_v49 = vld [vmem:[%s7755_s1 + $0xf00] ss:$16 sps:$4 sm:$0xff]   ;;  %v5799_v50 = vld [vmem:[%s7755_s1 + $0xf08] ss:$16 sps:$4 sm:$0xff]  }
 0x1a7   :  { %3852 = vmatpush1.bf16.msra.mxu0 %v5703_v51  ;;  %4239 = vmatpush1.bf16.msra.mxu1 %v5706_v52  ;;  %v5804_v51 = vld [vmem:[%s7755_s1 + $0xf24] ss:$16 sps:$4 sm:$0xff]   ;;  %v5807_v52 = vld [vmem:[%s7755_s1 + $0xf2c] ss:$16 sps:$4 sm:$0xff]  }
 0x1a8   :  { %3853 = vmatprep.subr.bf16.mxu0 %v5711_v53  ;;  %4240 = vmatprep.subr.bf16.mxu1 %v5714_v54  ;;  %v5802_v53 = vld [vmem:[%s7755_s1 + $0xf20] ss:$16 sps:$4 sm:$0xff]   ;;  %v5805_v54 = vld [vmem:[%s7755_s1 + $0xf28] ss:$16 sps:$4 sm:$0xff]  }
 0x1ab   :  { %3854 = vmatpush1.bf16.msra.mxu0 %v5709_v55  ;;  %4241 = vmatpush1.bf16.msra.mxu1 %v5712_v56  ;;  %v5810_v55 = vld [vmem:[%s7755_s1 + $0xf44] ss:$16 sps:$4 sm:$0xff]   ;;  %v5813_v56 = vld [vmem:[%s7755_s1 + $0xf4c] ss:$16 sps:$4 sm:$0xff]  }
 0x1ac   :  { %3855 = vmatprep.subr.bf16.mxu0 %v5717_v57  ;;  %4242 = vmatprep.subr.bf16.mxu1 %v5720_v58  ;;  %v5808_v57 = vld [vmem:[%s7755_s1 + $0xf40] ss:$16 sps:$4 sm:$0xff]   ;;  %v5811_v58 = vld [vmem:[%s7755_s1 + $0xf48] ss:$16 sps:$4 sm:$0xff]  }
 0x1af   :  { %3856 = vmatpush1.bf16.msra.mxu0 %v5715_v59  ;;  %4243 = vmatpush1.bf16.msra.mxu1 %v5718_v60  ;;  %v5816_v59 = vld [vmem:[%s7755_s1 + $0xf64] ss:$16 sps:$4 sm:$0xff]   ;;  %v5819_v60 = vld [vmem:[%s7755_s1 + $0xf6c] ss:$16 sps:$4 sm:$0xff]  }
 0x1b0   :  { %3857 = vmatprep.subr.bf16.mxu0 %v5723_v61  ;;  %4244 = vmatprep.subr.bf16.mxu1 %v5726_v62  ;;  %v5814_v61 = vld [vmem:[%s7755_s1 + $0xf60] ss:$16 sps:$4 sm:$0xff]   ;;  %v5817_v62 = vld [vmem:[%s7755_s1 + $0xf68] ss:$16 sps:$4 sm:$0xff]  }
 0x1b3   :  { %3858 = vmatpush1.bf16.msra.mxu0 %v5721_v63  ;;  %4245 = vmatpush1.bf16.msra.mxu1 %v5724_v0  ;;  %v5822_v63 = vld [vmem:[%s7755_s1 + $0xf84] ss:$16 sps:$4 sm:$0xff]   ;;  %v5825_v0 = vld [vmem:[%s7755_s1 + $0xf8c] ss:$16 sps:$4 sm:$0xff]  }
 0x1b4   :  { %3859 = vmatprep.subr.bf16.mxu0 %v5729_v1  ;;  %4246 = vmatprep.subr.bf16.mxu1 %v5732_v2  ;;  %v5820_v1 = vld [vmem:[%s7755_s1 + $0xf80] ss:$16 sps:$4 sm:$0xff]   ;;  %v5823_v2 = vld [vmem:[%s7755_s1 + $0xf88] ss:$16 sps:$4 sm:$0xff]  }
 0x1b7   :  { %3860 = vmatpush1.bf16.msra.mxu0 %v5727_v3  ;;  %4247 = vmatpush1.bf16.msra.mxu1 %v5730_v4  ;;  %v5828_v3 = vld [vmem:[%s7755_s1 + $0xfa4] ss:$16 sps:$4 sm:$0xff]   ;;  %v5831_v4 = vld [vmem:[%s7755_s1 + $0xfac] ss:$16 sps:$4 sm:$0xff]  }
 0x1b8   :  { %3861 = vmatprep.subr.bf16.mxu0 %v5735_v5  ;;  %4248 = vmatprep.subr.bf16.mxu1 %v5738_v6  ;;  %v5826_v5 = vld [vmem:[%s7755_s1 + $0xfa0] ss:$16 sps:$4 sm:$0xff]   ;;  %v5829_v6 = vld [vmem:[%s7755_s1 + $0xfa8] ss:$16 sps:$4 sm:$0xff]  }
 0x1bb   :  { %3862 = vmatpush1.bf16.msra.mxu0 %v5733_v7  ;;  %4249 = vmatpush1.bf16.msra.mxu1 %v5736_v8  ;;  %v5834_v7 = vld [vmem:[%s7755_s1 + $0xfc4] ss:$16 sps:$4 sm:$0xff]   ;;  %v5837_v8 = vld [vmem:[%s7755_s1 + $0xfcc] ss:$16 sps:$4 sm:$0xff]  }
 0x1bc   :  { %3863 = vmatprep.subr.bf16.mxu0 %v5741_v9  ;;  %4250 = vmatprep.subr.bf16.mxu1 %v5744_v10  ;;  %v5832_v9 = vld [vmem:[%s7755_s1 + $0xfc0] ss:$16 sps:$4 sm:$0xff]   ;;  %v5835_v10 = vld [vmem:[%s7755_s1 + $0xfc8] ss:$16 sps:$4 sm:$0xff]  }
 0x1bf   :  { %3864 = vmatpush1.bf16.msra.mxu0 %v5739_v11  ;;  %4251 = vmatpush1.bf16.msra.mxu1 %v5742_v12  ;;  %v5840_v11 = vld [vmem:[%s7755_s1 + $0xfe4] ss:$16 sps:$4 sm:$0xff]   ;;  %v5843_v12 = vld [vmem:[%s7755_s1 + $0xfec] ss:$16 sps:$4 sm:$0xff]  }
 0x1c0   :  { %3876 = vmatprep.subr.bf16.mxu0 %v5750_v13  ;;  %4263 = vmatprep.subr.bf16.mxu1 %v5753_v14  ;;  %v5838_v13 = vld [vmem:[%s7755_s1 + $0xfe0] ss:$16 sps:$4 sm:$0xff]   ;;  %v5841_v14 = vld [vmem:[%s7755_s1 + $0xfe8] ss:$16 sps:$4 sm:$0xff]  }
 0x1c2   :  { %3866 = vmatmul.mubr.bf16.vlgmr.msra.gmra.mrb[0].mxu0 %v5745_v15  ;;  %4253 = vmatmul.mubr.bf16.vlgmr.msra.gmra.mrb[0].mxu1 %v5745_v15  ;;  %v5849_v15 = vld [vmem:[%s7755_s1 + $0x1004] ss:$16 sps:$4 sm:$0xff]  }
 0x1c3   :  { %3877 = vmatpush1.bf16.msra.mxu0 %v5748_v16  ;;  %4264 = vmatpush1.bf16.msra.mxu1 %v5751_v17  ;;  %v5852_v16 = vld [vmem:[%s7755_s1 + $0x100c] ss:$16 sps:$4 sm:$0xff]   ;;  %v5844_v17 = vld [vmem:[%s7756_s0 + $0x38] ss:$72 sps:$4 sm:$0xff]  }
 0x1c4   :  { %3878 = vmatprep.subr.bf16.mxu0 %v5756_v18  ;;  %4265 = vmatprep.subr.bf16.mxu1 %v5759_v19  ;;  %v5847_v18 = vld [vmem:[%s7755_s1 + $0x1000] ss:$16 sps:$4 sm:$0xff]   ;;  %v5850_v19 = vld [vmem:[%s7755_s1 + $0x1008] ss:$16 sps:$4 sm:$0xff]  }
 0x1c5   :  { %3908 = vmatprep.mubr.bf16.mxu0 %v5846_v20  ;;  %4295 = vmatprep.mubr.bf16.mxu1 %v5846_v20  ;;  %v5855_v20 = vld [vmem:[%s7755_s1 + $0x1024] ss:$16 sps:$4 sm:$0xff]  }
 0x1c7   :  { %3879 = vmatpush1.bf16.msra.mxu0 %v5754_v21  ;;  %4266 = vmatpush1.bf16.msra.mxu1 %v5757_v22  ;;  %v5858_v21 = vld [vmem:[%s7755_s1 + $0x102c] ss:$16 sps:$4 sm:$0xff]  }
 0x1c8   :  { %3880 = vmatprep.subr.bf16.mxu0 %v5762_v23  ;;  %4267 = vmatprep.subr.bf16.mxu1 %v5765_v24  ;;  %v5945_v22 = vld [vmem:[%s7756_s0 + $0x44] ss:$72 sps:$4 sm:$0xff]   ;;  %v5853_v23 = vld [vmem:[%s7755_s1 + $0x1020] ss:$16 sps:$4 sm:$0xff]   ;;  %v5856_v24 = vld [vmem:[%s7755_s1 + $0x1028] ss:$16 sps:$4 sm:$0xff]  }
 0x1cb   :  { %3881 = vmatpush1.bf16.msra.mxu0 %v5760_v25  ;;  %4268 = vmatpush1.bf16.msra.mxu1 %v5763_v26  ;;  %v5861_v25 = vld [vmem:[%s7755_s1 + $0x1044] ss:$16 sps:$4 sm:$0xff]   ;;  %v5864_v26 = vld [vmem:[%s7755_s1 + $0x104c] ss:$16 sps:$4 sm:$0xff]  }
 0x1cc   :  { %3882 = vmatprep.subr.bf16.mxu0 %v5768_v27  ;;  %4269 = vmatprep.subr.bf16.mxu1 %v5771_v28  ;;  %v5859_v27 = vld [vmem:[%s7755_s1 + $0x1040] ss:$16 sps:$4 sm:$0xff]   ;;  %v5862_v28 = vld [vmem:[%s7755_s1 + $0x1048] ss:$16 sps:$4 sm:$0xff]  }
 0x1cf   :  { %3883 = vmatpush1.bf16.msra.mxu0 %v5766_v29  ;;  %4270 = vmatpush1.bf16.msra.mxu1 %v5769_v30  ;;  %v5867_v29 = vld [vmem:[%s7755_s1 + $0x1064] ss:$16 sps:$4 sm:$0xff]   ;;  %v5870_v30 = vld [vmem:[%s7755_s1 + $0x106c] ss:$16 sps:$4 sm:$0xff]  }
 0x1d0   :  { %3884 = vmatprep.subr.bf16.mxu0 %v5774_v31  ;;  %4271 = vmatprep.subr.bf16.mxu1 %v5777_v32  ;;  %v5865_v31 = vld [vmem:[%s7755_s1 + $0x1060] ss:$16 sps:$4 sm:$0xff]   ;;  %v5868_v32 = vld [vmem:[%s7755_s1 + $0x1068] ss:$16 sps:$4 sm:$0xff]  }
 0x1d3   :  { %3885 = vmatpush1.bf16.msra.mxu0 %v5772_v33  ;;  %4272 = vmatpush1.bf16.msra.mxu1 %v5775_v34  ;;  %v5873_v33 = vld [vmem:[%s7755_s1 + $0x1084] ss:$16 sps:$4 sm:$0xff]   ;;  %v5876_v34 = vld [vmem:[%s7755_s1 + $0x108c] ss:$16 sps:$4 sm:$0xff]  }
 0x1d4   :  { %3886 = vmatprep.subr.bf16.mxu0 %v5780_v35  ;;  %4273 = vmatprep.subr.bf16.mxu1 %v5783_v36  ;;  %v5871_v35 = vld [vmem:[%s7755_s1 + $0x1080] ss:$16 sps:$4 sm:$0xff]   ;;  %v5874_v36 = vld [vmem:[%s7755_s1 + $0x1088] ss:$16 sps:$4 sm:$0xff]  }
 0x1d7   :  { %3887 = vmatpush1.bf16.msra.mxu0 %v5778_v37  ;;  %4274 = vmatpush1.bf16.msra.mxu1 %v5781_v38  ;;  %v5879_v37 = vld [vmem:[%s7755_s1 + $0x10a4] ss:$16 sps:$4 sm:$0xff]   ;;  %v5882_v38 = vld [vmem:[%s7755_s1 + $0x10ac] ss:$16 sps:$4 sm:$0xff]  }
 0x1d8   :  { %3888 = vmatprep.subr.bf16.mxu0 %v5786_v39  ;;  %4275 = vmatprep.subr.bf16.mxu1 %v5789_v40  ;;  %v5877_v39 = vld [vmem:[%s7755_s1 + $0x10a0] ss:$16 sps:$4 sm:$0xff]   ;;  %v5880_v40 = vld [vmem:[%s7755_s1 + $0x10a8] ss:$16 sps:$4 sm:$0xff]  }
 0x1db   :  { %3889 = vmatpush1.bf16.msra.mxu0 %v5784_v41  ;;  %4276 = vmatpush1.bf16.msra.mxu1 %v5787_v42  ;;  %v5885_v41 = vld [vmem:[%s7755_s1 + $0x10c4] ss:$16 sps:$4 sm:$0xff]   ;;  %v5888_v42 = vld [vmem:[%s7755_s1 + $0x10cc] ss:$16 sps:$4 sm:$0xff]  }
 0x1dc   :  { %3890 = vmatprep.subr.bf16.mxu0 %v5792_v43  ;;  %4277 = vmatprep.subr.bf16.mxu1 %v5795_v44  ;;  %v5883_v43 = vld [vmem:[%s7755_s1 + $0x10c0] ss:$16 sps:$4 sm:$0xff]   ;;  %v5886_v44 = vld [vmem:[%s7755_s1 + $0x10c8] ss:$16 sps:$4 sm:$0xff]  }
 0x1df   :  { %3891 = vmatpush1.bf16.msra.mxu0 %v5790_v45  ;;  %4278 = vmatpush1.bf16.msra.mxu1 %v5793_v46  ;;  %v5891_v45 = vld [vmem:[%s7755_s1 + $0x10e4] ss:$16 sps:$4 sm:$0xff]   ;;  %v5894_v46 = vld [vmem:[%s7755_s1 + $0x10ec] ss:$16 sps:$4 sm:$0xff]  }
 0x1e0   :  { %3892 = vmatprep.subr.bf16.mxu0 %v5798_v47  ;;  %4279 = vmatprep.subr.bf16.mxu1 %v5801_v48  ;;  %v5889_v47 = vld [vmem:[%s7755_s1 + $0x10e0] ss:$16 sps:$4 sm:$0xff]   ;;  %v5892_v48 = vld [vmem:[%s7755_s1 + $0x10e8] ss:$16 sps:$4 sm:$0xff]  }
 0x1e3   :  { %3893 = vmatpush1.bf16.msra.mxu0 %v5796_v49  ;;  %4280 = vmatpush1.bf16.msra.mxu1 %v5799_v50  ;;  %v5897_v49 = vld [vmem:[%s7755_s1 + $0x1104] ss:$16 sps:$4 sm:$0xff]   ;;  %v5900_v50 = vld [vmem:[%s7755_s1 + $0x110c] ss:$16 sps:$4 sm:$0xff]  }
 0x1e4   :  { %3894 = vmatprep.subr.bf16.mxu0 %v5804_v51  ;;  %4281 = vmatprep.subr.bf16.mxu1 %v5807_v52  ;;  %v5895_v51 = vld [vmem:[%s7755_s1 + $0x1100] ss:$16 sps:$4 sm:$0xff]   ;;  %v5898_v52 = vld [vmem:[%s7755_s1 + $0x1108] ss:$16 sps:$4 sm:$0xff]  }
 0x1e7   :  { %3895 = vmatpush1.bf16.msra.mxu0 %v5802_v53  ;;  %4282 = vmatpush1.bf16.msra.mxu1 %v5805_v54  ;;  %v5903_v53 = vld [vmem:[%s7755_s1 + $0x1124] ss:$16 sps:$4 sm:$0xff]   ;;  %v5906_v54 = vld [vmem:[%s7755_s1 + $0x112c] ss:$16 sps:$4 sm:$0xff]  }
 0x1e8   :  { %3896 = vmatprep.subr.bf16.mxu0 %v5810_v55  ;;  %4283 = vmatprep.subr.bf16.mxu1 %v5813_v56  ;;  %v5901_v55 = vld [vmem:[%s7755_s1 + $0x1120] ss:$16 sps:$4 sm:$0xff]   ;;  %v5904_v56 = vld [vmem:[%s7755_s1 + $0x1128] ss:$16 sps:$4 sm:$0xff]  }
 0x1eb   :  { %3897 = vmatpush1.bf16.msra.mxu0 %v5808_v57  ;;  %4284 = vmatpush1.bf16.msra.mxu1 %v5811_v58  ;;  %v5909_v57 = vld [vmem:[%s7755_s1 + $0x1144] ss:$16 sps:$4 sm:$0xff]   ;;  %v5912_v58 = vld [vmem:[%s7755_s1 + $0x114c] ss:$16 sps:$4 sm:$0xff]  }
 0x1ec   :  { %3898 = vmatprep.subr.bf16.mxu0 %v5816_v59  ;;  %4285 = vmatprep.subr.bf16.mxu1 %v5819_v60  ;;  %v5907_v59 = vld [vmem:[%s7755_s1 + $0x1140] ss:$16 sps:$4 sm:$0xff]   ;;  %v5910_v60 = vld [vmem:[%s7755_s1 + $0x1148] ss:$16 sps:$4 sm:$0xff]  }
 0x1ef   :  { %3899 = vmatpush1.bf16.msra.mxu0 %v5814_v61  ;;  %4286 = vmatpush1.bf16.msra.mxu1 %v5817_v62  ;;  %v5915_v61 = vld [vmem:[%s7755_s1 + $0x1164] ss:$16 sps:$4 sm:$0xff]   ;;  %v5918_v62 = vld [vmem:[%s7755_s1 + $0x116c] ss:$16 sps:$4 sm:$0xff]  }
 0x1f0   :  { %3900 = vmatprep.subr.bf16.mxu0 %v5822_v63  ;;  %4287 = vmatprep.subr.bf16.mxu1 %v5825_v0  ;;  %v5913_v63 = vld [vmem:[%s7755_s1 + $0x1160] ss:$16 sps:$4 sm:$0xff]   ;;  %v5916_v0 = vld [vmem:[%s7755_s1 + $0x1168] ss:$16 sps:$4 sm:$0xff]  }
 0x1f3   :  { %3901 = vmatpush1.bf16.msra.mxu0 %v5820_v1  ;;  %4288 = vmatpush1.bf16.msra.mxu1 %v5823_v2  ;;  %v5921_v1 = vld [vmem:[%s7755_s1 + $0x1184] ss:$16 sps:$4 sm:$0xff]   ;;  %v5924_v2 = vld [vmem:[%s7755_s1 + $0x118c] ss:$16 sps:$4 sm:$0xff]  }
 0x1f4   :  { %3902 = vmatprep.subr.bf16.mxu0 %v5828_v3  ;;  %4289 = vmatprep.subr.bf16.mxu1 %v5831_v4  ;;  %v5919_v3 = vld [vmem:[%s7755_s1 + $0x1180] ss:$16 sps:$4 sm:$0xff]   ;;  %v5922_v4 = vld [vmem:[%s7755_s1 + $0x1188] ss:$16 sps:$4 sm:$0xff]  }
 0x1f7   :  { %3903 = vmatpush1.bf16.msra.mxu0 %v5826_v5  ;;  %4290 = vmatpush1.bf16.msra.mxu1 %v5829_v6  ;;  %v5927_v5 = vld [vmem:[%s7755_s1 + $0x11a4] ss:$16 sps:$4 sm:$0xff]   ;;  %v5930_v6 = vld [vmem:[%s7755_s1 + $0x11ac] ss:$16 sps:$4 sm:$0xff]  }
 0x1f8   :  { %3904 = vmatprep.subr.bf16.mxu0 %v5834_v7  ;;  %4291 = vmatprep.subr.bf16.mxu1 %v5837_v8  ;;  %v5925_v7 = vld [vmem:[%s7755_s1 + $0x11a0] ss:$16 sps:$4 sm:$0xff]   ;;  %v5928_v8 = vld [vmem:[%s7755_s1 + $0x11a8] ss:$16 sps:$4 sm:$0xff]  }
 0x1fb   :  { %3905 = vmatpush1.bf16.msra.mxu0 %v5832_v9  ;;  %4292 = vmatpush1.bf16.msra.mxu1 %v5835_v10  ;;  %v5933_v9 = vld [vmem:[%s7755_s1 + $0x11c4] ss:$16 sps:$4 sm:$0xff]   ;;  %v5936_v10 = vld [vmem:[%s7755_s1 + $0x11cc] ss:$16 sps:$4 sm:$0xff]  }
 0x1fc   :  { %3906 = vmatprep.subr.bf16.mxu0 %v5840_v11  ;;  %4293 = vmatprep.subr.bf16.mxu1 %v5843_v12  ;;  %v5931_v11 = vld [vmem:[%s7755_s1 + $0x11c0] ss:$16 sps:$4 sm:$0xff]   ;;  %v5934_v12 = vld [vmem:[%s7755_s1 + $0x11c8] ss:$16 sps:$4 sm:$0xff]  }
 0x1ff   :  { %3907 = vmatpush1.bf16.msra.mxu0 %v5838_v13  ;;  %4294 = vmatpush1.bf16.msra.mxu1 %v5841_v14  ;;  %v5939_v13 = vld [vmem:[%s7755_s1 + $0x11e4] ss:$16 sps:$4 sm:$0xff]   ;;  %v5942_v14 = vld [vmem:[%s7755_s1 + $0x11ec] ss:$16 sps:$4 sm:$0xff]  }
 0x200   :  { %3919 = vmatprep.subr.bf16.mxu0 %v5849_v15  ;;  %4306 = vmatprep.subr.bf16.mxu1 %v5852_v16  ;;  %v5937_v15 = vld [vmem:[%s7755_s1 + $0x11e0] ss:$16 sps:$4 sm:$0xff]   ;;  %v5940_v16 = vld [vmem:[%s7755_s1 + $0x11e8] ss:$16 sps:$4 sm:$0xff]  }
 0x202   :  { %3909 = vmatmul.mubr.bf16.vlgmr.msra.gmra.mrb[0].mxu0 %v5844_v17  ;;  %4296 = vmatmul.mubr.bf16.vlgmr.msra.gmra.mrb[0].mxu1 %v5844_v17  ;;  %v5943_v17 = vld [vmem:[%s7756_s0 + $0x40] ss:$72 sps:$4 sm:$0xff]  }
 0x203   :  { %3920 = vmatpush1.bf16.msra.mxu0 %v5847_v18  ;;  %4307 = vmatpush1.bf16.msra.mxu1 %v5850_v19 }
 0x204   :  { %3921 = vmatprep.subr.bf16.mxu0 %v5855_v20  ;;  %4308 = vmatprep.subr.bf16.mxu1 %v5858_v21 }
 0x205   :  { %3951 = vmatprep.mubr.bf16.mxu0 %v5945_v22  ;;  %4338 = vmatprep.mubr.bf16.mxu1 %v5945_v22 }
 0x207   :  { %3922 = vmatpush1.bf16.msra.mxu0 %v5853_v23  ;;  %4309 = vmatpush1.bf16.msra.mxu1 %v5856_v24 }
 0x208   :  { %3923 = vmatprep.subr.bf16.mxu0 %v5861_v25  ;;  %4310 = vmatprep.subr.bf16.mxu1 %v5864_v26 }
 0x20b   :  { %3924 = vmatpush1.bf16.msra.mxu0 %v5859_v27  ;;  %4311 = vmatpush1.bf16.msra.mxu1 %v5862_v28 }
 0x20c   :  { %3925 = vmatprep.subr.bf16.mxu0 %v5867_v29  ;;  %4312 = vmatprep.subr.bf16.mxu1 %v5870_v30 }
 0x20f   :  { %3926 = vmatpush1.bf16.msra.mxu0 %v5865_v31  ;;  %4313 = vmatpush1.bf16.msra.mxu1 %v5868_v32 }
 0x210   :  { %3927 = vmatprep.subr.bf16.mxu0 %v5873_v33  ;;  %4314 = vmatprep.subr.bf16.mxu1 %v5876_v34 }
 0x213   :  { %3928 = vmatpush1.bf16.msra.mxu0 %v5871_v35  ;;  %4315 = vmatpush1.bf16.msra.mxu1 %v5874_v36 }
 0x214   :  { %3929 = vmatprep.subr.bf16.mxu0 %v5879_v37  ;;  %4316 = vmatprep.subr.bf16.mxu1 %v5882_v38 }
 0x217   :  { %3930 = vmatpush1.bf16.msra.mxu0 %v5877_v39  ;;  %4317 = vmatpush1.bf16.msra.mxu1 %v5880_v40 }
 0x218   :  { %3931 = vmatprep.subr.bf16.mxu0 %v5885_v41  ;;  %4318 = vmatprep.subr.bf16.mxu1 %v5888_v42 }
 0x21b   :  { %3932 = vmatpush1.bf16.msra.mxu0 %v5883_v43  ;;  %4319 = vmatpush1.bf16.msra.mxu1 %v5886_v44 }
 0x21c   :  { %3933 = vmatprep.subr.bf16.mxu0 %v5891_v45  ;;  %4320 = vmatprep.subr.bf16.mxu1 %v5894_v46 }
 0x21f   :  { %3934 = vmatpush1.bf16.msra.mxu0 %v5889_v47  ;;  %4321 = vmatpush1.bf16.msra.mxu1 %v5892_v48 }
 0x220   :  { %3935 = vmatprep.subr.bf16.mxu0 %v5897_v49  ;;  %4322 = vmatprep.subr.bf16.mxu1 %v5900_v50 }
 0x223   :  { %3936 = vmatpush1.bf16.msra.mxu0 %v5895_v51  ;;  %4323 = vmatpush1.bf16.msra.mxu1 %v5898_v52 }
 0x224   :  { %3937 = vmatprep.subr.bf16.mxu0 %v5903_v53  ;;  %4324 = vmatprep.subr.bf16.mxu1 %v5906_v54 }
 0x227   :  { %3938 = vmatpush1.bf16.msra.mxu0 %v5901_v55  ;;  %4325 = vmatpush1.bf16.msra.mxu1 %v5904_v56 }
 0x228   :  { %3939 = vmatprep.subr.bf16.mxu0 %v5909_v57  ;;  %4326 = vmatprep.subr.bf16.mxu1 %v5912_v58 }
 0x22b   :  { %3940 = vmatpush1.bf16.msra.mxu0 %v5907_v59  ;;  %4327 = vmatpush1.bf16.msra.mxu1 %v5910_v60 }
 0x22c   :  { %3941 = vmatprep.subr.bf16.mxu0 %v5915_v61  ;;  %4328 = vmatprep.subr.bf16.mxu1 %v5918_v62 }
 0x22f   :  { %3942 = vmatpush1.bf16.msra.mxu0 %v5913_v63  ;;  %4329 = vmatpush1.bf16.msra.mxu1 %v5916_v0 }
 0x230   :  { %3943 = vmatprep.subr.bf16.mxu0 %v5921_v1  ;;  %4330 = vmatprep.subr.bf16.mxu1 %v5924_v2 }
 0x233   :  { %3944 = vmatpush1.bf16.msra.mxu0 %v5919_v3  ;;  %4331 = vmatpush1.bf16.msra.mxu1 %v5922_v4 }
 0x234   :  { %3945 = vmatprep.subr.bf16.mxu0 %v5927_v5  ;;  %4332 = vmatprep.subr.bf16.mxu1 %v5930_v6 }
 0x237   :  { %3946 = vmatpush1.bf16.msra.mxu0 %v5925_v7  ;;  %4333 = vmatpush1.bf16.msra.mxu1 %v5928_v8 }
 0x238   :  { %3947 = vmatprep.subr.bf16.mxu0 %v5933_v9  ;;  %4334 = vmatprep.subr.bf16.mxu1 %v5936_v10 }
 0x23b   :  { %3948 = vmatpush1.bf16.msra.mxu0 %v5931_v11  ;;  %4335 = vmatpush1.bf16.msra.mxu1 %v5934_v12 }
 0x23c   :  { %3949 = vmatprep.subr.bf16.mxu0 %v5939_v13  ;;  %4336 = vmatprep.subr.bf16.mxu1 %v5942_v14 }
 0x23f   :  { %3950 = vmatpush1.bf16.msra.mxu0 %v5937_v15  ;;  %4337 = vmatpush1.bf16.msra.mxu1 %v5940_v16 }
 0x242   :  { %3952 = vmatmul.mubr.bf16.vlgmr.msra.gmra.mrb[0].mxu0 %v5943_v17  ;;  %4339 = vmatmul.mubr.bf16.vlgmr.msra.gmra.mrb[0].mxu1 %v5943_v17 }
 0x315   :  { %v3953_v18 = vpop.f32.mrb[0].mxu0  ;;  %v4340_v19 = vpop.f32.mrb[0].mxu1 }
 0x316   :  { %v4349_v20 = vmax.f32 %v3953_v18, 0.0  ;;  %v4351_v21 = vmax.f32 %v4340_v19, 0.0  ;;  %v3955_v22 = vpop.f32.mrb[1].mxu0  ;;  %v4342_v23 = vpop.f32.mrb[1].mxu1 }
 0x317   :  { %v4350_v24 = vmax.f32 %v3955_v22, 0.0  ;;  %v4352_v25 = vmax.f32 %v4342_v23, 0.0  ;;  %v3957_v26 = vpop.f32.mrb[2].mxu0  ;;  %v4344_v27 = vpop.f32.mrb[2].mxu1 }
 0x318   :  { %v4353_v28 = vmax.f32 %v3957_v26, 0.0  ;;  %v4355_v29 = vmax.f32 %v4344_v27, 0.0  ;;  %v3959_v30 = vpop.f32.mrb[3].mxu0  ;;  %v4346_v31 = vpop.f32.mrb[3].mxu1 }
 0x319   :  { %v4987_v32 = vpack.c.bf16 %v4350_v24, %v4349_v20  ;;  %v4988_v33 = vpack.c.bf16 %v4352_v25, %v4351_v21  ;;  %v4354_v34 = vmax.f32 %v3959_v30, 0.0  ;;  %v4356_v35 = vmax.f32 %v4346_v31, 0.0 }
 0x31b   :  { %4381 = vst [vmem:[%s7757_s2] sm:$0xff] %v4987_v32  ;;  %4382 = vst [vmem:[%s7757_s2 + $0x8] sm:$0xff] %v4988_v33  ;;  %v4989_v36 = vpack.c.bf16 %v4354_v34, %v4353_v28  ;;  %v4990_v37 = vpack.c.bf16 %v4356_v35, %v4355_v29 }
 0x31d   :  { %4383 = vst [vmem:[%s7757_s2 + $0x10] sm:$0xff] %v4989_v36  ;;  %4384 = vst [vmem:[%s7757_s2 + $0x18] sm:$0xff] %v4990_v37 }

// kernel: light_flow_net.24
= control target key start
LH: loop header
LB: loop body
LE: loop exit
PB: predicated region body
PF: predicated region fallthrough
CT: control target
= control target key end

     0   :  { %v716_v0 = vmov 0   ;;  %vm323_vm0 = vcmask 15360   ;;  %vm339_vm1 = vcmask 1040384   ;;  %vm529_vm2 = vcmask 404480   ;;  %s921_s1 = inlined_call_operand.vmem [shape: bf16[386,50], index: 1, kind: input, shape index: {}]   ;;  %s922_s0 = inlined_call_operand.vmem [shape: bf16[80,386], index: 0, kind: input, shape index: {}]   ;;  %s923_s2 = inlined_call_operand.vmem [shape: bf16[80,50], index: 2, kind: output, shape index: {}]  }
   0x1   :  { %416 = vmatprep.subr.bf16.mxu1 %v716_v0  ;;  %v661_v1 = vld [vmem:[%s921_s1 + $0x40] sm:$0xff]   ;;  %v664_v4 = vld [vmem:[%s921_s1 + $0x48] sm:$0xff]   ;;  %v667_v7 = vld [vmem:[%s921_s1 + $0x50] sm:$0xff]  }
   0x2   :  { %v662_v2 = vld [vmem:[%s921_s1 + $0x80] sm:$0xff]   ;;  %614 = vmatprep.subr.bf16.mxu0 %v661_v1  ;;  %v665_v5 = vld [vmem:[%s921_s1 + $0x88] sm:$0xff]   ;;  %v668_v8 = vld [vmem:[%s921_s1 + $0x90] sm:$0xff]  }
   0x3   :  { %v663_v3 = vld [vmem:[%s921_s1] sm:$0xff]   ;;  %417 = vmatpush1.bf16.msra.mxu1 %v662_v2  ;;  %v666_v6 = vld [vmem:[%s921_s1 + $0x8] sm:$0xff]   ;;  %v669_v9 = vld [vmem:[%s921_s1 + $0x10] sm:$0xff]  }
   0x4   :  { %615 = vmatpush3.bf16.msra.mxu0 %v663_v3  ;;  %418 = vmatprep.subr.bf16.mxu1 %v716_v0  ;;  %v670_v10 = vld [vmem:[%s921_s1 + $0x58] sm:$0xff]   ;;  %v673_v13 = vld [vmem:[%s921_s1 + $0x60] sm:$0xff]   ;;  %v676_v16 = vld [vmem:[%s921_s1 + $0x68] sm:$0xff]  }
   0x5   :  { %616 = vmatprep.subr.bf16.mxu0 %v664_v4  ;;  %v671_v11 = vld [vmem:[%s921_s1 + $0x98] sm:$0xff]   ;;  %v674_v14 = vld [vmem:[%s921_s1 + $0xa0] sm:$0xff]   ;;  %v677_v17 = vld [vmem:[%s921_s1 + $0xa8] sm:$0xff]  }
   0x6   :  { %v672_v12 = vld [vmem:[%s921_s1 + $0x18] sm:$0xff]   ;;  %v675_v15 = vld [vmem:[%s921_s1 + $0x20] sm:$0xff]   ;;  %v678_v18 = vld [vmem:[%s921_s1 + $0x28] sm:$0xff]  }
   0x7   :  { %419 = vmatpush1.bf16.msra.mxu1 %v665_v5  ;;  %v679_v19 = vld [vmem:[%s921_s1 + $0x70] sm:$0xff]   ;;  %v682_v22 = vld [vmem:[%s921_s1 + $0x78] sm:$0xff]   ;;  %v688_v27 = vld [vmem:[%s921_s1 + $0xc0] ss:$0 sps:$4 sm:$0x11]  }
   0x8   :  { %617 = vmatpush3.bf16.msra.mxu0 %v666_v6  ;;  %420 = vmatprep.subr.bf16.mxu1 %v716_v0  ;;  %v680_v20 = vld [vmem:[%s921_s1 + $0xb0] sm:$0xff]   ;;  %v683_v24 = vld [vmem:[%s921_s1 + $0xb8] sm:$0xff]   ;;  %v341_v29 = vsel %vm339_vm1, %v688_v27, 0 }
   0x9   :  { %618 = vmatprep.subr.bf16.mxu0 %v667_v7  ;;  %v681_v21 = vld [vmem:[%s921_s1 + $0x30] sm:$0xff]   ;;  %v691_v25 = vld [vmem:[%s922_s0 + $0xc] ss:$16 sps:$4 sm:$0xff]   ;;  %v689_v31 = vld [vmem:[%s922_s0 + $0x8] ss:$16 sps:$4 sm:$0xff]  }
   0xa   :  { %v687_v23 = vld [vmem:[%s922_s0 + $0x4] ss:$16 sps:$4 sm:$0xff]   ;;  %v684_v26 = vld [vmem:[%s921_s1 + $0x38] sm:$0xff]   ;;  %589 = vmatprep.mubr.msk.bf16.mxu1 %vm323_vm0, %v691_v25  ;;  %v685_v28 = vld [vmem:[%s922_s0] ss:$16 sps:$4 sm:$0xff]  }
   0xb   :  { %421 = vmatpush1.bf16.msra.mxu1 %v668_v8  ;;  %375 = vmatprep.mubr.bf16.mxu0 %v687_v23  ;;  %v692_v30 = vld [vmem:[%s922_s0 + $0x24] ss:$16 sps:$4 sm:$0xff]   ;;  %v695_v32 = vld [vmem:[%s922_s0 + $0x2c] ss:$16 sps:$4 sm:$0xff]   ;;  %v694_v33 = vld [vmem:[%s922_s0 + $0x20] ss:$16 sps:$4 sm:$0xff]  }
   0xc   :  { %619 = vmatpush3.bf16.msra.mxu0 %v669_v9  ;;  %422 = vmatprep.subr.bf16.mxu1 %v716_v0  ;;  %v698_v34 = vld [vmem:[%s922_s0 + $0x44] ss:$16 sps:$4 sm:$0xff]   ;;  %v697_v35 = vld [vmem:[%s922_s0 + $0x28] ss:$16 sps:$4 sm:$0xff]   ;;  %v701_v36 = vld [vmem:[%s922_s0 + $0x4c] ss:$16 sps:$4 sm:$0xff]  }
   0xd   :  { %620 = vmatprep.subr.bf16.mxu0 %v670_v10  ;;  %v700_v37 = vld [vmem:[%s922_s0 + $0x40] ss:$16 sps:$4 sm:$0xff]   ;;  %v704_v38 = vld [vmem:[%s922_s0 + $0x64] ss:$16 sps:$4 sm:$0xff]   ;;  %v703_v39 = vld [vmem:[%s922_s0 + $0x48] ss:$16 sps:$4 sm:$0xff]  }
   0xe   :  { %v707_v40 = vld [vmem:[%s922_s0 + $0x6c] ss:$16 sps:$4 sm:$0xff]   ;;  %v706_v41 = vld [vmem:[%s922_s0 + $0x60] ss:$16 sps:$4 sm:$0xff]   ;;  %v710_v42 = vld [vmem:[%s922_s0 + $0x84] ss:$16 sps:$4 sm:$0xff]  }
   0xf   :  { %423 = vmatpush1.bf16.msra.mxu1 %v671_v11  ;;  %v709_v43 = vld [vmem:[%s922_s0 + $0x68] ss:$16 sps:$4 sm:$0xff]   ;;  %v713_v44 = vld [vmem:[%s922_s0 + $0x8c] ss:$16 sps:$4 sm:$0xff]   ;;  %v712_v45 = vld [vmem:[%s922_s0 + $0x80] ss:$16 sps:$4 sm:$0xff]  }
  0x10   :  { %621 = vmatpush3.bf16.msra.mxu0 %v672_v12  ;;  %424 = vmatprep.subr.bf16.mxu1 %v716_v0  ;;  %v715_v46 = vld [vmem:[%s922_s0 + $0x88] ss:$16 sps:$4 sm:$0xff]  }
  0x11   :  { %622 = vmatprep.subr.bf16.mxu0 %v673_v13 }
  0x13   :  { %425 = vmatpush1.bf16.msra.mxu1 %v674_v14 }
  0x14   :  { %623 = vmatpush3.bf16.msra.mxu0 %v675_v15  ;;  %426 = vmatprep.subr.bf16.mxu1 %v716_v0 }
  0x15   :  { %624 = vmatprep.subr.bf16.mxu0 %v676_v16 }
  0x17   :  { %427 = vmatpush1.bf16.msra.mxu1 %v677_v17 }
  0x18   :  { %625 = vmatpush3.bf16.msra.mxu0 %v678_v18  ;;  %428 = vmatprep.subr.bf16.mxu1 %v716_v0 }
  0x19   :  { %626 = vmatprep.subr.bf16.mxu0 %v679_v19 }
  0x1b   :  { %429 = vmatpush1.bf16.msra.mxu1 %v680_v20 }
  0x1c   :  { %627 = vmatpush3.bf16.msra.mxu0 %v681_v21  ;;  %430 = vmatprep.subr.bf16.mxu1 %v716_v0 }
  0x1d   :  { %628 = vmatprep.subr.bf16.mxu0 %v682_v22 }
  0x1f   :  { %431 = vmatpush1.bf16.msra.mxu1 %v683_v24 }
  0x20   :  { %629 = vmatpush3.bf16.msra.mxu0 %v684_v26  ;;  %432 = vmatprep.subr.bf16.mxu1 %v716_v0 }
  0x23   :  { %376 = vmatmul.mubr.bf16.vlgmr.msra.gmra.mrb[0].mxu0 %v685_v28  ;;  %433 = vmatpush1.bf16.msra.mxu1 %v341_v29 }
  0x24   :  { %383 = vmatprep.mubr.bf16.mxu0 %v692_v30 }
  0x26   :  { %449 = vmatmul.mubr.bf16.vlgmr.msra.gmra.mrb[0].mxu1 %v689_v31 }
  0x27   :  { %590 = vmatprep.mubr.msk.bf16.mxu1 %vm323_vm0, %v695_v32 }
  0x2b   :  { %384 = vmatmul.mubr.bf16.gmra.mrb[4].mxu0 %v694_v33 }
  0x2c   :  { %391 = vmatprep.mubr.bf16.mxu0 %v698_v34 }
  0x2e   :  { %457 = vmatmul.mubr.bf16.gmra.mrb[4].mxu1 %v697_v35 }
  0x2f   :  { %591 = vmatprep.mubr.msk.bf16.mxu1 %vm323_vm0, %v701_v36 }
  0x33   :  { %392 = vmatmul.mubr.bf16.gmra.mrb[8].mxu0 %v700_v37 }
  0x34   :  { %399 = vmatprep.mubr.bf16.mxu0 %v704_v38 }
  0x36   :  { %465 = vmatmul.mubr.bf16.gmra.mrb[8].mxu1 %v703_v39 }
  0x37   :  { %592 = vmatprep.mubr.msk.bf16.mxu1 %vm323_vm0, %v707_v40 }
  0x3b   :  { %400 = vmatmul.mubr.bf16.gmra.mrb[12].mxu0 %v706_v41 }
  0x3c   :  { %407 = vmatprep.mubr.bf16.mxu0 %v710_v42 }
  0x3e   :  { %473 = vmatmul.mubr.bf16.gmra.mrb[12].mxu1 %v709_v43 }
  0x3f   :  { %593 = vmatprep.mubr.msk.bf16.mxu1 %vm323_vm0, %v713_v44 }
  0x43   :  { %408 = vmatmul.mubr.bf16.gmra.mrb[16].mxu0 %v712_v45 }
  0x46   :  { %481 = vmatmul.mubr.bf16.gmra.mrb[16].mxu1 %v715_v46 }
  0xf6   :  { %v630_v47 = vpop.f32.mrb[0].mxu0 }
  0xf7   :  { %v631_v48 = vpop.f32.mrb[1].mxu0 }
  0xf8   :  { %v632_v49 = vadd.f32 %v631_v48, %v630_v47  ;;  %v633_v50 = vpop.f32.mrb[2].mxu0 }
  0xf9   :  { %v634_v51 = vpop.f32.mrb[3].mxu0  ;;  %v450_v52 = vpop.f32.mrb[0].mxu1 }
  0xfa   :  { %v635_v53 = vadd.f32 %v634_v51, %v633_v50  ;;  %v451_v54 = vadd.f32 %v632_v49, %v450_v52  ;;  %v452_v55 = vpop.f32.mrb[1].mxu1 }
  0xfb   :  { %v453_v56 = vpop.f32.mrb[2].mxu1 }
  0xfc   :  { %v604_v57 = vpack.c.bf16 %v451_v54, %v451_v54  ;;  %v454_v58 = vadd.f32 %v635_v53, %v453_v56  ;;  %v455_v59 = vpop.f32.mrb[3].mxu1 }
  0xfe   :  { %530 = vst.msk [vmem:[%s923_s2] sm:$0xf] %vm529_vm2, %v604_v57  ;;  %v605_v60 = vpack.c.bf16 %v454_v58, %v454_v58  ;;  %v636_v61 = vpop.f32.mrb[4].mxu0 }
  0xff   :  { %v637_v62 = vpop.f32.mrb[5].mxu0 }
 0x100   :  { %531 = vst.msk [vmem:[%s923_s2 + $0x4] sm:$0xf] %vm529_vm2, %v605_v60  ;;  %v638_v63 = vadd.f32 %v637_v62, %v636_v61  ;;  %v639_v0 = vpop.f32.mrb[6].mxu0 }
 0x101   :  { %v640_v1 = vpop.f32.mrb[7].mxu0  ;;  %v458_v2 = vpop.f32.mrb[4].mxu1 }
 0x102   :  { %v641_v3 = vadd.f32 %v640_v1, %v639_v0  ;;  %v459_v4 = vadd.f32 %v638_v63, %v458_v2  ;;  %v460_v5 = vpop.f32.mrb[5].mxu1 }
 0x103   :  { %v461_v6 = vpop.f32.mrb[6].mxu1 }
 0x104   :  { %v606_v7 = vpack.c.bf16 %v459_v4, %v459_v4  ;;  %v462_v8 = vadd.f32 %v641_v3, %v461_v6  ;;  %v463_v9 = vpop.f32.mrb[7].mxu1 }
 0x106   :  { %532 = vst.msk [vmem:[%s923_s2 + $0x8] sm:$0xf] %vm529_vm2, %v606_v7  ;;  %v607_v10 = vpack.c.bf16 %v462_v8, %v462_v8  ;;  %v642_v11 = vpop.f32.mrb[8].mxu0 }
 0x107   :  { %v643_v12 = vpop.f32.mrb[9].mxu0 }
 0x108   :  { %533 = vst.msk [vmem:[%s923_s2 + $0xc] sm:$0xf] %vm529_vm2, %v607_v10  ;;  %v644_v13 = vadd.f32 %v643_v12, %v642_v11  ;;  %v645_v14 = vpop.f32.mrb[10].mxu0 }
 0x109   :  { %v646_v15 = vpop.f32.mrb[11].mxu0  ;;  %v466_v16 = vpop.f32.mrb[8].mxu1 }
 0x10a   :  { %v647_v17 = vadd.f32 %v646_v15, %v645_v14  ;;  %v467_v18 = vadd.f32 %v644_v13, %v466_v16  ;;  %v468_v19 = vpop.f32.mrb[9].mxu1 }
 0x10b   :  { %v469_v20 = vpop.f32.mrb[10].mxu1 }
 0x10c   :  { %v608_v21 = vpack.c.bf16 %v467_v18, %v467_v18  ;;  %v470_v22 = vadd.f32 %v647_v17, %v469_v20  ;;  %v471_v23 = vpop.f32.mrb[11].mxu1 }
 0x10e   :  { %534 = vst.msk [vmem:[%s923_s2 + $0x10] sm:$0xf] %vm529_vm2, %v608_v21  ;;  %v609_v24 = vpack.c.bf16 %v470_v22, %v470_v22  ;;  %v648_v25 = vpop.f32.mrb[12].mxu0 }
 0x10f   :  { %v649_v26 = vpop.f32.mrb[13].mxu0 }
 0x110   :  { %535 = vst.msk [vmem:[%s923_s2 + $0x14] sm:$0xf] %vm529_vm2, %v609_v24  ;;  %v650_v27 = vadd.f32 %v649_v26, %v648_v25  ;;  %v651_v28 = vpop.f32.mrb[14].mxu0 }
 0x111   :  { %v652_v29 = vpop.f32.mrb[15].mxu0  ;;  %v474_v30 = vpop.f32.mrb[12].mxu1 }
 0x112   :  { %v653_v31 = vadd.f32 %v652_v29, %v651_v28  ;;  %v475_v32 = vadd.f32 %v650_v27, %v474_v30  ;;  %v476_v33 = vpop.f32.mrb[13].mxu1 }
 0x113   :  { %v477_v34 = vpop.f32.mrb[14].mxu1 }
 0x114   :  { %v610_v35 = vpack.c.bf16 %v475_v32, %v475_v32  ;;  %v478_v36 = vadd.f32 %v653_v31, %v477_v34  ;;  %v479_v37 = vpop.f32.mrb[15].mxu1 }
 0x116   :  { %536 = vst.msk [vmem:[%s923_s2 + $0x18] sm:$0xf] %vm529_vm2, %v610_v35  ;;  %v611_v38 = vpack.c.bf16 %v478_v36, %v478_v36  ;;  %v654_v39 = vpop.f32.mrb[16].mxu0 }
 0x117   :  { %v655_v40 = vpop.f32.mrb[17].mxu0 }
 0x118   :  { %537 = vst.msk [vmem:[%s923_s2 + $0x1c] sm:$0xf] %vm529_vm2, %v611_v38  ;;  %v656_v41 = vadd.f32 %v655_v40, %v654_v39  ;;  %v657_v42 = vpop.f32.mrb[18].mxu0 }
 0x119   :  { %v658_v43 = vpop.f32.mrb[19].mxu0  ;;  %v482_v44 = vpop.f32.mrb[16].mxu1 }
 0x11a   :  { %v659_v45 = vadd.f32 %v658_v43, %v657_v42  ;;  %v483_v46 = vadd.f32 %v656_v41, %v482_v44  ;;  %v484_v47 = vpop.f32.mrb[17].mxu1 }
 0x11b   :  { %v485_v48 = vpop.f32.mrb[18].mxu1 }
 0x11c   :  { %v612_v49 = vpack.c.bf16 %v483_v46, %v483_v46  ;;  %v486_v50 = vadd.f32 %v659_v45, %v485_v48  ;;  %v487_v51 = vpop.f32.mrb[19].mxu1 }
 0x11e   :  { %538 = vst.msk [vmem:[%s923_s2 + $0x20] sm:$0xf] %vm529_vm2, %v612_v49  ;;  %v613_v52 = vpack.c.bf16 %v486_v50, %v486_v50 }
 0x120   :  { %539 = vst.msk [vmem:[%s923_s2 + $0x24] sm:$0xf] %vm529_vm2, %v613_v52 }

// kernel: light_flow_net.25
= control target key start
LH: loop header
LB: loop body
LE: loop exit
PB: predicated region body
PF: predicated region fallthrough
CT: control target
= control target key end

     0   :  { %s665_s6 = smov 0   ;;  %s709_s0 = inlined_call_operand.vmem [shape: bf16[2,6,6,50], index: 0, kind: input, shape index: {}]   ;;  %s710_s1 = inlined_call_operand.vmem [shape: f32[2,2,2,2], index: 1, kind: output, shape index: {}]  }
   0x1 LB: > { %s411_s7 = sadd.s32 4294967295, %s629_s6   ;;  %p415_p0 = scmp.ge.s32.totalorder %s629_s6, 1  ;;  %s629_s6 = sphi %s665_s6, %s11_s6  }
   0x2   : > { %p87_p1 = scmp.lt.s32.totalorder %s629_s6, 3 }
   0x4   : > { %p88_p2 = pnand %p415_p0, %p87_p1 }
   0x5   : > { %p107_p3 = scmp.lt.s32.totalorder (!%p88_p2), %s411_s7, 1  ;;  %s631_s12 = smov (!%p88_p2), 126   ;;  %vm353_vm0 = vcmask (!%p88_p2), 9216  }
   0x6   : > { %91 = sbr.rel (%p88_p2) target bundleno = 190 (0xbe), region = 24  ;;  %s632_s13 = smov (!%p88_p2), 122  }
   0x7   : > { %s633_s14 = smov (!%p88_p2), 124   ;;  %s634_s15 = smov (!%p88_p2), 120  }
   0x8   : > { %s635_s16 = smov (!%p88_p2), 118   ;;  %s636_s17 = smov (!%p88_p2), 116  }
   0x9   : > { %s637_s18 = smov (!%p88_p2), 114   ;;  %s638_s19 = smov (!%p88_p2), 112  }
   0xa   : > { %s639_s20 = smov (!%p88_p2), 110   ;;  %s640_s21 = smov (!%p88_p2), 108  }
   0xb   : > { %s641_s22 = smov (!%p88_p2), 106   ;;  %s642_s23 = smov (!%p88_p2), 104  }
   0xc   : > { %s643_s24 = smov (!%p88_p2), 102   ;;  %s644_s25 = smov (!%p88_p2), 100  }
   0xd   : > { %s712_s7 = smov (!%p107_p3, %s411_s7), 1  ;;  %s645_s26 = smov 98  }
   0xe   : > { %s422_s8 = smul.u32 24, %s712_s7  ;;  %s646_s27 = smov 96  }
   0xf   : > { %s647_s28 = smov 94   ;;  %s648_s29 = smov 92  }
  0x10   : > { %s679_s11 = scalar_lea.vmem %s709_s0, %s422_s8  ;;  %s649_s30 = smov 90  }
  0x11   : > { %v117_v0 = vld [vmem:[%s679_s11] sm:$0x7]  ;;  %v118_v1 = vld [vmem:[%s679_s11 + $0x4] sm:$0x7]  ;;  %v119_v2 = vld [vmem:[%s679_s11 + $0x8] sm:$0x7] }
  0x12   : > { %v684_v3 = vunpack.c.l.bf16 %v117_v0  ;;  %v686_v4 = vunpack.c.l.bf16 %v118_v1  ;;  %v169_v5 = vunpack.c.l.bf16 %v119_v2  ;;  %v120_v23 = vld [vmem:[%s679_s11 + $0xc] sm:$0x7]  ;;  %v121_v32 = vld [vmem:[%s679_s11 + $0x10] sm:$0x7]  ;;  %v122_v45 = vld [vmem:[%s679_s11 + $0x14] sm:$0x7] }
  0x13   : > { %v215_v27 = vunpack.c.l.bf16 %v120_v23  ;;  %v261_v33 = vunpack.c.l.bf16 %v121_v32  ;;  %v307_v49 = vunpack.c.l.bf16 %v122_v45  ;;  %s650_s2 = smov 88   ;;  %s651_s3 = smov 86  }
  0x14   : > { %v129_v6 = vrot.slane %v684_v3, 1  ;;  %v130_v7 = vrot.slane %v686_v4, 1  ;;  %v149_v8 = vrot.slane %v684_v3, 3  ;;  %v150_v9 = vrot.slane %v686_v4, 3  ;;  %s652_s4 = smov 84   ;;  %s653_s5 = smov 82  }
  0x15   : > { %v139_v10 = vrot.slane %v684_v3, 2  ;;  %v140_v11 = vrot.slane %v686_v4, 2  ;;  %v159_v12 = vrot.slane %v684_v3, 4  ;;  %v160_v13 = vrot.slane %v686_v4, 4  ;;  %s654_s8 = smov 80   ;;  %s421_s9 = sshll.u32 %s712_s7, 2 }
  0x16   : > { %v455_v14 = vpack.i.bf16 %v130_v7, %v129_v6  ;;  %v470_v15 = vpack.i.bf16 %v150_v9, %v149_v8  ;;  %v179_v18 = vrot.slane %v169_v5, 1  ;;  %v465_v19 = vpack.i.bf16 %v169_v5, %v686_v4 }
  0x17   : > { %v460_v16 = vpack.i.bf16 %v140_v11, %v139_v10  ;;  %v475_v17 = vpack.i.bf16 %v160_v13, %v159_v12  ;;  %v188_v21 = vrot.slane %v169_v5, 2  ;;  %v197_v22 = vrot.slane %v169_v5, 3 }
  0x18   : > { %456 = vrot.lane.b32.xlu0 %v455_v14, %s631_s12  ;;  %471 = vrot.lane.b32.xlu1 %v470_v15, %s632_s13  ;;  %v480_v20 = vpack.i.bf16 %v179_v18, %v130_v7  ;;  %v206_v26 = vrot.slane %v169_v5, 4  ;;  %v500_v29 = vpack.i.bf16 %v215_v27, %v169_v5  ;;  %v225_v30 = vrot.slane %v215_v27, 1  ;;  %s116_s12 = scalar_lea.vmem %s710_s1, %s421_s9 }
  0x19   : > { %v485_v24 = vpack.i.bf16 %v188_v21, %v140_v11  ;;  %v490_v25 = vpack.i.bf16 %v197_v22, %v150_v9  ;;  %v234_v31 = vrot.slane %v215_v27, 2  ;;  %v243_v36 = vrot.slane %v215_v27, 3 }
  0x1a   : > { %v495_v28 = vpack.i.bf16 %v206_v26, %v160_v13  ;;  %v505_v34 = vpack.i.bf16 %v225_v30, %v179_v18  ;;  %v252_v37 = vrot.slane %v215_v27, 4  ;;  %v271_v40 = vrot.slane %v261_v33, 1 }
  0x1b   : > { %v510_v35 = vpack.i.bf16 %v234_v31, %v188_v21  ;;  %v515_v38 = vpack.i.bf16 %v243_v36, %v197_v22  ;;  %v525_v41 = vpack.i.bf16 %v261_v33, %v215_v27  ;;  %v280_v43 = vrot.slane %v261_v33, 2 }
  0x1c   : > { %461 = vrot.lane.b32.xlu0 %v460_v16, %s633_s14  ;;  %476 = vrot.lane.b32.xlu1 %v475_v17, %s634_s15  ;;  %v520_v39 = vpack.i.bf16 %v252_v37, %v206_v26  ;;  %v530_v42 = vpack.i.bf16 %v271_v40, %v225_v30  ;;  %v289_v44 = vrot.slane %v261_v33, 3  ;;  %v298_v48 = vrot.slane %v261_v33, 4 }
  0x1d   : > { %v535_v46 = vpack.i.bf16 %v280_v43, %v234_v31  ;;  %v550_v51 = vpack.i.bf16 %v307_v49, %v261_v33  ;;  %v317_v52 = vrot.slane %v307_v49, 1  ;;  %v326_v53 = vrot.slane %v307_v49, 2 }
  0x1e   : > { %v540_v47 = vpack.i.bf16 %v289_v44, %v243_v36  ;;  %v545_v50 = vpack.i.bf16 %v298_v48, %v252_v37  ;;  %v335_v56 = vrot.slane %v307_v49, 3  ;;  %v344_v57 = vrot.slane %v307_v49, 4 }
  0x1f   : > { %v555_v54 = vpack.i.bf16 %v317_v52, %v271_v40  ;;  %v560_v55 = vpack.i.bf16 %v326_v53, %v280_v43 }
  0x20   : > { %466 = vrot.lane.b32.xlu0 %v465_v19, %s635_s16  ;;  %481 = vrot.lane.b32.xlu1 %v480_v20, %s636_s17  ;;  %v565_v58 = vpack.i.bf16 %v335_v56, %v289_v44  ;;  %v570_v59 = vpack.i.bf16 %v344_v57, %v298_v48 }
  0x24   : > { %486 = vrot.lane.b32.xlu0 %v485_v24, %s637_s18  ;;  %491 = vrot.lane.b32.xlu1 %v490_v25, %s638_s19 }
  0x28   : > { %496 = vrot.lane.b32.xlu0 %v495_v28, %s639_s20  ;;  %501 = vrot.lane.b32.xlu1 %v500_v29, %s640_s21 }
  0x2c   : > { %506 = vrot.lane.b32.xlu0 %v505_v34, %s641_s22  ;;  %511 = vrot.lane.b32.xlu1 %v510_v35, %s642_s23 }
  0x30   : > { %516 = vrot.lane.b32.xlu0 %v515_v38, %s643_s24  ;;  %521 = vrot.lane.b32.xlu1 %v520_v39, %s644_s25 }
  0x34   : > { %526 = vrot.lane.b32.xlu0 %v525_v41, %s645_s26  ;;  %531 = vrot.lane.b32.xlu1 %v530_v42, %s646_s27 }
  0x38   : > { %536 = vrot.lane.b32.xlu0 %v535_v46, %s647_s28  ;;  %541 = vrot.lane.b32.xlu1 %v540_v47, %s648_s29 }
  0x3c   : > { %546 = vrot.lane.b32.xlu0 %v545_v50, %s649_s30  ;;  %551 = vrot.lane.b32.xlu1 %v550_v51, %s650_s2 }
  0x40   : > { %556 = vrot.lane.b32.xlu0 %v555_v54, %s651_s3  ;;  %561 = vrot.lane.b32.xlu1 %v560_v55, %s652_s4 }
  0x44   : > { %566 = vrot.lane.b32.xlu0 %v565_v58, %s653_s5  ;;  %571 = vrot.lane.b32.xlu1 %v570_v59, %s654_s8 }
  0x8a   : > { %v457_v60 = vpop.permute.xlu0 %456  ;;  %v472_v61 = vpop.permute.xlu1 %471 }
  0x8b   : > { %v575_v0 = vadd.high.f32.bf16 %v686_v4, %v457_v60  ;;  %v576_v1 = vadd.low.f32.bf16 %v684_v3, %v457_v60 }
  0x8e   : > { %v462_v62 = vpop.permute.xlu0 %461  ;;  %v477_v63 = vpop.permute.xlu1 %476 }
  0x8f   : > { %v577_v2 = vadd.low.f32.bf16 %v576_v1, %v462_v62  ;;  %v578_v5 = vadd.high.f32.bf16 %v575_v0, %v462_v62 }
  0x91   : > { %v579_v8 = vadd.low.f32.bf16 %v577_v2, %v472_v61  ;;  %v580_v9 = vadd.high.f32.bf16 %v578_v5, %v472_v61 }
  0x92   : > { %v467_v6 = vpop.permute.xlu0 %466  ;;  %v482_v7 = vpop.permute.xlu1 %481 }
  0x93   : > { %v581_v10 = vadd.low.f32.bf16 %v579_v8, %v477_v63  ;;  %v582_v11 = vadd.high.f32.bf16 %v580_v9, %v477_v63 }
  0x95   : > { %v583_v14 = vadd.low.f32.bf16 %v581_v10, %v467_v6  ;;  %v584_v15 = vadd.high.f32.bf16 %v582_v11, %v467_v6 }
  0x96   : > { %v487_v12 = vpop.permute.xlu0 %486  ;;  %v492_v13 = vpop.permute.xlu1 %491 }
  0x97   : > { %v585_v16 = vadd.low.f32.bf16 %v583_v14, %v482_v7  ;;  %v586_v17 = vadd.high.f32.bf16 %v584_v15, %v482_v7 }
  0x99   : > { %v587_v20 = vadd.low.f32.bf16 %v585_v16, %v487_v12  ;;  %v588_v4 = vadd.high.f32.bf16 %v586_v17, %v487_v12 }
  0x9a   : > { %v497_v18 = vpop.permute.xlu0 %496  ;;  %v502_v19 = vpop.permute.xlu1 %501 }
  0x9b   : > { %v589_v21 = vadd.low.f32.bf16 %v587_v20, %v492_v13  ;;  %v590_v3 = vadd.high.f32.bf16 %v588_v4, %v492_v13 }
  0x9d   : > { %v591_v24 = vadd.low.f32.bf16 %v589_v21, %v497_v18  ;;  %v592_v25 = vadd.high.f32.bf16 %v590_v3, %v497_v18 }
  0x9e   : > { %v507_v22 = vpop.permute.xlu0 %506  ;;  %v512_v23 = vpop.permute.xlu1 %511 }
  0x9f   : > { %v593_v26 = vadd.low.f32.bf16 %v591_v24, %v502_v19  ;;  %v594_v27 = vadd.high.f32.bf16 %v592_v25, %v502_v19 }
  0xa1   : > { %v595_v30 = vadd.low.f32.bf16 %v593_v26, %v507_v22  ;;  %v596_v31 = vadd.high.f32.bf16 %v594_v27, %v507_v22 }
  0xa2   : > { %v517_v28 = vpop.permute.xlu0 %516  ;;  %v522_v29 = vpop.permute.xlu1 %521 }
  0xa3   : > { %v597_v32 = vadd.low.f32.bf16 %v595_v30, %v512_v23  ;;  %v598_v33 = vadd.high.f32.bf16 %v596_v31, %v512_v23 }
  0xa5   : > { %v599_v36 = vadd.low.f32.bf16 %v597_v32, %v517_v28  ;;  %v600_v37 = vadd.high.f32.bf16 %v598_v33, %v517_v28 }
  0xa6   : > { %v527_v34 = vpop.permute.xlu0 %526  ;;  %v532_v35 = vpop.permute.xlu1 %531 }
  0xa7   : > { %v601_v38 = vadd.low.f32.bf16 %v599_v36, %v522_v29  ;;  %v602_v39 = vadd.high.f32.bf16 %v600_v37, %v522_v29 }
  0xa9   : > { %v603_v42 = vadd.low.f32.bf16 %v601_v38, %v527_v34  ;;  %v604_v43 = vadd.high.f32.bf16 %v602_v39, %v527_v34 }
  0xaa   : > { %v537_v40 = vpop.permute.xlu0 %536  ;;  %v542_v41 = vpop.permute.xlu1 %541 }
  0xab   : > { %v605_v44 = vadd.low.f32.bf16 %v603_v42, %v532_v35  ;;  %v606_v45 = vadd.high.f32.bf16 %v604_v43, %v532_v35 }
  0xad   : > { %v607_v48 = vadd.low.f32.bf16 %v605_v44, %v537_v40  ;;  %v608_v49 = vadd.high.f32.bf16 %v606_v45, %v537_v40 }
  0xae   : > { %v547_v46 = vpop.permute.xlu0 %546  ;;  %v552_v47 = vpop.permute.xlu1 %551 }
  0xaf   : > { %v609_v50 = vadd.low.f32.bf16 %v607_v48, %v542_v41  ;;  %v610_v51 = vadd.high.f32.bf16 %v608_v49, %v542_v41 }
  0xb1   : > { %v611_v54 = vadd.low.f32.bf16 %v609_v50, %v547_v46  ;;  %v612_v55 = vadd.high.f32.bf16 %v610_v51, %v547_v46 }
  0xb2   : > { %v557_v52 = vpop.permute.xlu0 %556  ;;  %v562_v53 = vpop.permute.xlu1 %561 }
  0xb3   : > { %v613_v56 = vadd.low.f32.bf16 %v611_v54, %v552_v47  ;;  %v614_v57 = vadd.high.f32.bf16 %v612_v55, %v552_v47 }
  0xb5   : > { %v615_v60 = vadd.low.f32.bf16 %v613_v56, %v557_v52  ;;  %v616_v61 = vadd.high.f32.bf16 %v614_v57, %v557_v52 }
  0xb6   : > { %v567_v58 = vpop.permute.xlu0 %566  ;;  %v572_v59 = vpop.permute.xlu1 %571 }
  0xb7   : > { %v617_v62 = vadd.low.f32.bf16 %v615_v60, %v562_v53  ;;  %v618_v63 = vadd.high.f32.bf16 %v616_v61, %v562_v53 }
  0xb9   : > { %v619_v0 = vadd.low.f32.bf16 %v617_v62, %v567_v58  ;;  %v620_v1 = vadd.high.f32.bf16 %v618_v63, %v567_v58 }
  0xbb   : > { %v621_v2 = vadd.low.f32.bf16 %v619_v0, %v572_v59  ;;  %v622_v5 = vadd.high.f32.bf16 %v620_v1, %v572_v59 }
  0xbd   : > { %354 = vst.msk [vmem:[%s116_s12] sm:$0x3] %vm353_vm0, %v621_v2  ;;  %355 = vst.msk [vmem:[%s116_s12 + $0x2] sm:$0x3] %vm353_vm0, %v622_v5 }
  0xbe PF: > { %s11_s6 = sadd.s32 1, %s629_s6  }
  0xbf   : > { %p8_p4 = scmp.ge.s32.totalorder %s11_s6, 4  }
  0xc1   :  { %10 = sbr.rel (!%p8_p4) target bundleno = 1 (0x1), region = 54 }

// kernel: light_flow_net.27
= control target key start
LH: loop header
LB: loop body
LE: loop exit
PB: predicated region body
PF: predicated region fallthrough
CT: control target
= control target key end

     0   :  { %vm1335_vm0 = vcmask 1043456   ;;  %vm1328_vm1 = vcmask 64512   ;;  %s3048_s1 = inlined_call_operand.vmem [shape: bf16[1544,256], index: 1, kind: input, shape index: {}]   ;;  %s3049_s0 = inlined_call_operand.vmem [shape: bf16[32,1544], index: 0, kind: input, shape index: {}]   ;;  %s3050_s2 = inlined_call_operand.vmem [shape: bf16[32,256], index: 2, kind: output, shape index: {}]  }
   0x1   :  { %v2035_v0 = vld [vmem:[%s3048_s1 + $0x4] ss:$8 sps:$4 sm:$0xff]   ;;  %v2039_v2 = vld [vmem:[%s3048_s1] ss:$8 sps:$4 sm:$0xff]   ;;  %v2041_v4 = vld [vmem:[%s3048_s1 + $0x14] ss:$8 sps:$4 sm:$0xff]  }
   0x2   :  { %v2037_v1 = vld [vmem:[%s3048_s1 + $0x304] ss:$8 sps:$4 sm:$0xff]   ;;  %1342 = vmatprep.subr.bf16.mxu1 %v2035_v0  ;;  %v2040_v3 = vld [vmem:[%s3048_s1 + $0x300] ss:$8 sps:$4 sm:$0xff]   ;;  %v2043_v5 = vld [vmem:[%s3048_s1 + $0x314] ss:$8 sps:$4 sm:$0xff]  }
   0x3   :  { %1501 = vmatprep.subr.bf16.mxu0 %v2037_v1  ;;  %1343 = vmatpush1.bf16.msra.mxu1 %v2039_v2  ;;  %v2045_v6 = vld [vmem:[%s3048_s1 + $0x10] ss:$8 sps:$4 sm:$0xff]   ;;  %v2047_v8 = vld [vmem:[%s3048_s1 + $0x24] ss:$8 sps:$4 sm:$0xff]   ;;  %v2051_v10 = vld [vmem:[%s3048_s1 + $0x20] ss:$8 sps:$4 sm:$0xff]  }
   0x4   :  { %1502 = vmatpush1.bf16.msra.mxu0 %v2040_v3  ;;  %1344 = vmatprep.subr.bf16.mxu1 %v2041_v4  ;;  %v2046_v7 = vld [vmem:[%s3048_s1 + $0x310] ss:$8 sps:$4 sm:$0xff]   ;;  %v2049_v9 = vld [vmem:[%s3048_s1 + $0x324] ss:$8 sps:$4 sm:$0xff]   ;;  %v2052_v11 = vld [vmem:[%s3048_s1 + $0x320] ss:$8 sps:$4 sm:$0xff]  }
   0x5   :  { %1503 = vmatprep.subr.bf16.mxu0 %v2043_v5  ;;  %v2053_v12 = vld [vmem:[%s3048_s1 + $0x34] ss:$8 sps:$4 sm:$0xff]   ;;  %v2057_v14 = vld [vmem:[%s3048_s1 + $0x30] ss:$8 sps:$4 sm:$0xff]   ;;  %v2059_v16 = vld [vmem:[%s3048_s1 + $0x44] ss:$8 sps:$4 sm:$0xff]  }
   0x6   :  { %v2055_v13 = vld [vmem:[%s3048_s1 + $0x334] ss:$8 sps:$4 sm:$0xff]   ;;  %v2058_v15 = vld [vmem:[%s3048_s1 + $0x330] ss:$8 sps:$4 sm:$0xff]   ;;  %v2061_v17 = vld [vmem:[%s3048_s1 + $0x344] ss:$8 sps:$4 sm:$0xff]  }
   0x7   :  { %1345 = vmatpush1.bf16.msra.mxu1 %v2045_v6  ;;  %v2063_v18 = vld [vmem:[%s3048_s1 + $0x40] ss:$8 sps:$4 sm:$0xff]   ;;  %v2065_v20 = vld [vmem:[%s3048_s1 + $0x54] ss:$8 sps:$4 sm:$0xff]   ;;  %v2069_v22 = vld [vmem:[%s3048_s1 + $0x50] ss:$8 sps:$4 sm:$0xff]  }
   0x8   :  { %1504 = vmatpush1.bf16.msra.mxu0 %v2046_v7  ;;  %1346 = vmatprep.subr.bf16.mxu1 %v2047_v8  ;;  %v2064_v19 = vld [vmem:[%s3048_s1 + $0x340] ss:$8 sps:$4 sm:$0xff]   ;;  %v2067_v21 = vld [vmem:[%s3048_s1 + $0x354] ss:$8 sps:$4 sm:$0xff]   ;;  %v2070_v23 = vld [vmem:[%s3048_s1 + $0x350] ss:$8 sps:$4 sm:$0xff]  }
   0x9   :  { %1505 = vmatprep.subr.bf16.mxu0 %v2049_v9  ;;  %v2071_v24 = vld [vmem:[%s3048_s1 + $0x64] ss:$8 sps:$4 sm:$0xff]   ;;  %v2075_v26 = vld [vmem:[%s3048_s1 + $0x60] ss:$8 sps:$4 sm:$0xff]   ;;  %v2077_v28 = vld [vmem:[%s3048_s1 + $0x74] ss:$8 sps:$4 sm:$0xff]  }
   0xa   :  { %v2073_v25 = vld [vmem:[%s3048_s1 + $0x364] ss:$8 sps:$4 sm:$0xff]   ;;  %v2076_v27 = vld [vmem:[%s3048_s1 + $0x360] ss:$8 sps:$4 sm:$0xff]   ;;  %v2079_v29 = vld [vmem:[%s3048_s1 + $0x374] ss:$8 sps:$4 sm:$0xff]  }
   0xb   :  { %1347 = vmatpush1.bf16.msra.mxu1 %v2051_v10  ;;  %v2081_v30 = vld [vmem:[%s3048_s1 + $0x70] ss:$8 sps:$4 sm:$0xff]   ;;  %v2083_v32 = vld [vmem:[%s3048_s1 + $0x84] ss:$8 sps:$4 sm:$0xff]   ;;  %v2087_v34 = vld [vmem:[%s3048_s1 + $0x80] ss:$8 sps:$4 sm:$0xff]  }
   0xc   :  { %1506 = vmatpush1.bf16.msra.mxu0 %v2052_v11  ;;  %1348 = vmatprep.subr.bf16.mxu1 %v2053_v12  ;;  %v2082_v31 = vld [vmem:[%s3048_s1 + $0x370] ss:$8 sps:$4 sm:$0xff]   ;;  %v2085_v33 = vld [vmem:[%s3048_s1 + $0x384] ss:$8 sps:$4 sm:$0xff]   ;;  %v2088_v35 = vld [vmem:[%s3048_s1 + $0x380] ss:$8 sps:$4 sm:$0xff]  }
   0xd   :  { %1507 = vmatprep.subr.bf16.mxu0 %v2055_v13  ;;  %v2089_v36 = vld [vmem:[%s3048_s1 + $0x94] ss:$8 sps:$4 sm:$0xff]   ;;  %v2093_v38 = vld [vmem:[%s3048_s1 + $0x90] ss:$8 sps:$4 sm:$0xff]   ;;  %v2095_v40 = vld [vmem:[%s3048_s1 + $0xa4] ss:$8 sps:$4 sm:$0xff]  }
   0xe   :  { %v2091_v37 = vld [vmem:[%s3048_s1 + $0x394] ss:$8 sps:$4 sm:$0xff]   ;;  %v2094_v39 = vld [vmem:[%s3048_s1 + $0x390] ss:$8 sps:$4 sm:$0xff]   ;;  %v2097_v41 = vld [vmem:[%s3048_s1 + $0x3a4] ss:$8 sps:$4 sm:$0xff]  }
   0xf   :  { %1349 = vmatpush1.bf16.msra.mxu1 %v2057_v14  ;;  %v2099_v42 = vld [vmem:[%s3048_s1 + $0xa0] ss:$8 sps:$4 sm:$0xff]   ;;  %v2101_v44 = vld [vmem:[%s3048_s1 + $0xb4] ss:$8 sps:$4 sm:$0xff]   ;;  %v2105_v46 = vld [vmem:[%s3048_s1 + $0xb0] ss:$8 sps:$4 sm:$0xff]  }
  0x10   :  { %1508 = vmatpush1.bf16.msra.mxu0 %v2058_v15  ;;  %1350 = vmatprep.subr.bf16.mxu1 %v2059_v16  ;;  %v2100_v43 = vld [vmem:[%s3048_s1 + $0x3a0] ss:$8 sps:$4 sm:$0xff]   ;;  %v2103_v45 = vld [vmem:[%s3048_s1 + $0x3b4] ss:$8 sps:$4 sm:$0xff]   ;;  %v2106_v47 = vld [vmem:[%s3048_s1 + $0x3b0] ss:$8 sps:$4 sm:$0xff]  }
  0x11   :  { %1509 = vmatprep.subr.bf16.mxu0 %v2061_v17  ;;  %v2133_v48 = vld [vmem:[%s3049_s0 + $0x4] ss:$52 sps:$4 sm:$0xff]   ;;  %v2139_v51 = vld [vmem:[%s3049_s0 + $0x1c] ss:$52 sps:$4 sm:$0xff]   ;;  %v2111_v52 = vld [vmem:[%s3048_s1 + $0xc0] ss:$8 sps:$4 sm:$0xff]  }
  0x12   :  { %v2107_v49 = vld [vmem:[%s3048_s1 + $0xc4] ss:$8 sps:$4 sm:$0xff]   ;;  %1374 = vmatprep.mubr.bf16.mxu1 %v2133_v48  ;;  %v2112_v53 = vld [vmem:[%s3048_s1 + $0x3c0] ss:$8 sps:$4 sm:$0xff]   ;;  %v2113_v54 = vld [vmem:[%s3048_s1 + $0xd4] ss:$8 sps:$4 sm:$0xff]   ;;  %1533 = vmatprep.mubr.bf16.mxu0 %v2139_v51 }
  0x13   :  { %1351 = vmatpush1.bf16.msra.mxu1 %v2063_v18  ;;  %v2109_v50 = vld [vmem:[%s3048_s1 + $0x3c4] ss:$8 sps:$4 sm:$0xff]   ;;  %v2115_v55 = vld [vmem:[%s3048_s1 + $0x3d4] ss:$8 sps:$4 sm:$0xff]   ;;  %v2117_v56 = vld [vmem:[%s3048_s1 + $0xd0] ss:$8 sps:$4 sm:$0xff]  }
  0x14   :  { %1510 = vmatpush1.bf16.msra.mxu0 %v2064_v19  ;;  %1352 = vmatprep.subr.bf16.mxu1 %v2065_v20  ;;  %v2118_v57 = vld [vmem:[%s3048_s1 + $0x3d0] ss:$8 sps:$4 sm:$0xff]   ;;  %v2119_v58 = vld [vmem:[%s3048_s1 + $0xe4] ss:$8 sps:$4 sm:$0xff]   ;;  %v2123_v60 = vld [vmem:[%s3048_s1 + $0xe0] ss:$8 sps:$4 sm:$0xff]  }
  0x15   :  { %1511 = vmatprep.subr.bf16.mxu0 %v2067_v21  ;;  %v2121_v59 = vld [vmem:[%s3048_s1 + $0x3e4] ss:$8 sps:$4 sm:$0xff]   ;;  %v2124_v61 = vld [vmem:[%s3048_s1 + $0x3e0] ss:$8 sps:$4 sm:$0xff]   ;;  %v2125_v62 = vld [vmem:[%s3048_s1 + $0xf4] ss:$8 sps:$4 sm:$0xff]  }
  0x16   :  { %v2127_v63 = vld [vmem:[%s3048_s1 + $0x3f4] ss:$8 sps:$4 sm:$0xff]   ;;  %v2129_v0 = vld [vmem:[%s3048_s1 + $0xf0] ss:$8 sps:$4 sm:$0xff]   ;;  %v2136_v2 = vld [vmem:[%s3048_s1 + $0x104] ss:$8 sps:$4 sm:$0xff]  }
  0x17   :  { %1353 = vmatpush1.bf16.msra.mxu1 %v2069_v22  ;;  %v2130_v1 = vld [vmem:[%s3048_s1 + $0x3f0] ss:$8 sps:$4 sm:$0xff]   ;;  %v2142_v3 = vld [vmem:[%s3048_s1 + $0x404] ss:$8 sps:$4 sm:$0xff]   ;;  %v2131_v4 = vld [vmem:[%s3049_s0] ss:$52 sps:$4 sm:$0xff]  }
  0x18   :  { %1512 = vmatpush1.bf16.msra.mxu0 %v2070_v23  ;;  %1354 = vmatprep.subr.bf16.mxu1 %v2071_v24  ;;  %v2134_v5 = vld [vmem:[%s3048_s1 + $0x100] ss:$8 sps:$4 sm:$0xff]   ;;  %v2137_v6 = vld [vmem:[%s3049_s0 + $0x18] ss:$52 sps:$4 sm:$0xff]   ;;  %v2145_v8 = vld [vmem:[%s3048_s1 + $0x114] ss:$8 sps:$4 sm:$0xff]  }
  0x19   :  { %1513 = vmatprep.subr.bf16.mxu0 %v2073_v25  ;;  %v2140_v7 = vld [vmem:[%s3048_s1 + $0x400] ss:$8 sps:$4 sm:$0xff]   ;;  %v2148_v9 = vld [vmem:[%s3048_s1 + $0x414] ss:$8 sps:$4 sm:$0xff]   ;;  %v2143_v10 = vld [vmem:[%s3048_s1 + $0x110] ss:$8 sps:$4 sm:$0xff]  }
  0x1a   :  { %v2146_v11 = vld [vmem:[%s3048_s1 + $0x410] ss:$8 sps:$4 sm:$0xff]   ;;  %v2151_v12 = vld [vmem:[%s3048_s1 + $0x124] ss:$8 sps:$4 sm:$0xff]   ;;  %v2149_v14 = vld [vmem:[%s3048_s1 + $0x120] ss:$8 sps:$4 sm:$0xff]  }
  0x1b   :  { %1355 = vmatpush1.bf16.msra.mxu1 %v2075_v26  ;;  %v2154_v13 = vld [vmem:[%s3048_s1 + $0x424] ss:$8 sps:$4 sm:$0xff]   ;;  %v2152_v15 = vld [vmem:[%s3048_s1 + $0x420] ss:$8 sps:$4 sm:$0xff]   ;;  %v2157_v16 = vld [vmem:[%s3048_s1 + $0x134] ss:$8 sps:$4 sm:$0xff]  }
  0x1c   :  { %1514 = vmatpush1.bf16.msra.mxu0 %v2076_v27  ;;  %1356 = vmatprep.subr.bf16.mxu1 %v2077_v28  ;;  %v2160_v17 = vld [vmem:[%s3048_s1 + $0x434] ss:$8 sps:$4 sm:$0xff]   ;;  %v2155_v18 = vld [vmem:[%s3048_s1 + $0x130] ss:$8 sps:$4 sm:$0xff]   ;;  %v2163_v20 = vld [vmem:[%s3048_s1 + $0x144] ss:$8 sps:$4 sm:$0xff]  }
  0x1d   :  { %1515 = vmatprep.subr.bf16.mxu0 %v2079_v29  ;;  %v2158_v19 = vld [vmem:[%s3048_s1 + $0x430] ss:$8 sps:$4 sm:$0xff]   ;;  %v2166_v21 = vld [vmem:[%s3048_s1 + $0x444] ss:$8 sps:$4 sm:$0xff]   ;;  %v2161_v22 = vld [vmem:[%s3048_s1 + $0x140] ss:$8 sps:$4 sm:$0xff]  }
  0x1e   :  { %v2164_v23 = vld [vmem:[%s3048_s1 + $0x440] ss:$8 sps:$4 sm:$0xff]   ;;  %v2169_v24 = vld [vmem:[%s3048_s1 + $0x154] ss:$8 sps:$4 sm:$0xff]   ;;  %v2167_v26 = vld [vmem:[%s3048_s1 + $0x150] ss:$8 sps:$4 sm:$0xff]  }
  0x1f   :  { %1357 = vmatpush1.bf16.msra.mxu1 %v2081_v30  ;;  %v2172_v25 = vld [vmem:[%s3048_s1 + $0x454] ss:$8 sps:$4 sm:$0xff]   ;;  %v2170_v27 = vld [vmem:[%s3048_s1 + $0x450] ss:$8 sps:$4 sm:$0xff]   ;;  %v2221_v28 = vld [vmem:[%s3049_s0 + $0x6c] ss:$52 sps:$4 sm:$0xff]  }
  0x20   :  { %1516 = vmatpush1.bf16.msra.mxu0 %v2082_v31  ;;  %1358 = vmatprep.subr.bf16.mxu1 %v2083_v32  ;;  %v2175_v29 = vld [vmem:[%s3048_s1 + $0x164] ss:$8 sps:$4 sm:$0xff]   ;;  %v2173_v32 = vld [vmem:[%s3048_s1 + $0x160] ss:$8 sps:$4 sm:$0xff]   ;;  %v2191_v48 = vld [vmem:[%s3048_s1 + $0x190] ss:$8 sps:$4 sm:$0xff]  }
  0x21   :  { %1517 = vmatprep.subr.bf16.mxu0 %v2085_v33  ;;  %v2178_v30 = vld [vmem:[%s3048_s1 + $0x464] ss:$8 sps:$4 sm:$0xff]   ;;  %v2176_v33 = vld [vmem:[%s3048_s1 + $0x460] ss:$8 sps:$4 sm:$0xff]  }
  0x22   :  { %v2226_v31 = vld [vmem:[%s3049_s0 + $0x84] ss:$52 sps:$4 sm:$0xff]  }
  0x23   :  { %1359 = vmatpush1.bf16.msra.mxu1 %v2087_v34  ;;  %v2231_v34 = vld [vmem:[%s3049_s0 + $0x68] ss:$52 sps:$4 sm:$0xff]   ;;  %v2202_v51 = vld [vmem:[%s3048_s1 + $0x4a4] ss:$8 sps:$4 sm:$0xff]  }
  0x24   :  { %1518 = vmatpush1.bf16.msra.mxu0 %v2088_v35  ;;  %1360 = vmatprep.subr.bf16.mxu1 %v2089_v36  ;;  %v2232_v35 = vld [vmem:[%s3049_s0 + $0x80] ss:$52 sps:$4 sm:$0xff]  }
  0x25   :  { %1519 = vmatprep.subr.bf16.mxu0 %v2091_v37  ;;  %v2181_v36 = vld [vmem:[%s3048_s1 + $0x174] ss:$8 sps:$4 sm:$0xff]  }
  0x26   :  { %v2184_v37 = vld [vmem:[%s3048_s1 + $0x474] ss:$8 sps:$4 sm:$0xff]  }
  0x27   :  { %1361 = vmatpush1.bf16.msra.mxu1 %v2093_v38  ;;  %v2179_v38 = vld [vmem:[%s3048_s1 + $0x170] ss:$8 sps:$4 sm:$0xff]  }
  0x28   :  { %1520 = vmatpush1.bf16.msra.mxu0 %v2094_v39  ;;  %1362 = vmatprep.subr.bf16.mxu1 %v2095_v40  ;;  %v2182_v39 = vld [vmem:[%s3048_s1 + $0x470] ss:$8 sps:$4 sm:$0xff]   ;;  %v2241_v40 = vld [vmem:[%s3049_s0 + $0xc] ss:$52 sps:$4 sm:$0xff]  }
  0x29   :  { %1521 = vmatprep.subr.bf16.mxu0 %v2097_v41  ;;  %v2187_v41 = vld [vmem:[%s3048_s1 + $0x184] ss:$8 sps:$4 sm:$0xff]  }
  0x2b   :  { %1363 = vmatpush1.bf16.msra.mxu1 %v2099_v42  ;;  %v2190_v42 = vld [vmem:[%s3048_s1 + $0x484] ss:$8 sps:$4 sm:$0xff]  }
  0x2c   :  { %1522 = vmatpush1.bf16.msra.mxu0 %v2100_v43  ;;  %1364 = vmatprep.subr.bf16.mxu1 %v2101_v44  ;;  %v2247_v43 = vld [vmem:[%s3049_s0 + $0x24] ss:$52 sps:$4 sm:$0xff]   ;;  %v2185_v44 = vld [vmem:[%s3048_s1 + $0x180] ss:$8 sps:$4 sm:$0xff]  }
  0x2d   :  { %1523 = vmatprep.subr.bf16.mxu0 %v2103_v45  ;;  %v2188_v45 = vld [vmem:[%s3048_s1 + $0x480] ss:$8 sps:$4 sm:$0xff]  }
  0x2f   :  { %1365 = vmatpush1.bf16.msra.mxu1 %v2105_v46  ;;  %v2193_v46 = vld [vmem:[%s3048_s1 + $0x194] ss:$8 sps:$4 sm:$0xff]  }
  0x30   :  { %1524 = vmatpush1.bf16.msra.mxu0 %v2106_v47  ;;  %1366 = vmatprep.subr.bf16.mxu1 %v2107_v49  ;;  %v2196_v47 = vld [vmem:[%s3048_s1 + $0x494] ss:$8 sps:$4 sm:$0xff]   ;;  %v2194_v49 = vld [vmem:[%s3048_s1 + $0x490] ss:$8 sps:$4 sm:$0xff]  }
  0x31   :  { %1525 = vmatprep.subr.bf16.mxu0 %v2109_v50  ;;  %v2199_v50 = vld [vmem:[%s3048_s1 + $0x1a4] ss:$8 sps:$4 sm:$0xff]  }
  0x33   :  { %1367 = vmatpush1.bf16.msra.mxu1 %v2111_v52  ;;  %v2197_v52 = vld [vmem:[%s3048_s1 + $0x1a0] ss:$8 sps:$4 sm:$0xff]  }
  0x34   :  { %1526 = vmatpush1.bf16.msra.mxu0 %v2112_v53  ;;  %1368 = vmatprep.subr.bf16.mxu1 %v2113_v54  ;;  %v2200_v53 = vld [vmem:[%s3048_s1 + $0x4a0] ss:$8 sps:$4 sm:$0xff]   ;;  %v2205_v54 = vld [vmem:[%s3048_s1 + $0x1b4] ss:$8 sps:$4 sm:$0xff]  }
  0x35   :  { %1527 = vmatprep.subr.bf16.mxu0 %v2115_v55  ;;  %v2208_v55 = vld [vmem:[%s3048_s1 + $0x4b4] ss:$8 sps:$4 sm:$0xff]  }
  0x37   :  { %1369 = vmatpush1.bf16.msra.mxu1 %v2117_v56  ;;  %v2203_v56 = vld [vmem:[%s3048_s1 + $0x1b0] ss:$8 sps:$4 sm:$0xff]  }
  0x38   :  { %1528 = vmatpush1.bf16.msra.mxu0 %v2118_v57  ;;  %1370 = vmatprep.subr.bf16.mxu1 %v2119_v58  ;;  %v2206_v57 = vld [vmem:[%s3048_s1 + $0x4b0] ss:$8 sps:$4 sm:$0xff]   ;;  %v2211_v58 = vld [vmem:[%s3048_s1 + $0x1c4] ss:$8 sps:$4 sm:$0xff]  }
  0x39   :  { %1529 = vmatprep.subr.bf16.mxu0 %v2121_v59  ;;  %v2214_v59 = vld [vmem:[%s3048_s1 + $0x4c4] ss:$8 sps:$4 sm:$0xff]  }
  0x3b   :  { %1371 = vmatpush1.bf16.msra.mxu1 %v2123_v60  ;;  %v2209_v60 = vld [vmem:[%s3048_s1 + $0x1c0] ss:$8 sps:$4 sm:$0xff]  }
  0x3c   :  { %1530 = vmatpush1.bf16.msra.mxu0 %v2124_v61  ;;  %1372 = vmatprep.subr.bf16.mxu1 %v2125_v62  ;;  %v2212_v61 = vld [vmem:[%s3048_s1 + $0x4c0] ss:$8 sps:$4 sm:$0xff]   ;;  %v2217_v62 = vld [vmem:[%s3048_s1 + $0x1d4] ss:$8 sps:$4 sm:$0xff]  }
  0x3d   :  { %1531 = vmatprep.subr.bf16.mxu0 %v2127_v63  ;;  %v2220_v63 = vld [vmem:[%s3048_s1 + $0x4d4] ss:$8 sps:$4 sm:$0xff]  }
  0x3f   :  { %1373 = vmatpush1.bf16.msra.mxu1 %v2129_v0  ;;  %v2215_v0 = vld [vmem:[%s3048_s1 + $0x1d0] ss:$8 sps:$4 sm:$0xff]  }
  0x40   :  { %1532 = vmatpush1.bf16.msra.mxu0 %v2130_v1  ;;  %1395 = vmatprep.subr.bf16.mxu1 %v2136_v2  ;;  %v2218_v1 = vld [vmem:[%s3048_s1 + $0x4d0] ss:$8 sps:$4 sm:$0xff]   ;;  %v2225_v2 = vld [vmem:[%s3048_s1 + $0x1e4] ss:$8 sps:$4 sm:$0xff]  }
  0x41   :  { %1554 = vmatprep.subr.bf16.mxu0 %v2142_v3  ;;  %v2230_v3 = vld [vmem:[%s3048_s1 + $0x4e4] ss:$8 sps:$4 sm:$0xff]  }
  0x42   :  { %1375 = vmatmul.mubr.bf16.vlgmr.msra.gmra.mrb[0].mxu1 %v2131_v4  ;;  %v2223_v4 = vld [vmem:[%s3048_s1 + $0x1e0] ss:$8 sps:$4 sm:$0xff]  }
  0x43   :  { %1534 = vmatmul.mubr.bf16.vlgmr.msra.gmra.mrb[0].mxu0 %v2137_v6  ;;  %1396 = vmatpush1.bf16.msra.mxu1 %v2134_v5  ;;  %v2228_v5 = vld [vmem:[%s3048_s1 + $0x4e0] ss:$8 sps:$4 sm:$0xff]   ;;  %v2235_v6 = vld [vmem:[%s3048_s1 + $0x1f4] ss:$8 sps:$4 sm:$0xff]  }
  0x44   :  { %1555 = vmatpush1.bf16.msra.mxu0 %v2140_v7  ;;  %1397 = vmatprep.subr.bf16.mxu1 %v2145_v8  ;;  %v2238_v7 = vld [vmem:[%s3048_s1 + $0x4f4] ss:$8 sps:$4 sm:$0xff]   ;;  %v2233_v8 = vld [vmem:[%s3048_s1 + $0x1f0] ss:$8 sps:$4 sm:$0xff]  }
  0x45   :  { %1556 = vmatprep.subr.bf16.mxu0 %v2148_v9  ;;  %1384 = vmatprep.mubr.bf16.mxu1 %v2221_v28  ;;  %v2236_v9 = vld [vmem:[%s3048_s1 + $0x4f0] ss:$8 sps:$4 sm:$0xff]   ;;  %v2265_v28 = vld [vmem:[%s3048_s1 + $0x234] ss:$8 sps:$4 sm:$0xff]  }
  0x46   :  { %1543 = vmatprep.mubr.bf16.mxu0 %v2226_v31  ;;  %v2266_v31 = vld [vmem:[%s3048_s1 + $0x530] ss:$8 sps:$4 sm:$0xff]  }
  0x47   :  { %1398 = vmatpush1.bf16.msra.mxu1 %v2143_v10  ;;  %v2244_v10 = vld [vmem:[%s3048_s1 + $0x204] ss:$8 sps:$4 sm:$0xff]  }
  0x48   :  { %1557 = vmatpush1.bf16.msra.mxu0 %v2146_v11  ;;  %1399 = vmatprep.subr.bf16.mxu1 %v2151_v12  ;;  %v2250_v11 = vld [vmem:[%s3048_s1 + $0x504] ss:$8 sps:$4 sm:$0xff]   ;;  %v2239_v12 = vld [vmem:[%s3049_s0 + $0x8] ss:$52 sps:$4 sm:$0xff]  }
  0x49   :  { %1558 = vmatprep.subr.bf16.mxu0 %v2154_v13  ;;  %v2242_v13 = vld [vmem:[%s3048_s1 + $0x200] ss:$8 sps:$4 sm:$0xff]  }
  0x4a   :  { %1385 = vmatmul.mubr.bf16.gmra.mrb[4].mxu1 %v2231_v34  ;;  %v2274_v34 = vld [vmem:[%s3048_s1 + $0x544] ss:$8 sps:$4 sm:$0xff]  }
  0x4b   :  { %1400 = vmatpush1.bf16.msra.mxu1 %v2149_v14  ;;  %1544 = vmatmul.mubr.bf16.gmra.mrb[4].mxu0 %v2232_v35  ;;  %v2245_v14 = vld [vmem:[%s3049_s0 + $0x20] ss:$52 sps:$4 sm:$0xff]  }
  0x4c   :  { %1559 = vmatpush1.bf16.msra.mxu0 %v2152_v15  ;;  %1401 = vmatprep.subr.bf16.mxu1 %v2157_v16  ;;  %v2248_v15 = vld [vmem:[%s3048_s1 + $0x500] ss:$8 sps:$4 sm:$0xff]   ;;  %v2253_v16 = vld [vmem:[%s3048_s1 + $0x214] ss:$8 sps:$4 sm:$0xff]  }
  0x4d   :  { %1560 = vmatprep.subr.bf16.mxu0 %v2160_v17  ;;  %1427 = vmatprep.mubr.bf16.mxu1 %v2241_v40  ;;  %v2256_v17 = vld [vmem:[%s3048_s1 + $0x514] ss:$8 sps:$4 sm:$0xff]   ;;  %v2352_v35 = vld [vmem:[%s3049_s0 + $0x2c] ss:$52 sps:$4 sm:$0xff]   ;;  %v2275_v40 = vld [vmem:[%s3048_s1 + $0x250] ss:$8 sps:$4 sm:$0xff]  }
  0x4e   :  { %1586 = vmatprep.mubr.bf16.mxu0 %v2247_v43  ;;  %v2286_v43 = vld [vmem:[%s3048_s1 + $0x564] ss:$8 sps:$4 sm:$0xff]  }
  0x4f   :  { %1402 = vmatpush1.bf16.msra.mxu1 %v2155_v18  ;;  %v2251_v18 = vld [vmem:[%s3048_s1 + $0x210] ss:$8 sps:$4 sm:$0xff]  }
  0x50   :  { %1561 = vmatpush1.bf16.msra.mxu0 %v2158_v19  ;;  %1403 = vmatprep.subr.bf16.mxu1 %v2163_v20  ;;  %v2254_v19 = vld [vmem:[%s3048_s1 + $0x510] ss:$8 sps:$4 sm:$0xff]   ;;  %v2329_v20 = vld [vmem:[%s3049_s0 + $0x74] ss:$52 sps:$4 sm:$0xff]  }
  0x51   :  { %1562 = vmatprep.subr.bf16.mxu0 %v2166_v21  ;;  %v2259_v21 = vld [vmem:[%s3048_s1 + $0x224] ss:$8 sps:$4 sm:$0xff]  }
  0x53   :  { %1404 = vmatpush1.bf16.msra.mxu1 %v2161_v22  ;;  %v2331_v22 = vld [vmem:[%s3049_s0 + $0x8c] ss:$52 sps:$4 sm:$0xff]  }
  0x54   :  { %1563 = vmatpush1.bf16.msra.mxu0 %v2164_v23  ;;  %1405 = vmatprep.subr.bf16.mxu1 %v2169_v24  ;;  %v2262_v23 = vld [vmem:[%s3048_s1 + $0x524] ss:$8 sps:$4 sm:$0xff]   ;;  %v2257_v24 = vld [vmem:[%s3048_s1 + $0x220] ss:$8 sps:$4 sm:$0xff]  }
  0x55   :  { %1564 = vmatprep.subr.bf16.mxu0 %v2172_v25  ;;  %v2260_v25 = vld [vmem:[%s3048_s1 + $0x520] ss:$8 sps:$4 sm:$0xff]  }
  0x57   :  { %1406 = vmatpush1.bf16.msra.mxu1 %v2167_v26  ;;  %v2333_v26 = vld [vmem:[%s3049_s0 + $0x70] ss:$52 sps:$4 sm:$0xff]  }
  0x58   :  { %1565 = vmatpush1.bf16.msra.mxu0 %v2170_v27  ;;  %1407 = vmatprep.subr.bf16.mxu1 %v2175_v29  ;;  %v2337_v27 = vld [vmem:[%s3049_s0 + $0x88] ss:$52 sps:$4 sm:$0xff]  }
  0x59   :  { %1566 = vmatprep.subr.bf16.mxu0 %v2178_v30  ;;  %v2268_v29 = vld [vmem:[%s3048_s1 + $0x534] ss:$8 sps:$4 sm:$0xff]   ;;  %v2263_v30 = vld [vmem:[%s3048_s1 + $0x230] ss:$8 sps:$4 sm:$0xff]  }
  0x5b   :  { %1408 = vmatpush1.bf16.msra.mxu1 %v2173_v32  ;;  %v2349_v32 = vld [vmem:[%s3049_s0 + $0x14] ss:$52 sps:$4 sm:$0xff]  }
  0x5c   :  { %1567 = vmatpush1.bf16.msra.mxu0 %v2176_v33  ;;  %1409 = vmatprep.subr.bf16.mxu1 %v2181_v36  ;;  %v2271_v33 = vld [vmem:[%s3048_s1 + $0x244] ss:$8 sps:$4 sm:$0xff]   ;;  %v2269_v36 = vld [vmem:[%s3048_s1 + $0x240] ss:$8 sps:$4 sm:$0xff]  }
  0x5d   :  { %1568 = vmatprep.subr.bf16.mxu0 %v2184_v37  ;;  %v2272_v37 = vld [vmem:[%s3048_s1 + $0x540] ss:$8 sps:$4 sm:$0xff]  }
  0x5f   :  { %1410 = vmatpush1.bf16.msra.mxu1 %v2179_v38  ;;  %v2277_v38 = vld [vmem:[%s3048_s1 + $0x254] ss:$8 sps:$4 sm:$0xff]  }
  0x60   :  { %1569 = vmatpush1.bf16.msra.mxu0 %v2182_v39  ;;  %1411 = vmatprep.subr.bf16.mxu1 %v2187_v41  ;;  %v2280_v39 = vld [vmem:[%s3048_s1 + $0x554] ss:$8 sps:$4 sm:$0xff]   ;;  %v2278_v41 = vld [vmem:[%s3048_s1 + $0x550] ss:$8 sps:$4 sm:$0xff]  }
  0x61   :  { %1570 = vmatprep.subr.bf16.mxu0 %v2190_v42  ;;  %v2283_v42 = vld [vmem:[%s3048_s1 + $0x264] ss:$8 sps:$4 sm:$0xff]  }
  0x63   :  { %1412 = vmatpush1.bf16.msra.mxu1 %v2185_v44  ;;  %v2281_v44 = vld [vmem:[%s3048_s1 + $0x260] ss:$8 sps:$4 sm:$0xff]  }
  0x64   :  { %1571 = vmatpush1.bf16.msra.mxu0 %v2188_v45  ;;  %1413 = vmatprep.subr.bf16.mxu1 %v2193_v46  ;;  %v2284_v45 = vld [vmem:[%s3048_s1 + $0x560] ss:$8 sps:$4 sm:$0xff]   ;;  %v2289_v46 = vld [vmem:[%s3048_s1 + $0x274] ss:$8 sps:$4 sm:$0xff]  }
  0x65   :  { %1572 = vmatprep.subr.bf16.mxu0 %v2196_v47  ;;  %v2292_v47 = vld [vmem:[%s3048_s1 + $0x574] ss:$8 sps:$4 sm:$0xff]  }
  0x67   :  { %1414 = vmatpush1.bf16.msra.mxu1 %v2191_v48  ;;  %v2287_v48 = vld [vmem:[%s3048_s1 + $0x270] ss:$8 sps:$4 sm:$0xff]  }
  0x68   :  { %1573 = vmatpush1.bf16.msra.mxu0 %v2194_v49  ;;  %1415 = vmatprep.subr.bf16.mxu1 %v2199_v50  ;;  %v2290_v49 = vld [vmem:[%s3048_s1 + $0x570] ss:$8 sps:$4 sm:$0xff]   ;;  %v2295_v50 = vld [vmem:[%s3048_s1 + $0x284] ss:$8 sps:$4 sm:$0xff]  }
  0x69   :  { %1574 = vmatprep.subr.bf16.mxu0 %v2202_v51  ;;  %v2298_v51 = vld [vmem:[%s3048_s1 + $0x584] ss:$8 sps:$4 sm:$0xff]  }
  0x6b   :  { %1416 = vmatpush1.bf16.msra.mxu1 %v2197_v52  ;;  %v2293_v52 = vld [vmem:[%s3048_s1 + $0x280] ss:$8 sps:$4 sm:$0xff]  }
  0x6c   :  { %1575 = vmatpush1.bf16.msra.mxu0 %v2200_v53  ;;  %1417 = vmatprep.subr.bf16.mxu1 %v2205_v54  ;;  %v2296_v53 = vld [vmem:[%s3048_s1 + $0x580] ss:$8 sps:$4 sm:$0xff]   ;;  %v2301_v54 = vld [vmem:[%s3048_s1 + $0x294] ss:$8 sps:$4 sm:$0xff]  }
  0x6d   :  { %1576 = vmatprep.subr.bf16.mxu0 %v2208_v55  ;;  %v2304_v55 = vld [vmem:[%s3048_s1 + $0x594] ss:$8 sps:$4 sm:$0xff]  }
  0x6f   :  { %1418 = vmatpush1.bf16.msra.mxu1 %v2203_v56  ;;  %v2299_v56 = vld [vmem:[%s3048_s1 + $0x290] ss:$8 sps:$4 sm:$0xff]  }
  0x70   :  { %1577 = vmatpush1.bf16.msra.mxu0 %v2206_v57  ;;  %1419 = vmatprep.subr.bf16.mxu1 %v2211_v58  ;;  %v2302_v57 = vld [vmem:[%s3048_s1 + $0x590] ss:$8 sps:$4 sm:$0xff]   ;;  %v2307_v58 = vld [vmem:[%s3048_s1 + $0x2a4] ss:$8 sps:$4 sm:$0xff]  }
  0x71   :  { %1578 = vmatprep.subr.bf16.mxu0 %v2214_v59  ;;  %v2310_v59 = vld [vmem:[%s3048_s1 + $0x5a4] ss:$8 sps:$4 sm:$0xff]  }
  0x73   :  { %1420 = vmatpush1.bf16.msra.mxu1 %v2209_v60  ;;  %v2305_v60 = vld [vmem:[%s3048_s1 + $0x2a0] ss:$8 sps:$4 sm:$0xff]  }
  0x74   :  { %1579 = vmatpush1.bf16.msra.mxu0 %v2212_v61  ;;  %1421 = vmatprep.subr.bf16.mxu1 %v2217_v62  ;;  %v2308_v61 = vld [vmem:[%s3048_s1 + $0x5a0] ss:$8 sps:$4 sm:$0xff]   ;;  %v2313_v62 = vld [vmem:[%s3048_s1 + $0x2b4] ss:$8 sps:$4 sm:$0xff]  }
  0x75   :  { %1580 = vmatprep.subr.bf16.mxu0 %v2220_v63  ;;  %v2316_v63 = vld [vmem:[%s3048_s1 + $0x5b4] ss:$8 sps:$4 sm:$0xff]  }
  0x77   :  { %1422 = vmatpush1.bf16.msra.mxu1 %v2215_v0  ;;  %v2311_v0 = vld [vmem:[%s3048_s1 + $0x2b0] ss:$8 sps:$4 sm:$0xff]  }
  0x78   :  { %1581 = vmatpush1.bf16.msra.mxu0 %v2218_v1  ;;  %1423 = vmatprep.subr.bf16.mxu1 %v2225_v2  ;;  %v2314_v1 = vld [vmem:[%s3048_s1 + $0x5b0] ss:$8 sps:$4 sm:$0xff]   ;;  %v2319_v2 = vld [vmem:[%s3048_s1 + $0x2c4] ss:$8 sps:$4 sm:$0xff]  }
  0x79   :  { %1582 = vmatprep.subr.bf16.mxu0 %v2230_v3  ;;  %v2322_v3 = vld [vmem:[%s3048_s1 + $0x5c4] ss:$8 sps:$4 sm:$0xff]  }
  0x7b   :  { %1424 = vmatpush1.bf16.msra.mxu1 %v2223_v4  ;;  %v2317_v4 = vld [vmem:[%s3048_s1 + $0x2c0] ss:$8 sps:$4 sm:$0xff]  }
  0x7c   :  { %1583 = vmatpush1.bf16.msra.mxu0 %v2228_v5  ;;  %1425 = vmatprep.subr.bf16.mxu1 %v2235_v6  ;;  %v2320_v5 = vld [vmem:[%s3048_s1 + $0x5c0] ss:$8 sps:$4 sm:$0xff]   ;;  %v2325_v6 = vld [vmem:[%s3048_s1 + $0x2d4] ss:$8 sps:$4 sm:$0xff]  }
  0x7d   :  { %1584 = vmatprep.subr.bf16.mxu0 %v2238_v7  ;;  %v2328_v7 = vld [vmem:[%s3048_s1 + $0x5d4] ss:$8 sps:$4 sm:$0xff]  }
  0x7f   :  { %1426 = vmatpush1.bf16.msra.mxu1 %v2233_v8  ;;  %v2323_v8 = vld [vmem:[%s3048_s1 + $0x2d0] ss:$8 sps:$4 sm:$0xff]  }
  0x80   :  { %1585 = vmatpush1.bf16.msra.mxu0 %v2236_v9  ;;  %1448 = vmatprep.subr.bf16.mxu1 %v2244_v10  ;;  %v2326_v9 = vld [vmem:[%s3048_s1 + $0x5d0] ss:$8 sps:$4 sm:$0xff]   ;;  %v2336_v10 = vld [vmem:[%s3048_s1 + $0x2e4] ss:$8 sps:$4 sm:$0xff]  }
  0x81   :  { %1607 = vmatprep.subr.bf16.mxu0 %v2250_v11  ;;  %v2340_v11 = vld [vmem:[%s3048_s1 + $0x5e4] ss:$8 sps:$4 sm:$0xff]  }
  0x82   :  { %1428 = vmatmul.mubr.bf16.vlgmr.msra.gmra.mrb[0].mxu1 %v2239_v12  ;;  %v2334_v12 = vld [vmem:[%s3048_s1 + $0x2e0] ss:$8 sps:$4 sm:$0xff]  }
  0x83   :  { %1587 = vmatmul.mubr.bf16.vlgmr.msra.gmra.mrb[0].mxu0 %v2245_v14  ;;  %1449 = vmatpush1.bf16.msra.mxu1 %v2242_v13  ;;  %v2338_v13 = vld [vmem:[%s3048_s1 + $0x5e0] ss:$8 sps:$4 sm:$0xff]   ;;  %v2343_v14 = vld [vmem:[%s3048_s1 + $0x2f4] ss:$8 sps:$4 sm:$0xff]  }
  0x84   :  { %1608 = vmatpush1.bf16.msra.mxu0 %v2248_v15  ;;  %1450 = vmatprep.subr.bf16.mxu1 %v2253_v16  ;;  %v2346_v15 = vld [vmem:[%s3048_s1 + $0x5f4] ss:$8 sps:$4 sm:$0xff]   ;;  %v232_v16 = vld [vmem:[%s3048_s1 + $0x600] sm:$0xff] }
  0x85   :  { %1609 = vmatprep.subr.bf16.mxu0 %v2256_v17  ;;  %1437 = vmatprep.mubr.bf16.mxu1 %v2329_v20  ;;  %v2341_v17 = vld [vmem:[%s3048_s1 + $0x2f0] ss:$8 sps:$4 sm:$0xff]   ;;  %v1971_v20 = vcombine.low %v232_v16, %v232_v16 }
  0x86   :  { %1596 = vmatprep.mubr.bf16.mxu0 %v2331_v22  ;;  %v2350_v22 = vld [vmem:[%s3049_s0 + $0x28] ss:$52 sps:$4 sm:$0xff]  }
  0x87   :  { %1451 = vmatpush1.bf16.msra.mxu1 %v2251_v18  ;;  %v2344_v18 = vld [vmem:[%s3048_s1 + $0x5f0] ss:$8 sps:$4 sm:$0xff]  }
  0x88   :  { %1610 = vmatpush1.bf16.msra.mxu0 %v2254_v19  ;;  %1452 = vmatprep.subr.bf16.mxu1 %v2259_v21  ;;  %v1972_v19 = vcombine.high %v232_v16, %v232_v16  ;;  %v2347_v21 = vld [vmem:[%s3049_s0 + $0x10] ss:$52 sps:$4 sm:$0xff]  }
  0x89   :  { %1611 = vmatprep.subr.bf16.mxu0 %v2262_v23  ;;  %v1337_v23 = vsel %vm1335_vm0, %v1971_v20, 0 }
  0x8a   :  { %1438 = vmatmul.mubr.bf16.gmra.mrb[4].mxu1 %v2333_v26  ;;  %v2359_v26 = vld [vmem:[%s3049_s0 + $0x78] ss:$52 sps:$4 sm:$0xff]  }
  0x8b   :  { %1597 = vmatmul.mubr.bf16.gmra.mrb[4].mxu0 %v2337_v27  ;;  %1453 = vmatpush1.bf16.msra.mxu1 %v2257_v24  ;;  %v2355_v24 = vld [vmem:[%s3049_s0 + $0x7c] ss:$52 sps:$4 sm:$0xff]  }
  0x8c   :  { %1612 = vmatpush1.bf16.msra.mxu0 %v2260_v25  ;;  %1454 = vmatprep.subr.bf16.mxu1 %v2265_v28  ;;  %v2357_v25 = vld [vmem:[%s3049_s0 + $0x94] ss:$52 sps:$4 sm:$0xff]   ;;  %v2360_v27 = vld [vmem:[%s3049_s0 + $0x90] ss:$52 sps:$4 sm:$0xff]   ;;  %v2363_v28 = vmov 0  }
  0x8d   :  { %1613 = vmatprep.subr.bf16.mxu0 %v2268_v29  ;;  %1480 = vmatprep.mubr.bf16.mxu1 %v2349_v32  ;;  %v2361_v29 = vld [vmem:[%s3049_s0 + $0x30] ss:$52 sps:$4 sm:$0xff]  }
  0x8e   :  { %1639 = vmatprep.mubr.bf16.mxu0 %v2352_v35 }
  0x8f   :  { %1455 = vmatpush1.bf16.msra.mxu1 %v2263_v30  ;;  %v2362_v30 = vld [vmem:[%s3049_s0 + $0x98] ss:$52 sps:$4 sm:$0xff]  }
  0x90   :  { %1614 = vmatpush1.bf16.msra.mxu0 %v2266_v31  ;;  %1456 = vmatprep.subr.bf16.mxu1 %v2271_v33 }
  0x91   :  { %1615 = vmatprep.subr.bf16.mxu0 %v2274_v34 }
  0x93   :  { %1457 = vmatpush1.bf16.msra.mxu1 %v2269_v36 }
  0x94   :  { %1616 = vmatpush1.bf16.msra.mxu0 %v2272_v37  ;;  %1458 = vmatprep.subr.bf16.mxu1 %v2277_v38 }
  0x95   :  { %1617 = vmatprep.subr.bf16.mxu0 %v2280_v39 }
  0x97   :  { %1459 = vmatpush1.bf16.msra.mxu1 %v2275_v40 }
  0x98   :  { %1618 = vmatpush1.bf16.msra.mxu0 %v2278_v41  ;;  %1460 = vmatprep.subr.bf16.mxu1 %v2283_v42 }
  0x99   :  { %1619 = vmatprep.subr.bf16.mxu0 %v2286_v43 }
  0x9b   :  { %1461 = vmatpush1.bf16.msra.mxu1 %v2281_v44 }
  0x9c   :  { %1620 = vmatpush1.bf16.msra.mxu0 %v2284_v45  ;;  %1462 = vmatprep.subr.bf16.mxu1 %v2289_v46 }
  0x9d   :  { %1621 = vmatprep.subr.bf16.mxu0 %v2292_v47 }
  0x9f   :  { %1463 = vmatpush1.bf16.msra.mxu1 %v2287_v48 }
  0xa0   :  { %1622 = vmatpush1.bf16.msra.mxu0 %v2290_v49  ;;  %1464 = vmatprep.subr.bf16.mxu1 %v2295_v50 }
  0xa1   :  { %1623 = vmatprep.subr.bf16.mxu0 %v2298_v51 }
  0xa3   :  { %1465 = vmatpush1.bf16.msra.mxu1 %v2293_v52 }
  0xa4   :  { %1624 = vmatpush1.bf16.msra.mxu0 %v2296_v53  ;;  %1466 = vmatprep.subr.bf16.mxu1 %v2301_v54 }
  0xa5   :  { %1625 = vmatprep.subr.bf16.mxu0 %v2304_v55 }
  0xa7   :  { %1467 = vmatpush1.bf16.msra.mxu1 %v2299_v56 }
  0xa8   :  { %1626 = vmatpush1.bf16.msra.mxu0 %v2302_v57  ;;  %1468 = vmatprep.subr.bf16.mxu1 %v2307_v58 }
  0xa9   :  { %1627 = vmatprep.subr.bf16.mxu0 %v2310_v59 }
  0xab   :  { %1469 = vmatpush1.bf16.msra.mxu1 %v2305_v60 }
  0xac   :  { %1628 = vmatpush1.bf16.msra.mxu0 %v2308_v61  ;;  %1470 = vmatprep.subr.bf16.mxu1 %v2313_v62 }
  0xad   :  { %1629 = vmatprep.subr.bf16.mxu0 %v2316_v63 }
  0xaf   :  { %1471 = vmatpush1.bf16.msra.mxu1 %v2311_v0 }
  0xb0   :  { %1630 = vmatpush1.bf16.msra.mxu0 %v2314_v1  ;;  %1472 = vmatprep.subr.bf16.mxu1 %v2319_v2 }
  0xb1   :  { %1631 = vmatprep.subr.bf16.mxu0 %v2322_v3 }
  0xb3   :  { %1473 = vmatpush1.bf16.msra.mxu1 %v2317_v4 }
  0xb4   :  { %1632 = vmatpush1.bf16.msra.mxu0 %v2320_v5  ;;  %1474 = vmatprep.subr.bf16.mxu1 %v2325_v6 }
  0xb5   :  { %1633 = vmatprep.subr.bf16.mxu0 %v2328_v7 }
  0xb7   :  { %1475 = vmatpush1.bf16.msra.mxu1 %v2323_v8 }
  0xb8   :  { %1634 = vmatpush1.bf16.msra.mxu0 %v2326_v9  ;;  %1476 = vmatprep.subr.bf16.mxu1 %v2336_v10 }
  0xb9   :  { %1635 = vmatprep.subr.bf16.mxu0 %v2340_v11 }
  0xbb   :  { %1477 = vmatpush1.bf16.msra.mxu1 %v2334_v12 }
  0xbc   :  { %1636 = vmatpush1.bf16.msra.mxu0 %v2338_v13  ;;  %1478 = vmatprep.subr.bf16.mxu1 %v2343_v14 }
  0xbd   :  { %1637 = vmatprep.subr.bf16.mxu0 %v2346_v15 }
  0xbf   :  { %1479 = vmatpush1.bf16.msra.mxu1 %v2341_v17 }
  0xc0   :  { %1638 = vmatpush1.bf16.msra.mxu0 %v2344_v18  ;;  %1984 = vmatprep.subr.msk.bf16.mxu1 %vm1335_vm0, %v1972_v19 }
  0xc1   :  { %1973 = vmatprep.subr.msk.bf16.mxu0 %vm1335_vm0, %v1972_v19 }
  0xc2   :  { %1481 = vmatmul.mubr.bf16.vlgmr.msra.gmra.mrb[0].mxu1 %v2347_v21 }
  0xc3   :  { %1640 = vmatmul.mubr.bf16.vlgmr.msra.gmra.mrb[0].mxu0 %v2350_v22  ;;  %1985 = vmatpush1.bf16.msra.mxu1 %v1337_v23 }
  0xc4   :  { %1661 = vmatpush1.bf16.msra.mxu0 %v1337_v23  ;;  %1490 = vmatprep.mubr.bf16.mxu1 %v2355_v24 }
  0xc5   :  { %1649 = vmatprep.mubr.bf16.mxu0 %v2357_v25 }
  0xca   :  { %1491 = vmatmul.mubr.bf16.gmra.mrb[4].mxu1 %v2359_v26 }
  0xcb   :  { %1650 = vmatmul.mubr.bf16.gmra.mrb[4].mxu0 %v2360_v27  ;;  %1702 = vmatprep.mubr.bf16.mxu1 %v2363_v28 }
  0xcc   :  { %1692 = vmatprep.mubr.bf16.mxu0 %v2363_v28 }
  0xd2   :  { %1975 = vmatmul.mubr.msk.bf16.vlgmr.msra.gmra.mrb[8].mxu1 %vm1328_vm1, %v2362_v30 }
  0xd3   :  { %1974 = vmatmul.mubr.msk.bf16.vlgmr.msra.gmra.mrb[0].mxu0 %vm1328_vm1, %v2361_v29 }
 0x195   :  { %v1482_v31 = vpop.f32.mrb[0].mxu1 }
 0x196   :  { %v1484_v32 = vpop.f32.mrb[1].mxu1 }
 0x197   :  { %v1486_v33 = vpop.f32.mrb[2].mxu1 }
 0x198   :  { %v1488_v34 = vpop.f32.mrb[3].mxu1 }
 0x19d   :  { %v1492_v35 = vpop.f32.mrb[4].mxu1 }
 0x19e   :  { %v1651_v36 = vpop.f32.mrb[4].mxu0  ;;  %v1494_v38 = vpop.f32.mrb[5].mxu1 }
 0x19f   :  { %v1990_v37 = vadd.f32 %v1651_v36, %v1492_v35  ;;  %v1653_v39 = vpop.f32.mrb[5].mxu0  ;;  %v1496_v41 = vpop.f32.mrb[6].mxu1 }
 0x1a0   :  { %v1992_v40 = vadd.f32 %v1653_v39, %v1494_v38  ;;  %v1655_v42 = vpop.f32.mrb[6].mxu0  ;;  %v1498_v44 = vpop.f32.mrb[7].mxu1 }
 0x1a1   :  { %v1994_v43 = vadd.f32 %v1655_v42, %v1496_v41  ;;  %v1657_v45 = vpop.f32.mrb[7].mxu0 }
 0x1a2   :  { %v1996_v46 = vadd.f32 %v1657_v45, %v1498_v44 }
 0x1a5   :  { %v1704_v48 = vpop.f32.mrb[8].mxu1 }
 0x1a6   :  { %v1694_v47 = vpop.f32.mrb[0].mxu0  ;;  %v1991_v50 = vadd.f32 %v1990_v37, %v1704_v48  ;;  %v1706_v52 = vpop.f32.mrb[9].mxu1 }
 0x1a7   :  { %v1986_v49 = vadd.f32 %v1694_v47, %v1482_v31  ;;  %v1696_v51 = vpop.f32.mrb[1].mxu0  ;;  %v1993_v54 = vadd.f32 %v1992_v40, %v1706_v52  ;;  %v1708_v56 = vpop.f32.mrb[10].mxu1 }
 0x1a8   :  { %v1987_v53 = vadd.f32 %v1696_v51, %v1484_v32  ;;  %v1698_v55 = vpop.f32.mrb[2].mxu0  ;;  %v1717_v58 = vmax.f32 %v1991_v50, 0.0  ;;  %v1995_v60 = vadd.f32 %v1994_v43, %v1708_v56  ;;  %v1710_v62 = vpop.f32.mrb[11].mxu1 }
 0x1a9   :  { %v1713_v57 = vmax.f32 %v1986_v49, 0.0  ;;  %v1988_v59 = vadd.f32 %v1698_v55, %v1486_v33  ;;  %v1700_v61 = vpop.f32.mrb[3].mxu0  ;;  %v1718_v0 = vmax.f32 %v1993_v54, 0.0  ;;  %v1997_v2 = vadd.f32 %v1996_v46, %v1710_v62 }
 0x1aa   :  { %v1714_v63 = vmax.f32 %v1987_v53, 0.0  ;;  %v1989_v1 = vadd.f32 %v1700_v61, %v1488_v34  ;;  %v1719_v4 = vmax.f32 %v1995_v60, 0.0 }
 0x1ab   :  { %v1715_v3 = vmax.f32 %v1988_v59, 0.0  ;;  %v1982_v6 = vpack.c.bf16 %v1718_v0, %v1717_v58  ;;  %v1720_v8 = vmax.f32 %v1997_v2, 0.0 }
 0x1ac   :  { %v1980_v5 = vpack.c.bf16 %v1714_v63, %v1713_v57  ;;  %v1716_v7 = vmax.f32 %v1989_v1, 0.0 }
 0x1ad   :  { %1747 = vst [vmem:[%s3050_s2 + $0x10] sm:$0xff] %v1982_v6  ;;  %v1983_v10 = vpack.c.bf16 %v1720_v8, %v1719_v4 }
 0x1ae   :  { %1745 = vst [vmem:[%s3050_s2] sm:$0xff] %v1980_v5  ;;  %v1981_v9 = vpack.c.bf16 %v1716_v7, %v1715_v3 }
 0x1af   :  { %1748 = vst [vmem:[%s3050_s2 + $0x18] sm:$0xff] %v1983_v10 }
 0x1b0   :  { %1746 = vst [vmem:[%s3050_s2 + $0x8] sm:$0xff] %v1981_v9 }

// kernel: light_flow_net.26
= control target key start
LH: loop header
LB: loop body
LE: loop exit
PB: predicated region body
PF: predicated region fallthrough
CT: control target
= control target key end

     0   :  { %vm34_vm0 = vcmask 1043456   ;;  %vm27_vm1 = vcmask 64512   ;;  %vm103_vm2 = vcmask 60416   ;;  %s172_s1 = inlined_call_operand.vmem [shape: bf16[8,8], index: 1, kind: input, shape index: {}]   ;;  %s173_s0 = inlined_call_operand.vmem [shape: bf16[32,8], index: 0, kind: input, shape index: {}]   ;;  %s174_s2 = inlined_call_operand.vmem [shape: bf16[32,8], index: 2, kind: output, shape index: {}]  }
   0x1   :  { %v16_v0 = vld [vmem:[%s172_s1] sm:$0xf]  ;;  %v135_v3 = vld [vmem:[%s173_s0 + $0x8] sm:$0xff]  }
   0x2   :  { %133 = vmatprep.subr.msk.bf16.mxu0 %vm34_vm0, %v16_v0  ;;  %v36_v1 = vsel %vm34_vm0, %v16_v0, 0  ;;  %v134_v2 = vld [vmem:[%s173_s0] sm:$0xff]  }
   0x3   :  { %128 = vmatpush3.bf16.msra.mxu0 %v36_v1  ;;  %129 = vmatprep.mubr.msk.bf16.mxu0 %vm27_vm1, %v134_v2 }
   0x6   :  { %130 = vmatmul.mubr.msk.bf16.vlgmr.msra.gmra.mrb[0].mxu0 %vm27_vm1, %v135_v3 }
  0xd9   :  { %v131_v4 = vpop.f32.mrb[0].mxu0 }
  0xda   :  { %v122_v5 = vpack.c.bf16 %v131_v4, %v131_v4  ;;  %v72_v6 = vpop.f32.mrb[1].mxu0 }
  0xdb   :  { %v120_v7 = vpack.c.bf16 %v72_v6, %v72_v6  ;;  %v132_v8 = vpop.f32.mrb[2].mxu0 }
  0xdc   :  { %106 = vst.msk [vmem:[%s174_s2 + $0x8] sm:$0xf] %vm103_vm2, %v122_v5  ;;  %v123_v9 = vpack.c.bf16 %v132_v8, %v132_v8  ;;  %v75_v10 = vpop.f32.mrb[3].mxu0 }
  0xdd   :  { %104 = vst.msk [vmem:[%s174_s2] sm:$0xf] %vm103_vm2, %v120_v7  ;;  %v121_v11 = vpack.c.bf16 %v75_v10, %v75_v10 }
  0xde   :  { %107 = vst.msk [vmem:[%s174_s2 + $0xc] sm:$0xf] %vm103_vm2, %v123_v9 }
  0xdf   :  { %105 = vst.msk [vmem:[%s174_s2 + $0x4] sm:$0xf] %vm103_vm2, %v121_v11 }

// kernel: light_flow_net.28
= control target key start
LH: loop header
LB: loop body
LE: loop exit
PB: predicated region body
PF: predicated region fallthrough
CT: control target
= control target key end

     0   :  { %v544_v0 = vmov 0   ;;  %vm200_vm0 = vcmask 539648   ;;  %vm225_vm1 = vcmask 1040384   ;;  %vm390_vm2 = vcmask 404480   ;;  %s745_s1 = inlined_call_operand.vmem [shape: bf16[194,50], index: 1, kind: input, shape index: {}]   ;;  %s746_s0 = inlined_call_operand.vmem [shape: bf16[128,194], index: 0, kind: input, shape index: {}]   ;;  %s747_s2 = inlined_call_operand.vmem [shape: bf16[128,50], index: 2, kind: output, shape index: {}]  }
   0x1   :  { %229 = vmatprep.subr.bf16.mxu0 %v544_v0  ;;  %480 = vmatprep.subr.bf16.mxu1 %v544_v0  ;;  %v507_v1 = vld [vmem:[%s745_s1] sm:$0xff]   ;;  %v508_v2 = vld [vmem:[%s745_s1 + $0x8] sm:$0xff]   ;;  %v509_v3 = vld [vmem:[%s745_s1 + $0x10] sm:$0xff]  }
   0x2   :  { %230 = vmatpush1.bf16.msra.mxu0 %v507_v1  ;;  %493 = vmatpush1.bf16.msra.mxu1 %v507_v1  ;;  %v510_v4 = vld [vmem:[%s745_s1 + $0x18] sm:$0xff]   ;;  %v522_v5 = vld [vmem:[%s746_s0 + $0x4] ss:$8 sps:$4 sm:$0xff]   ;;  %v513_v9 = vld [vmem:[%s745_s1 + $0x30] sm:$0xff]  }
   0x3   :  { %231 = vmatprep.subr.bf16.mxu0 %v544_v0  ;;  %481 = vmatprep.subr.bf16.mxu1 %v544_v0  ;;  %v511_v6 = vld [vmem:[%s745_s1 + $0x20] sm:$0xff]   ;;  %v512_v8 = vld [vmem:[%s745_s1 + $0x28] sm:$0xff]   ;;  %v514_v10 = vld [vmem:[%s745_s1 + $0x38] sm:$0xff]  }
   0x4   :  { %v525_v7 = vld [vmem:[%s746_s0 + $0x44] ss:$8 sps:$4 sm:$0xff]   ;;  %440 = vmatprep.mubr.msk.bf16.mxu0 %vm200_vm0, %v522_v5  ;;  %v517_v13 = vld [vmem:[%s745_s1 + $0x50] sm:$0xff]   ;;  %v518_v14 = vld [vmem:[%s745_s1 + $0x58] sm:$0xff]  }
   0x5   :  { %444 = vmatprep.mubr.msk.bf16.mxu1 %vm200_vm0, %v525_v7  ;;  %v515_v11 = vld [vmem:[%s745_s1 + $0x40] sm:$0xff]   ;;  %v516_v12 = vld [vmem:[%s745_s1 + $0x48] sm:$0xff]   ;;  %v526_v19 = vld [vmem:[%s746_s0 + $0x14] ss:$8 sps:$4 sm:$0xff]  }
   0x6   :  { %232 = vmatpush1.bf16.msra.mxu0 %v508_v2  ;;  %494 = vmatpush1.bf16.msra.mxu1 %v508_v2  ;;  %v519_v15 = vld [vmem:[%s745_s1 + $0x60] ss:$0 sps:$4 sm:$0x11]   ;;  %v528_v20 = vld [vmem:[%s746_s0 + $0x54] ss:$8 sps:$4 sm:$0xff]  }
   0x7   :  { %233 = vmatprep.subr.bf16.mxu0 %v544_v0  ;;  %482 = vmatprep.subr.bf16.mxu1 %v544_v0  ;;  %v227_v16 = vsel %vm225_vm1, %v519_v15, 0  ;;  %v520_v17 = vld [vmem:[%s746_s0] ss:$8 sps:$4 sm:$0xff]   ;;  %v530_v21 = vld [vmem:[%s746_s0 + $0x10] ss:$8 sps:$4 sm:$0xff]  }
   0x8   :  { %v523_v18 = vld [vmem:[%s746_s0 + $0x40] ss:$8 sps:$4 sm:$0xff]   ;;  %v531_v22 = vld [vmem:[%s746_s0 + $0x50] ss:$8 sps:$4 sm:$0xff]   ;;  %v532_v23 = vld [vmem:[%s746_s0 + $0x24] ss:$8 sps:$4 sm:$0xff]  }
   0x9   :  { %v534_v24 = vld [vmem:[%s746_s0 + $0x64] ss:$8 sps:$4 sm:$0xff]   ;;  %v536_v25 = vld [vmem:[%s746_s0 + $0x20] ss:$8 sps:$4 sm:$0xff]   ;;  %v538_v27 = vld [vmem:[%s746_s0 + $0x34] ss:$8 sps:$4 sm:$0xff]  }
   0xa   :  { %234 = vmatpush1.bf16.msra.mxu0 %v509_v3  ;;  %495 = vmatpush1.bf16.msra.mxu1 %v509_v3  ;;  %v537_v26 = vld [vmem:[%s746_s0 + $0x60] ss:$8 sps:$4 sm:$0xff]   ;;  %v540_v28 = vld [vmem:[%s746_s0 + $0x74] ss:$8 sps:$4 sm:$0xff]   ;;  %v542_v29 = vld [vmem:[%s746_s0 + $0x30] ss:$8 sps:$4 sm:$0xff]  }
   0xb   :  { %235 = vmatprep.subr.bf16.mxu0 %v544_v0  ;;  %483 = vmatprep.subr.bf16.mxu1 %v544_v0  ;;  %v543_v30 = vld [vmem:[%s746_s0 + $0x70] ss:$8 sps:$4 sm:$0xff]  }
   0xe   :  { %236 = vmatpush1.bf16.msra.mxu0 %v510_v4  ;;  %496 = vmatpush1.bf16.msra.mxu1 %v510_v4 }
   0xf   :  { %237 = vmatprep.subr.bf16.mxu0 %v544_v0  ;;  %484 = vmatprep.subr.bf16.mxu1 %v544_v0 }
  0x12   :  { %238 = vmatpush1.bf16.msra.mxu0 %v511_v6  ;;  %497 = vmatpush1.bf16.msra.mxu1 %v511_v6 }
  0x13   :  { %239 = vmatprep.subr.bf16.mxu0 %v544_v0  ;;  %485 = vmatprep.subr.bf16.mxu1 %v544_v0 }
  0x16   :  { %240 = vmatpush1.bf16.msra.mxu0 %v512_v8  ;;  %498 = vmatpush1.bf16.msra.mxu1 %v512_v8 }
  0x17   :  { %241 = vmatprep.subr.bf16.mxu0 %v544_v0  ;;  %486 = vmatprep.subr.bf16.mxu1 %v544_v0 }
  0x1a   :  { %242 = vmatpush1.bf16.msra.mxu0 %v513_v9  ;;  %499 = vmatpush1.bf16.msra.mxu1 %v513_v9 }
  0x1b   :  { %243 = vmatprep.subr.bf16.mxu0 %v544_v0  ;;  %487 = vmatprep.subr.bf16.mxu1 %v544_v0 }
  0x1e   :  { %244 = vmatpush1.bf16.msra.mxu0 %v514_v10  ;;  %500 = vmatpush1.bf16.msra.mxu1 %v514_v10 }
  0x1f   :  { %245 = vmatprep.subr.bf16.mxu0 %v544_v0  ;;  %488 = vmatprep.subr.bf16.mxu1 %v544_v0 }
  0x22   :  { %246 = vmatpush1.bf16.msra.mxu0 %v515_v11  ;;  %501 = vmatpush1.bf16.msra.mxu1 %v515_v11 }
  0x23   :  { %247 = vmatprep.subr.bf16.mxu0 %v544_v0  ;;  %489 = vmatprep.subr.bf16.mxu1 %v544_v0 }
  0x26   :  { %248 = vmatpush1.bf16.msra.mxu0 %v516_v12  ;;  %502 = vmatpush1.bf16.msra.mxu1 %v516_v12 }
  0x27   :  { %249 = vmatprep.subr.bf16.mxu0 %v544_v0  ;;  %490 = vmatprep.subr.bf16.mxu1 %v544_v0 }
  0x2a   :  { %250 = vmatpush1.bf16.msra.mxu0 %v517_v13  ;;  %503 = vmatpush1.bf16.msra.mxu1 %v517_v13 }
  0x2b   :  { %251 = vmatprep.subr.bf16.mxu0 %v544_v0  ;;  %491 = vmatprep.subr.bf16.mxu1 %v544_v0 }
  0x2e   :  { %252 = vmatpush1.bf16.msra.mxu0 %v518_v14  ;;  %504 = vmatpush1.bf16.msra.mxu1 %v518_v14 }
  0x2f   :  { %253 = vmatprep.subr.bf16.mxu0 %v544_v0  ;;  %492 = vmatprep.subr.bf16.mxu1 %v544_v0 }
  0x32   :  { %254 = vmatpush1.bf16.msra.mxu0 %v227_v16  ;;  %505 = vmatpush1.bf16.msra.mxu1 %v227_v16 }
  0x35   :  { %262 = vmatmul.mubr.bf16.vlgmr.msra.gmra.mrb[0].mxu0 %v520_v17  ;;  %294 = vmatmul.mubr.bf16.vlgmr.msra.gmra.mrb[0].mxu1 %v523_v18 }
  0x36   :  { %441 = vmatprep.mubr.msk.bf16.mxu0 %vm200_vm0, %v526_v19  ;;  %445 = vmatprep.mubr.msk.bf16.mxu1 %vm200_vm0, %v528_v20 }
  0x3d   :  { %270 = vmatmul.mubr.bf16.gmra.mrb[4].mxu0 %v530_v21  ;;  %302 = vmatmul.mubr.bf16.gmra.mrb[4].mxu1 %v531_v22 }
  0x3e   :  { %442 = vmatprep.mubr.msk.bf16.mxu0 %vm200_vm0, %v532_v23  ;;  %446 = vmatprep.mubr.msk.bf16.mxu1 %vm200_vm0, %v534_v24 }
  0x45   :  { %278 = vmatmul.mubr.bf16.gmra.mrb[8].mxu0 %v536_v25  ;;  %310 = vmatmul.mubr.bf16.gmra.mrb[8].mxu1 %v537_v26 }
  0x46   :  { %443 = vmatprep.mubr.msk.bf16.mxu0 %vm200_vm0, %v538_v27  ;;  %447 = vmatprep.mubr.msk.bf16.mxu1 %vm200_vm0, %v540_v28 }
  0x4d   :  { %286 = vmatmul.mubr.bf16.gmra.mrb[12].mxu0 %v542_v29  ;;  %318 = vmatmul.mubr.bf16.gmra.mrb[12].mxu1 %v543_v30 }
 0x108   :  { %v263_v31 = vpop.f32.mrb[0].mxu0  ;;  %v295_v32 = vpop.f32.mrb[0].mxu1 }
 0x109   :  { %v464_v33 = vpack.c.bf16 %v263_v31, %v263_v31  ;;  %v472_v34 = vpack.c.bf16 %v295_v32, %v295_v32  ;;  %v265_v35 = vpop.f32.mrb[1].mxu0  ;;  %v297_v36 = vpop.f32.mrb[1].mxu1 }
 0x10a   :  { %v266_v37 = vpop.f32.mrb[2].mxu0  ;;  %v298_v38 = vpop.f32.mrb[2].mxu1 }
 0x10b   :  { %391 = vst.msk [vmem:[%s747_s2] sm:$0xf] %vm390_vm2, %v464_v33  ;;  %399 = vst.msk [vmem:[%s747_s2 + $0x20] sm:$0xf] %vm390_vm2, %v472_v34  ;;  %v465_v39 = vpack.c.bf16 %v266_v37, %v266_v37  ;;  %v473_v40 = vpack.c.bf16 %v298_v38, %v298_v38  ;;  %v268_v41 = vpop.f32.mrb[3].mxu0  ;;  %v300_v42 = vpop.f32.mrb[3].mxu1 }
 0x10d   :  { %392 = vst.msk [vmem:[%s747_s2 + $0x4] sm:$0xf] %vm390_vm2, %v465_v39  ;;  %400 = vst.msk [vmem:[%s747_s2 + $0x24] sm:$0xf] %vm390_vm2, %v473_v40 }
 0x110   :  { %v271_v43 = vpop.f32.mrb[4].mxu0  ;;  %v303_v44 = vpop.f32.mrb[4].mxu1 }
 0x111   :  { %v466_v45 = vpack.c.bf16 %v271_v43, %v271_v43  ;;  %v474_v46 = vpack.c.bf16 %v303_v44, %v303_v44  ;;  %v273_v47 = vpop.f32.mrb[5].mxu0  ;;  %v305_v48 = vpop.f32.mrb[5].mxu1 }
 0x112   :  { %v274_v49 = vpop.f32.mrb[6].mxu0  ;;  %v306_v50 = vpop.f32.mrb[6].mxu1 }
 0x113   :  { %393 = vst.msk [vmem:[%s747_s2 + $0x8] sm:$0xf] %vm390_vm2, %v466_v45  ;;  %401 = vst.msk [vmem:[%s747_s2 + $0x28] sm:$0xf] %vm390_vm2, %v474_v46  ;;  %v467_v51 = vpack.c.bf16 %v274_v49, %v274_v49  ;;  %v475_v52 = vpack.c.bf16 %v306_v50, %v306_v50  ;;  %v276_v53 = vpop.f32.mrb[7].mxu0  ;;  %v308_v54 = vpop.f32.mrb[7].mxu1 }
 0x115   :  { %394 = vst.msk [vmem:[%s747_s2 + $0xc] sm:$0xf] %vm390_vm2, %v467_v51  ;;  %402 = vst.msk [vmem:[%s747_s2 + $0x2c] sm:$0xf] %vm390_vm2, %v475_v52 }
 0x118   :  { %v279_v55 = vpop.f32.mrb[8].mxu0  ;;  %v311_v56 = vpop.f32.mrb[8].mxu1 }
 0x119   :  { %v468_v57 = vpack.c.bf16 %v279_v55, %v279_v55  ;;  %v476_v58 = vpack.c.bf16 %v311_v56, %v311_v56  ;;  %v281_v59 = vpop.f32.mrb[9].mxu0  ;;  %v313_v60 = vpop.f32.mrb[9].mxu1 }
 0x11a   :  { %v282_v61 = vpop.f32.mrb[10].mxu0  ;;  %v314_v62 = vpop.f32.mrb[10].mxu1 }
 0x11b   :  { %395 = vst.msk [vmem:[%s747_s2 + $0x10] sm:$0xf] %vm390_vm2, %v468_v57  ;;  %403 = vst.msk [vmem:[%s747_s2 + $0x30] sm:$0xf] %vm390_vm2, %v476_v58  ;;  %v469_v63 = vpack.c.bf16 %v282_v61, %v282_v61  ;;  %v477_v0 = vpack.c.bf16 %v314_v62, %v314_v62  ;;  %v284_v1 = vpop.f32.mrb[11].mxu0  ;;  %v316_v2 = vpop.f32.mrb[11].mxu1 }
 0x11d   :  { %396 = vst.msk [vmem:[%s747_s2 + $0x14] sm:$0xf] %vm390_vm2, %v469_v63  ;;  %404 = vst.msk [vmem:[%s747_s2 + $0x34] sm:$0xf] %vm390_vm2, %v477_v0 }
 0x120   :  { %v287_v3 = vpop.f32.mrb[12].mxu0  ;;  %v319_v4 = vpop.f32.mrb[12].mxu1 }
 0x121   :  { %v470_v5 = vpack.c.bf16 %v287_v3, %v287_v3  ;;  %v478_v6 = vpack.c.bf16 %v319_v4, %v319_v4  ;;  %v289_v7 = vpop.f32.mrb[13].mxu0  ;;  %v321_v8 = vpop.f32.mrb[13].mxu1 }
 0x122   :  { %v290_v9 = vpop.f32.mrb[14].mxu0  ;;  %v322_v10 = vpop.f32.mrb[14].mxu1 }
 0x123   :  { %397 = vst.msk [vmem:[%s747_s2 + $0x18] sm:$0xf] %vm390_vm2, %v470_v5  ;;  %405 = vst.msk [vmem:[%s747_s2 + $0x38] sm:$0xf] %vm390_vm2, %v478_v6  ;;  %v471_v11 = vpack.c.bf16 %v290_v9, %v290_v9  ;;  %v479_v12 = vpack.c.bf16 %v322_v10, %v322_v10  ;;  %v292_v13 = vpop.f32.mrb[15].mxu0  ;;  %v324_v14 = vpop.f32.mrb[15].mxu1 }
 0x125   :  { %398 = vst.msk [vmem:[%s747_s2 + $0x1c] sm:$0xf] %vm390_vm2, %v471_v11  ;;  %406 = vst.msk [vmem:[%s747_s2 + $0x3c] sm:$0xf] %vm390_vm2, %v479_v12 }

// kernel: light_flow_net.29
= control target key start
LH: loop header
LB: loop body
LE: loop exit
PB: predicated region body
PF: predicated region fallthrough
CT: control target
= control target key end

     0   :  { %s1063_s6 = smov 0   ;;  %s1131_s0 = inlined_call_operand.vmem [shape: bf16[2,8,8,50], index: 0, kind: input, shape index: {}]   ;;  %s1132_s1 = inlined_call_operand.vmem [shape: f32[2,4,4,2], index: 1, kind: output, shape index: {}]  }
   0x1 LB: > { %s621_s7 = sadd.s32 4294967295, %s1027_s6   ;;  %p625_p0 = scmp.ge.s32.totalorder %s1027_s6, 1  ;;  %s1027_s6 = sphi %s1063_s6, %s11_s6  }
   0x2   : > { %p87_p1 = scmp.lt.s32.totalorder %s1027_s6, 3 }
   0x4   : > { %p88_p2 = pnand %p625_p0, %p87_p1 }
   0x5   : > { %p107_p3 = scmp.lt.s32.totalorder (!%p88_p2), %s621_s7, 1  ;;  %s1029_s12 = smov (!%p88_p2), 124   ;;  %vm561_vm0 = vcmask (!%p88_p2), 11264  }
   0x6   : > { %91 = sbr.rel (%p88_p2) target bundleno = 234 (0xea), region = 24  ;;  %s1030_s13 = smov (!%p88_p2), 126  }
   0x7   : > { %s1031_s14 = smov (!%p88_p2), 122   ;;  %s1032_s15 = smov (!%p88_p2), 120  }
   0x8   : > { %s1033_s16 = smov (!%p88_p2), 118   ;;  %s1034_s17 = smov (!%p88_p2), 116  }
   0x9   : > { %s1035_s18 = smov (!%p88_p2), 114   ;;  %s1036_s19 = smov (!%p88_p2), 112  }
   0xa   : > { %s1037_s20 = smov (!%p88_p2), 110   ;;  %s1038_s21 = smov (!%p88_p2), 108  }
   0xb   : > { %s1039_s22 = smov (!%p88_p2), 106   ;;  %s1040_s23 = smov (!%p88_p2), 104  }
   0xc   : > { %s1041_s24 = smov (!%p88_p2), 102   ;;  %s1042_s25 = smov (!%p88_p2), 100  }
   0xd   : > { %s1134_s7 = smov (!%p107_p3, %s621_s7), 1  ;;  %s1043_s26 = smov 98  }
   0xe   : > { %s632_s8 = sshll.u32 %s1134_s7, 5  ;;  %s1044_s27 = smov 96  }
   0xf   : > { %s1077_s11 = scalar_lea.vmem %s1131_s0, %s632_s8  ;;  %s1045_s28 = smov 94  }
  0x10   : > { %v635_v0 = vld [vmem:[%s1077_s11] sm:$0xff]   ;;  %v650_v1 = vld [vmem:[%s1077_s11 + $0x8] sm:$0xff]   ;;  %v651_v28 = vld [vmem:[%s1077_s11 + $0x10] sm:$0xff]   ;;  %s1046_s29 = smov 92   ;;  %s1047_s30 = smov 90  }
  0x11   : > { %v1081_v2 = vunpack.c.l.bf16 %v635_v0  ;;  %v1083_v3 = vunpack.c.h.bf16 %v635_v0  ;;  %v1085_v4 = vunpack.c.l.bf16 %v650_v1  ;;  %v1087_v5 = vunpack.c.h.bf16 %v650_v1  ;;  %v652_v56 = vld [vmem:[%s1077_s11 + $0x18] sm:$0xff]   ;;  %s1048_s2 = smov 88   ;;  %s1049_s3 = smov 86  }
  0x12   : > { %v644_v29 = vunpack.c.l.bf16 %v651_v28  ;;  %v645_v44 = vunpack.c.h.bf16 %v651_v28  ;;  %v648_v58 = vunpack.c.l.bf16 %v652_v56  ;;  %s1050_s4 = smov 84   ;;  %s1051_s5 = smov 82  }
  0x13   : > { %v157_v6 = vrot.slane %v1081_v2, 2  ;;  %v158_v7 = vrot.slane %v1083_v3, 2  ;;  %v137_v8 = vrot.slane %v1081_v2, 1  ;;  %v138_v9 = vrot.slane %v1083_v3, 1  ;;  %s1052_s8 = smov 80   ;;  %s633_s9 = sshll.u32 %s1134_s7, 4 }
  0x14   : > { %v159_v10 = vrot.slane %v1085_v4, 2  ;;  %v160_v11 = vrot.slane %v1087_v5, 2  ;;  %v139_v12 = vrot.slane %v1085_v4, 1  ;;  %v140_v13 = vrot.slane %v1087_v5, 1 }
  0x15   : > { %v695_v14 = vpack.i.bf16 %v158_v7, %v157_v6  ;;  %v685_v15 = vpack.i.bf16 %v138_v9, %v137_v8  ;;  %v179_v16 = vrot.slane %v1085_v4, 3  ;;  %v180_v17 = vrot.slane %v1087_v5, 3 }
  0x16   : > { %v1099_v18 = vpack.i.bf16 %v160_v11, %v159_v10  ;;  %v690_v19 = vpack.i.bf16 %v140_v13, %v139_v12  ;;  %v177_v20 = vrot.slane %v1081_v2, 3  ;;  %v178_v21 = vrot.slane %v1083_v3, 3 }
  0x17   : > { %696 = vrot.lane.b32.xlu1 %v695_v14, %s1029_s12  ;;  %686 = vrot.lane.b32.xlu0 %v685_v15, %s1030_s13  ;;  %v1103_v22 = vpack.i.bf16 %v180_v17, %v179_v16  ;;  %v199_v23 = vrot.slane %v1085_v4, 4  ;;  %v200_v25 = vrot.slane %v1087_v5, 4  ;;  %v197_v26 = vrot.slane %v1081_v2, 4 }
  0x18   : > { %v705_v24 = vpack.i.bf16 %v178_v21, %v177_v20  ;;  %v198_v27 = vrot.slane %v1083_v3, 4  ;;  %v730_v32 = vpack.i.bf16 %v644_v29, %v1087_v5  ;;  %v725_v33 = vpack.i.bf16 %v1085_v4, %v1083_v3 }
  0x19   : > { %v720_v30 = vpack.i.bf16 %v200_v25, %v199_v23  ;;  %v235_v34 = vrot.slane %v644_v29, 1  ;;  %v735_v36 = vpack.i.bf16 %v139_v12, %v138_v9  ;;  %v252_v37 = vrot.slane %v644_v29, 2 }
  0x1a   : > { %v715_v31 = vpack.i.bf16 %v198_v27, %v197_v26  ;;  %v745_v39 = vpack.i.bf16 %v159_v10, %v158_v7  ;;  %v269_v40 = vrot.slane %v644_v29, 3  ;;  %v755_v42 = vpack.i.bf16 %v179_v16, %v178_v21 }
  0x1b   : > { %701 = vrot.lane.b32.xlu1 %v1099_v18, %s1029_s12  ;;  %691 = vrot.lane.b32.xlu0 %v690_v19, %s1030_s13  ;;  %v740_v35 = vpack.i.bf16 %v235_v34, %v140_v13  ;;  %v750_v38 = vpack.i.bf16 %v252_v37, %v160_v11  ;;  %v286_v43 = vrot.slane %v644_v29, 4  ;;  %v765_v46 = vpack.i.bf16 %v199_v23, %v198_v27  ;;  %s116_s12 = scalar_lea.vmem %s1132_s1, %s633_s9 }
  0x1c   : > { %v760_v41 = vpack.i.bf16 %v269_v40, %v180_v17  ;;  %v780_v47 = vpack.i.bf16 %v645_v44, %v644_v29  ;;  %v775_v48 = vpack.i.bf16 %v1087_v5, %v1085_v4  ;;  %v321_v49 = vrot.slane %v645_v44, 1 }
  0x1d   : > { %v770_v45 = vpack.i.bf16 %v286_v43, %v200_v25  ;;  %v338_v51 = vrot.slane %v645_v44, 2  ;;  %v355_v53 = vrot.slane %v645_v44, 3  ;;  %v372_v55 = vrot.slane %v645_v44, 4 }
  0x1e   : > { %v790_v50 = vpack.i.bf16 %v321_v49, %v235_v34  ;;  %v830_v59 = vpack.i.bf16 %v648_v58, %v645_v44  ;;  %v407_v60 = vrot.slane %v648_v58, 1  ;;  %v424_v62 = vrot.slane %v648_v58, 2 }
  0x1f   : > { %711 = vrot.lane.b32.xlu1 %v1103_v22, %s1031_s14  ;;  %706 = vrot.lane.b32.xlu0 %v705_v24, %s1031_s14  ;;  %v800_v52 = vpack.i.bf16 %v338_v51, %v252_v37  ;;  %v810_v54 = vpack.i.bf16 %v355_v53, %v269_v40  ;;  %v820_v57 = vpack.i.bf16 %v372_v55, %v286_v43  ;;  %v441_v0 = vrot.slane %v648_v58, 3 }
  0x20   : > { %v840_v61 = vpack.i.bf16 %v407_v60, %v321_v49  ;;  %v850_v63 = vpack.i.bf16 %v424_v62, %v338_v51  ;;  %v458_v6 = vrot.slane %v648_v58, 4  ;;  %v649_v8 = vunpack.c.h.bf16 %v652_v56 }
  0x21   : > { %v860_v1 = vpack.i.bf16 %v441_v0, %v355_v53 }
  0x22   : > { %v870_v7 = vpack.i.bf16 %v458_v6, %v372_v55  ;;  %v880_v9 = vpack.i.bf16 %v649_v8, %v648_v58  ;;  %v493_v10 = vrot.slane %v649_v8, 1  ;;  %v510_v12 = vrot.slane %v649_v8, 2 }
  0x23   : > { %721 = vrot.lane.b32.xlu1 %v720_v30, %s1032_s15  ;;  %716 = vrot.lane.b32.xlu0 %v715_v31, %s1032_s15  ;;  %v527_v14 = vrot.slane %v649_v8, 3  ;;  %v544_v16 = vrot.slane %v649_v8, 4 }
  0x24   : > { %v890_v11 = vpack.i.bf16 %v493_v10, %v407_v60  ;;  %v900_v13 = vpack.i.bf16 %v510_v12, %v424_v62 }
  0x25   : > { %v910_v15 = vpack.i.bf16 %v527_v14, %v441_v0  ;;  %v920_v17 = vpack.i.bf16 %v544_v16, %v458_v6 }
  0x27   : > { %731 = vrot.lane.b32.xlu1 %v730_v32, %s1033_s16  ;;  %726 = vrot.lane.b32.xlu0 %v725_v33, %s1033_s16 }
  0x2b   : > { %741 = vrot.lane.b32.xlu1 %v740_v35, %s1034_s17  ;;  %736 = vrot.lane.b32.xlu0 %v735_v36, %s1034_s17 }
  0x2f   : > { %751 = vrot.lane.b32.xlu1 %v750_v38, %s1035_s18  ;;  %746 = vrot.lane.b32.xlu0 %v745_v39, %s1035_s18 }
  0x33   : > { %761 = vrot.lane.b32.xlu1 %v760_v41, %s1036_s19  ;;  %756 = vrot.lane.b32.xlu0 %v755_v42, %s1036_s19 }
  0x37   : > { %771 = vrot.lane.b32.xlu1 %v770_v45, %s1037_s20  ;;  %766 = vrot.lane.b32.xlu0 %v765_v46, %s1037_s20 }
  0x3b   : > { %781 = vrot.lane.b32.xlu1 %v780_v47, %s1038_s21  ;;  %776 = vrot.lane.b32.xlu0 %v775_v48, %s1038_s21 }
  0x3f   : > { %791 = vrot.lane.b32.xlu1 %v790_v50, %s1039_s22  ;;  %786 = vrot.lane.b32.xlu0 %v690_v19, %s1039_s22 }
  0x43   : > { %801 = vrot.lane.b32.xlu1 %v800_v52, %s1040_s23  ;;  %796 = vrot.lane.b32.xlu0 %v1099_v18, %s1040_s23 }
  0x47   : > { %811 = vrot.lane.b32.xlu1 %v810_v54, %s1041_s24  ;;  %806 = vrot.lane.b32.xlu0 %v1103_v22, %s1041_s24 }
  0x4b   : > { %821 = vrot.lane.b32.xlu1 %v820_v57, %s1042_s25  ;;  %816 = vrot.lane.b32.xlu0 %v720_v30, %s1042_s25 }
  0x4f   : > { %831 = vrot.lane.b32.xlu1 %v830_v59, %s1043_s26  ;;  %826 = vrot.lane.b32.xlu0 %v730_v32, %s1043_s26 }
  0x53   : > { %841 = vrot.lane.b32.xlu1 %v840_v61, %s1044_s27  ;;  %836 = vrot.lane.b32.xlu0 %v740_v35, %s1044_s27 }
  0x57   : > { %851 = vrot.lane.b32.xlu1 %v850_v63, %s1045_s28  ;;  %846 = vrot.lane.b32.xlu0 %v750_v38, %s1045_s28 }
  0x5b   : > { %861 = vrot.lane.b32.xlu1 %v860_v1, %s1046_s29  ;;  %856 = vrot.lane.b32.xlu0 %v760_v41, %s1046_s29 }
  0x5f   : > { %871 = vrot.lane.b32.xlu1 %v870_v7, %s1047_s30  ;;  %866 = vrot.lane.b32.xlu0 %v770_v45, %s1047_s30 }
  0x63   : > { %881 = vrot.lane.b32.xlu1 %v880_v9, %s1048_s2  ;;  %876 = vrot.lane.b32.xlu0 %v780_v47, %s1048_s2 }
  0x67   : > { %891 = vrot.lane.b32.xlu1 %v890_v11, %s1049_s3  ;;  %886 = vrot.lane.b32.xlu0 %v790_v50, %s1049_s3 }
  0x6b   : > { %901 = vrot.lane.b32.xlu1 %v900_v13, %s1050_s4  ;;  %896 = vrot.lane.b32.xlu0 %v800_v52, %s1050_s4 }
  0x6f   : > { %911 = vrot.lane.b32.xlu1 %v910_v15, %s1051_s5  ;;  %906 = vrot.lane.b32.xlu0 %v810_v54, %s1051_s5 }
  0x73   : > { %921 = vrot.lane.b32.xlu1 %v920_v17, %s1052_s8  ;;  %916 = vrot.lane.b32.xlu0 %v820_v57, %s1052_s8 }
  0x89   : > { %v697_v18 = vpop.permute.xlu1 %696  ;;  %v687_v19 = vpop.permute.xlu0 %686 }
  0x8a   : > { %v927_v38 = vadd.high.f32.bf16 %v1083_v3, %v687_v19  ;;  %v928_v39 = vadd.low.f32.bf16 %v1081_v2, %v687_v19 }
  0x8c   : > { %v931_v44 = vadd.low.f32.bf16 %v928_v39, %v697_v18  ;;  %v932_v45 = vadd.high.f32.bf16 %v927_v38, %v697_v18 }
  0x8d   : > { %v702_v20 = vpop.permute.xlu1 %701  ;;  %v692_v21 = vpop.permute.xlu0 %691 }
  0x8e   : > { %v925_v36 = vadd.high.f32.bf16 %v1087_v5, %v692_v21  ;;  %v926_v37 = vadd.low.f32.bf16 %v1085_v4, %v692_v21 }
  0x90   : > { %v929_v42 = vadd.low.f32.bf16 %v926_v37, %v702_v20  ;;  %v930_v43 = vadd.high.f32.bf16 %v925_v36, %v702_v20 }
  0x91   : > { %v712_v22 = vpop.permute.xlu1 %711  ;;  %v707_v23 = vpop.permute.xlu0 %706 }
  0x92   : > { %v933_v48 = vadd.low.f32.bf16 %v929_v42, %v712_v22  ;;  %v934_v49 = vadd.high.f32.bf16 %v930_v43, %v712_v22  ;;  %v935_v50 = vadd.low.f32.bf16 %v931_v44, %v707_v23  ;;  %v936_v51 = vadd.high.f32.bf16 %v932_v45, %v707_v23 }
  0x95   : > { %v722_v24 = vpop.permute.xlu1 %721  ;;  %v717_v25 = vpop.permute.xlu0 %716 }
  0x96   : > { %v937_v53 = vadd.low.f32.bf16 %v933_v48, %v722_v24  ;;  %v938_v4 = vadd.high.f32.bf16 %v934_v49, %v722_v24  ;;  %v939_v54 = vadd.low.f32.bf16 %v935_v50, %v717_v25  ;;  %v940_v3 = vadd.high.f32.bf16 %v936_v51, %v717_v25 }
  0x99   : > { %v732_v26 = vpop.permute.xlu1 %731  ;;  %v727_v27 = vpop.permute.xlu0 %726 }
  0x9a   : > { %v941_v55 = vadd.low.f32.bf16 %v937_v53, %v732_v26  ;;  %v942_v2 = vadd.high.f32.bf16 %v938_v4, %v732_v26  ;;  %v943_v56 = vadd.low.f32.bf16 %v939_v54, %v727_v27  ;;  %v944_v57 = vadd.high.f32.bf16 %v940_v3, %v727_v27 }
  0x9d   : > { %v742_v28 = vpop.permute.xlu1 %741  ;;  %v737_v29 = vpop.permute.xlu0 %736 }
  0x9e   : > { %v945_v60 = vadd.low.f32.bf16 %v941_v55, %v742_v28  ;;  %v946_v61 = vadd.high.f32.bf16 %v942_v2, %v742_v28  ;;  %v947_v62 = vadd.low.f32.bf16 %v943_v56, %v737_v29  ;;  %v948_v63 = vadd.high.f32.bf16 %v944_v57, %v737_v29 }
  0xa1   : > { %v752_v30 = vpop.permute.xlu1 %751  ;;  %v747_v31 = vpop.permute.xlu0 %746 }
  0xa2   : > { %v949_v6 = vadd.low.f32.bf16 %v945_v60, %v752_v30  ;;  %v950_v7 = vadd.high.f32.bf16 %v946_v61, %v752_v30  ;;  %v951_v8 = vadd.low.f32.bf16 %v947_v62, %v747_v31  ;;  %v952_v9 = vadd.high.f32.bf16 %v948_v63, %v747_v31 }
  0xa5   : > { %v762_v32 = vpop.permute.xlu1 %761  ;;  %v757_v33 = vpop.permute.xlu0 %756 }
  0xa6   : > { %v953_v10 = vadd.low.f32.bf16 %v949_v6, %v762_v32  ;;  %v954_v11 = vadd.high.f32.bf16 %v950_v7, %v762_v32  ;;  %v955_v12 = vadd.low.f32.bf16 %v951_v8, %v757_v33  ;;  %v956_v13 = vadd.high.f32.bf16 %v952_v9, %v757_v33 }
  0xa9   : > { %v772_v34 = vpop.permute.xlu1 %771  ;;  %v767_v35 = vpop.permute.xlu0 %766 }
  0xaa   : > { %v957_v16 = vadd.low.f32.bf16 %v953_v10, %v772_v34  ;;  %v958_v17 = vadd.high.f32.bf16 %v954_v11, %v772_v34  ;;  %v959_v18 = vadd.low.f32.bf16 %v955_v12, %v767_v35  ;;  %v960_v19 = vadd.high.f32.bf16 %v956_v13, %v767_v35 }
  0xad   : > { %v782_v40 = vpop.permute.xlu1 %781  ;;  %v777_v41 = vpop.permute.xlu0 %776 }
  0xae   : > { %v961_v20 = vadd.low.f32.bf16 %v957_v16, %v782_v40  ;;  %v962_v21 = vadd.high.f32.bf16 %v958_v17, %v782_v40  ;;  %v963_v22 = vadd.low.f32.bf16 %v959_v18, %v777_v41  ;;  %v964_v23 = vadd.high.f32.bf16 %v960_v19, %v777_v41 }
  0xb1   : > { %v792_v46 = vpop.permute.xlu1 %791  ;;  %v787_v47 = vpop.permute.xlu0 %786 }
  0xb2   : > { %v965_v26 = vadd.low.f32.bf16 %v961_v20, %v792_v46  ;;  %v966_v27 = vadd.high.f32.bf16 %v962_v21, %v792_v46  ;;  %v967_v28 = vadd.low.f32.bf16 %v963_v22, %v787_v47  ;;  %v968_v29 = vadd.high.f32.bf16 %v964_v23, %v787_v47 }
  0xb5   : > { %v802_v52 = vpop.permute.xlu1 %801  ;;  %v797_v5 = vpop.permute.xlu0 %796 }
  0xb6   : > { %v969_v32 = vadd.low.f32.bf16 %v965_v26, %v802_v52  ;;  %v970_v33 = vadd.high.f32.bf16 %v966_v27, %v802_v52  ;;  %v971_v36 = vadd.low.f32.bf16 %v967_v28, %v797_v5  ;;  %v972_v37 = vadd.high.f32.bf16 %v968_v29, %v797_v5 }
  0xb9   : > { %v812_v58 = vpop.permute.xlu1 %811  ;;  %v807_v59 = vpop.permute.xlu0 %806 }
  0xba   : > { %v973_v38 = vadd.low.f32.bf16 %v969_v32, %v812_v58  ;;  %v974_v34 = vadd.high.f32.bf16 %v970_v33, %v812_v58  ;;  %v975_v39 = vadd.low.f32.bf16 %v971_v36, %v807_v59  ;;  %v976_v35 = vadd.high.f32.bf16 %v972_v37, %v807_v59 }
  0xbd   : > { %v822_v0 = vpop.permute.xlu1 %821  ;;  %v817_v1 = vpop.permute.xlu0 %816 }
  0xbe   : > { %v977_v43 = vadd.low.f32.bf16 %v973_v38, %v822_v0  ;;  %v978_v41 = vadd.high.f32.bf16 %v974_v34, %v822_v0  ;;  %v979_v44 = vadd.low.f32.bf16 %v975_v39, %v817_v1  ;;  %v980_v45 = vadd.high.f32.bf16 %v976_v35, %v817_v1 }
  0xc1   : > { %v832_v14 = vpop.permute.xlu1 %831  ;;  %v827_v15 = vpop.permute.xlu0 %826 }
  0xc2   : > { %v981_v49 = vadd.low.f32.bf16 %v977_v43, %v832_v14  ;;  %v982_v47 = vadd.high.f32.bf16 %v978_v41, %v832_v14  ;;  %v983_v50 = vadd.low.f32.bf16 %v979_v44, %v827_v15  ;;  %v984_v51 = vadd.high.f32.bf16 %v980_v45, %v827_v15 }
  0xc5   : > { %v842_v24 = vpop.permute.xlu1 %841  ;;  %v837_v25 = vpop.permute.xlu0 %836 }
  0xc6   : > { %v985_v53 = vadd.low.f32.bf16 %v981_v49, %v842_v24  ;;  %v986_v52 = vadd.high.f32.bf16 %v982_v47, %v842_v24  ;;  %v987_v4 = vadd.low.f32.bf16 %v983_v50, %v837_v25  ;;  %v988_v5 = vadd.high.f32.bf16 %v984_v51, %v837_v25 }
  0xc9   : > { %v852_v30 = vpop.permute.xlu1 %851  ;;  %v847_v31 = vpop.permute.xlu0 %846 }
  0xca   : > { %v989_v55 = vadd.low.f32.bf16 %v985_v53, %v852_v30  ;;  %v990_v2 = vadd.high.f32.bf16 %v986_v52, %v852_v30  ;;  %v991_v56 = vadd.low.f32.bf16 %v987_v4, %v847_v31  ;;  %v992_v57 = vadd.high.f32.bf16 %v988_v5, %v847_v31 }
  0xcd   : > { %v862_v42 = vpop.permute.xlu1 %861  ;;  %v857_v40 = vpop.permute.xlu0 %856 }
  0xce   : > { %v993_v58 = vadd.low.f32.bf16 %v989_v55, %v862_v42  ;;  %v994_v59 = vadd.high.f32.bf16 %v990_v2, %v862_v42  ;;  %v995_v60 = vadd.low.f32.bf16 %v991_v56, %v857_v40  ;;  %v996_v61 = vadd.high.f32.bf16 %v992_v57, %v857_v40 }
  0xd1   : > { %v872_v48 = vpop.permute.xlu1 %871  ;;  %v867_v46 = vpop.permute.xlu0 %866 }
  0xd2   : > { %v997_v0 = vadd.low.f32.bf16 %v993_v58, %v872_v48  ;;  %v998_v1 = vadd.high.f32.bf16 %v994_v59, %v872_v48  ;;  %v999_v6 = vadd.low.f32.bf16 %v995_v60, %v867_v46  ;;  %v1000_v7 = vadd.high.f32.bf16 %v996_v61, %v867_v46 }
  0xd5   : > { %v882_v54 = vpop.permute.xlu1 %881  ;;  %v877_v3 = vpop.permute.xlu0 %876 }
  0xd6   : > { %v1001_v10 = vadd.low.f32.bf16 %v997_v0, %v882_v54  ;;  %v1002_v11 = vadd.high.f32.bf16 %v998_v1, %v882_v54  ;;  %v1003_v12 = vadd.low.f32.bf16 %v999_v6, %v877_v3  ;;  %v1004_v13 = vadd.high.f32.bf16 %v1000_v7, %v877_v3 }
  0xd9   : > { %v892_v62 = vpop.permute.xlu1 %891  ;;  %v887_v63 = vpop.permute.xlu0 %886 }
  0xda   : > { %v1005_v14 = vadd.low.f32.bf16 %v1001_v10, %v892_v62  ;;  %v1006_v15 = vadd.high.f32.bf16 %v1002_v11, %v892_v62  ;;  %v1007_v16 = vadd.low.f32.bf16 %v1003_v12, %v887_v63  ;;  %v1008_v17 = vadd.high.f32.bf16 %v1004_v13, %v887_v63 }
  0xdd   : > { %v902_v8 = vpop.permute.xlu1 %901  ;;  %v897_v9 = vpop.permute.xlu0 %896 }
  0xde   : > { %v1009_v20 = vadd.low.f32.bf16 %v1005_v14, %v902_v8  ;;  %v1010_v21 = vadd.high.f32.bf16 %v1006_v15, %v902_v8  ;;  %v1011_v22 = vadd.low.f32.bf16 %v1007_v16, %v897_v9  ;;  %v1012_v23 = vadd.high.f32.bf16 %v1008_v17, %v897_v9 }
  0xe1   : > { %v912_v18 = vpop.permute.xlu1 %911  ;;  %v907_v19 = vpop.permute.xlu0 %906 }
  0xe2   : > { %v1013_v24 = vadd.low.f32.bf16 %v1009_v20, %v912_v18  ;;  %v1014_v25 = vadd.high.f32.bf16 %v1010_v21, %v912_v18  ;;  %v1015_v26 = vadd.low.f32.bf16 %v1011_v22, %v907_v19  ;;  %v1016_v27 = vadd.high.f32.bf16 %v1012_v23, %v907_v19 }
  0xe5   : > { %v922_v28 = vpop.permute.xlu1 %921  ;;  %v917_v29 = vpop.permute.xlu0 %916 }
  0xe6   : > { %v1017_v30 = vadd.low.f32.bf16 %v1013_v24, %v922_v28  ;;  %v1018_v31 = vadd.high.f32.bf16 %v1014_v25, %v922_v28  ;;  %v1019_v32 = vadd.low.f32.bf16 %v1015_v26, %v917_v29  ;;  %v1020_v33 = vadd.high.f32.bf16 %v1016_v27, %v917_v29 }
  0xe8   : > { %564 = vst.msk [vmem:[%s116_s12 + $0x8] sm:$0xf] %vm561_vm0, %v1017_v30  ;;  %565 = vst.msk [vmem:[%s116_s12 + $0xc] sm:$0xf] %vm561_vm0, %v1018_v31 }
  0xe9   : > { %562 = vst.msk [vmem:[%s116_s12] sm:$0xf] %vm561_vm0, %v1019_v32  ;;  %563 = vst.msk [vmem:[%s116_s12 + $0x4] sm:$0xf] %vm561_vm0, %v1020_v33 }
  0xea PF: > { %s11_s6 = sadd.s32 1, %s1027_s6  }
  0xeb   : > { %p8_p4 = scmp.ge.s32.totalorder %s11_s6, 4  }
  0xed   :  { %10 = sbr.rel (!%p8_p4) target bundleno = 1 (0x1), region = 54 }

</bundles_post_ra>
